<compile_context>
chip_gen: v5e
topology: v5e:2x2
jax: 0.10.0
libtpu: 0.0.40
codegen_flags: <defaults>
</compile_context>

<pallas_src>
import functools

import jax
import jax.numpy as jnp
from jax.experimental import pallas as pl
from jax.experimental.pallas import tpu as pltpu
import numpy as np


def _corr_block_kernel(x_ref, w_ref, m_ref, out_ref, *, radius, W, ch):
    """One (C, L) block (L = TB*H*W pixels): fused fc0/fc1 -> K shifted dots."""
    side = 2 * radius + 1

    x = x_ref[...].astype(jnp.float32)          # (C, L)
    w = w_ref[...].astype(jnp.float32)          # (2*ch, C)  == [w0; w1]

    # Fused fc0/fc1: one MXU matmul, then split along (8-aligned) sublanes.
    f = jnp.dot(w, x, preferred_element_type=jnp.float32)   # (2*ch, L)
    f0 = f[:ch, :] * (1.0 / ch)                 # fold cal_corr's /c here (hoisted)
    f1 = f[ch:, :]

    # k = a*side + b: a -> x (column) offset, b -> y (row) offset — matches the
    # torch delta/meshgrid construction verified against the reference.
    for a in range(side):
        dxo = a - radius
        for b in range(side):
            dyo = b - radius
            k = a * side + b
            s = dyo * W + dxo                   # flat pixel shift (static int)
            # f1s[:, n] = f1[:, (n + s) mod L]; wrapped lanes are masked below.
            f1s = f1 if s == 0 else jnp.roll(f1, -s, axis=1)
            row = jnp.sum(f0 * f1s, axis=0, keepdims=True)   # (1, L)
            # lane-dense full-width row store, zeroing out-of-bounds taps
            out_ref[k:k + 1, :] = row * m_ref[k:k + 1, :]


def _window_mask(H, W, radius, tb):
    """(K, tb*H*W) float mask: 1 where the shifted pixel stays in-bounds."""
    side = 2 * radius + 1
    K = side * side
    ii, jj = np.meshgrid(np.arange(H), np.arange(W), indexing="ij")
    i_flat = ii.reshape(-1)
    j_flat = jj.reshape(-1)
    mask = np.zeros((K, H * W), np.float32)
    for a in range(side):
        dxo = a - radius
        for b in range(side):
            dyo = b - radius
            k = a * side + b
            valid = ((j_flat + dxo >= 0) & (j_flat + dxo < W) &
                     (i_flat + dyo >= 0) & (i_flat + dyo < H))
            mask[k] = valid.astype(np.float32)
    return np.tile(mask, (1, tb))


def _pick_tb(BT, HW, *, max_lanes=8192):
    """Largest TB dividing BT with TB*HW <= max_lanes lanes and TB*HW % 128 == 0;
    prefer >= 2 grid steps so v7x megacore can shard the parallel axis."""
    divs = [d for d in range(1, BT + 1) if BT % d == 0]
    ok = [d for d in divs if d * HW <= max_lanes and (d * HW) % 128 == 0]
    pref = [d for d in ok if BT // d >= 2]
    if pref:
        return max(pref)
    if ok:
        return max(ok)
    return BT   # block == full array dims (always a legal BlockSpec)


def corr_block_forward(x, w0, w1, *, radius=3, num_levels=1):
    """CorrBlock.forward.  x: (B, C, T, H, W); w0/w1: (C//2, C). -> (B, K, T, H, W)."""
    assert num_levels == 1  # see TODO(synk) above
    B, C, T, H, W = x.shape
    Ch = w0.shape[0]
    side = 2 * radius + 1
    K = side * side
    HW = H * W
    BT = B * T

    TB = _pick_tb(BT, HW)
    L = TB * HW
    grid = (BT // TB,)

    # (B, C, T, H, W) -> (C, B*T*H*W): channels on sublanes, pixels lane-dense.
    xf = jnp.transpose(x, (1, 0, 2, 3, 4)).reshape(C, BT * HW)
    w = jnp.concatenate([w0, w1], axis=0)                  # fused fc0 | fc1
    mask = jnp.asarray(_window_mask(H, W, radius, TB))     # (K, L)

    kernel = functools.partial(_corr_block_kernel, radius=radius, W=W, ch=Ch)
    out = pl.pallas_call(
        kernel,
        out_shape=jax.ShapeDtypeStruct((K, BT * HW), jnp.float32),
        grid_spec=pltpu.PrefetchScalarGridSpec(
            num_scalar_prefetch=0,
            grid=grid,
            in_specs=[
                pl.BlockSpec((C, L), lambda g: (0, g)),          # pixels blocked
                pl.BlockSpec((2 * Ch, C), lambda g: (0, 0)),     # weights (stationary)
                pl.BlockSpec((K, L), lambda g: (0, 0)),          # mask (stationary)
            ],
            out_specs=pl.BlockSpec((K, L), lambda g: (0, g)),    # lane-dense output
        ),
        compiler_params=pltpu.CompilerParams(
            dimension_semantics=("parallel",)),
    )(xf, w, mask)

    # (K, B*T*H*W) -> (K, B, T, H, W) -> (B, K, T, H, W)   (matches torch permute)
    out = out.reshape(K, B, T, H, W).transpose(1, 0, 2, 3, 4)
    return out.astype(jnp.float32)


def _reference(x, w0, w1, radius):
    """Pure-JAX reference mirroring the PyTorch forward (num_levels=1)."""
    B, C, T, H, W = x.shape
    HW = H * W
    side = 2 * radius + 1
    xf = jnp.transpose(x, (0, 2, 1, 3, 4)).reshape(B * T, C, HW)
    f0 = jnp.einsum('oc,bcq->boq', w0, xf)
    f1 = jnp.einsum('oc,bcq->boq', w1, xf)
    ch = w0.shape[0]
    corr = jnp.einsum('bcq,bcp->bqp', f0, f1) / ch          # (BT, HW, HW)
    corr = corr.reshape(B * T, HW, H, W)
    ii = jnp.arange(HW) // W
    jj = jnp.arange(HW) % W
    cols = []
    for wi in range(side):
        for wj in range(side):
            dx, dy = wi - radius, wj - radius
            yy, xx = ii + dy, jj + dx
            valid = (yy >= 0) & (yy < H) & (xx >= 0) & (xx < W)
            yc = jnp.clip(yy, 0, H - 1)
            xc = jnp.clip(xx, 0, W - 1)
            v = corr[:, jnp.arange(HW), yc, xc]             # (BT, HW)
            cols.append(jnp.where(valid[None, :], v, 0.0))
    out = jnp.stack(cols, axis=-1)                          # (BT, HW, K)
    return out.reshape(B, T, H, W, side * side).transpose(0, 4, 1, 2, 3)


if __name__ == "__main__":
    key = jax.random.PRNGKey(0)
    kx, k0, k1 = jax.random.split(key, 3)

    # Small shapes consistent with the module: input_dim=32, radius=3, num_levels=1.
    B, C, T, H, W = 2, 32, 2, 16, 16
    radius = 3
    Ch = C // 2

    x = jax.random.normal(kx, (B, C, T, H, W), dtype=jnp.float32)
    # Deterministic synthetic 1x1-conv weights (shape (out=C//2, in=C)).
    w0 = jax.random.normal(k0, (Ch, C), dtype=jnp.float32) / jnp.sqrt(C)
    w1 = jax.random.normal(k1, (Ch, C), dtype=jnp.float32) / jnp.sqrt(C)

    out = corr_block_forward(x, w0, w1, radius=radius, num_levels=1)
    out = jax.block_until_ready(out)

    K = (2 * radius + 1) ** 2
    assert out.shape == (B, K, T, H, W), out.shape
    ref = _reference(x, w0, w1, radius)
    np.testing.assert_allclose(np.asarray(out), np.asarray(ref),
                               rtol=1e-4, atol=1e-4)
    print("KERNEL_OK")
</pallas_src>

<mosaic_0001>
module attributes {stable_mosaic.version = 11 : i64} {
  func.func @_corr_block_kernel(%arg0: i32, %arg1: memref<32x512xf32, #tpu.memory_space<vmem>>, %arg2: memref<32x32xf32, #tpu.memory_space<vmem>>, %arg3: memref<49x512xf32, #tpu.memory_space<vmem>>, %arg4: memref<49x512xf32, #tpu.memory_space<vmem>>) attributes {dimension_semantics = [#tpu.dimension_semantics<parallel>], iteration_bounds = array<i64: 2>, scalar_prefetch = 0 : i64, scratch_operands = 0 : i64, tpu.core_type = #tpu.core_type<tc>, window_params = [{transform_indices = @transform_0, window_bounds = array<i64: 32, 512>}, {pipeline_mode = #tpu.pipeline_mode<synchronous>, transform_indices = @transform_1, window_bounds = array<i64: 32, 32>}, {pipeline_mode = #tpu.pipeline_mode<synchronous>, transform_indices = @transform_2, window_bounds = array<i64: 49, 512>}, {transform_indices = @transform_3, window_bounds = array<i64: 49, 512>}]} {
    %c0 = arith.constant 0 : index
    %c0_0 = arith.constant 0 : index
    %0 = vector.load %arg1[%c0, %c0_0] : memref<32x512xf32, #tpu.memory_space<vmem>>, vector<32x512xf32>
    %c0_1 = arith.constant 0 : index
    %c0_2 = arith.constant 0 : index
    %1 = vector.load %arg2[%c0_1, %c0_2] : memref<32x32xf32, #tpu.memory_space<vmem>>, vector<32x32xf32>
    %cst = arith.constant dense<0.000000e+00> : vector<32x512xf32>
    %2 = tpu.matmul %1, %0, %cst {dimension_numbers = #tpu.dot_dimension_numbers<[1], [0], [0], [1], [0, 0, 1, 1], [], []>} : vector<32x32xf32>, vector<32x512xf32>, vector<32x512xf32> -> vector<32x512xf32>
    %3 = vector.extract_strided_slice %2 {offsets = [0, 0], sizes = [16, 512], strides = [1, 1]} : vector<32x512xf32> to vector<16x512xf32>
    %cst_3 = arith.constant 6.250000e-02 : f32
    %4 = vector.broadcast %cst_3 : f32 to vector<16x512xf32>
    %5 = arith.mulf %3, %4 : vector<16x512xf32>
    %6 = vector.extract_strided_slice %2 {offsets = [16, 0], sizes = [16, 512], strides = [1, 1]} : vector<32x512xf32> to vector<16x512xf32>
    %7 = vector.extract_strided_slice %6 {offsets = [0, 461], sizes = [16, 51], strides = [1, 1]} : vector<16x512xf32> to vector<16x51xf32>
    %8 = vector.extract_strided_slice %6 {offsets = [0, 0], sizes = [16, 461], strides = [1, 1]} : vector<16x512xf32> to vector<16x461xf32>
    %9 = tpu.concatenate %7, %8 in 1 : vector<16x51xf32>, vector<16x461xf32> -> vector<16x512xf32>
    %10 = arith.mulf %5, %9 : vector<16x512xf32>
    %cst_4 = arith.constant dense<0.000000e+00> : vector<512xf32>
    %11 = vector.multi_reduction <add>, %10, %cst_4 [0] : vector<16x512xf32> to vector<512xf32>
    %12 = vector.shape_cast %11 : vector<512xf32> to vector<1x512xf32>
    %c0_5 = arith.constant 0 : index
    %c0_6 = arith.constant 0 : index
    %13 = vector.load %arg3[%c0_5, %c0_6] : memref<49x512xf32, #tpu.memory_space<vmem>>, vector<1x512xf32>
    %14 = arith.mulf %12, %13 : vector<1x512xf32>
    %c0_7 = arith.constant 0 : index
    %c0_8 = arith.constant 0 : index
    %15 = vector.load %arg4[%c0_7, %c0_8] : memref<49x512xf32, #tpu.memory_space<vmem>>, vector<1x512xf32>
    tpu.vector_store %arg4[%c0_7, %c0_8], %14 {strides = array<i32>} : memref<49x512xf32, #tpu.memory_space<vmem>>, vector<1x512xf32>,
    %16 = vector.extract_strided_slice %6 {offsets = [0, 477], sizes = [16, 35], strides = [1, 1]} : vector<16x512xf32> to vector<16x35xf32>
    %17 = vector.extract_strided_slice %6 {offsets = [0, 0], sizes = [16, 477], strides = [1, 1]} : vector<16x512xf32> to vector<16x477xf32>
    %18 = tpu.concatenate %16, %17 in 1 : vector<16x35xf32>, vector<16x477xf32> -> vector<16x512xf32>
    %19 = arith.mulf %5, %18 : vector<16x512xf32>
    %cst_9 = arith.constant dense<0.000000e+00> : vector<512xf32>
    %20 = vector.multi_reduction <add>, %19, %cst_9 [0] : vector<16x512xf32> to vector<512xf32>
    %21 = vector.shape_cast %20 : vector<512xf32> to vector<1x512xf32>
    %c1 = arith.constant 1 : index
    %c0_10 = arith.constant 0 : index
    %22 = vector.load %arg3[%c1, %c0_10] : memref<49x512xf32, #tpu.memory_space<vmem>>, vector<1x512xf32>
    %23 = arith.mulf %21, %22 : vector<1x512xf32>
    %c1_11 = arith.constant 1 : index
    %c0_12 = arith.constant 0 : index
    %24 = vector.load %arg4[%c1_11, %c0_12] : memref<49x512xf32, #tpu.memory_space<vmem>>, vector<1x512xf32>
    tpu.vector_store %arg4[%c1_11, %c0_12], %23 {strides = array<i32>} : memref<49x512xf32, #tpu.memory_space<vmem>>, vector<1x512xf32>,
    %25 = vector.extract_strided_slice %6 {offsets = [0, 493], sizes = [16, 19], strides = [1, 1]} : vector<16x512xf32> to vector<16x19xf32>
    %26 = vector.extract_strided_slice %6 {offsets = [0, 0], sizes = [16, 493], strides = [1, 1]} : vector<16x512xf32> to vector<16x493xf32>
    %27 = tpu.concatenate %25, %26 in 1 : vector<16x19xf32>, vector<16x493xf32> -> vector<16x512xf32>
    %28 = arith.mulf %5, %27 : vector<16x512xf32>
    %cst_13 = arith.constant dense<0.000000e+00> : vector<512xf32>
    %29 = vector.multi_reduction <add>, %28, %cst_13 [0] : vector<16x512xf32> to vector<512xf32>
    %30 = vector.shape_cast %29 : vector<512xf32> to vector<1x512xf32>
    %c2 = arith.constant 2 : index
    %c0_14 = arith.constant 0 : index
    %31 = vector.load %arg3[%c2, %c0_14] : memref<49x512xf32, #tpu.memory_space<vmem>>, vector<1x512xf32>
    %32 = arith.mulf %30, %31 : vector<1x512xf32>
    %c2_15 = arith.constant 2 : index
    %c0_16 = arith.constant 0 : index
    %33 = vector.load %arg4[%c2_15, %c0_16] : memref<49x512xf32, #tpu.memory_space<vmem>>, vector<1x512xf32>
    tpu.vector_store %arg4[%c2_15, %c0_16], %32 {strides = array<i32>} : memref<49x512xf32, #tpu.memory_space<vmem>>, vector<1x512xf32>,
    %34 = vector.extract_strided_slice %6 {offsets = [0, 509], sizes = [16, 3], strides = [1, 1]} : vector<16x512xf32> to vector<16x3xf32>
    %35 = vector.extract_strided_slice %6 {offsets = [0, 0], sizes = [16, 509], strides = [1, 1]} : vector<16x512xf32> to vector<16x509xf32>
    %36 = tpu.concatenate %34, %35 in 1 : vector<16x3xf32>, vector<16x509xf32> -> vector<16x512xf32>
    %37 = arith.mulf %5, %36 : vector<16x512xf32>
    %cst_17 = arith.constant dense<0.000000e+00> : vector<512xf32>
    %38 = vector.multi_reduction <add>, %37, %cst_17 [0] : vector<16x512xf32> to vector<512xf32>
    %39 = vector.shape_cast %38 : vector<512xf32> to vector<1x512xf32>
    %c3 = arith.constant 3 : index
    %c0_18 = arith.constant 0 : index
    %40 = vector.load %arg3[%c3, %c0_18] : memref<49x512xf32, #tpu.memory_space<vmem>>, vector<1x512xf32>
    %41 = arith.mulf %39, %40 : vector<1x512xf32>
    %c3_19 = arith.constant 3 : index
    %c0_20 = arith.constant 0 : index
    %42 = vector.load %arg4[%c3_19, %c0_20] : memref<49x512xf32, #tpu.memory_space<vmem>>, vector<1x512xf32>
    tpu.vector_store %arg4[%c3_19, %c0_20], %41 {strides = array<i32>} : memref<49x512xf32, #tpu.memory_space<vmem>>, vector<1x512xf32>,
    %43 = vector.extract_strided_slice %6 {offsets = [0, 13], sizes = [16, 499], strides = [1, 1]} : vector<16x512xf32> to vector<16x499xf32>
    %44 = vector.extract_strided_slice %6 {offsets = [0, 0], sizes = [16, 13], strides = [1, 1]} : vector<16x512xf32> to vector<16x13xf32>
    %45 = tpu.concatenate %43, %44 in 1 : vector<16x499xf32>, vector<16x13xf32> -> vector<16x512xf32>
    %46 = arith.mulf %5, %45 : vector<16x512xf32>
    %cst_21 = arith.constant dense<0.000000e+00> : vector<512xf32>
    %47 = vector.multi_reduction <add>, %46, %cst_21 [0] : vector<16x512xf32> to vector<512xf32>
    %48 = vector.shape_cast %47 : vector<512xf32> to vector<1x512xf32>
    %c4 = arith.constant 4 : index
    %c0_22 = arith.constant 0 : index
    %49 = vector.load %arg3[%c4, %c0_22] : memref<49x512xf32, #tpu.memory_space<vmem>>, vector<1x512xf32>
    %50 = arith.mulf %48, %49 : vector<1x512xf32>
    %c4_23 = arith.constant 4 : index
    %c0_24 = arith.constant 0 : index
    %51 = vector.load %arg4[%c4_23, %c0_24] : memref<49x512xf32, #tpu.memory_space<vmem>>, vector<1x512xf32>
    tpu.vector_store %arg4[%c4_23, %c0_24], %50 {strides = array<i32>} : memref<49x512xf32, #tpu.memory_space<vmem>>, vector<1x512xf32>,
    %52 = vector.extract_strided_slice %6 {offsets = [0, 29], sizes = [16, 483], strides = [1, 1]} : vector<16x512xf32> to vector<16x483xf32>
    %53 = vector.extract_strided_slice %6 {offsets = [0, 0], sizes = [16, 29], strides = [1, 1]} : vector<16x512xf32> to vector<16x29xf32>
    %54 = tpu.concatenate %52, %53 in 1 : vector<16x483xf32>, vector<16x29xf32> -> vector<16x512xf32>
    %55 = arith.mulf %5, %54 : vector<16x512xf32>
    %cst_25 = arith.constant dense<0.000000e+00> : vector<512xf32>
    %56 = vector.multi_reduction <add>, %55, %cst_25 [0] : vector<16x512xf32> to vector<512xf32>
    %57 = vector.shape_cast %56 : vector<512xf32> to vector<1x512xf32>
    %c5 = arith.constant 5 : index
    %c0_26 = arith.constant 0 : index
    %58 = vector.load %arg3[%c5, %c0_26] : memref<49x512xf32, #tpu.memory_space<vmem>>, vector<1x512xf32>
    %59 = arith.mulf %57, %58 : vector<1x512xf32>
    %c5_27 = arith.constant 5 : index
    %c0_28 = arith.constant 0 : index
    %60 = vector.load %arg4[%c5_27, %c0_28] : memref<49x512xf32, #tpu.memory_space<vmem>>, vector<1x512xf32>
    tpu.vector_store %arg4[%c5_27, %c0_28], %59 {strides = array<i32>} : memref<49x512xf32, #tpu.memory_space<vmem>>, vector<1x512xf32>,
    %61 = vector.extract_strided_slice %6 {offsets = [0, 45], sizes = [16, 467], strides = [1, 1]} : vector<16x512xf32> to vector<16x467xf32>
    %62 = vector.extract_strided_slice %6 {offsets = [0, 0], sizes = [16, 45], strides = [1, 1]} : vector<16x512xf32> to vector<16x45xf32>
    %63 = tpu.concatenate %61, %62 in 1 : vector<16x467xf32>, vector<16x45xf32> -> vector<16x512xf32>
    %64 = arith.mulf %5, %63 : vector<16x512xf32>
    %cst_29 = arith.constant dense<0.000000e+00> : vector<512xf32>
    %65 = vector.multi_reduction <add>, %64, %cst_29 [0] : vector<16x512xf32> to vector<512xf32>
    %66 = vector.shape_cast %65 : vector<512xf32> to vector<1x512xf32>
    %c6 = arith.constant 6 : index
    %c0_30 = arith.constant 0 : index
    %67 = vector.load %arg3[%c6, %c0_30] : memref<49x512xf32, #tpu.memory_space<vmem>>, vector<1x512xf32>
    %68 = arith.mulf %66, %67 : vector<1x512xf32>
    %c6_31 = arith.constant 6 : index
    %c0_32 = arith.constant 0 : index
    %69 = vector.load %arg4[%c6_31, %c0_32] : memref<49x512xf32, #tpu.memory_space<vmem>>, vector<1x512xf32>
    tpu.vector_store %arg4[%c6_31, %c0_32], %68 {strides = array<i32>} : memref<49x512xf32, #tpu.memory_space<vmem>>, vector<1x512xf32>,
    %70 = vector.extract_strided_slice %6 {offsets = [0, 462], sizes = [16, 50], strides = [1, 1]} : vector<16x512xf32> to vector<16x50xf32>
    %71 = vector.extract_strided_slice %6 {offsets = [0, 0], sizes = [16, 462], strides = [1, 1]} : vector<16x512xf32> to vector<16x462xf32>
    %72 = tpu.concatenate %70, %71 in 1 : vector<16x50xf32>, vector<16x462xf32> -> vector<16x512xf32>
    %73 = arith.mulf %5, %72 : vector<16x512xf32>
    %cst_33 = arith.constant dense<0.000000e+00> : vector<512xf32>
    %74 = vector.multi_reduction <add>, %73, %cst_33 [0] : vector<16x512xf32> to vector<512xf32>
    %75 = vector.shape_cast %74 : vector<512xf32> to vector<1x512xf32>
    %c7 = arith.constant 7 : index
    %c0_34 = arith.constant 0 : index
    %76 = vector.load %arg3[%c7, %c0_34] : memref<49x512xf32, #tpu.memory_space<vmem>>, vector<1x512xf32>
    %77 = arith.mulf %75, %76 : vector<1x512xf32>
    %c7_35 = arith.constant 7 : index
    %c0_36 = arith.constant 0 : index
    %78 = vector.load %arg4[%c7_35, %c0_36] : memref<49x512xf32, #tpu.memory_space<vmem>>, vector<1x512xf32>
    tpu.vector_store %arg4[%c7_35, %c0_36], %77 {strides = array<i32>} : memref<49x512xf32, #tpu.memory_space<vmem>>, vector<1x512xf32>,
    %79 = vector.extract_strided_slice %6 {offsets = [0, 478], sizes = [16, 34], strides = [1, 1]} : vector<16x512xf32> to vector<16x34xf32>
    %80 = vector.extract_strided_slice %6 {offsets = [0, 0], sizes = [16, 478], strides = [1, 1]} : vector<16x512xf32> to vector<16x478xf32>
    %81 = tpu.concatenate %79, %80 in 1 : vector<16x34xf32>, vector<16x478xf32> -> vector<16x512xf32>
    %82 = arith.mulf %5, %81 : vector<16x512xf32>
    %cst_37 = arith.constant dense<0.000000e+00> : vector<512xf32>
    %83 = vector.multi_reduction <add>, %82, %cst_37 [0] : vector<16x512xf32> to vector<512xf32>
    %84 = vector.shape_cast %83 : vector<512xf32> to vector<1x512xf32>
    %c8 = arith.constant 8 : index
    %c0_38 = arith.constant 0 : index
    %85 = vector.load %arg3[%c8, %c0_38] : memref<49x512xf32, #tpu.memory_space<vmem>>, vector<1x512xf32>
    %86 = arith.mulf %84, %85 : vector<1x512xf32>
    %c8_39 = arith.constant 8 : index
    %c0_40 = arith.constant 0 : index
    %87 = vector.load %arg4[%c8_39, %c0_40] : memref<49x512xf32, #tpu.memory_space<vmem>>, vector<1x512xf32>
    tpu.vector_store %arg4[%c8_39, %c0_40], %86 {strides = array<i32>} : memref<49x512xf32, #tpu.memory_space<vmem>>, vector<1x512xf32>,
    %88 = vector.extract_strided_slice %6 {offsets = [0, 494], sizes = [16, 18], strides = [1, 1]} : vector<16x512xf32> to vector<16x18xf32>
    %89 = vector.extract_strided_slice %6 {offsets = [0, 0], sizes = [16, 494], strides = [1, 1]} : vector<16x512xf32> to vector<16x494xf32>
    %90 = tpu.concatenate %88, %89 in 1 : vector<16x18xf32>, vector<16x494xf32> -> vector<16x512xf32>
    %91 = arith.mulf %5, %90 : vector<16x512xf32>
    %cst_41 = arith.constant dense<0.000000e+00> : vector<512xf32>
    %92 = vector.multi_reduction <add>, %91, %cst_41 [0] : vector<16x512xf32> to vector<512xf32>
    %93 = vector.shape_cast %92 : vector<512xf32> to vector<1x512xf32>
    %c9 = arith.constant 9 : index
    %c0_42 = arith.constant 0 : index
    %94 = vector.load %arg3[%c9, %c0_42] : memref<49x512xf32, #tpu.memory_space<vmem>>, vector<1x512xf32>
    %95 = arith.mulf %93, %94 : vector<1x512xf32>
    %c9_43 = arith.constant 9 : index
    %c0_44 = arith.constant 0 : index
    %96 = vector.load %arg4[%c9_43, %c0_44] : memref<49x512xf32, #tpu.memory_space<vmem>>, vector<1x512xf32>
    tpu.vector_store %arg4[%c9_43, %c0_44], %95 {strides = array<i32>} : memref<49x512xf32, #tpu.memory_space<vmem>>, vector<1x512xf32>,
    %97 = vector.extract_strided_slice %6 {offsets = [0, 510], sizes = [16, 2], strides = [1, 1]} : vector<16x512xf32> to vector<16x2xf32>
    %98 = vector.extract_strided_slice %6 {offsets = [0, 0], sizes = [16, 510], strides = [1, 1]} : vector<16x512xf32> to vector<16x510xf32>
    %99 = tpu.concatenate %97, %98 in 1 : vector<16x2xf32>, vector<16x510xf32> -> vector<16x512xf32>
    %100 = arith.mulf %5, %99 : vector<16x512xf32>
    %cst_45 = arith.constant dense<0.000000e+00> : vector<512xf32>
    %101 = vector.multi_reduction <add>, %100, %cst_45 [0] : vector<16x512xf32> to vector<512xf32>
    %102 = vector.shape_cast %101 : vector<512xf32> to vector<1x512xf32>
    %c10 = arith.constant 10 : index
    %c0_46 = arith.constant 0 : index
    %103 = vector.load %arg3[%c10, %c0_46] : memref<49x512xf32, #tpu.memory_space<vmem>>, vector<1x512xf32>
    %104 = arith.mulf %102, %103 : vector<1x512xf32>
    %c10_47 = arith.constant 10 : index
    %c0_48 = arith.constant 0 : index
    %105 = vector.load %arg4[%c10_47, %c0_48] : memref<49x512xf32, #tpu.memory_space<vmem>>, vector<1x512xf32>
    tpu.vector_store %arg4[%c10_47, %c0_48], %104 {strides = array<i32>} : memref<49x512xf32, #tpu.memory_space<vmem>>, vector<1x512xf32>,
    %106 = vector.extract_strided_slice %6 {offsets = [0, 14], sizes = [16, 498], strides = [1, 1]} : vector<16x512xf32> to vector<16x498xf32>
    %107 = vector.extract_strided_slice %6 {offsets = [0, 0], sizes = [16, 14], strides = [1, 1]} : vector<16x512xf32> to vector<16x14xf32>
    %108 = tpu.concatenate %106, %107 in 1 : vector<16x498xf32>, vector<16x14xf32> -> vector<16x512xf32>
    %109 = arith.mulf %5, %108 : vector<16x512xf32>
    %cst_49 = arith.constant dense<0.000000e+00> : vector<512xf32>
    %110 = vector.multi_reduction <add>, %109, %cst_49 [0] : vector<16x512xf32> to vector<512xf32>
    %111 = vector.shape_cast %110 : vector<512xf32> to vector<1x512xf32>
    %c11 = arith.constant 11 : index
    %c0_50 = arith.constant 0 : index
    %112 = vector.load %arg3[%c11, %c0_50] : memref<49x512xf32, #tpu.memory_space<vmem>>, vector<1x512xf32>
    %113 = arith.mulf %111, %112 : vector<1x512xf32>
    %c11_51 = arith.constant 11 : index
    %c0_52 = arith.constant 0 : index
    %114 = vector.load %arg4[%c11_51, %c0_52] : memref<49x512xf32, #tpu.memory_space<vmem>>, vector<1x512xf32>
    tpu.vector_store %arg4[%c11_51, %c0_52], %113 {strides = array<i32>} : memref<49x512xf32, #tpu.memory_space<vmem>>, vector<1x512xf32>,
    %115 = vector.extract_strided_slice %6 {offsets = [0, 30], sizes = [16, 482], strides = [1, 1]} : vector<16x512xf32> to vector<16x482xf32>
    %116 = vector.extract_strided_slice %6 {offsets = [0, 0], sizes = [16, 30], strides = [1, 1]} : vector<16x512xf32> to vector<16x30xf32>
    %117 = tpu.concatenate %115, %116 in 1 : vector<16x482xf32>, vector<16x30xf32> -> vector<16x512xf32>
    %118 = arith.mulf %5, %117 : vector<16x512xf32>
    %cst_53 = arith.constant dense<0.000000e+00> : vector<512xf32>
    %119 = vector.multi_reduction <add>, %118, %cst_53 [0] : vector<16x512xf32> to vector<512xf32>
    %120 = vector.shape_cast %119 : vector<512xf32> to vector<1x512xf32>
    %c12 = arith.constant 12 : index
    %c0_54 = arith.constant 0 : index
    %121 = vector.load %arg3[%c12, %c0_54] : memref<49x512xf32, #tpu.memory_space<vmem>>, vector<1x512xf32>
    %122 = arith.mulf %120, %121 : vector<1x512xf32>
    %c12_55 = arith.constant 12 : index
    %c0_56 = arith.constant 0 : index
    %123 = vector.load %arg4[%c12_55, %c0_56] : memref<49x512xf32, #tpu.memory_space<vmem>>, vector<1x512xf32>
    tpu.vector_store %arg4[%c12_55, %c0_56], %122 {strides = array<i32>} : memref<49x512xf32, #tpu.memory_space<vmem>>, vector<1x512xf32>,
    %124 = vector.extract_strided_slice %6 {offsets = [0, 46], sizes = [16, 466], strides = [1, 1]} : vector<16x512xf32> to vector<16x466xf32>
    %125 = vector.extract_strided_slice %6 {offsets = [0, 0], sizes = [16, 46], strides = [1, 1]} : vector<16x512xf32> to vector<16x46xf32>
    %126 = tpu.concatenate %124, %125 in 1 : vector<16x466xf32>, vector<16x46xf32> -> vector<16x512xf32>
    %127 = arith.mulf %5, %126 : vector<16x512xf32>
    %cst_57 = arith.constant dense<0.000000e+00> : vector<512xf32>
    %128 = vector.multi_reduction <add>, %127, %cst_57 [0] : vector<16x512xf32> to vector<512xf32>
    %129 = vector.shape_cast %128 : vector<512xf32> to vector<1x512xf32>
    %c13 = arith.constant 13 : index
    %c0_58 = arith.constant 0 : index
    %130 = vector.load %arg3[%c13, %c0_58] : memref<49x512xf32, #tpu.memory_space<vmem>>, vector<1x512xf32>
    %131 = arith.mulf %129, %130 : vector<1x512xf32>
    %c13_59 = arith.constant 13 : index
    %c0_60 = arith.constant 0 : index
    %132 = vector.load %arg4[%c13_59, %c0_60] : memref<49x512xf32, #tpu.memory_space<vmem>>, vector<1x512xf32>
    tpu.vector_store %arg4[%c13_59, %c0_60], %131 {strides = array<i32>} : memref<49x512xf32, #tpu.memory_space<vmem>>, vector<1x512xf32>,
    %133 = vector.extract_strided_slice %6 {offsets = [0, 463], sizes = [16, 49], strides = [1, 1]} : vector<16x512xf32> to vector<16x49xf32>
    %134 = vector.extract_strided_slice %6 {offsets = [0, 0], sizes = [16, 463], strides = [1, 1]} : vector<16x512xf32> to vector<16x463xf32>
    %135 = tpu.concatenate %133, %134 in 1 : vector<16x49xf32>, vector<16x463xf32> -> vector<16x512xf32>
    %136 = arith.mulf %5, %135 : vector<16x512xf32>
    %cst_61 = arith.constant dense<0.000000e+00> : vector<512xf32>
    %137 = vector.multi_reduction <add>, %136, %cst_61 [0] : vector<16x512xf32> to vector<512xf32>
    %138 = vector.shape_cast %137 : vector<512xf32> to vector<1x512xf32>
    %c14 = arith.constant 14 : index
    %c0_62 = arith.constant 0 : index
    %139 = vector.load %arg3[%c14, %c0_62] : memref<49x512xf32, #tpu.memory_space<vmem>>, vector<1x512xf32>
    %140 = arith.mulf %138, %139 : vector<1x512xf32>
    %c14_63 = arith.constant 14 : index
    %c0_64 = arith.constant 0 : index
    %141 = vector.load %arg4[%c14_63, %c0_64] : memref<49x512xf32, #tpu.memory_space<vmem>>, vector<1x512xf32>
    tpu.vector_store %arg4[%c14_63, %c0_64], %140 {strides = array<i32>} : memref<49x512xf32, #tpu.memory_space<vmem>>, vector<1x512xf32>,
    %142 = vector.extract_strided_slice %6 {offsets = [0, 479], sizes = [16, 33], strides = [1, 1]} : vector<16x512xf32> to vector<16x33xf32>
    %143 = vector.extract_strided_slice %6 {offsets = [0, 0], sizes = [16, 479], strides = [1, 1]} : vector<16x512xf32> to vector<16x479xf32>
    %144 = tpu.concatenate %142, %143 in 1 : vector<16x33xf32>, vector<16x479xf32> -> vector<16x512xf32>
    %145 = arith.mulf %5, %144 : vector<16x512xf32>
    %cst_65 = arith.constant dense<0.000000e+00> : vector<512xf32>
    %146 = vector.multi_reduction <add>, %145, %cst_65 [0] : vector<16x512xf32> to vector<512xf32>
    %147 = vector.shape_cast %146 : vector<512xf32> to vector<1x512xf32>
    %c15 = arith.constant 15 : index
    %c0_66 = arith.constant 0 : index
    %148 = vector.load %arg3[%c15, %c0_66] : memref<49x512xf32, #tpu.memory_space<vmem>>, vector<1x512xf32>
    %149 = arith.mulf %147, %148 : vector<1x512xf32>
    %c15_67 = arith.constant 15 : index
    %c0_68 = arith.constant 0 : index
    %150 = vector.load %arg4[%c15_67, %c0_68] : memref<49x512xf32, #tpu.memory_space<vmem>>, vector<1x512xf32>
    tpu.vector_store %arg4[%c15_67, %c0_68], %149 {strides = array<i32>} : memref<49x512xf32, #tpu.memory_space<vmem>>, vector<1x512xf32>,
    %151 = vector.extract_strided_slice %6 {offsets = [0, 495], sizes = [16, 17], strides = [1, 1]} : vector<16x512xf32> to vector<16x17xf32>
    %152 = vector.extract_strided_slice %6 {offsets = [0, 0], sizes = [16, 495], strides = [1, 1]} : vector<16x512xf32> to vector<16x495xf32>
    %153 = tpu.concatenate %151, %152 in 1 : vector<16x17xf32>, vector<16x495xf32> -> vector<16x512xf32>
    %154 = arith.mulf %5, %153 : vector<16x512xf32>
    %cst_69 = arith.constant dense<0.000000e+00> : vector<512xf32>
    %155 = vector.multi_reduction <add>, %154, %cst_69 [0] : vector<16x512xf32> to vector<512xf32>
    %156 = vector.shape_cast %155 : vector<512xf32> to vector<1x512xf32>
    %c16 = arith.constant 16 : index
    %c0_70 = arith.constant 0 : index
    %157 = vector.load %arg3[%c16, %c0_70] : memref<49x512xf32, #tpu.memory_space<vmem>>, vector<1x512xf32>
    %158 = arith.mulf %156, %157 : vector<1x512xf32>
    %c16_71 = arith.constant 16 : index
    %c0_72 = arith.constant 0 : index
    %159 = vector.load %arg4[%c16_71, %c0_72] : memref<49x512xf32, #tpu.memory_space<vmem>>, vector<1x512xf32>
    tpu.vector_store %arg4[%c16_71, %c0_72], %158 {strides = array<i32>} : memref<49x512xf32, #tpu.memory_space<vmem>>, vector<1x512xf32>,
    %160 = vector.extract_strided_slice %6 {offsets = [0, 511], sizes = [16, 1], strides = [1, 1]} : vector<16x512xf32> to vector<16x1xf32>
    %161 = vector.extract_strided_slice %6 {offsets = [0, 0], sizes = [16, 511], strides = [1, 1]} : vector<16x512xf32> to vector<16x511xf32>
    %162 = tpu.concatenate %160, %161 in 1 : vector<16x1xf32>, vector<16x511xf32> -> vector<16x512xf32>
    %163 = arith.mulf %5, %162 : vector<16x512xf32>
    %cst_73 = arith.constant dense<0.000000e+00> : vector<512xf32>
    %164 = vector.multi_reduction <add>, %163, %cst_73 [0] : vector<16x512xf32> to vector<512xf32>
    %165 = vector.shape_cast %164 : vector<512xf32> to vector<1x512xf32>
    %c17 = arith.constant 17 : index
    %c0_74 = arith.constant 0 : index
    %166 = vector.load %arg3[%c17, %c0_74] : memref<49x512xf32, #tpu.memory_space<vmem>>, vector<1x512xf32>
    %167 = arith.mulf %165, %166 : vector<1x512xf32>
    %c17_75 = arith.constant 17 : index
    %c0_76 = arith.constant 0 : index
    %168 = vector.load %arg4[%c17_75, %c0_76] : memref<49x512xf32, #tpu.memory_space<vmem>>, vector<1x512xf32>
    tpu.vector_store %arg4[%c17_75, %c0_76], %167 {strides = array<i32>} : memref<49x512xf32, #tpu.memory_space<vmem>>, vector<1x512xf32>,
    %169 = vector.extract_strided_slice %6 {offsets = [0, 15], sizes = [16, 497], strides = [1, 1]} : vector<16x512xf32> to vector<16x497xf32>
    %170 = vector.extract_strided_slice %6 {offsets = [0, 0], sizes = [16, 15], strides = [1, 1]} : vector<16x512xf32> to vector<16x15xf32>
    %171 = tpu.concatenate %169, %170 in 1 : vector<16x497xf32>, vector<16x15xf32> -> vector<16x512xf32>
    %172 = arith.mulf %5, %171 : vector<16x512xf32>
    %cst_77 = arith.constant dense<0.000000e+00> : vector<512xf32>
    %173 = vector.multi_reduction <add>, %172, %cst_77 [0] : vector<16x512xf32> to vector<512xf32>
    %174 = vector.shape_cast %173 : vector<512xf32> to vector<1x512xf32>
    %c18 = arith.constant 18 : index
    %c0_78 = arith.constant 0 : index
    %175 = vector.load %arg3[%c18, %c0_78] : memref<49x512xf32, #tpu.memory_space<vmem>>, vector<1x512xf32>
    %176 = arith.mulf %174, %175 : vector<1x512xf32>
    %c18_79 = arith.constant 18 : index
    %c0_80 = arith.constant 0 : index
    %177 = vector.load %arg4[%c18_79, %c0_80] : memref<49x512xf32, #tpu.memory_space<vmem>>, vector<1x512xf32>
    tpu.vector_store %arg4[%c18_79, %c0_80], %176 {strides = array<i32>} : memref<49x512xf32, #tpu.memory_space<vmem>>, vector<1x512xf32>,
    %178 = vector.extract_strided_slice %6 {offsets = [0, 31], sizes = [16, 481], strides = [1, 1]} : vector<16x512xf32> to vector<16x481xf32>
    %179 = vector.extract_strided_slice %6 {offsets = [0, 0], sizes = [16, 31], strides = [1, 1]} : vector<16x512xf32> to vector<16x31xf32>
    %180 = tpu.concatenate %178, %179 in 1 : vector<16x481xf32>, vector<16x31xf32> -> vector<16x512xf32>
    %181 = arith.mulf %5, %180 : vector<16x512xf32>
    %cst_81 = arith.constant dense<0.000000e+00> : vector<512xf32>
    %182 = vector.multi_reduction <add>, %181, %cst_81 [0] : vector<16x512xf32> to vector<512xf32>
    %183 = vector.shape_cast %182 : vector<512xf32> to vector<1x512xf32>
    %c19 = arith.constant 19 : index
    %c0_82 = arith.constant 0 : index
    %184 = vector.load %arg3[%c19, %c0_82] : memref<49x512xf32, #tpu.memory_space<vmem>>, vector<1x512xf32>
    %185 = arith.mulf %183, %184 : vector<1x512xf32>
    %c19_83 = arith.constant 19 : index
    %c0_84 = arith.constant 0 : index
    %186 = vector.load %arg4[%c19_83, %c0_84] : memref<49x512xf32, #tpu.memory_space<vmem>>, vector<1x512xf32>
    tpu.vector_store %arg4[%c19_83, %c0_84], %185 {strides = array<i32>} : memref<49x512xf32, #tpu.memory_space<vmem>>, vector<1x512xf32>,
    %187 = vector.extract_strided_slice %6 {offsets = [0, 47], sizes = [16, 465], strides = [1, 1]} : vector<16x512xf32> to vector<16x465xf32>
    %188 = vector.extract_strided_slice %6 {offsets = [0, 0], sizes = [16, 47], strides = [1, 1]} : vector<16x512xf32> to vector<16x47xf32>
    %189 = tpu.concatenate %187, %188 in 1 : vector<16x465xf32>, vector<16x47xf32> -> vector<16x512xf32>
    %190 = arith.mulf %5, %189 : vector<16x512xf32>
    %cst_85 = arith.constant dense<0.000000e+00> : vector<512xf32>
    %191 = vector.multi_reduction <add>, %190, %cst_85 [0] : vector<16x512xf32> to vector<512xf32>
    %192 = vector.shape_cast %191 : vector<512xf32> to vector<1x512xf32>
    %c20 = arith.constant 20 : index
    %c0_86 = arith.constant 0 : index
    %193 = vector.load %arg3[%c20, %c0_86] : memref<49x512xf32, #tpu.memory_space<vmem>>, vector<1x512xf32>
    %194 = arith.mulf %192, %193 : vector<1x512xf32>
    %c20_87 = arith.constant 20 : index
    %c0_88 = arith.constant 0 : index
    %195 = vector.load %arg4[%c20_87, %c0_88] : memref<49x512xf32, #tpu.memory_space<vmem>>, vector<1x512xf32>
    tpu.vector_store %arg4[%c20_87, %c0_88], %194 {strides = array<i32>} : memref<49x512xf32, #tpu.memory_space<vmem>>, vector<1x512xf32>,
    %196 = vector.extract_strided_slice %6 {offsets = [0, 464], sizes = [16, 48], strides = [1, 1]} : vector<16x512xf32> to vector<16x48xf32>
    %197 = vector.extract_strided_slice %6 {offsets = [0, 0], sizes = [16, 464], strides = [1, 1]} : vector<16x512xf32> to vector<16x464xf32>
    %198 = tpu.concatenate %196, %197 in 1 : vector<16x48xf32>, vector<16x464xf32> -> vector<16x512xf32>
    %199 = arith.mulf %5, %198 : vector<16x512xf32>
    %cst_89 = arith.constant dense<0.000000e+00> : vector<512xf32>
    %200 = vector.multi_reduction <add>, %199, %cst_89 [0] : vector<16x512xf32> to vector<512xf32>
    %201 = vector.shape_cast %200 : vector<512xf32> to vector<1x512xf32>
    %c21 = arith.constant 21 : index
    %c0_90 = arith.constant 0 : index
    %202 = vector.load %arg3[%c21, %c0_90] : memref<49x512xf32, #tpu.memory_space<vmem>>, vector<1x512xf32>
    %203 = arith.mulf %201, %202 : vector<1x512xf32>
    %c21_91 = arith.constant 21 : index
    %c0_92 = arith.constant 0 : index
    %204 = vector.load %arg4[%c21_91, %c0_92] : memref<49x512xf32, #tpu.memory_space<vmem>>, vector<1x512xf32>
    tpu.vector_store %arg4[%c21_91, %c0_92], %203 {strides = array<i32>} : memref<49x512xf32, #tpu.memory_space<vmem>>, vector<1x512xf32>,
    %205 = vector.extract_strided_slice %6 {offsets = [0, 480], sizes = [16, 32], strides = [1, 1]} : vector<16x512xf32> to vector<16x32xf32>
    %206 = vector.extract_strided_slice %6 {offsets = [0, 0], sizes = [16, 480], strides = [1, 1]} : vector<16x512xf32> to vector<16x480xf32>
    %207 = tpu.concatenate %205, %206 in 1 : vector<16x32xf32>, vector<16x480xf32> -> vector<16x512xf32>
    %208 = arith.mulf %5, %207 : vector<16x512xf32>
    %cst_93 = arith.constant dense<0.000000e+00> : vector<512xf32>
    %209 = vector.multi_reduction <add>, %208, %cst_93 [0] : vector<16x512xf32> to vector<512xf32>
    %210 = vector.shape_cast %209 : vector<512xf32> to vector<1x512xf32>
    %c22 = arith.constant 22 : index
    %c0_94 = arith.constant 0 : index
    %211 = vector.load %arg3[%c22, %c0_94] : memref<49x512xf32, #tpu.memory_space<vmem>>, vector<1x512xf32>
    %212 = arith.mulf %210, %211 : vector<1x512xf32>
    %c22_95 = arith.constant 22 : index
    %c0_96 = arith.constant 0 : index
    %213 = vector.load %arg4[%c22_95, %c0_96] : memref<49x512xf32, #tpu.memory_space<vmem>>, vector<1x512xf32>
    tpu.vector_store %arg4[%c22_95, %c0_96], %212 {strides = array<i32>} : memref<49x512xf32, #tpu.memory_space<vmem>>, vector<1x512xf32>,
    %214 = vector.extract_strided_slice %6 {offsets = [0, 496], sizes = [16, 16], strides = [1, 1]} : vector<16x512xf32> to vector<16x16xf32>
    %215 = vector.extract_strided_slice %6 {offsets = [0, 0], sizes = [16, 496], strides = [1, 1]} : vector<16x512xf32> to vector<16x496xf32>
    %216 = tpu.concatenate %214, %215 in 1 : vector<16x16xf32>, vector<16x496xf32> -> vector<16x512xf32>
    %217 = arith.mulf %5, %216 : vector<16x512xf32>
    %cst_97 = arith.constant dense<0.000000e+00> : vector<512xf32>
    %218 = vector.multi_reduction <add>, %217, %cst_97 [0] : vector<16x512xf32> to vector<512xf32>
    %219 = vector.shape_cast %218 : vector<512xf32> to vector<1x512xf32>
    %c23 = arith.constant 23 : index
    %c0_98 = arith.constant 0 : index
    %220 = vector.load %arg3[%c23, %c0_98] : memref<49x512xf32, #tpu.memory_space<vmem>>, vector<1x512xf32>
    %221 = arith.mulf %219, %220 : vector<1x512xf32>
    %c23_99 = arith.constant 23 : index
    %c0_100 = arith.constant 0 : index
    %222 = vector.load %arg4[%c23_99, %c0_100] : memref<49x512xf32, #tpu.memory_space<vmem>>, vector<1x512xf32>
    tpu.vector_store %arg4[%c23_99, %c0_100], %221 {strides = array<i32>} : memref<49x512xf32, #tpu.memory_space<vmem>>, vector<1x512xf32>,
    %223 = arith.mulf %5, %6 : vector<16x512xf32>
    %cst_101 = arith.constant dense<0.000000e+00> : vector<512xf32>
    %224 = vector.multi_reduction <add>, %223, %cst_101 [0] : vector<16x512xf32> to vector<512xf32>
    %225 = vector.shape_cast %224 : vector<512xf32> to vector<1x512xf32>
    %c24 = arith.constant 24 : index
    %c0_102 = arith.constant 0 : index
    %226 = vector.load %arg3[%c24, %c0_102] : memref<49x512xf32, #tpu.memory_space<vmem>>, vector<1x512xf32>
    %227 = arith.mulf %225, %226 : vector<1x512xf32>
    %c24_103 = arith.constant 24 : index
    %c0_104 = arith.constant 0 : index
    %228 = vector.load %arg4[%c24_103, %c0_104] : memref<49x512xf32, #tpu.memory_space<vmem>>, vector<1x512xf32>
    tpu.vector_store %arg4[%c24_103, %c0_104], %227 {strides = array<i32>} : memref<49x512xf32, #tpu.memory_space<vmem>>, vector<1x512xf32>,
    %229 = vector.extract_strided_slice %6 {offsets = [0, 16], sizes = [16, 496], strides = [1, 1]} : vector<16x512xf32> to vector<16x496xf32>
    %230 = vector.extract_strided_slice %6 {offsets = [0, 0], sizes = [16, 16], strides = [1, 1]} : vector<16x512xf32> to vector<16x16xf32>
    %231 = tpu.concatenate %229, %230 in 1 : vector<16x496xf32>, vector<16x16xf32> -> vector<16x512xf32>
    %232 = arith.mulf %5, %231 : vector<16x512xf32>
    %cst_105 = arith.constant dense<0.000000e+00> : vector<512xf32>
    %233 = vector.multi_reduction <add>, %232, %cst_105 [0] : vector<16x512xf32> to vector<512xf32>
    %234 = vector.shape_cast %233 : vector<512xf32> to vector<1x512xf32>
    %c25 = arith.constant 25 : index
    %c0_106 = arith.constant 0 : index
    %235 = vector.load %arg3[%c25, %c0_106] : memref<49x512xf32, #tpu.memory_space<vmem>>, vector<1x512xf32>
    %236 = arith.mulf %234, %235 : vector<1x512xf32>
    %c25_107 = arith.constant 25 : index
    %c0_108 = arith.constant 0 : index
    %237 = vector.load %arg4[%c25_107, %c0_108] : memref<49x512xf32, #tpu.memory_space<vmem>>, vector<1x512xf32>
    tpu.vector_store %arg4[%c25_107, %c0_108], %236 {strides = array<i32>} : memref<49x512xf32, #tpu.memory_space<vmem>>, vector<1x512xf32>,
    %238 = vector.extract_strided_slice %6 {offsets = [0, 32], sizes = [16, 480], strides = [1, 1]} : vector<16x512xf32> to vector<16x480xf32>
    %239 = vector.extract_strided_slice %6 {offsets = [0, 0], sizes = [16, 32], strides = [1, 1]} : vector<16x512xf32> to vector<16x32xf32>
    %240 = tpu.concatenate %238, %239 in 1 : vector<16x480xf32>, vector<16x32xf32> -> vector<16x512xf32>
    %241 = arith.mulf %5, %240 : vector<16x512xf32>
    %cst_109 = arith.constant dense<0.000000e+00> : vector<512xf32>
    %242 = vector.multi_reduction <add>, %241, %cst_109 [0] : vector<16x512xf32> to vector<512xf32>
    %243 = vector.shape_cast %242 : vector<512xf32> to vector<1x512xf32>
    %c26 = arith.constant 26 : index
    %c0_110 = arith.constant 0 : index
    %244 = vector.load %arg3[%c26, %c0_110] : memref<49x512xf32, #tpu.memory_space<vmem>>, vector<1x512xf32>
    %245 = arith.mulf %243, %244 : vector<1x512xf32>
    %c26_111 = arith.constant 26 : index
    %c0_112 = arith.constant 0 : index
    %246 = vector.load %arg4[%c26_111, %c0_112] : memref<49x512xf32, #tpu.memory_space<vmem>>, vector<1x512xf32>
    tpu.vector_store %arg4[%c26_111, %c0_112], %245 {strides = array<i32>} : memref<49x512xf32, #tpu.memory_space<vmem>>, vector<1x512xf32>,
    %247 = vector.extract_strided_slice %6 {offsets = [0, 48], sizes = [16, 464], strides = [1, 1]} : vector<16x512xf32> to vector<16x464xf32>
    %248 = vector.extract_strided_slice %6 {offsets = [0, 0], sizes = [16, 48], strides = [1, 1]} : vector<16x512xf32> to vector<16x48xf32>
    %249 = tpu.concatenate %247, %248 in 1 : vector<16x464xf32>, vector<16x48xf32> -> vector<16x512xf32>
    %250 = arith.mulf %5, %249 : vector<16x512xf32>
    %cst_113 = arith.constant dense<0.000000e+00> : vector<512xf32>
    %251 = vector.multi_reduction <add>, %250, %cst_113 [0] : vector<16x512xf32> to vector<512xf32>
    %252 = vector.shape_cast %251 : vector<512xf32> to vector<1x512xf32>
    %c27 = arith.constant 27 : index
    %c0_114 = arith.constant 0 : index
    %253 = vector.load %arg3[%c27, %c0_114] : memref<49x512xf32, #tpu.memory_space<vmem>>, vector<1x512xf32>
    %254 = arith.mulf %252, %253 : vector<1x512xf32>
    %c27_115 = arith.constant 27 : index
    %c0_116 = arith.constant 0 : index
    %255 = vector.load %arg4[%c27_115, %c0_116] : memref<49x512xf32, #tpu.memory_space<vmem>>, vector<1x512xf32>
    tpu.vector_store %arg4[%c27_115, %c0_116], %254 {strides = array<i32>} : memref<49x512xf32, #tpu.memory_space<vmem>>, vector<1x512xf32>,
    %256 = vector.extract_strided_slice %6 {offsets = [0, 465], sizes = [16, 47], strides = [1, 1]} : vector<16x512xf32> to vector<16x47xf32>
    %257 = vector.extract_strided_slice %6 {offsets = [0, 0], sizes = [16, 465], strides = [1, 1]} : vector<16x512xf32> to vector<16x465xf32>
    %258 = tpu.concatenate %256, %257 in 1 : vector<16x47xf32>, vector<16x465xf32> -> vector<16x512xf32>
    %259 = arith.mulf %5, %258 : vector<16x512xf32>
    %cst_117 = arith.constant dense<0.000000e+00> : vector<512xf32>
    %260 = vector.multi_reduction <add>, %259, %cst_117 [0] : vector<16x512xf32> to vector<512xf32>
    %261 = vector.shape_cast %260 : vector<512xf32> to vector<1x512xf32>
    %c28 = arith.constant 28 : index
    %c0_118 = arith.constant 0 : index
    %262 = vector.load %arg3[%c28, %c0_118] : memref<49x512xf32, #tpu.memory_space<vmem>>, vector<1x512xf32>
    %263 = arith.mulf %261, %262 : vector<1x512xf32>
    %c28_119 = arith.constant 28 : index
    %c0_120 = arith.constant 0 : index
    %264 = vector.load %arg4[%c28_119, %c0_120] : memref<49x512xf32, #tpu.memory_space<vmem>>, vector<1x512xf32>
    tpu.vector_store %arg4[%c28_119, %c0_120], %263 {strides = array<i32>} : memref<49x512xf32, #tpu.memory_space<vmem>>, vector<1x512xf32>,
    %265 = vector.extract_strided_slice %6 {offsets = [0, 481], sizes = [16, 31], strides = [1, 1]} : vector<16x512xf32> to vector<16x31xf32>
    %266 = vector.extract_strided_slice %6 {offsets = [0, 0], sizes = [16, 481], strides = [1, 1]} : vector<16x512xf32> to vector<16x481xf32>
    %267 = tpu.concatenate %265, %266 in 1 : vector<16x31xf32>, vector<16x481xf32> -> vector<16x512xf32>
    %268 = arith.mulf %5, %267 : vector<16x512xf32>
    %cst_121 = arith.constant dense<0.000000e+00> : vector<512xf32>
    %269 = vector.multi_reduction <add>, %268, %cst_121 [0] : vector<16x512xf32> to vector<512xf32>
    %270 = vector.shape_cast %269 : vector<512xf32> to vector<1x512xf32>
    %c29 = arith.constant 29 : index
    %c0_122 = arith.constant 0 : index
    %271 = vector.load %arg3[%c29, %c0_122] : memref<49x512xf32, #tpu.memory_space<vmem>>, vector<1x512xf32>
    %272 = arith.mulf %270, %271 : vector<1x512xf32>
    %c29_123 = arith.constant 29 : index
    %c0_124 = arith.constant 0 : index
    %273 = vector.load %arg4[%c29_123, %c0_124] : memref<49x512xf32, #tpu.memory_space<vmem>>, vector<1x512xf32>
    tpu.vector_store %arg4[%c29_123, %c0_124], %272 {strides = array<i32>} : memref<49x512xf32, #tpu.memory_space<vmem>>, vector<1x512xf32>,
    %274 = vector.extract_strided_slice %6 {offsets = [0, 497], sizes = [16, 15], strides = [1, 1]} : vector<16x512xf32> to vector<16x15xf32>
    %275 = vector.extract_strided_slice %6 {offsets = [0, 0], sizes = [16, 497], strides = [1, 1]} : vector<16x512xf32> to vector<16x497xf32>
    %276 = tpu.concatenate %274, %275 in 1 : vector<16x15xf32>, vector<16x497xf32> -> vector<16x512xf32>
    %277 = arith.mulf %5, %276 : vector<16x512xf32>
    %cst_125 = arith.constant dense<0.000000e+00> : vector<512xf32>
    %278 = vector.multi_reduction <add>, %277, %cst_125 [0] : vector<16x512xf32> to vector<512xf32>
    %279 = vector.shape_cast %278 : vector<512xf32> to vector<1x512xf32>
    %c30 = arith.constant 30 : index
    %c0_126 = arith.constant 0 : index
    %280 = vector.load %arg3[%c30, %c0_126] : memref<49x512xf32, #tpu.memory_space<vmem>>, vector<1x512xf32>
    %281 = arith.mulf %279, %280 : vector<1x512xf32>
    %c30_127 = arith.constant 30 : index
    %c0_128 = arith.constant 0 : index
    %282 = vector.load %arg4[%c30_127, %c0_128] : memref<49x512xf32, #tpu.memory_space<vmem>>, vector<1x512xf32>
    tpu.vector_store %arg4[%c30_127, %c0_128], %281 {strides = array<i32>} : memref<49x512xf32, #tpu.memory_space<vmem>>, vector<1x512xf32>,
    %283 = vector.extract_strided_slice %6 {offsets = [0, 1], sizes = [16, 511], strides = [1, 1]} : vector<16x512xf32> to vector<16x511xf32>
    %284 = vector.extract_strided_slice %6 {offsets = [0, 0], sizes = [16, 1], strides = [1, 1]} : vector<16x512xf32> to vector<16x1xf32>
    %285 = tpu.concatenate %283, %284 in 1 : vector<16x511xf32>, vector<16x1xf32> -> vector<16x512xf32>
    %286 = arith.mulf %5, %285 : vector<16x512xf32>
    %cst_129 = arith.constant dense<0.000000e+00> : vector<512xf32>
    %287 = vector.multi_reduction <add>, %286, %cst_129 [0] : vector<16x512xf32> to vector<512xf32>
    %288 = vector.shape_cast %287 : vector<512xf32> to vector<1x512xf32>
    %c31 = arith.constant 31 : index
    %c0_130 = arith.constant 0 : index
    %289 = vector.load %arg3[%c31, %c0_130] : memref<49x512xf32, #tpu.memory_space<vmem>>, vector<1x512xf32>
    %290 = arith.mulf %288, %289 : vector<1x512xf32>
    %c31_131 = arith.constant 31 : index
    %c0_132 = arith.constant 0 : index
    %291 = vector.load %arg4[%c31_131, %c0_132] : memref<49x512xf32, #tpu.memory_space<vmem>>, vector<1x512xf32>
    tpu.vector_store %arg4[%c31_131, %c0_132], %290 {strides = array<i32>} : memref<49x512xf32, #tpu.memory_space<vmem>>, vector<1x512xf32>,
    %292 = vector.extract_strided_slice %6 {offsets = [0, 17], sizes = [16, 495], strides = [1, 1]} : vector<16x512xf32> to vector<16x495xf32>
    %293 = vector.extract_strided_slice %6 {offsets = [0, 0], sizes = [16, 17], strides = [1, 1]} : vector<16x512xf32> to vector<16x17xf32>
    %294 = tpu.concatenate %292, %293 in 1 : vector<16x495xf32>, vector<16x17xf32> -> vector<16x512xf32>
    %295 = arith.mulf %5, %294 : vector<16x512xf32>
    %cst_133 = arith.constant dense<0.000000e+00> : vector<512xf32>
    %296 = vector.multi_reduction <add>, %295, %cst_133 [0] : vector<16x512xf32> to vector<512xf32>
    %297 = vector.shape_cast %296 : vector<512xf32> to vector<1x512xf32>
    %c32 = arith.constant 32 : index
    %c0_134 = arith.constant 0 : index
    %298 = vector.load %arg3[%c32, %c0_134] : memref<49x512xf32, #tpu.memory_space<vmem>>, vector<1x512xf32>
    %299 = arith.mulf %297, %298 : vector<1x512xf32>
    %c32_135 = arith.constant 32 : index
    %c0_136 = arith.constant 0 : index
    %300 = vector.load %arg4[%c32_135, %c0_136] : memref<49x512xf32, #tpu.memory_space<vmem>>, vector<1x512xf32>
    tpu.vector_store %arg4[%c32_135, %c0_136], %299 {strides = array<i32>} : memref<49x512xf32, #tpu.memory_space<vmem>>, vector<1x512xf32>,
    %301 = vector.extract_strided_slice %6 {offsets = [0, 33], sizes = [16, 479], strides = [1, 1]} : vector<16x512xf32> to vector<16x479xf32>
    %302 = vector.extract_strided_slice %6 {offsets = [0, 0], sizes = [16, 33], strides = [1, 1]} : vector<16x512xf32> to vector<16x33xf32>
    %303 = tpu.concatenate %301, %302 in 1 : vector<16x479xf32>, vector<16x33xf32> -> vector<16x512xf32>
    %304 = arith.mulf %5, %303 : vector<16x512xf32>
    %cst_137 = arith.constant dense<0.000000e+00> : vector<512xf32>
    %305 = vector.multi_reduction <add>, %304, %cst_137 [0] : vector<16x512xf32> to vector<512xf32>
    %306 = vector.shape_cast %305 : vector<512xf32> to vector<1x512xf32>
    %c33 = arith.constant 33 : index
    %c0_138 = arith.constant 0 : index
    %307 = vector.load %arg3[%c33, %c0_138] : memref<49x512xf32, #tpu.memory_space<vmem>>, vector<1x512xf32>
    %308 = arith.mulf %306, %307 : vector<1x512xf32>
    %c33_139 = arith.constant 33 : index
    %c0_140 = arith.constant 0 : index
    %309 = vector.load %arg4[%c33_139, %c0_140] : memref<49x512xf32, #tpu.memory_space<vmem>>, vector<1x512xf32>
    tpu.vector_store %arg4[%c33_139, %c0_140], %308 {strides = array<i32>} : memref<49x512xf32, #tpu.memory_space<vmem>>, vector<1x512xf32>,
    %310 = vector.extract_strided_slice %6 {offsets = [0, 49], sizes = [16, 463], strides = [1, 1]} : vector<16x512xf32> to vector<16x463xf32>
    %311 = vector.extract_strided_slice %6 {offsets = [0, 0], sizes = [16, 49], strides = [1, 1]} : vector<16x512xf32> to vector<16x49xf32>
    %312 = tpu.concatenate %310, %311 in 1 : vector<16x463xf32>, vector<16x49xf32> -> vector<16x512xf32>
    %313 = arith.mulf %5, %312 : vector<16x512xf32>
    %cst_141 = arith.constant dense<0.000000e+00> : vector<512xf32>
    %314 = vector.multi_reduction <add>, %313, %cst_141 [0] : vector<16x512xf32> to vector<512xf32>
    %315 = vector.shape_cast %314 : vector<512xf32> to vector<1x512xf32>
    %c34 = arith.constant 34 : index
    %c0_142 = arith.constant 0 : index
    %316 = vector.load %arg3[%c34, %c0_142] : memref<49x512xf32, #tpu.memory_space<vmem>>, vector<1x512xf32>
    %317 = arith.mulf %315, %316 : vector<1x512xf32>
    %c34_143 = arith.constant 34 : index
    %c0_144 = arith.constant 0 : index
    %318 = vector.load %arg4[%c34_143, %c0_144] : memref<49x512xf32, #tpu.memory_space<vmem>>, vector<1x512xf32>
    tpu.vector_store %arg4[%c34_143, %c0_144], %317 {strides = array<i32>} : memref<49x512xf32, #tpu.memory_space<vmem>>, vector<1x512xf32>,
    %319 = vector.extract_strided_slice %6 {offsets = [0, 466], sizes = [16, 46], strides = [1, 1]} : vector<16x512xf32> to vector<16x46xf32>
    %320 = vector.extract_strided_slice %6 {offsets = [0, 0], sizes = [16, 466], strides = [1, 1]} : vector<16x512xf32> to vector<16x466xf32>
    %321 = tpu.concatenate %319, %320 in 1 : vector<16x46xf32>, vector<16x466xf32> -> vector<16x512xf32>
    %322 = arith.mulf %5, %321 : vector<16x512xf32>
    %cst_145 = arith.constant dense<0.000000e+00> : vector<512xf32>
    %323 = vector.multi_reduction <add>, %322, %cst_145 [0] : vector<16x512xf32> to vector<512xf32>
    %324 = vector.shape_cast %323 : vector<512xf32> to vector<1x512xf32>
    %c35 = arith.constant 35 : index
    %c0_146 = arith.constant 0 : index
    %325 = vector.load %arg3[%c35, %c0_146] : memref<49x512xf32, #tpu.memory_space<vmem>>, vector<1x512xf32>
    %326 = arith.mulf %324, %325 : vector<1x512xf32>
    %c35_147 = arith.constant 35 : index
    %c0_148 = arith.constant 0 : index
    %327 = vector.load %arg4[%c35_147, %c0_148] : memref<49x512xf32, #tpu.memory_space<vmem>>, vector<1x512xf32>
    tpu.vector_store %arg4[%c35_147, %c0_148], %326 {strides = array<i32>} : memref<49x512xf32, #tpu.memory_space<vmem>>, vector<1x512xf32>,
    %328 = vector.extract_strided_slice %6 {offsets = [0, 482], sizes = [16, 30], strides = [1, 1]} : vector<16x512xf32> to vector<16x30xf32>
    %329 = vector.extract_strided_slice %6 {offsets = [0, 0], sizes = [16, 482], strides = [1, 1]} : vector<16x512xf32> to vector<16x482xf32>
    %330 = tpu.concatenate %328, %329 in 1 : vector<16x30xf32>, vector<16x482xf32> -> vector<16x512xf32>
    %331 = arith.mulf %5, %330 : vector<16x512xf32>
    %cst_149 = arith.constant dense<0.000000e+00> : vector<512xf32>
    %332 = vector.multi_reduction <add>, %331, %cst_149 [0] : vector<16x512xf32> to vector<512xf32>
    %333 = vector.shape_cast %332 : vector<512xf32> to vector<1x512xf32>
    %c36 = arith.constant 36 : index
    %c0_150 = arith.constant 0 : index
    %334 = vector.load %arg3[%c36, %c0_150] : memref<49x512xf32, #tpu.memory_space<vmem>>, vector<1x512xf32>
    %335 = arith.mulf %333, %334 : vector<1x512xf32>
    %c36_151 = arith.constant 36 : index
    %c0_152 = arith.constant 0 : index
    %336 = vector.load %arg4[%c36_151, %c0_152] : memref<49x512xf32, #tpu.memory_space<vmem>>, vector<1x512xf32>
    tpu.vector_store %arg4[%c36_151, %c0_152], %335 {strides = array<i32>} : memref<49x512xf32, #tpu.memory_space<vmem>>, vector<1x512xf32>,
    %337 = vector.extract_strided_slice %6 {offsets = [0, 498], sizes = [16, 14], strides = [1, 1]} : vector<16x512xf32> to vector<16x14xf32>
    %338 = vector.extract_strided_slice %6 {offsets = [0, 0], sizes = [16, 498], strides = [1, 1]} : vector<16x512xf32> to vector<16x498xf32>
    %339 = tpu.concatenate %337, %338 in 1 : vector<16x14xf32>, vector<16x498xf32> -> vector<16x512xf32>
    %340 = arith.mulf %5, %339 : vector<16x512xf32>
    %cst_153 = arith.constant dense<0.000000e+00> : vector<512xf32>
    %341 = vector.multi_reduction <add>, %340, %cst_153 [0] : vector<16x512xf32> to vector<512xf32>
    %342 = vector.shape_cast %341 : vector<512xf32> to vector<1x512xf32>
    %c37 = arith.constant 37 : index
    %c0_154 = arith.constant 0 : index
    %343 = vector.load %arg3[%c37, %c0_154] : memref<49x512xf32, #tpu.memory_space<vmem>>, vector<1x512xf32>
    %344 = arith.mulf %342, %343 : vector<1x512xf32>
    %c37_155 = arith.constant 37 : index
    %c0_156 = arith.constant 0 : index
    %345 = vector.load %arg4[%c37_155, %c0_156] : memref<49x512xf32, #tpu.memory_space<vmem>>, vector<1x512xf32>
    tpu.vector_store %arg4[%c37_155, %c0_156], %344 {strides = array<i32>} : memref<49x512xf32, #tpu.memory_space<vmem>>, vector<1x512xf32>,
    %346 = vector.extract_strided_slice %6 {offsets = [0, 2], sizes = [16, 510], strides = [1, 1]} : vector<16x512xf32> to vector<16x510xf32>
    %347 = vector.extract_strided_slice %6 {offsets = [0, 0], sizes = [16, 2], strides = [1, 1]} : vector<16x512xf32> to vector<16x2xf32>
    %348 = tpu.concatenate %346, %347 in 1 : vector<16x510xf32>, vector<16x2xf32> -> vector<16x512xf32>
    %349 = arith.mulf %5, %348 : vector<16x512xf32>
    %cst_157 = arith.constant dense<0.000000e+00> : vector<512xf32>
    %350 = vector.multi_reduction <add>, %349, %cst_157 [0] : vector<16x512xf32> to vector<512xf32>
    %351 = vector.shape_cast %350 : vector<512xf32> to vector<1x512xf32>
    %c38 = arith.constant 38 : index
    %c0_158 = arith.constant 0 : index
    %352 = vector.load %arg3[%c38, %c0_158] : memref<49x512xf32, #tpu.memory_space<vmem>>, vector<1x512xf32>
    %353 = arith.mulf %351, %352 : vector<1x512xf32>
    %c38_159 = arith.constant 38 : index
    %c0_160 = arith.constant 0 : index
    %354 = vector.load %arg4[%c38_159, %c0_160] : memref<49x512xf32, #tpu.memory_space<vmem>>, vector<1x512xf32>
    tpu.vector_store %arg4[%c38_159, %c0_160], %353 {strides = array<i32>} : memref<49x512xf32, #tpu.memory_space<vmem>>, vector<1x512xf32>,
    %355 = vector.extract_strided_slice %6 {offsets = [0, 18], sizes = [16, 494], strides = [1, 1]} : vector<16x512xf32> to vector<16x494xf32>
    %356 = vector.extract_strided_slice %6 {offsets = [0, 0], sizes = [16, 18], strides = [1, 1]} : vector<16x512xf32> to vector<16x18xf32>
    %357 = tpu.concatenate %355, %356 in 1 : vector<16x494xf32>, vector<16x18xf32> -> vector<16x512xf32>
    %358 = arith.mulf %5, %357 : vector<16x512xf32>
    %cst_161 = arith.constant dense<0.000000e+00> : vector<512xf32>
    %359 = vector.multi_reduction <add>, %358, %cst_161 [0] : vector<16x512xf32> to vector<512xf32>
    %360 = vector.shape_cast %359 : vector<512xf32> to vector<1x512xf32>
    %c39 = arith.constant 39 : index
    %c0_162 = arith.constant 0 : index
    %361 = vector.load %arg3[%c39, %c0_162] : memref<49x512xf32, #tpu.memory_space<vmem>>, vector<1x512xf32>
    %362 = arith.mulf %360, %361 : vector<1x512xf32>
    %c39_163 = arith.constant 39 : index
    %c0_164 = arith.constant 0 : index
    %363 = vector.load %arg4[%c39_163, %c0_164] : memref<49x512xf32, #tpu.memory_space<vmem>>, vector<1x512xf32>
    tpu.vector_store %arg4[%c39_163, %c0_164], %362 {strides = array<i32>} : memref<49x512xf32, #tpu.memory_space<vmem>>, vector<1x512xf32>,
    %364 = vector.extract_strided_slice %6 {offsets = [0, 34], sizes = [16, 478], strides = [1, 1]} : vector<16x512xf32> to vector<16x478xf32>
    %365 = vector.extract_strided_slice %6 {offsets = [0, 0], sizes = [16, 34], strides = [1, 1]} : vector<16x512xf32> to vector<16x34xf32>
    %366 = tpu.concatenate %364, %365 in 1 : vector<16x478xf32>, vector<16x34xf32> -> vector<16x512xf32>
    %367 = arith.mulf %5, %366 : vector<16x512xf32>
    %cst_165 = arith.constant dense<0.000000e+00> : vector<512xf32>
    %368 = vector.multi_reduction <add>, %367, %cst_165 [0] : vector<16x512xf32> to vector<512xf32>
    %369 = vector.shape_cast %368 : vector<512xf32> to vector<1x512xf32>
    %c40 = arith.constant 40 : index
    %c0_166 = arith.constant 0 : index
    %370 = vector.load %arg3[%c40, %c0_166] : memref<49x512xf32, #tpu.memory_space<vmem>>, vector<1x512xf32>
    %371 = arith.mulf %369, %370 : vector<1x512xf32>
    %c40_167 = arith.constant 40 : index
    %c0_168 = arith.constant 0 : index
    %372 = vector.load %arg4[%c40_167, %c0_168] : memref<49x512xf32, #tpu.memory_space<vmem>>, vector<1x512xf32>
    tpu.vector_store %arg4[%c40_167, %c0_168], %371 {strides = array<i32>} : memref<49x512xf32, #tpu.memory_space<vmem>>, vector<1x512xf32>,
    %373 = vector.extract_strided_slice %6 {offsets = [0, 50], sizes = [16, 462], strides = [1, 1]} : vector<16x512xf32> to vector<16x462xf32>
    %374 = vector.extract_strided_slice %6 {offsets = [0, 0], sizes = [16, 50], strides = [1, 1]} : vector<16x512xf32> to vector<16x50xf32>
    %375 = tpu.concatenate %373, %374 in 1 : vector<16x462xf32>, vector<16x50xf32> -> vector<16x512xf32>
    %376 = arith.mulf %5, %375 : vector<16x512xf32>
    %cst_169 = arith.constant dense<0.000000e+00> : vector<512xf32>
    %377 = vector.multi_reduction <add>, %376, %cst_169 [0] : vector<16x512xf32> to vector<512xf32>
    %378 = vector.shape_cast %377 : vector<512xf32> to vector<1x512xf32>
    %c41 = arith.constant 41 : index
    %c0_170 = arith.constant 0 : index
    %379 = vector.load %arg3[%c41, %c0_170] : memref<49x512xf32, #tpu.memory_space<vmem>>, vector<1x512xf32>
    %380 = arith.mulf %378, %379 : vector<1x512xf32>
    %c41_171 = arith.constant 41 : index
    %c0_172 = arith.constant 0 : index
    %381 = vector.load %arg4[%c41_171, %c0_172] : memref<49x512xf32, #tpu.memory_space<vmem>>, vector<1x512xf32>
    tpu.vector_store %arg4[%c41_171, %c0_172], %380 {strides = array<i32>} : memref<49x512xf32, #tpu.memory_space<vmem>>, vector<1x512xf32>,
    %382 = vector.extract_strided_slice %6 {offsets = [0, 467], sizes = [16, 45], strides = [1, 1]} : vector<16x512xf32> to vector<16x45xf32>
    %383 = vector.extract_strided_slice %6 {offsets = [0, 0], sizes = [16, 467], strides = [1, 1]} : vector<16x512xf32> to vector<16x467xf32>
    %384 = tpu.concatenate %382, %383 in 1 : vector<16x45xf32>, vector<16x467xf32> -> vector<16x512xf32>
    %385 = arith.mulf %5, %384 : vector<16x512xf32>
    %cst_173 = arith.constant dense<0.000000e+00> : vector<512xf32>
    %386 = vector.multi_reduction <add>, %385, %cst_173 [0] : vector<16x512xf32> to vector<512xf32>
    %387 = vector.shape_cast %386 : vector<512xf32> to vector<1x512xf32>
    %c42 = arith.constant 42 : index
    %c0_174 = arith.constant 0 : index
    %388 = vector.load %arg3[%c42, %c0_174] : memref<49x512xf32, #tpu.memory_space<vmem>>, vector<1x512xf32>
    %389 = arith.mulf %387, %388 : vector<1x512xf32>
    %c42_175 = arith.constant 42 : index
    %c0_176 = arith.constant 0 : index
    %390 = vector.load %arg4[%c42_175, %c0_176] : memref<49x512xf32, #tpu.memory_space<vmem>>, vector<1x512xf32>
    tpu.vector_store %arg4[%c42_175, %c0_176], %389 {strides = array<i32>} : memref<49x512xf32, #tpu.memory_space<vmem>>, vector<1x512xf32>,
    %391 = vector.extract_strided_slice %6 {offsets = [0, 483], sizes = [16, 29], strides = [1, 1]} : vector<16x512xf32> to vector<16x29xf32>
    %392 = vector.extract_strided_slice %6 {offsets = [0, 0], sizes = [16, 483], strides = [1, 1]} : vector<16x512xf32> to vector<16x483xf32>
    %393 = tpu.concatenate %391, %392 in 1 : vector<16x29xf32>, vector<16x483xf32> -> vector<16x512xf32>
    %394 = arith.mulf %5, %393 : vector<16x512xf32>
    %cst_177 = arith.constant dense<0.000000e+00> : vector<512xf32>
    %395 = vector.multi_reduction <add>, %394, %cst_177 [0] : vector<16x512xf32> to vector<512xf32>
    %396 = vector.shape_cast %395 : vector<512xf32> to vector<1x512xf32>
    %c43 = arith.constant 43 : index
    %c0_178 = arith.constant 0 : index
    %397 = vector.load %arg3[%c43, %c0_178] : memref<49x512xf32, #tpu.memory_space<vmem>>, vector<1x512xf32>
    %398 = arith.mulf %396, %397 : vector<1x512xf32>
    %c43_179 = arith.constant 43 : index
    %c0_180 = arith.constant 0 : index
    %399 = vector.load %arg4[%c43_179, %c0_180] : memref<49x512xf32, #tpu.memory_space<vmem>>, vector<1x512xf32>
    tpu.vector_store %arg4[%c43_179, %c0_180], %398 {strides = array<i32>} : memref<49x512xf32, #tpu.memory_space<vmem>>, vector<1x512xf32>,
    %400 = vector.extract_strided_slice %6 {offsets = [0, 499], sizes = [16, 13], strides = [1, 1]} : vector<16x512xf32> to vector<16x13xf32>
    %401 = vector.extract_strided_slice %6 {offsets = [0, 0], sizes = [16, 499], strides = [1, 1]} : vector<16x512xf32> to vector<16x499xf32>
    %402 = tpu.concatenate %400, %401 in 1 : vector<16x13xf32>, vector<16x499xf32> -> vector<16x512xf32>
    %403 = arith.mulf %5, %402 : vector<16x512xf32>
    %cst_181 = arith.constant dense<0.000000e+00> : vector<512xf32>
    %404 = vector.multi_reduction <add>, %403, %cst_181 [0] : vector<16x512xf32> to vector<512xf32>
    %405 = vector.shape_cast %404 : vector<512xf32> to vector<1x512xf32>
    %c44 = arith.constant 44 : index
    %c0_182 = arith.constant 0 : index
    %406 = vector.load %arg3[%c44, %c0_182] : memref<49x512xf32, #tpu.memory_space<vmem>>, vector<1x512xf32>
    %407 = arith.mulf %405, %406 : vector<1x512xf32>
    %c44_183 = arith.constant 44 : index
    %c0_184 = arith.constant 0 : index
    %408 = vector.load %arg4[%c44_183, %c0_184] : memref<49x512xf32, #tpu.memory_space<vmem>>, vector<1x512xf32>
    tpu.vector_store %arg4[%c44_183, %c0_184], %407 {strides = array<i32>} : memref<49x512xf32, #tpu.memory_space<vmem>>, vector<1x512xf32>,
    %409 = vector.extract_strided_slice %6 {offsets = [0, 3], sizes = [16, 509], strides = [1, 1]} : vector<16x512xf32> to vector<16x509xf32>
    %410 = vector.extract_strided_slice %6 {offsets = [0, 0], sizes = [16, 3], strides = [1, 1]} : vector<16x512xf32> to vector<16x3xf32>
    %411 = tpu.concatenate %409, %410 in 1 : vector<16x509xf32>, vector<16x3xf32> -> vector<16x512xf32>
    %412 = arith.mulf %5, %411 : vector<16x512xf32>
    %cst_185 = arith.constant dense<0.000000e+00> : vector<512xf32>
    %413 = vector.multi_reduction <add>, %412, %cst_185 [0] : vector<16x512xf32> to vector<512xf32>
    %414 = vector.shape_cast %413 : vector<512xf32> to vector<1x512xf32>
    %c45 = arith.constant 45 : index
    %c0_186 = arith.constant 0 : index
    %415 = vector.load %arg3[%c45, %c0_186] : memref<49x512xf32, #tpu.memory_space<vmem>>, vector<1x512xf32>
    %416 = arith.mulf %414, %415 : vector<1x512xf32>
    %c45_187 = arith.constant 45 : index
    %c0_188 = arith.constant 0 : index
    %417 = vector.load %arg4[%c45_187, %c0_188] : memref<49x512xf32, #tpu.memory_space<vmem>>, vector<1x512xf32>
    tpu.vector_store %arg4[%c45_187, %c0_188], %416 {strides = array<i32>} : memref<49x512xf32, #tpu.memory_space<vmem>>, vector<1x512xf32>,
    %418 = vector.extract_strided_slice %6 {offsets = [0, 19], sizes = [16, 493], strides = [1, 1]} : vector<16x512xf32> to vector<16x493xf32>
    %419 = vector.extract_strided_slice %6 {offsets = [0, 0], sizes = [16, 19], strides = [1, 1]} : vector<16x512xf32> to vector<16x19xf32>
    %420 = tpu.concatenate %418, %419 in 1 : vector<16x493xf32>, vector<16x19xf32> -> vector<16x512xf32>
    %421 = arith.mulf %5, %420 : vector<16x512xf32>
    %cst_189 = arith.constant dense<0.000000e+00> : vector<512xf32>
    %422 = vector.multi_reduction <add>, %421, %cst_189 [0] : vector<16x512xf32> to vector<512xf32>
    %423 = vector.shape_cast %422 : vector<512xf32> to vector<1x512xf32>
    %c46 = arith.constant 46 : index
    %c0_190 = arith.constant 0 : index
    %424 = vector.load %arg3[%c46, %c0_190] : memref<49x512xf32, #tpu.memory_space<vmem>>, vector<1x512xf32>
    %425 = arith.mulf %423, %424 : vector<1x512xf32>
    %c46_191 = arith.constant 46 : index
    %c0_192 = arith.constant 0 : index
    %426 = vector.load %arg4[%c46_191, %c0_192] : memref<49x512xf32, #tpu.memory_space<vmem>>, vector<1x512xf32>
    tpu.vector_store %arg4[%c46_191, %c0_192], %425 {strides = array<i32>} : memref<49x512xf32, #tpu.memory_space<vmem>>, vector<1x512xf32>,
    %427 = vector.extract_strided_slice %6 {offsets = [0, 35], sizes = [16, 477], strides = [1, 1]} : vector<16x512xf32> to vector<16x477xf32>
    %428 = vector.extract_strided_slice %6 {offsets = [0, 0], sizes = [16, 35], strides = [1, 1]} : vector<16x512xf32> to vector<16x35xf32>
    %429 = tpu.concatenate %427, %428 in 1 : vector<16x477xf32>, vector<16x35xf32> -> vector<16x512xf32>
    %430 = arith.mulf %5, %429 : vector<16x512xf32>
    %cst_193 = arith.constant dense<0.000000e+00> : vector<512xf32>
    %431 = vector.multi_reduction <add>, %430, %cst_193 [0] : vector<16x512xf32> to vector<512xf32>
    %432 = vector.shape_cast %431 : vector<512xf32> to vector<1x512xf32>
    %c47 = arith.constant 47 : index
    %c0_194 = arith.constant 0 : index
    %433 = vector.load %arg3[%c47, %c0_194] : memref<49x512xf32, #tpu.memory_space<vmem>>, vector<1x512xf32>
    %434 = arith.mulf %432, %433 : vector<1x512xf32>
    %c47_195 = arith.constant 47 : index
    %c0_196 = arith.constant 0 : index
    %435 = vector.load %arg4[%c47_195, %c0_196] : memref<49x512xf32, #tpu.memory_space<vmem>>, vector<1x512xf32>
    tpu.vector_store %arg4[%c47_195, %c0_196], %434 {strides = array<i32>} : memref<49x512xf32, #tpu.memory_space<vmem>>, vector<1x512xf32>,
    %436 = vector.extract_strided_slice %6 {offsets = [0, 51], sizes = [16, 461], strides = [1, 1]} : vector<16x512xf32> to vector<16x461xf32>
    %437 = vector.extract_strided_slice %6 {offsets = [0, 0], sizes = [16, 51], strides = [1, 1]} : vector<16x512xf32> to vector<16x51xf32>
    %438 = tpu.concatenate %436, %437 in 1 : vector<16x461xf32>, vector<16x51xf32> -> vector<16x512xf32>
    %439 = arith.mulf %5, %438 : vector<16x512xf32>
    %cst_197 = arith.constant dense<0.000000e+00> : vector<512xf32>
    %440 = vector.multi_reduction <add>, %439, %cst_197 [0] : vector<16x512xf32> to vector<512xf32>
    %441 = vector.shape_cast %440 : vector<512xf32> to vector<1x512xf32>
    %c48 = arith.constant 48 : index
    %c0_198 = arith.constant 0 : index
    %442 = vector.load %arg3[%c48, %c0_198] : memref<49x512xf32, #tpu.memory_space<vmem>>, vector<1x512xf32>
    %443 = arith.mulf %441, %442 : vector<1x512xf32>
    %c48_199 = arith.constant 48 : index
    %c0_200 = arith.constant 0 : index
    %444 = vector.load %arg4[%c48_199, %c0_200] : memref<49x512xf32, #tpu.memory_space<vmem>>, vector<1x512xf32>
    tpu.vector_store %arg4[%c48_199, %c0_200], %443 {strides = array<i32>} : memref<49x512xf32, #tpu.memory_space<vmem>>, vector<1x512xf32>,
    return
  }
  func.func @transform_0(%arg0: i32) -> (i32, i32) {
    %c0_i32 = arith.constant 0 : i32
    %c0_i32_0 = arith.constant 0 : i32
    return %c0_i32, %arg0 : i32, i32
  }
  func.func @transform_1(%arg0: i32) -> (i32, i32) {
    %c0_i32 = arith.constant 0 : i32
    %c0_i32_0 = arith.constant 0 : i32
    %c0_i32_1 = arith.constant 0 : i32
    return %c0_i32, %c0_i32_0 : i32, i32
  }
  func.func @transform_2(%arg0: i32) -> (i32, i32) {
    %c0_i32 = arith.constant 0 : i32
    %c0_i32_0 = arith.constant 0 : i32
    %c0_i32_1 = arith.constant 0 : i32
    return %c0_i32, %c0_i32_0 : i32, i32
  }
  func.func @transform_3(%arg0: i32) -> (i32, i32) {
    %c0_i32 = arith.constant 0 : i32
    %c0_i32_0 = arith.constant 0 : i32
    return %c0_i32, %arg0 : i32, i32
  }
}

</mosaic_0001>

<bundles_post_ra>
// kernel: tpu_custom_call.1
= control target key start
LH: loop header
LB: loop body
LE: loop exit
PB: predicated region body
PF: predicated region fallthrough
CT: control target
= control target key end

     0   :  { %8 = vsyncpa [#allocation3], 0  ;;  %s8822_s0 = inlined_call_operand.hbm [shape: f32[32,1024], index: 0, kind: input, shape index: {}]   ;;  %s8823_s1 = inlined_call_operand.hbm [shape: f32[32,32], index: 1, kind: input, shape index: {}]   ;;  %s8824_s2 = inlined_call_operand.hbm [shape: f32[49,512], index: 2, kind: input, shape index: {}]   ;;  %s8825_s3 = inlined_call_operand.hbm [shape: f32[49,1024], index: 3, kind: output, shape index: {}]  }
   0x1   :  { %10 = vsyncpa [#allocation3 + $0x1], 0 }
   0x2   :  { %11 = vsyncpa [#allocation6], 0 }
   0x3   :  { %12 = vsyncpa [#allocation4], 0 }
   0x4   :  { %14 = vsyncpa [#allocation4 + $0x1], 0  ;;  %s5812_s12 = smov 0   ;;  %s5814_s13 = smov 0  }
   0x5   :  { %s5816_s14 = smov 0   ;;  %s5818_s15 = smov 0  }
   0x6 LB: > { %s5833_s16 = sadd.s32 4294967295, %s5733_s15   ;;  %s5368_s17 = sadd.s32 4294967294, %s5733_s15   ;;  %s5733_s15 = sphi %s5818_s15, %s8953_s15   ;;  %s5729_s14 = sphi %s5816_s14, %s8952_s14   ;;  %s5725_s13 = sphi %s5814_s13, %s8951_s13   ;;  %s5721_s12 = sphi %s5812_s12, %s8950_s12  }
   0x7   : > { %p40_p0 = scmp.ne.s32.totalorder %s5725_s13, %s5721_s12  ;;  %p41_p1 = scmp.eq.s32.totalorder %s5833_s16, 0 }
   0x8   : > { %p106_p2 = scmp.eq.s32.totalorder %s5833_s16, 1  ;;  %p112_p3 = scmp.eq.s32.totalorder %s5368_s17, 1 }
   0x9   : > { %p5842_p4 = por %p41_p1, %p40_p0  ;;  %p5369_p5 = scmp.ge.s32.totalorder %s5733_s15, 1 }
   0xa   : > { %p5847_p6 = por %p112_p3, %p40_p0  ;;  %p119_p7 = scmp.lt.s32.totalorder %s5733_s15, 3 }
   0xb   : > { %s130_s22 = sshll.u32 %s8823_s1, 4  ;;  %s5735_s24 = smov [#allocation5]   ;;  %s131_s22 = int_to_ptr.hbm [resolvable:$true] %s130_s22 }
   0xc   : > { %p5855_p8 = pnand %p5369_p5, %p119_p7  ;;  %s132_s25 = sshll.u32 %s5735_s24, 4  ;;  %s133_s25 = int_to_ptr.vmem [resolvable:$true] %s132_s25 }
   0xd   : > { %s144_s28 = sshll.u32 %s8824_s2, 4  ;;  %s5736_s29 = smov 128   ;;  %s145_s28 = int_to_ptr.hbm [resolvable:$true] %s144_s28 }
   0xe   : > { %p5463_p9 = pneg %p5855_p8  ;;  %s5737_s30 = smov 8  }
   0xf   : > { %s5738_s4 = smov [#allocation7]   ;;  %s5739_s6 = smov 512  }
  0x10   : > { %p5464_p10 = pnand %p5463_p9, %p41_p1  ;;  %s146_s5 = sshll.u32 %s5738_s4, 4  ;;  %s147_s5 = int_to_ptr.vmem [resolvable:$true] %s146_s5 }
  0x11   : > { %s5740_s7 = smov 32   ;;  %s5871_s8 = sadd.s32 1, %s5733_s15  }
  0x12   : > { %5466 = dma.hbm_to_vmem [thread:$0]  (!%p5464_p10), %s131_s22, 512, %s133_s25, [#allocation6], %s5736_s29, %s5736_s29, %s5737_s30  }
  0x13   : > { %5469 = dma.hbm_to_vmem [thread:$0]  (!%p5464_p10), %s145_s28, 3584, %s147_s5, [#allocation6], %s5739_s6, %s5739_s6, %s5740_s7  }
  0x14   : > { %s24_s9 = ssub.s32 %s5733_s15, %s5871_s8  ;;  %s27_s10 = sadd.s32 1, %s5729_s14 }
  0x15   : > { %p25_p12 = scmp.eq.s32.totalorder %s24_s9, 0  ;;  %p34_p13 = scmp.ne.s32.totalorder %s5729_s14, %s5725_s13 }
  0x16   : > { %p35_p0 = scmp.eq.s32.totalorder %s5733_s15, 0  ;;  %p5480_p7 = scmp.lt.s32.totalorder %s5733_s15, 2 }
  0x17   : > { %s5880_s11 = scalar_select %p25_p12, %s5729_s14, %s27_s10  }
  0x18   : > { %p36_p3 = por %p35_p0, %p34_p13  ;;  %p5884_p5 = por %p106_p2, %p34_p13 }
  0x19   : > { %s160_s20 = sand.u32 1, %s5729_s14   ;;  %s5448_s22 = sshll.u32 %s5733_s15, 5 }
  0x1a   : > { %s5373_s21 = sshll.u32 %s160_s20, 7  ;;  %s169_s26 = scalar_lea.hbm %s8822_s0, %s5448_s22 }
  0x1b   : > { %s164_s27 = scalar_lea.vmem [#allocation2], %s5373_s21  ;;  %s170_s29 = sshll.u32 %s169_s26, 4  ;;  %s171_s29 = int_to_ptr.hbm [resolvable:$true] %s170_s29 }
  0x1c   : > { %s172_s28 = sshll.u32 %s164_s27, 4  ;;  %p5894_p9 = pnand %p5480_p7, %p36_p3  ;;  %s173_s28 = int_to_ptr.vmem [resolvable:$true] %s172_s28 }
  0x1d   : > { %s161_s4 = scalar_lea.sflag [#allocation3], %s160_s20  ;;  %s5633_s5 = sshra.s32 %s171_s29, 4  ;;  %s5634_s5 = int_to_ptr.hbm [resolvable:$true] %s5633_s5 }
  0x1e   : > { %s5635_s9 = scalar_lea.hbm %s5634_s5, 128  ;;  %p5637_p10 = pneg %p5894_p9 }
  0x1f   : > { %p5636_p2 = scmp.ne.s32.totalorder %s5634_s5, %s5635_s9  ;;  %s5640_s22 = scalar_lea.hbm %s8822_s0, 256 }
  0x20   : > { %p5641_p0 = scmp.lt.s32.totalorder %s5634_s5, %s8822_s0  ;;  %p5642_p3 = scmp.lt.s32.totalorder %s5640_s22, %s5635_s9 }
  0x21   : > { %p5638_p12 = pnand %p5637_p10, %p5636_p2 }
  0x22   : > { %p5643_p7 = por %p5642_p3, %p5641_p0 }
  0x23   : > { %p5639_p13 = pneg %p5638_p12 }
  0x25   : > { %p5644_p11 = pnand %p5643_p7, %p5639_p13 }
  0x27   : > { %5647 = shalt.err (!%p5644_p11)
}
  0x28   : > { %s5741_s20 = smov 1024   ;;  %184 = sbr.rel (%p5855_p8) target bundleno = 1362 (0x552), region = 32 }
  0x29   : > { %5473 = dma.hbm_to_vmem [thread:$0]  (!%p5894_p9), %s171_s29, 2048, %s173_s28, %s161_s4, %s5741_s20, %s5739_s6, %s5740_s7  }
  0x2d   : > { %s5913_s26 = sand.u32 1, %s5725_s13  }
  0x2e   : > { %s5377_s27 = sshll.u32 %s5913_s26, 7  ;;  %s187_s5 = scalar_lea.sflag [#allocation3], %s5913_s26 }
  0x2f   : > { %s190_s9 = scalar_lea.vmem [#allocation2], %s5377_s27 }
  0x30   : > { %5708 = dma.done.wait (%p5842_p4), %s187_s5, 2048  }
  0x31   : > { %5710 = vsyncadd (%p5842_p4), %s187_s5, 4294965248 }
  0x32   : > { %5712 = dma.done.wait (%p41_p1), [#allocation6], 4096  }
  0x33   : > { %5714 = vsyncadd (%p41_p1), [#allocation6], 4294963200  ;;  %v238_v0 = vld [vmem:[%s190_s9 + $0x60] sm:$0xff]  ;;  %v239_v1 = vld [vmem:[%s190_s9 + $0x68] sm:$0xff]  ;;  %vm246_vm0 = vcmask 261120   ;;  %s5742_s18 = smov 35  }
  0x34   : > { %v240_v2 = vld [vmem:[%s190_s9 + $0x70] sm:$0xff]  ;;  %271 = vmatpush.msra.mxu0 %v238_v0  ;;  %300 = vmatpush.msra.mxu1 %v239_v1  ;;  %v241_v3 = vld [vmem:[%s190_s9 + $0x78] sm:$0xff]  ;;  %v234_v4 = vld [vmem:[%s190_s9 + $0x40] sm:$0xff]  ;;  %s5743_s23 = smov 19   ;;  %s5744_s6 = smov 51   ;;  %vm483_vm1 = vcmask 1040384  }
  0x35   : > { %v235_v5 = vld [vmem:[%s190_s9 + $0x48] sm:$0xff]  ;;  %329 = vmatpush.msra.mxu2 %v240_v2  ;;  %358 = vmatpush.msra.mxu3 %v241_v3  ;;  %v236_v6 = vld [vmem:[%s190_s9 + $0x50] sm:$0xff]  ;;  %v237_v7 = vld [vmem:[%s190_s9 + $0x58] sm:$0xff]  ;;  %s5745_s7 = smov 3   ;;  %s5746_s28 = smov 115   ;;  %vm485_vm2 = vcmask 1042434  }
  0x36   : > { %v230_v8 = vld [vmem:[%s190_s9 + $0x20] sm:$0xff]  ;;  %272 = vmatpush.msra.mxu0 %v234_v4  ;;  %301 = vmatpush.msra.mxu1 %v235_v5  ;;  %v231_v9 = vld [vmem:[%s190_s9 + $0x28] sm:$0xff]  ;;  %v232_v10 = vld [vmem:[%s190_s9 + $0x30] sm:$0xff]  ;;  %s5747_s29 = smov 99   ;;  %s5748_s30 = smov 83   ;;  %vm487_vm3 = vcmask 1041408  }
  0x37   : > { %v233_v11 = vld [vmem:[%s190_s9 + $0x38] sm:$0xff]  ;;  %330 = vmatpush.msra.mxu2 %v236_v6  ;;  %359 = vmatpush.msra.mxu3 %v237_v7  ;;  %v226_v12 = vld [vmem:[%s190_s9] sm:$0xff]  ;;  %v227_v13 = vld [vmem:[%s190_s9 + $0x8] sm:$0xff]  ;;  %s5450_s4 = smul.u32 224, %s5913_s26  ;;  %s5749_s10 = smov 50   ;;  %vm409_vm5 = vcmask 416768  }
  0x38   : > { %273 = vmatpush.msra.mxu0 %v230_v8  ;;  %302 = vmatpush.msra.mxu1 %v231_v9  ;;  %v228_v14 = vld [vmem:[%s190_s9 + $0x10] sm:$0xff]  ;;  %v229_v15 = vld [vmem:[%s190_s9 + $0x18] sm:$0xff]  ;;  %v242_v16 = vld [vmem:[#allocation5] sm:$0xff]  ;;  %s5750_s22 = smov 34   ;;  %s5751_s24 = smov 18   ;;  %vm714_vm6 = vcmask 23552  }
  0x39   : > { %331 = vmatpush.msra.mxu2 %v232_v10  ;;  %360 = vmatpush.msra.mxu3 %v233_v11  ;;  %v243_v17 = vld [vmem:[#allocation5 + $0x8] sm:$0xff]  ;;  %v244_v18 = vld [vmem:[#allocation5 + $0x10] sm:$0xff]  ;;  %v245_v19 = vld [vmem:[#allocation5 + $0x18] sm:$0xff]  ;;  %s6027_s21 = scalar_lea.vmem [#allocation8], %s5450_s4  ;;  %vm812_vm7 = vcmask 941056   ;;  %vm514_vm8 = vcmask 285696  }
  0x3a   : > { %274 = vmatpush.msra.mxu0 %v226_v12  ;;  %303 = vmatpush.msra.mxu1 %v227_v13  ;;  %v2832_v1 = vld [vmem:[#allocation7 + $0x60] ss:$8 sm:$0xf]  ;;  %vm614_vm9 = vcmask 154624   ;;  %vm912_vm10 = vcmask 809984   ;;  %vm1012_vm11 = vcmask 678912  }
  0x3b   : > { %332 = vmatpush.msra.mxu2 %v228_v14  ;;  %361 = vmatpush.msra.mxu3 %v229_v15  ;;  %v2835_v7 = vperm.slane %v2832_v1, 1  ;;  %v2836_v13 = vperm.slane %v2832_v1, 2  ;;  %vm1114_vm12 = vcmask 408576   ;;  %s5752_s25 = smov 2   ;;  %s5753_s20 = smov 114   ;;  %vm1214_vm13 = vcmask 277504  }
  0x3c   : > { %5380 = vmatmul.msk.f32.vlgmr.msra.gmra.mxu0 %vm246_vm0, %v242_v16  ;;  %5384 = vmatmul.msk.f32.vlgmr.msra.gmra.mxu1 %vm246_vm0, %v242_v16  ;;  %s5754_s27 = smov 98   ;;  %s5755_s5 = smov 82   ;;  %vm1314_vm14 = vcmask 146432   ;;  %vm1414_vm15 = vcmask 15360  }
  0x3d   : > { %5388 = vmatmul.msk.f32.vlgmr.msra.gmra.mxu2 %vm246_vm0, %v242_v16  ;;  %5392 = vmatmul.msk.f32.vlgmr.msra.gmra.mxu3 %vm246_vm0, %v242_v16  ;;  %s5756_s9 = smov 49   ;;  %s5764_s4 = smov 32  }
  0x44   : > { %5381 = vmatmul.msk.f32.gmra.mxu0 %vm246_vm0, %v243_v17  ;;  %5385 = vmatmul.msk.f32.gmra.mxu1 %vm246_vm0, %v243_v17 }
  0x45   : > { %5389 = vmatmul.msk.f32.gmra.mxu2 %vm246_vm0, %v243_v17  ;;  %5393 = vmatmul.msk.f32.gmra.mxu3 %vm246_vm0, %v243_v17  ;;  %v2837_v17 = vperm.slane %v2832_v1, 3 }
  0x4c   : > { %5382 = vmatmul.msk.f32.gmra.mxu0 %vm246_vm0, %v244_v18  ;;  %5386 = vmatmul.msk.f32.gmra.mxu1 %vm246_vm0, %v244_v18 }
  0x4d   : > { %5390 = vmatmul.msk.f32.gmra.mxu2 %vm246_vm0, %v244_v18  ;;  %5394 = vmatmul.msk.f32.gmra.mxu3 %vm246_vm0, %v244_v18 }
  0x54   : > { %5383 = vmatmul.msk.f32.gmra.mxu0 %vm246_vm0, %v245_v19  ;;  %5387 = vmatmul.msk.f32.gmra.mxu1 %vm246_vm0, %v245_v19 }
  0x55   : > { %5391 = vmatmul.msk.f32.gmra.mxu2 %vm246_vm0, %v245_v19  ;;  %5395 = vmatmul.msk.f32.gmra.mxu3 %vm246_vm0, %v245_v19  ;;  %v2834_v19 = vperm.slane %v2832_v1, 0 }
  0xb9   : > { %v276_v20 = vpop.f32.mrf.mxu0  ;;  %v305_v21 = vpop.f32.mrf.mxu1 }
  0xba   : > { %v5951_v30 = vmul.f32 0.0625, %v276_v20  ;;  %v5953_v31 = vmul.f32 0.0625, %v305_v21 }
  0xbc   : > { %8857 = vst [vmem:[#allocation12_spill] sm:$0xff] %v5951_v30 }
  0xbd   : > { %8858 = vst [vmem:[#allocation13_spill] sm:$0xff] %v5953_v31 }
  0xc0   : > { %v334_v22 = vpop.f32.mrf.mxu2  ;;  %v363_v23 = vpop.f32.mrf.mxu3 }
  0xc1   : > { %v279_v24 = vpop.f32.mrf.mxu0  ;;  %v308_v25 = vpop.f32.mrf.mxu1  ;;  %v5979_v42 = vmul.f32 0.0625, %v334_v22  ;;  %v5981_v43 = vmul.f32 0.0625, %v363_v23  ;;  %v490_v22 = vlaneseq }
  0xc2   : > { %v5955_v32 = vmul.f32 0.0625, %v279_v24  ;;  %v5957_v33 = vmul.f32 0.0625, %v308_v25 }
  0xc3   : > { %8860 = vst [vmem:[#allocation15_spill] sm:$0xff] %v5979_v42  ;;  %vm6020_vm4 = vcmp.lt.s32.totalorder %v490_v22, 512 }
  0xc4   : > { %8861 = vst [vmem:[#allocation16_spill] sm:$0xff] %v5981_v43 }
  0xc8   : > { %v337_v26 = vpop.f32.mrf.mxu2  ;;  %v366_v27 = vpop.f32.mrf.mxu3 }
  0xc9   : > { %v5941_v28 = vpop.f32.mrf.mxu0  ;;  %v5943_v29 = vpop.f32.mrf.mxu1  ;;  %v5985_v46 = vmul.f32 0.0625, %v337_v26  ;;  %v5987_v47 = vmul.f32 0.0625, %v366_v27 }
  0xca   : > { %504 = vrot.lane.b32.xlu2 %v5943_v29, %s5742_s18  ;;  %602 = vrot.lane.b32.xlu0 %v5941_v28, %s5743_s23  ;;  %v2795_v37 = vmul.f32 %v5951_v30, %v5941_v28  ;;  %v2796_v40 = vmul.f32 %v5953_v31, %v5943_v29 }
  0xcb   : > { %397 = vrot.lane.b32.xlu1 %v5941_v28, %s5744_s6  ;;  %8862 = vst [vmem:[#allocation17_spill] sm:$0xff] %v5987_v47 }
  0xd0   : > { %v5959_v34 = vpop.f32.mrf.mxu2  ;;  %v5961_v35 = vpop.f32.mrf.mxu3 }
  0xd1   : > { %8859 = vst [vmem:[#allocation14_spill] sm:$0xff] %v5961_v35  ;;  %v5963_v36 = vpop.f32.mrf.mxu0  ;;  %v5967_v38 = vpop.f32.mrf.mxu1  ;;  %v2797_v50 = vmul.f32 %v5979_v42, %v5959_v34  ;;  %v2798_v51 = vmul.f32 %v5981_v43, %v5961_v35 }
  0xd2   : > { %v2799_v39 = vmul.f32 %v5955_v32, %v5963_v36  ;;  %v2800_v41 = vmul.f32 %v5957_v33, %v5967_v38  ;;  %702 = vrot.lane.b32.xlu2 %v5941_v28, %s5745_s7  ;;  %704 = vrot.lane.b32.xlu0 %v5943_v29, %s5745_s7 }
  0xd3   : > { %399 = vrot.lane.b32.xlu1 %v5943_v29, %s5744_s6 }
  0xd4   : > { %v2803_v44 = vadd.f32 %v2799_v39, %v2795_v37  ;;  %v2810_v45 = vadd.f32 %v2800_v41, %v2796_v40  ;;  %v8863_v39 = vmov 0 }
  0xd5   : > { %v8864_v39 = vsel %vm6020_vm4, 4294967295, %v8863_v39 }
  0xd6   : > { %v2804_v48 = vrot.slane %v2803_v44, 4  ;;  %v2811_v49 = vrot.slane %v2810_v45, 4  ;;  %8865 = vst [vmem:[#allocation18_spill] sm:$0xff] %v8864_v39 }
  0xd8   : > { %v2805_v52 = vadd.f32 %v2804_v48, %v2803_v44  ;;  %v2812_v53 = vadd.f32 %v2811_v49, %v2810_v45  ;;  %v5993_v54 = vpop.f32.mrf.mxu2  ;;  %v5995_v55 = vpop.f32.mrf.mxu3 }
  0xd9   : > { %v2801_v56 = vmul.f32 %v5985_v46, %v5993_v54  ;;  %v2802_v57 = vmul.f32 %v5987_v47, %v5995_v55 }
  0xda   : > { %v2813_v58 = vrot.slane %v2812_v53, 2  ;;  %796 = vrot.lane.b32.xlu2 %v5941_v28, %s5746_s28  ;;  %798 = vrot.lane.b32.xlu0 %v5943_v29, %s5746_s28  ;;  %v2806_v59 = vrot.slane %v2805_v52, 2 }
  0xdb   : > { %v2817_v60 = vadd.f32 %v2801_v56, %v2797_v50  ;;  %v2824_v61 = vadd.f32 %v2802_v57, %v2798_v51  ;;  %502 = vrot.lane.b32.xlu1 %v5941_v28, %s5742_s18 }
  0xdc   : > { %v2814_v62 = vadd.f32 %v2813_v58, %v2812_v53  ;;  %v2807_v3 = vadd.f32 %v2806_v59, %v2805_v52 }
  0xdd   : > { %v2818_v63 = vrot.slane %v2817_v60, 4  ;;  %v2825_v0 = vrot.slane %v2824_v61, 4 }
  0xde   : > { %v2815_v2 = vrot.slane %v2814_v62, 1  ;;  %v2808_v10 = vrot.slane %v2807_v3, 1 }
  0xdf   : > { %v2819_v4 = vadd.f32 %v2818_v63, %v2817_v60  ;;  %v2826_v5 = vadd.f32 %v2825_v0, %v2824_v61 }
  0xe0   : > { %v2816_v6 = vadd.f32 %v2815_v2, %v2814_v62  ;;  %v2809_v18 = vadd.f32 %v2808_v10, %v2807_v3 }
  0xe1   : > { %v2820_v8 = vrot.slane %v2819_v4, 2  ;;  %v2827_v9 = vrot.slane %v2826_v5, 2 }
  0xe2   : > { %898 = vrot.lane.b32.xlu2 %v5943_v29, %s5747_s29  ;;  %996 = vrot.lane.b32.xlu0 %v5941_v28, %s5748_s30  ;;  %v2843_v14 = vmul.f32 %v2835_v7, %v2816_v6  ;;  %v2842_v26 = vmul.f32 %v2834_v19, %v2809_v18 }
  0xe3   : > { %v2821_v11 = vadd.f32 %v2820_v8, %v2819_v4  ;;  %v2828_v12 = vadd.f32 %v2827_v9, %v2826_v5  ;;  %604 = vrot.lane.b32.xlu1 %v5943_v29, %s5743_s23 }
  0xe4   : > { %v2850_v23 = vrot.slane %v2843_v14, 7 }
  0xe5   : > { %v2822_v15 = vrot.slane %v2821_v11, 1  ;;  %v2829_v16 = vrot.slane %v2828_v12, 1 }
  0xe6   : > { %v2853_v40 = vsel %vm483_vm1, %v2842_v26, %v2850_v23 }
  0xe7   : > { %v2823_v20 = vadd.f32 %v2822_v15, %v2821_v11  ;;  %v2830_v21 = vadd.f32 %v2829_v16, %v2828_v12 }
  0xe9   : > { %v2844_v24 = vmul.f32 %v2836_v13, %v2823_v20  ;;  %v2845_v25 = vmul.f32 %v2837_v17, %v2830_v21 }
  0xea   : > { %1104 = vrot.lane.b32.xlu2 %v5943_v29, %s5749_s10  ;;  %385 = vrot.lane.b32.xlu0 %v5961_v35, %s5744_s6 }
  0xeb   : > { %v2851_v27 = vrot.slane %v2844_v24, 6  ;;  %v2852_v37 = vrot.slane %v2845_v25, 5  ;;  %896 = vrot.lane.b32.xlu1 %v5941_v28, %s5747_s29 }
  0xed   : > { %v2854_v41 = vsel %vm485_vm2, %v2851_v27, %v2852_v37 }
  0xee   : > { %v2855_v44 = vsel %vm487_vm3, %v2853_v40, %v2854_v41 }
  0xef   : > { %5419 = vst.msk [vmem:[%s6027_s21 + $0x60] ss:$8 sm:$0xf] %vm6020_vm4, %v2855_v44 }
  0xf2   : > { %401 = vrot.lane.b32.xlu2 %v5959_v34, %s5744_s6  ;;  %506 = vrot.lane.b32.xlu0 %v5959_v34, %s5742_s18 }
  0xf3   : > { %998 = vrot.lane.b32.xlu1 %v5943_v29, %s5748_s30 }
  0xfa   : > { %496 = vrot.lane.b32.xlu2 %v5961_v35, %s5742_s18  ;;  %696 = vrot.lane.b32.xlu0 %v5961_v35, %s5745_s7 }
  0xfb   : > { %1102 = vrot.lane.b32.xlu1 %v5941_v28, %s5749_s10 }
 0x102   : > { %606 = vrot.lane.b32.xlu2 %v5959_v34, %s5743_s23  ;;  %900 = vrot.lane.b32.xlu0 %v5959_v34, %s5747_s29 }
 0x103   : > { %596 = vrot.lane.b32.xlu1 %v5961_v35, %s5743_s23 }
 0x10a   : > { %802 = vrot.lane.b32.xlu2 %v5961_v35, %s5746_s28  ;;  %1002 = vrot.lane.b32.xlu0 %v5961_v35, %s5748_s30 }
 0x10b   : > { %706 = vrot.lane.b32.xlu1 %v5959_v34, %s5745_s7 }
 0x112   : > { %1000 = vrot.lane.b32.xlu2 %v5959_v34, %s5748_s30  ;;  %1106 = vrot.lane.b32.xlu0 %v5959_v34, %s5749_s10 }
 0x113   : > { %800 = vrot.lane.b32.xlu1 %v5959_v34, %s5746_s28 }
 0x11a   : > { %1096 = vrot.lane.b32.xlu2 %v5961_v35, %s5749_s10  ;;  %405 = vrot.lane.b32.xlu0 %v5967_v38, %s5744_s6 }
 0x11b   : > { %902 = vrot.lane.b32.xlu1 %v5961_v35, %s5747_s29 }
 0x122   : > { %608 = vrot.lane.b32.xlu0 %v5963_v36, %s5743_s23  ;;  %403 = vrot.lane.b32.xlu2 %v5963_v36, %s5744_s6 }
 0x123   : > { %1196 = vrot.lane.b32.xlu1 %v5961_v35, %s5750_s22 }
 0x124   : > { %v6074_v45 = vpop.permute.xlu2 %504 }
 0x12a   : > { %710 = vrot.lane.b32.xlu0 %v5967_v38, %s5745_s7  ;;  %510 = vrot.lane.b32.xlu2 %v5967_v38, %s5742_s18 }
 0x12b   : > { %508 = vrot.lane.b32.xlu1 %v5963_v36, %s5742_s18 }
 0x12c   : > { %v6082_v48 = vpop.permute.xlu2 %702 }
 0x132   : > { %804 = vrot.lane.b32.xlu0 %v5963_v36, %s5746_s28  ;;  %708 = vrot.lane.b32.xlu2 %v5963_v36, %s5745_s7 }
 0x133   : > { %610 = vrot.lane.b32.xlu1 %v5967_v38, %s5743_s23 }
 0x134   : > { %v6090_v49 = vpop.permute.xlu2 %796 }
 0x13a   : > { %906 = vrot.lane.b32.xlu0 %v5967_v38, %s5747_s29  ;;  %904 = vrot.lane.b32.xlu2 %v5963_v36, %s5747_s29 }
 0x13b   : > { %806 = vrot.lane.b32.xlu1 %v5967_v38, %s5746_s28 }
 0x13c   : > { %v6098_v50 = vpop.permute.xlu2 %898  ;;  %v6100_v51 = vpop.permute.xlu0 %602 }
 0x13d   : > { %v6102_v52 = vpop.permute.xlu1 %397 }
 0x142   : > { %387 = vrot.lane.b32.xlu0 %v5995_v55, %s5744_s6  ;;  %1006 = vrot.lane.b32.xlu2 %v5967_v38, %s5748_s30 }
 0x143   : > { %1004 = vrot.lane.b32.xlu1 %v5963_v36, %s5748_s30 }
 0x144   : > { %v6110_v53 = vpop.permute.xlu2 %1104  ;;  %v6112_v56 = vpop.permute.xlu0 %704 }
 0x145   : > { %v6114_v57 = vpop.permute.xlu1 %399  ;;  %v715_v26 = vsel %vm714_vm6, %v6082_v48, %v6112_v56 }
 0x146   : > { %v410_v18 = vsel %vm409_vm5, %v6102_v52, %v6114_v57 }
 0x147   : > { %v427_v24 = vmul.f32 %v410_v18, %v5953_v31 }
 0x14a   : > { %498 = vrot.lane.b32.xlu0 %v5995_v55, %s5742_s18  ;;  %1110 = vrot.lane.b32.xlu2 %v5967_v38, %s5749_s10 }
 0x14b   : > { %1108 = vrot.lane.b32.xlu1 %v5963_v36, %s5749_s10 }
 0x14c   : > { %v6122_v58 = vpop.permute.xlu2 %401  ;;  %v6124_v59 = vpop.permute.xlu0 %798 }
 0x14d   : > { %v6126_v60 = vpop.permute.xlu1 %502  ;;  %v411_v27 = vsel %vm409_vm5, %v6114_v57, %v6122_v58  ;;  %v813_v41 = vsel %vm812_vm7, %v6090_v49, %v6124_v59 }
 0x14e   : > { %v515_v57 = vsel %vm514_vm8, %v6126_v60, %v6074_v45 }
 0x152   : > { %512 = vrot.lane.b32.xlu0 %v5993_v54, %s5742_s18  ;;  %598 = vrot.lane.b32.xlu2 %v5995_v55, %s5743_s23  ;;  %s5757_s18 = smov 33  }
 0x153   : > { %407 = vrot.lane.b32.xlu1 %v5993_v54, %s5744_s6  ;;  %s5759_s6 = smov 1  }
 0x154   : > { %v6134_v61 = vpop.permute.xlu2 %496  ;;  %v6136_v62 = vpop.permute.xlu0 %996 }
 0x155   : > { %v6138_v63 = vpop.permute.xlu1 %604  ;;  %v529_v39 = vsel %vm514_vm8, %v6134_v61, %v6126_v60 }
 0x15a   : > { %810 = vrot.lane.b32.xlu0 %v5995_v55, %s5746_s28  ;;  %612 = vrot.lane.b32.xlu2 %v5993_v54, %s5743_s23  ;;  %s5758_s23 = smov 17  }
 0x15b   : > { %698 = vrot.lane.b32.xlu1 %v5995_v55, %s5745_s7 }
 0x15c   : > { %v6146_v0 = vpop.permute.xlu2 %606  ;;  %v6148_v1 = vpop.permute.xlu0 %385 }
 0x15d   : > { %v6150_v2 = vpop.permute.xlu1 %896 }
 0x15e   : > { %v913_v60 = vsel %vm912_vm10, %v6150_v2, %v6098_v50 }
 0x162   : > { %1008 = vrot.lane.b32.xlu0 %v5993_v54, %s5748_s30  ;;  %808 = vrot.lane.b32.xlu2 %v5993_v54, %s5746_s28  ;;  %s5761_s28 = smov 97  }
 0x163   : > { %712 = vrot.lane.b32.xlu1 %v5993_v54, %s5745_s7  ;;  %s5760_s7 = smov 113  }
 0x164   : > { %v6158_v3 = vpop.permute.xlu2 %802  ;;  %v6160_v4 = vpop.permute.xlu0 %506 }
 0x165   : > { %v6162_v5 = vpop.permute.xlu1 %998  ;;  %v829_v47 = vsel %vm812_vm7, %v6158_v3, %v6090_v49  ;;  %v517_v49 = vsel %vm514_vm8, %v6160_v4, %v6134_v61  ;;  %v6318_v61 = vld [vmem:[#allocation7] ss:$8 sm:$0xf] }
 0x16a   : > { %1098 = vrot.lane.b32.xlu0 %v5995_v55, %s5749_s10  ;;  %910 = vrot.lane.b32.xlu2 %v5995_v55, %s5747_s29 }
 0x16b   : > { %908 = vrot.lane.b32.xlu1 %v5993_v54, %s5747_s29  ;;  %s5762_s29 = smov 81  }
 0x16c   : > { %v6170_v6 = vpop.permute.xlu2 %1000  ;;  %v6172_v7 = vpop.permute.xlu0 %696 }
 0x16d   : > { %v6174_v8 = vpop.permute.xlu1 %1102 }
 0x172   : > { %1112 = vrot.lane.b32.xlu0 %v5993_v54, %s5749_s10  ;;  %1198 = vrot.lane.b32.xlu2 %v5995_v55, %s5750_s22  ;;  %s5765_s10 = smov 16  }
 0x173   : > { %1010 = vrot.lane.b32.xlu1 %v5995_v55, %s5748_s30  ;;  %s5763_s30 = smov 48  }
 0x174   : > { %v6182_v9 = vpop.permute.xlu2 %1096  ;;  %v6184_v10 = vpop.permute.xlu0 %900 }
 0x175   : > { %v6186_v11 = vpop.permute.xlu1 %596 }
 0x17a   : > { %1202 = vrot.lane.b32.xlu0 %v5941_v28, %s5750_s22  ;;  %1206 = vrot.lane.b32.xlu2 %v5959_v34, %s5750_s22 }
 0x17b   : > { %1204 = vrot.lane.b32.xlu1 %v5943_v29, %s5750_s22 }
 0x17c   : > { %v6194_v12 = vpop.permute.xlu0 %1002  ;;  %v6196_v13 = vpop.permute.xlu2 %403 }
 0x17d   : > { %v6198_v14 = vpop.permute.xlu1 %706 }
 0x182   : > { %1208 = vrot.lane.b32.xlu0 %v5963_v36, %s5750_s22  ;;  %1212 = vrot.lane.b32.xlu2 %v5993_v54, %s5750_s22 }
 0x183   : > { %1210 = vrot.lane.b32.xlu1 %v5967_v38, %s5750_s22  ;;  %s5766_s22 = smov 112  }
 0x184   : > { %v6206_v15 = vpop.permute.xlu0 %1106  ;;  %v6208_v16 = vpop.permute.xlu2 %510 }
 0x185   : > { %v6210_v17 = vpop.permute.xlu1 %800 }
 0x18a   : > { %1296 = vrot.lane.b32.xlu0 %v5961_v35, %s5751_s24  ;;  %1302 = vrot.lane.b32.xlu2 %v5941_v28, %s5751_s24 }
 0x18b   : > { %1298 = vrot.lane.b32.xlu1 %v5995_v55, %s5751_s24 }
 0x18c   : > { %v6221_v19 = vpop.permute.xlu0 %405  ;;  %v6223_v20 = vpop.permute.xlu2 %708 }
 0x18d   : > { %8866 = vst [vmem:[#allocation19_spill] sm:$0xff] %v6221_v19  ;;  %v413_v21 = vsel %vm409_vm5, %v6196_v13, %v6221_v19  ;;  %v6228_v22 = vpop.permute.xlu1 %902  ;;  %v532_v19 = vmul.f32 %v515_v57, %v5953_v31  ;;  %v6325_v57 = vmul.f32 %v829_v47, %v5981_v43 }
 0x18e   : > { %8867 = vst [vmem:[#allocation20_spill] sm:$0xff] %v6223_v20  ;;  %v431_v23 = vmul.f32 %v413_v21, %v5957_v33  ;;  %v732_v21 = vmul.f32 %v715_v26, %v5953_v31  ;;  %v616_v26 = vsel %vm614_vm9, %v6138_v63, %v6146_v0 }
 0x18f   : > { %8873 = vst [vmem:[#allocation26_spill] sm:$0xff] %v6325_v57 }
 0x190   : > { %v441_v25 = vadd.f32 %v431_v23, %v427_v24  ;;  %v6255_v23 = vmul.f32 %v411_v27, %v5979_v42  ;;  %v6261_v24 = vmul.f32 %v813_v41, %v5951_v30  ;;  %v412_v27 = vsel %vm409_vm5, %v6122_v58, %v6148_v1 }
 0x191   : > { %v424_v41 = vsel %vm409_vm5, %v6148_v1, %v6102_v52  ;;  %v6293_v52 = vmul.f32 %v529_v39, %v5951_v30  ;;  %v6307_v1 = vmul.f32 %v616_v26, %v5979_v42 }
 0x192   : > { %1304 = vrot.lane.b32.xlu0 %v5943_v29, %s5751_s24  ;;  %1308 = vrot.lane.b32.xlu2 %v5963_v36, %s5751_s24  ;;  %v442_v44 = vrot.slane %v441_v25, 4  ;;  %8869 = vst [vmem:[#allocation22_spill] sm:$0xff] %v6255_v23  ;;  %v6310_v39 = vmul.f32 %v424_v41, %v5951_v30 }
 0x193   : > { %1306 = vrot.lane.b32.xlu1 %v5959_v34, %s5751_s24  ;;  %8870 = vst [vmem:[#allocation23_spill] sm:$0xff] %v6293_v52 }
 0x194   : > { %v6244_v37 = vpop.permute.xlu0 %608  ;;  %v6246_v40 = vpop.permute.xlu2 %904  ;;  %v443_v23 = vadd.f32 %v442_v44, %v441_v25  ;;  %v6313_v25 = vmul.f32 %v412_v27, %v5981_v43  ;;  %v6316_v44 = vmul.f32 %v913_v60, %v5951_v30  ;;  %v6336_v60 = vmul.f32 %v517_v49, %v5981_v43 }
 0x195   : > { %v6251_v18 = vpop.permute.xlu1 %1196 }
 0x196   : > { %8868 = vst [vmem:[#allocation21_spill] sm:$0xff] %v6251_v18  ;;  %v615_v18 = vsel %vm614_vm9, %v6100_v51, %v6138_v63  ;;  %v516_v63 = vsel %vm514_vm8, %v6074_v45, %v6160_v4  ;;  %v1013_v45 = vsel %vm1012_vm11, %v6136_v62, %v6162_v5  ;;  %v444_v41 = vrot.slane %v443_v23, 2 }
 0x197   : > { %v6296_v58 = vmul.f32 %v615_v18, %v5953_v31  ;;  %8871 = vst [vmem:[#allocation24_spill] sm:$0xff] %v6313_v25  ;;  %v6328_v26 = vmul.f32 %v516_v63, %v5979_v42  ;;  %v6339_v52 = vmul.f32 %v1013_v45, %v5951_v30  ;;  %v1014_v63 = vsel %vm1012_vm11, %v6162_v5, %v6170_v6 }
 0x198   : > { %8875 = vst [vmem:[#allocation28_spill] sm:$0xff] %v6336_v60  ;;  %v1115_v45 = vsel %vm1114_vm12, %v6174_v8, %v6110_v53  ;;  %v914_v5 = vsel %vm912_vm10, %v6098_v50, %v6184_v10  ;;  %v445_v49 = vadd.f32 %v444_v41, %v443_v23 }
 0x199   : > { %8874 = vst [vmem:[#allocation27_spill] sm:$0xff] %v6328_v26  ;;  %v6369_v26 = vmul.f32 %v1014_v63, %v5953_v31 }
 0x19a   : > { %1310 = vrot.lane.b32.xlu0 %v5967_v38, %s5751_s24  ;;  %1396 = vrot.lane.b32.xlu2 %v5961_v35, %s5752_s25  ;;  %v446_v63 = vrot.slane %v445_v49, 1 }
 0x19b   : > { %1312 = vrot.lane.b32.xlu1 %v5993_v54, %s5751_s24  ;;  %8876 = vst [vmem:[#allocation29_spill] sm:$0xff] %v6369_v26  ;;  %v8894_v26 = vld [vmem:[#allocation23_spill] sm:$0xff]  ;;  %s5767_s24 = smov 96  }
 0x19c   : > { %v6320_v4 = vpop.permute.xlu0 %710  ;;  %v6322_v18 = vpop.permute.xlu2 %1006 }
 0x19d   : > { %8872 = vst [vmem:[#allocation25_spill] sm:$0xff] %v6320_v4  ;;  %v718_v27 = vsel %vm714_vm6, %v6223_v20, %v6320_v4  ;;  %v6333_v25 = vpop.permute.xlu1 %508  ;;  %v729_v4 = vsel %vm714_vm6, %v6172_v7, %v6082_v48  ;;  %v617_v48 = vsel %vm614_vm9, %v6146_v0, %v6186_v11 }
 0x19e   : > { %v736_v35 = vmul.f32 %v718_v27, %v5957_v33  ;;  %v518_v47 = vsel %vm514_vm8, %v6333_v25, %v6208_v16  ;;  %v1129_v27 = vsel %vm1114_vm12, %v6182_v9, %v6174_v8  ;;  %v6372_v8 = vmul.f32 %v729_v4, %v5951_v30 }
 0x19f   : > { %v536_v20 = vmul.f32 %v518_v47, %v5957_v33  ;;  %v629_v47 = vsel %vm614_vm9, %v6186_v11, %v6100_v51  ;;  %v6382_v51 = vmul.f32 %v1115_v45, %v5953_v31  ;;  %v6385_v0 = vmul.f32 %v1129_v27, %v5951_v30 }
 0x1a0   : > { %v746_v57 = vadd.f32 %v736_v35, %v732_v21  ;;  %v1015_v35 = vsel %vm1012_vm11, %v6170_v6, %v6194_v12  ;;  %v1029_v11 = vsel %vm1012_vm11, %v6194_v12, %v6136_v62  ;;  %v6393_v6 = vmul.f32 %v914_v5, %v5953_v31 }
 0x1a1   : > { %v546_v60 = vadd.f32 %v536_v20, %v532_v19  ;;  %8877 = vst [vmem:[#allocation30_spill] sm:$0xff] %v6385_v0  ;;  %v6396_v20 = vmul.f32 %v629_v47, %v5951_v30  ;;  %v6399_v21 = vmul.f32 %v617_v48, %v5981_v43  ;;  %v6406_v62 = vmul.f32 %v1015_v35, %v5979_v42  ;;  %v6428_v35 = vld [vmem:[#allocation7 + $0x3] ss:$8 sm:$0xf] }
 0x1a2   : > { %v747_v50 = vrot.slane %v746_v57, 4  ;;  %1398 = vrot.lane.b32.xlu0 %v5995_v55, %s5752_s25  ;;  %1404 = vrot.lane.b32.xlu2 %v5943_v29, %s5752_s25  ;;  %8878 = vst [vmem:[#allocation31_spill] sm:$0xff] %v6393_v6  ;;  %v716_v12 = vsel %vm714_vm6, %v6112_v56, %v6198_v14  ;;  %v6414_v5 = vmul.f32 %v1029_v11, %v5981_v43 }
 0x1a3   : > { %v547_v19 = vrot.slane %v546_v60, 4  ;;  %1402 = vrot.lane.b32.xlu1 %v5941_v28, %s5752_s25  ;;  %8879 = vst [vmem:[#allocation32_spill] sm:$0xff] %v6406_v62  ;;  %v1116_v56 = vsel %vm1114_vm12, %v6110_v53, %v6206_v15  ;;  %v815_v53 = vsel %vm812_vm7, %v6210_v17, %v6158_v3  ;;  %v447_v30 = vadd.f32 %v446_v63, %v445_v49 }
 0x1a4   : > { %v748_v23 = vadd.f32 %v747_v50, %v746_v57  ;;  %v6401_v4 = vpop.permute.xlu0 %804  ;;  %v6403_v41 = vpop.permute.xlu2 %1110  ;;  %8880 = vst [vmem:[#allocation33_spill] sm:$0xff] %v6414_v5  ;;  %v717_v57 = vsel %vm714_vm6, %v6198_v14, %v6172_v7  ;;  %v6432_v7 = vmul.f32 %v716_v12, %v5979_v42  ;;  %v814_v14 = vsel %vm812_vm7, %v6124_v59, %v6210_v17  ;;  %v6446_v12 = vld [vmem:[#allocation7 + $0x1] ss:$8 sm:$0xf] }
 0x1a5   : > { %v548_v45 = vadd.f32 %v547_v19, %v546_v60  ;;  %v6411_v27 = vpop.permute.xlu1 %610  ;;  %v1117_v60 = vsel %vm1114_vm12, %v6206_v15, %v6182_v9  ;;  %8881 = vst [vmem:[#allocation34_spill] sm:$0xff] %v6428_v35  ;;  %v915_v9 = vsel %vm912_vm10, %v6184_v10, %v6228_v22  ;;  %v929_v15 = vsel %vm912_vm10, %v6228_v22, %v6150_v2 }
 0x1a6   : > { %v749_v48 = vrot.slane %v748_v23, 2  ;;  %v618_v47 = vsel %vm614_vm9, %v6244_v37, %v6411_v27  ;;  %8882 = vst [vmem:[#allocation35_spill] sm:$0xff] %v6432_v7  ;;  %v6450_v59 = vmul.f32 %v717_v57, %v5981_v43  ;;  %v6453_v5 = vmul.f32 %v1116_v56, %v5979_v42  ;;  %v6480_v56 = vld [vmem:[#allocation7 + $0x5] ss:$8 sm:$0xf] }
 0x1a7   : > { %v549_v50 = vrot.slane %v548_v45, 2  ;;  %v636_v11 = vmul.f32 %v618_v47, %v5957_v33  ;;  %v6456_v3 = vmul.f32 %v1117_v60, %v5981_v43  ;;  %v771_v17 = vperm.slane %v6428_v35, 1 }
 0x1a8   : > { %v750_v19 = vadd.f32 %v749_v48, %v748_v23  ;;  %8883 = vst [vmem:[#allocation36_spill] sm:$0xff] %v6450_v59  ;;  %v6464_v2 = vmul.f32 %v814_v14, %v5953_v31  ;;  %v6467_v10 = vmul.f32 %v815_v53, %v5979_v42  ;;  %v6474_v23 = vmul.f32 %v915_v9, %v5979_v42  ;;  %v6491_v9 = vld [vmem:[#allocation7 + $0x4] ss:$8 sm:$0xf] }
 0x1a9   : > { %v646_v47 = vadd.f32 %v636_v11, %v6296_v58  ;;  %8884 = vst [vmem:[#allocation37_spill] sm:$0xff] %v6453_v5  ;;  %v550_v22 = vadd.f32 %v549_v50, %v548_v45  ;;  %v6469_v58 = vld [vmem:[#allocation7 + $0x2] ss:$8 sm:$0xf]  ;;  %v6477_v63 = vmul.f32 %v929_v15, %v5981_v43  ;;  %v571_v48 = vperm.slane %v6446_v12, 1 }
 0x1aa   : > { %8885 = vst [vmem:[#allocation38_spill] sm:$0xff] %v6456_v3  ;;  %1406 = vrot.lane.b32.xlu0 %v5959_v34, %s5752_s25  ;;  %1410 = vrot.lane.b32.xlu2 %v5967_v38, %s5752_s25  ;;  %v751_v57 = vrot.slane %v750_v19, 1  ;;  %v8888_v50 = vperm.slane %v6318_v61, 1  ;;  %v671_v31 = vperm.slane %v6469_v58, 1 }
 0x1ab   : > { %v647_v49 = vrot.slane %v646_v47, 4  ;;  %1408 = vrot.lane.b32.xlu1 %v5963_v36, %s5752_s25  ;;  %8886 = vst [vmem:[#allocation39_spill] sm:$0xff] %v6474_v23  ;;  %v6505_v23 = vld [vmem:[#allocation7 + $0x6] ss:$8 sm:$0xf] }
 0x1ac   : > { %v6482_v60 = vpop.permute.xlu0 %906  ;;  %v599_v45 = vpop.permute.xlu2 %598  ;;  %v6486_v11 = vmul.f32 %v8888_v50, %v447_v30  ;;  %8889 = vst [vmem:[#allocation41_spill] sm:$0xff] %v6505_v23  ;;  %v752_v6 = vadd.f32 %v751_v57, %v750_v19 }
 0x1ad   : > { %8887 = vst [vmem:[#allocation40_spill] sm:$0xff] %v6482_v60  ;;  %v648_v14 = vadd.f32 %v647_v49, %v646_v47  ;;  %v916_v53 = vsel %vm912_vm10, %v6246_v40, %v6482_v60  ;;  %v6493_v15 = vpop.permute.xlu1 %806  ;;  %v630_v42 = vsel %vm614_vm9, %v599_v45, %v6244_v37  ;;  %v551_v49 = vrot.slane %v550_v22, 1 }
 0x1ae   : > { %v935_v62 = vmul.f32 %v916_v53, %v5955_v32  ;;  %v816_v30 = vsel %vm812_vm7, %v6401_v4, %v6493_v15  ;;  %v635_v47 = vmul.f32 %v630_v42, %v5955_v32 }
 0x1af   : > { %v649_v50 = vrot.slane %v648_v14, 2  ;;  %v835_v5 = vmul.f32 %v816_v30, %v5955_v32 }
 0x1b0   : > { %v939_v37 = vadd.f32 %v935_v62, %v6316_v44  ;;  %v639_v53 = vadd.f32 %v635_v47, %v6396_v20  ;;  %v552_v62 = vadd.f32 %v551_v49, %v550_v22 }
 0x1b1   : > { %v650_v0 = vadd.f32 %v649_v50, %v648_v14  ;;  %v839_v42 = vadd.f32 %v835_v5, %v6261_v24  ;;  %v6522_v5 = vmul.f32 %v771_v17, %v752_v6  ;;  %v8892_v24 = vld [vmem:[#allocation17_spill] sm:$0xff] }
 0x1b2   : > { %v940_v7 = vrot.slane %v939_v37, 4  ;;  %v640_v3 = vrot.slane %v639_v53, 4  ;;  %1412 = vrot.lane.b32.xlu0 %v5993_v54, %s5752_s25  ;;  %1498 = vrot.lane.b32.xlu2 %v5943_v29, %s5753_s20  ;;  %s5768_s25 = smov 80  }
 0x1b3   : > { %v651_v19 = vrot.slane %v650_v0, 1  ;;  %v840_v57 = vrot.slane %v839_v42, 4  ;;  %1496 = vrot.lane.b32.xlu1 %v5941_v28, %s5753_s20  ;;  %8890 = vst [vmem:[#allocation42_spill] sm:$0xff] %v6522_v5 }
 0x1b4   : > { %v941_v14 = vadd.f32 %v940_v7, %v939_v37  ;;  %v641_v30 = vadd.f32 %v640_v3, %v639_v53  ;;  %v6524_v47 = vpop.permute.xlu0 %387  ;;  %v613_v60 = vpop.permute.xlu2 %612  ;;  %v6538_v37 = vmul.f32 %v571_v48, %v552_v62  ;;  %v6547_v48 = vld [vmem:[#allocation7 + $0x7] ss:$8 sm:$0xf] }
 0x1b5   : > { %v652_v44 = vadd.f32 %v651_v19, %v650_v0  ;;  %v841_v43 = vadd.f32 %v840_v57, %v839_v42  ;;  %v425_v22 = vsel %vm409_vm5, %v6524_v47, %v6196_v13  ;;  %v6530_v49 = vpop.permute.xlu1 %1004  ;;  %v619_v20 = vsel %vm614_vm9, %v6411_v27, %v613_v60 }
 0x1b6   : > { %8891 = vst [vmem:[#allocation43_spill] sm:$0xff] %v6530_v49  ;;  %v942_v6 = vrot.slane %v941_v14, 2  ;;  %v642_v17 = vrot.slane %v641_v30, 2  ;;  %v430_v7 = vmul.f32 %v425_v22, %v5955_v32  ;;  %v1016_v3 = vsel %vm1012_vm11, %v6530_v49, %v6322_v18 }
 0x1b7   : > { %v842_v0 = vrot.slane %v841_v43, 2  ;;  %v1035_v53 = vmul.f32 %v1016_v3, %v5955_v32  ;;  %v620_v13 = vsel %vm614_vm9, %v613_v60, %v599_v45  ;;  %v637_v27 = vmul.f32 %v619_v20, %v5985_v46 }
 0x1b8   : > { %v943_v42 = vadd.f32 %v942_v6, %v941_v14  ;;  %v643_v19 = vadd.f32 %v642_v17, %v641_v30  ;;  %v434_v57 = vadd.f32 %v430_v7, %v6310_v39  ;;  %v638_v59 = vmul.f32 %v620_v13, %v8892_v24  ;;  %v8893_v14 = vld [vmem:[#allocation14_spill] sm:$0xff] }
 0x1b9   : > { %v843_v50 = vadd.f32 %v842_v0, %v841_v43  ;;  %v1039_v22 = vadd.f32 %v1035_v53, %v6339_v52  ;;  %v6550_v3 = vmul.f32 %v671_v31, %v652_v44  ;;  %v653_v45 = vadd.f32 %v637_v27, %v6307_v1 }
 0x1ba   : > { %v435_v60 = vrot.slane %v434_v57, 4  ;;  %1500 = vrot.lane.b32.xlu0 %v5959_v34, %s5753_s20  ;;  %1504 = vrot.lane.b32.xlu2 %v5963_v36, %s5753_s20  ;;  %v944_v43 = vrot.slane %v943_v42, 1  ;;  %v644_v52 = vrot.slane %v643_v19, 1  ;;  %v660_v20 = vadd.f32 %v638_v59, %v6399_v21 }
 0x1bb   : > { %v1040_v39 = vrot.slane %v1039_v22, 4  ;;  %1502 = vrot.lane.b32.xlu1 %v8893_v14, %s5753_s20  ;;  %v654_v30 = vrot.slane %v653_v45, 4  ;;  %v844_v7 = vrot.slane %v843_v50, 1  ;;  %v686_v21 = vrot.slane %v6550_v3, 7 }
 0x1bc   : > { %v436_v44 = vadd.f32 %v435_v60, %v434_v57  ;;  %v499_v6 = vpop.permute.xlu0 %498  ;;  %v6562_v17 = vpop.permute.xlu2 %808  ;;  %v661_v53 = vrot.slane %v660_v20, 4  ;;  %v945_v60 = vadd.f32 %v944_v43, %v943_v42  ;;  %v645_v31 = vadd.f32 %v644_v52, %v643_v19 }
 0x1bd   : > { %v1041_v0 = vadd.f32 %v1040_v39, %v1039_v22  ;;  %v530_v13 = vsel %vm514_vm8, %v499_v6, %v6333_v25  ;;  %v6566_v27 = vpop.permute.xlu1 %1108  ;;  %v655_v62 = vadd.f32 %v654_v30, %v653_v45  ;;  %v845_v39 = vadd.f32 %v844_v7, %v843_v50 }
 0x1be   : > { %v437_v59 = vrot.slane %v436_v44, 2  ;;  %v662_v49 = vadd.f32 %v661_v53, %v660_v20  ;;  %v535_v1 = vmul.f32 %v530_v13, %v5955_v32  ;;  %v1118_v25 = vsel %vm1114_vm12, %v6566_v27, %v6403_v41 }
 0x1bf   : > { %v1042_v23 = vrot.slane %v1041_v0, 2  ;;  %v656_v22 = vrot.slane %v655_v62, 2  ;;  %v1136_v45 = vmul.f32 %v1118_v25, %v5957_v33  ;;  %v817_v42 = vsel %vm812_vm7, %v6493_v15, %v6562_v17 }
 0x1c0   : > { %v438_v5 = vadd.f32 %v437_v59, %v436_v44  ;;  %v663_v35 = vrot.slane %v662_v49, 2  ;;  %v539_v3 = vadd.f32 %v535_v1, %v8894_v26  ;;  %v8895_v50 = vperm.slane %v6469_v58, 0 }
 0x1c1   : > { %v657_v57 = vadd.f32 %v656_v22, %v655_v62  ;;  %v1146_v20 = vadd.f32 %v1136_v45, %v6382_v51  ;;  %v8896_v15 = vperm.slane %v6480_v56, 0  ;;  %v1043_v44 = vadd.f32 %v1042_v23, %v1041_v0 }
 0x1c2   : > { %v439_v30 = vrot.slane %v438_v5, 1  ;;  %1506 = vrot.lane.b32.xlu0 %v5967_v38, %s5753_s20  ;;  %1510 = vrot.lane.b32.xlu2 %v5995_v55, %s5753_s20  ;;  %v678_v43 = vmul.f32 %v8895_v50, %v645_v31  ;;  %v664_v26 = vadd.f32 %v663_v35, %v662_v49  ;;  %v540_v52 = vrot.slane %v539_v3, 4 }
 0x1c3   : > { %1508 = vrot.lane.b32.xlu1 %v5993_v54, %s5753_s20  ;;  %v6591_v62 = vmul.f32 %v8896_v15, %v945_v60  ;;  %v658_v1 = vrot.slane %v657_v57, 1  ;;  %v836_v7 = vmul.f32 %v817_v42, %v5957_v33  ;;  %v8898_v31 = vperm.slane %v6491_v9, 0  ;;  %s5769_s20 = smov 47  }
 0x1c4   : > { %v513_v53 = vpop.permute.xlu0 %512  ;;  %v6594_v13 = vpop.permute.xlu2 %910  ;;  %v665_v49 = vrot.slane %v664_v26, 1  ;;  %v541_v51 = vadd.f32 %v540_v52, %v539_v3  ;;  %v1147_v59 = vrot.slane %v1146_v20, 4  ;;  %v440_v25 = vadd.f32 %v439_v30, %v438_v5 }
 0x1c5   : > { %8897 = vst [vmem:[#allocation17_spill] sm:$0xff] %v6591_v62  ;;  %v6598_v35 = vmul.f32 %v8898_v31, %v845_v39  ;;  %v408_v22 = vpop.permute.xlu1 %407  ;;  %v659_v45 = vadd.f32 %v658_v1, %v657_v57  ;;  %v846_v60 = vadd.f32 %v836_v7, %v6464_v2  ;;  %v519_v23 = vsel %vm514_vm8, %v6208_v16, %v513_v53  ;;  %v8902_v7 = vld [vmem:[#allocation27_spill] sm:$0xff] }
 0x1c6   : > { %v689_v0 = vsel %vm483_vm1, %v678_v43, %v686_v21  ;;  %v666_v42 = vadd.f32 %v665_v49, %v664_v26  ;;  %v542_v50 = vrot.slane %v541_v51, 2  ;;  %v1148_v15 = vadd.f32 %v1147_v59, %v1146_v20  ;;  %v8904_v59 = vld [vmem:[#allocation19_spill] sm:$0xff] }
 0x1c7   : > { %v1044_v19 = vrot.slane %v1043_v44, 1  ;;  %v8899_v39 = vperm.slane %v6469_v58, 2  ;;  %v847_v62 = vrot.slane %v846_v60, 4  ;;  %v520_v3 = vsel %vm514_vm8, %v513_v53, %v499_v6 }
 0x1c8   : > { %v8900_v5 = vperm.slane %v6469_v58, 3  ;;  %v543_v30 = vadd.f32 %v542_v50, %v541_v51  ;;  %v1149_v2 = vrot.slane %v1148_v15, 2  ;;  %v537_v52 = vmul.f32 %v519_v23, %v5985_v46 }
 0x1c9   : > { %v680_v31 = vmul.f32 %v8899_v39, %v659_v45  ;;  %v8901_v16 = vperm.slane %v6318_v61, 0  ;;  %v848_v26 = vadd.f32 %v847_v62, %v846_v60  ;;  %v538_v20 = vmul.f32 %v520_v3, %v8892_v24  ;;  %v8903_v62 = vld [vmem:[#allocation28_spill] sm:$0xff] }
 0x1ca   : > { %v681_v57 = vmul.f32 %v8900_v5, %v666_v42  ;;  %1596 = vrot.lane.b32.xlu0 %v5941_v28, %s5754_s27  ;;  %1600 = vrot.lane.b32.xlu2 %v5959_v34, %s5754_s27  ;;  %v544_v6 = vrot.slane %v543_v30, 1  ;;  %v1150_v1 = vadd.f32 %v1149_v2, %v1148_v15  ;;  %v553_v53 = vadd.f32 %v537_v52, %v8902_v7 }
 0x1cb   : > { %v472_v21 = vmul.f32 %v8901_v16, %v440_v25  ;;  %v687_v43 = vrot.slane %v680_v31, 6  ;;  %1598 = vrot.lane.b32.xlu1 %v5943_v29, %s5754_s27  ;;  %v849_v49 = vrot.slane %v848_v26, 2  ;;  %v560_v51 = vadd.f32 %v538_v20, %v8903_v62 }
 0x1cc   : > { %v688_v58 = vrot.slane %v681_v57, 5  ;;  %v414_v25 = vsel %vm409_vm5, %v8904_v59, %v408_v22  ;;  %v415_v45 = vsel %vm409_vm5, %v408_v22, %v6524_v47  ;;  %v811_v60 = vpop.permute.xlu0 %810  ;;  %v6625_v23 = vpop.permute.xlu2 %1198  ;;  %v545_v50 = vadd.f32 %v544_v6, %v543_v30  ;;  %v8906_v6 = vld [vmem:[#allocation22_spill] sm:$0xff] }
 0x1cd   : > { %v1151_v15 = vrot.slane %v1150_v1, 1  ;;  %v554_v39 = vrot.slane %v553_v53, 4  ;;  %v6628_v31 = vpop.permute.xlu1 %698  ;;  %v850_v5 = vadd.f32 %v849_v49, %v848_v26  ;;  %v561_v57 = vrot.slane %v560_v51, 4 }
 0x1ce   : > { %v690_v42 = vsel %vm485_vm2, %v687_v43, %v688_v58  ;;  %v432_v2 = vmul.f32 %v414_v25, %v5985_v46  ;;  %v573_v47 = vperm.slane %v6446_v12, 3  ;;  %v466_v16 = vperm.slane %v6318_v61, 2 }
 0x1cf   : > { %v691_v3 = vsel %vm487_vm3, %v689_v0, %v690_v42  ;;  %v555_v22 = vadd.f32 %v554_v39, %v553_v53  ;;  %v433_v30 = vmul.f32 %v415_v45, %v8892_v24  ;;  %v6638_v43 = vadd.f32 %v1044_v19, %v1043_v44  ;;  %v8909_v53 = vld [vmem:[#allocation24_spill] sm:$0xff] }
 0x1d0   : > { %5397 = vst.msk [vmem:[%s6027_s21 + $0x2] ss:$8 sm:$0xf] %vm6020_vm4, %v691_v3  ;;  %v1152_v20 = vadd.f32 %v1151_v15, %v1150_v1  ;;  %v562_v58 = vadd.f32 %v561_v57, %v560_v51  ;;  %v448_v0 = vadd.f32 %v432_v2, %v8906_v6  ;;  %v8907_v26 = vrot.slane %v6486_v11, 7 }
 0x1d1   : > { %v8908_v49 = vperm.slane %v6446_v12, 0  ;;  %v556_v59 = vrot.slane %v555_v22, 2  ;;  %v455_v25 = vadd.f32 %v433_v30, %v8909_v53  ;;  %v851_v42 = vrot.slane %v850_v5, 1 }
 0x1d2   : > { %v6644_v7 = vsel %vm483_vm1, %v472_v21, %v8907_v26  ;;  %v563_v39 = vrot.slane %v562_v58, 2  ;;  %v449_v45 = vrot.slane %v448_v0, 4  ;;  %v930_v19 = vsel %vm912_vm10, %v6594_v13, %v6246_v40  ;;  %1602 = vrot.lane.b32.xlu0 %v8893_v14, %s5754_s27  ;;  %1606 = vrot.lane.b32.xlu2 %v5967_v38, %s5754_s27 }
 0x1d3   : > { %v578_v62 = vmul.f32 %v8908_v49, %v545_v50  ;;  %v557_v11 = vadd.f32 %v556_v59, %v555_v22  ;;  %v467_v44 = vperm.slane %v6318_v61, 3  ;;  %v456_v21 = vrot.slane %v455_v25, 4  ;;  %1604 = vrot.lane.b32.xlu1 %v5963_v36, %s5754_s27 }
 0x1d4   : > { %v938_v1 = vmul.f32 %v930_v19, %v8892_v24  ;;  %v8910_v51 = vperm.slane %v6547_v48, 1  ;;  %v564_v40 = vadd.f32 %v563_v39, %v562_v58  ;;  %v450_v15 = vadd.f32 %v449_v45, %v448_v0  ;;  %v6665_v57 = vpop.permute.xlu0 %1008  ;;  %v6667_v2 = vpop.permute.xlu2 %1206 }
 0x1d5   : > { %v8911_v22 = vrot.slane %v6538_v37, 7  ;;  %v558_v6 = vrot.slane %v557_v11, 1  ;;  %v457_v26 = vadd.f32 %v456_v21, %v455_v25  ;;  %v6673_v59 = vpop.permute.xlu1 %712  ;;  %v818_v0 = vsel %vm812_vm7, %v6562_v17, %v811_v60 }
 0x1d6   : > { %v6662_v50 = vmul.f32 %v8910_v51, %v1152_v20  ;;  %v960_v49 = vadd.f32 %v938_v1, %v6477_v63  ;;  %v852_v20 = vadd.f32 %v851_v42, %v850_v5  ;;  %v565_v53 = vrot.slane %v564_v40, 1 }
 0x1d7   : > { %v589_v30 = vsel %vm483_vm1, %v578_v62, %v8911_v22  ;;  %v451_v58 = vrot.slane %v450_v15, 2  ;;  %v559_v39 = vadd.f32 %v558_v6, %v557_v11  ;;  %v458_v45 = vrot.slane %v457_v26, 2  ;;  %v8927_v62 = vld [vmem:[#allocation31_spill] sm:$0xff] }
 0x1d8   : > { %v961_v19 = vrot.slane %v960_v49, 4  ;;  %v830_v37 = vsel %vm812_vm7, %v811_v60, %v6401_v4  ;;  %v566_v51 = vadd.f32 %v565_v53, %v564_v40  ;;  %v837_v63 = vmul.f32 %v818_v0, %v5985_v46  ;;  %v8915_v53 = vld [vmem:[#allocation20_spill] sm:$0xff] }
 0x1d9   : > { %v452_v25 = vadd.f32 %v451_v58, %v450_v15  ;;  %v8912_v21 = vperm.slane %v6446_v12, 2  ;;  %v459_v42 = vadd.f32 %v458_v45, %v457_v26  ;;  %v838_v22 = vmul.f32 %v830_v37, %v8892_v24  ;;  %v8914_v15 = vld [vmem:[#allocation26_spill] sm:$0xff] }
 0x1da   : > { %v962_v1 = vadd.f32 %v961_v19, %v960_v49  ;;  %v8913_v17 = vperm.slane %v6491_v9, 1  ;;  %v581_v6 = vmul.f32 %v573_v47, %v566_v51  ;;  %v853_v4 = vadd.f32 %v837_v63, %v6467_v10  ;;  %1608 = vrot.lane.b32.xlu0 %v5993_v54, %s5754_s27  ;;  %1696 = vrot.lane.b32.xlu2 %v5941_v28, %s5755_s5 }
 0x1db   : > { %v580_v5 = vmul.f32 %v8912_v21, %v559_v39  ;;  %v453_v3 = vrot.slane %v452_v25, 1  ;;  %v460_v60 = vrot.slane %v459_v42, 1  ;;  %v860_v26 = vadd.f32 %v838_v22, %v8914_v15  ;;  %1610 = vrot.lane.b32.xlu1 %v5995_v55, %s5754_s27  ;;  %s5770_s27 = smov 31  }
 0x1dc   : > { %v879_v11 = vmul.f32 %v8913_v17, %v852_v20  ;;  %v963_v40 = vrot.slane %v962_v1, 2  ;;  %v588_v49 = vrot.slane %v581_v6, 5  ;;  %v854_v20 = vrot.slane %v853_v4, 4  ;;  %v6697_v58 = vpop.permute.xlu0 %1098  ;;  %v6699_v0 = vpop.permute.xlu2 %1212 }
 0x1dd   : > { %v587_v12 = vrot.slane %v580_v5, 6  ;;  %v454_v47 = vadd.f32 %v453_v3, %v452_v25  ;;  %v730_v10 = vsel %vm714_vm6, %v6628_v31, %v8915_v53  ;;  %v461_v39 = vadd.f32 %v460_v60, %v459_v42  ;;  %v6702_v51 = vpop.permute.xlu1 %908  ;;  %v8917_v53 = vld [vmem:[#allocation25_spill] sm:$0xff] }
 0x1de   : > { %v964_v45 = vadd.f32 %v963_v40, %v962_v1  ;;  %v861_v19 = vrot.slane %v860_v26, 4  ;;  %v735_v37 = vmul.f32 %v730_v10, %v5955_v32  ;;  %v886_v63 = vrot.slane %v879_v11, 7 }
 0x1df   : > { %v590_v3 = vsel %vm485_vm2, %v587_v12, %v588_v49  ;;  %v474_v25 = vmul.f32 %v466_v16, %v454_v47  ;;  %v855_v21 = vadd.f32 %v854_v20, %v853_v4  ;;  %v475_v22 = vmul.f32 %v467_v44, %v461_v39  ;;  %v8916_v49 = vld [vmem:[#allocation29_spill] sm:$0xff] }
 0x1e0   : > { %v591_v5 = vsel %vm487_vm3, %v589_v30, %v590_v3  ;;  %v965_v17 = vrot.slane %v964_v45, 1  ;;  %v862_v6 = vadd.f32 %v861_v19, %v860_v26  ;;  %v739_v60 = vadd.f32 %v735_v37, %v6372_v8  ;;  %v8918_v37 = vld [vmem:[#allocation34_spill] sm:$0xff] }
 0x1e1   : > { %5396 = vst.msk [vmem:[%s6027_s21 + $0x1] ss:$8 sm:$0xf] %vm6020_vm4, %v591_v5  ;;  %v481_v42 = vrot.slane %v474_v25, 6  ;;  %v856_v1 = vrot.slane %v855_v21, 2  ;;  %v1017_v11 = vsel %vm1012_vm11, %v6322_v18, %v6665_v57  ;;  %v482_v12 = vrot.slane %v475_v22, 5 }
 0x1e2   : > { %v872_v61 = vperm.slane %v6491_v9, 2  ;;  %v863_v16 = vrot.slane %v862_v6, 2  ;;  %v1036_v30 = vmul.f32 %v1017_v11, %v5957_v33  ;;  %v6719_v44 = vsel %vm483_vm1, %v6598_v35, %v886_v63  ;;  %1698 = vrot.lane.b32.xlu0 %v5943_v29, %s5755_s5  ;;  %1702 = vrot.lane.b32.xlu2 %v8893_v14, %s5755_s5 }
 0x1e3   : > { %v873_v4 = vperm.slane %v6491_v9, 3  ;;  %v857_v40 = vadd.f32 %v856_v1, %v855_v21  ;;  %v740_v15 = vrot.slane %v739_v60, 4  ;;  %v486_v18 = vsel %vm485_vm2, %v481_v42, %v482_v12  ;;  %1700 = vrot.lane.b32.xlu1 %v5959_v34, %s5755_s5 }
 0x1e4   : > { %v966_v8 = vadd.f32 %v965_v17, %v964_v45  ;;  %v864_v26 = vadd.f32 %v863_v16, %v862_v6  ;;  %v1046_v47 = vadd.f32 %v1036_v30, %v8916_v49  ;;  %v488_v9 = vsel %vm487_vm3, %v6644_v7, %v486_v18  ;;  %v6735_v39 = vpop.permute.xlu0 %1112  ;;  %v6737_v19 = vpop.permute.xlu2 %1302 }
 0x1e5   : > { %v858_v35 = vrot.slane %v857_v40, 1  ;;  %v741_v20 = vadd.f32 %v740_v15, %v739_v60  ;;  %v719_v10 = vsel %vm714_vm6, %v8917_v53, %v6673_v59  ;;  %494 = vst.msk [vmem:[%s6027_s21] ss:$8 sm:$0xf] %vm6020_vm4, %v488_v9  ;;  %v770_v63 = vperm.slane %v8918_v37, 0  ;;  %v6746_v25 = vpop.permute.xlu1 %1010  ;;  %v8920_v60 = vld [vmem:[#allocation41_spill] sm:$0xff] }
 0x1e6   : > { %v865_v45 = vrot.slane %v864_v26, 1  ;;  %v1047_v3 = vrot.slane %v1046_v47, 4  ;;  %v720_v7 = vsel %vm714_vm6, %v6673_v59, %v6628_v31  ;;  %v737_v22 = vmul.f32 %v719_v10, %v5985_v46  ;;  %v8921_v15 = vld [vmem:[#allocation35_spill] sm:$0xff]  ;;  %v8922_v59 = vld [vmem:[#allocation36_spill] sm:$0xff] }
 0x1e7   : > { %v859_v21 = vadd.f32 %v858_v35, %v857_v40  ;;  %v742_v5 = vrot.slane %v741_v20, 2  ;;  %v738_v17 = vmul.f32 %v720_v7, %v8892_v24  ;;  %v8919_v6 = vperm.slane %v6480_v56, 3 }
 0x1e8   : > { %v866_v1 = vadd.f32 %v865_v45, %v864_v26  ;;  %v1071_v11 = vperm.slane %v8920_v60, 1  ;;  %v1048_v12 = vadd.f32 %v1047_v3, %v1046_v47  ;;  %v753_v31 = vadd.f32 %v737_v22, %v8921_v15  ;;  %v8923_v3 = vld [vmem:[#allocation21_spill] sm:$0xff] }
 0x1e9   : > { %v6752_v42 = vmul.f32 %v8919_v6, %v966_v8  ;;  %v880_v16 = vmul.f32 %v872_v61, %v859_v21  ;;  %v743_v30 = vadd.f32 %v742_v5, %v741_v20  ;;  %v760_v18 = vadd.f32 %v738_v17, %v8922_v59 }
 0x1ea   : > { %v881_v40 = vmul.f32 %v873_v4, %v866_v1  ;;  %v1049_v49 = vrot.slane %v1048_v12, 2  ;;  %v1130_v9 = vsel %vm1114_vm12, %v6697_v58, %v6566_v27  ;;  %v754_v53 = vrot.slane %v753_v31, 4  ;;  %1704 = vrot.lane.b32.xlu0 %v5963_v36, %s5755_s5  ;;  %1708 = vrot.lane.b32.xlu2 %v5993_v54, %s5755_s5  ;;  %v8924_v1 = vld [vmem:[#allocation30_spill] sm:$0xff] }
 0x1eb   : > { %v887_v35 = vrot.slane %v880_v16, 6  ;;  %v744_v8 = vrot.slane %v743_v30, 1  ;;  %v761_v26 = vrot.slane %v760_v18, 4  ;;  %v772_v4 = vperm.slane %v8918_v37, 2  ;;  %1706 = vrot.lane.b32.xlu1 %v5967_v38, %s5755_s5 }
 0x1ec   : > { %v888_v61 = vrot.slane %v881_v40, 5  ;;  %v1050_v47 = vadd.f32 %v1049_v49, %v1048_v12  ;;  %v1135_v20 = vmul.f32 %v1130_v9, %v5955_v32  ;;  %v773_v27 = vperm.slane %v8918_v37, 3  ;;  %v6772_v21 = vpop.permute.xlu0 %1202  ;;  %v6774_v5 = vpop.permute.xlu2 %1308 }
 0x1ed   : > { %v755_v10 = vadd.f32 %v754_v53, %v753_v31  ;;  %v762_v45 = vadd.f32 %v761_v26, %v760_v18  ;;  %v1217_v7 = vsel %vm1214_vm13, %v6667_v2, %v8923_v3  ;;  %v745_v17 = vadd.f32 %v744_v8, %v743_v30  ;;  %v6778_v16 = vpop.permute.xlu1 %1204  ;;  %v8925_v30 = vld [vmem:[#allocation40_spill] sm:$0xff] }
 0x1ee   : > { %v890_v22 = vsel %vm485_vm2, %v887_v35, %v888_v61  ;;  %v1051_v6 = vrot.slane %v1050_v47, 1  ;;  %v1139_v12 = vadd.f32 %v1135_v20, %v8924_v1  ;;  %v917_v49 = vsel %vm912_vm10, %v8925_v30, %v6702_v51  ;;  %v8926_v53 = vld [vmem:[#allocation16_spill] sm:$0xff] }
 0x1ef   : > { %v891_v15 = vsel %vm487_vm3, %v6719_v44, %v890_v22  ;;  %v756_v31 = vrot.slane %v755_v10, 2  ;;  %v763_v59 = vrot.slane %v762_v45, 2  ;;  %v918_v9 = vsel %vm912_vm10, %v6702_v51, %v6594_v13  ;;  %v6823_v51 = vld [vmem:[#allocation7 + $0x20] ss:$8 sm:$0xf] }
 0x1f0   : > { %5399 = vst.msk [vmem:[%s6027_s21 + $0x4] ss:$8 sm:$0xf] %vm6020_vm4, %v891_v15  ;;  %v1140_v40 = vrot.slane %v1139_v12, 4  ;;  %v1234_v44 = vmul.f32 %v1217_v7, %v8926_v53  ;;  %v936_v26 = vmul.f32 %v917_v49, %v5957_v33  ;;  %v778_v61 = vmul.f32 %v770_v63, %v745_v17  ;;  %v8928_v63 = vld [vmem:[#allocation39_spill] sm:$0xff] }
 0x1f1   : > { %v757_v35 = vadd.f32 %v756_v31, %v755_v10  ;;  %v764_v8 = vadd.f32 %v763_v59, %v762_v45  ;;  %v1052_v20 = vadd.f32 %v1051_v6, %v1050_v47  ;;  %v937_v1 = vmul.f32 %v918_v9, %v5985_v46  ;;  %v8930_v31 = vld [vmem:[#allocation42_spill] sm:$0xff] }
 0x1f2   : > { %v1141_v22 = vadd.f32 %v1140_v40, %v1139_v12  ;;  %v946_v18 = vadd.f32 %v936_v26, %v8927_v62  ;;  %v1220_v30 = vsel %vm1214_vm13, %v6699_v0, %v6625_v23  ;;  %1710 = vrot.lane.b32.xlu0 %v5995_v55, %s5755_s5  ;;  %1798 = vrot.lane.b32.xlu2 %v5995_v55, %s5756_s9  ;;  %v972_v7 = vperm.slane %v6480_v56, 2  ;;  %s5771_s5 = smov 15  }
 0x1f3   : > { %v758_v15 = vrot.slane %v757_v35, 1  ;;  %v765_v37 = vrot.slane %v764_v8, 1  ;;  %v953_v47 = vadd.f32 %v937_v1, %v8928_v63  ;;  %v1238_v10 = vmul.f32 %v1220_v30, %v8892_v24  ;;  %1796 = vrot.lane.b32.xlu1 %v8893_v14, %s5756_s9 }
 0x1f4   : > { %v1142_v13 = vrot.slane %v1141_v22, 2  ;;  %v947_v17 = vrot.slane %v946_v18, 4  ;;  %v6810_v6 = vpop.permute.xlu0 %1208  ;;  %v6812_v12 = vpop.permute.xlu2 %1396  ;;  %v8931_v59 = vrot.slane %v8930_v31, 7  ;;  %v8938_v31 = vld [vmem:[#allocation33_spill] sm:$0xff]  ;;  %vm1512_vm5 = vcmask 932864  }
 0x1f5   : > { %v759_v62 = vadd.f32 %v758_v15, %v757_v35  ;;  %v766_v45 = vadd.f32 %v765_v37, %v764_v8  ;;  %8929 = vst [vmem:[#allocation14_spill] sm:$0xff] %v6812_v12  ;;  %v954_v9 = vrot.slane %v953_v47, 4  ;;  %v1260_v26 = vadd.f32 %v1238_v10, %v1234_v44  ;;  %v6817_v1 = vpop.permute.xlu1 %1210 }
 0x1f6   : > { %v789_v40 = vsel %vm483_vm1, %v778_v61, %v8931_v59  ;;  %v1143_v49 = vadd.f32 %v1142_v13, %v1141_v22  ;;  %v6821_v35 = vmul.f32 %v1071_v11, %v1052_v20  ;;  %v948_v15 = vadd.f32 %v947_v17, %v946_v18  ;;  %v8932_v59 = vld [vmem:[#allocation37_spill] sm:$0xff] }
 0x1f7   : > { %v780_v37 = vmul.f32 %v772_v4, %v759_v62  ;;  %v781_v8 = vmul.f32 %v773_v27, %v766_v45  ;;  %v955_v63 = vadd.f32 %v954_v9, %v953_v47  ;;  %v1261_v12 = vrot.slane %v1260_v26, 4  ;;  %v8933_v9 = vld [vmem:[#allocation38_spill] sm:$0xff] }
 0x1f8   : > { %v1144_v30 = vrot.slane %v1143_v49, 1  ;;  %v1119_v61 = vsel %vm1114_vm12, %v6403_v41, %v6735_v39  ;;  %v949_v13 = vrot.slane %v948_v15, 2  ;;  %v1120_v11 = vsel %vm1114_vm12, %v6735_v39, %v6697_v58 }
 0x1f9   : > { %v787_v22 = vrot.slane %v780_v37, 6  ;;  %v788_v44 = vrot.slane %v781_v8, 5  ;;  %v956_v27 = vrot.slane %v955_v63, 2  ;;  %v1262_v18 = vadd.f32 %v1261_v12, %v1260_v26 }
 0x1fa   : > { %v1145_v4 = vadd.f32 %v1144_v30, %v1143_v49  ;;  %v1137_v20 = vmul.f32 %v1119_v61, %v5985_v46  ;;  %v950_v10 = vadd.f32 %v949_v13, %v948_v15  ;;  %v1273_v62 = vperm.slane %v6823_v51, 3  ;;  %1802 = vrot.lane.b32.xlu0 %v5941_v28, %s5756_s9  ;;  %1806 = vrot.lane.b32.xlu2 %v5959_v34, %s5756_s9 }
 0x1fb   : > { %v790_v47 = vsel %vm485_vm2, %v787_v22, %v788_v44  ;;  %v1138_v41 = vmul.f32 %v1120_v11, %v8892_v24  ;;  %v957_v45 = vadd.f32 %v956_v27, %v955_v63  ;;  %v1263_v17 = vrot.slane %v1262_v18, 2  ;;  %1804 = vrot.lane.b32.xlu1 %v5943_v29, %s5756_s9  ;;  %v8935_v27 = vld [vmem:[#allocation43_spill] sm:$0xff] }
 0x1fc   : > { %v791_v39 = vsel %vm487_vm3, %v789_v40, %v790_v47  ;;  %v951_v12 = vrot.slane %v950_v10, 1  ;;  %v1153_v49 = vadd.f32 %v1137_v20, %v8932_v59  ;;  %v6849_v37 = vpop.permute.xlu0 %1296  ;;  %v6851_v8 = vpop.permute.xlu2 %1404  ;;  %v8934_v40 = vperm.slane %v6547_v48, 0 }
 0x1fd   : > { %5398 = vst.msk [vmem:[%s6027_s21 + $0x3] ss:$8 sm:$0xf] %vm6020_vm4, %v791_v39  ;;  %v1160_v26 = vadd.f32 %v1138_v41, %v8933_v9  ;;  %v958_v30 = vrot.slane %v957_v45, 1  ;;  %v1264_v63 = vadd.f32 %v1263_v17, %v1262_v18  ;;  %v1018_v61 = vsel %vm1012_vm11, %v6665_v57, %v6746_v25  ;;  %v6858_v22 = vpop.permute.xlu1 %1298 }
 0x1fe   : > { %v1178_v15 = vmul.f32 %v8934_v40, %v1145_v4  ;;  %v952_v44 = vadd.f32 %v951_v12, %v950_v10  ;;  %v1154_v13 = vrot.slane %v1153_v49, 4  ;;  %v1030_v20 = vsel %vm1012_vm11, %v6746_v25, %v8935_v27  ;;  %v8937_v40 = vld [vmem:[#allocation32_spill] sm:$0xff] }
 0x1ff   : > { %v1161_v11 = vrot.slane %v1160_v26, 4  ;;  %v959_v47 = vadd.f32 %v958_v30, %v957_v45  ;;  %v1265_v41 = vrot.slane %v1264_v63, 1  ;;  %v1037_v39 = vmul.f32 %v1018_v61, %v5985_v46 }
 0x200   : > { %v1038_v4 = vmul.f32 %v1030_v20, %v8892_v24  ;;  %v8936_v18 = vperm.slane %v6480_v56, 1  ;;  %v1173_v57 = vperm.slane %v6547_v48, 3  ;;  %v1155_v59 = vadd.f32 %v1154_v13, %v1153_v49 }
 0x201   : > { %v1162_v9 = vadd.f32 %v1161_v11, %v1160_v26  ;;  %v980_v10 = vmul.f32 %v972_v7, %v959_v47  ;;  %v1072_v12 = vperm.slane %v8920_v60, 2  ;;  %v1053_v58 = vadd.f32 %v1037_v39, %v8937_v40 }
 0x202   : > { %v979_v17 = vmul.f32 %v8936_v18, %v952_v44  ;;  %v1060_v25 = vadd.f32 %v1038_v4, %v8938_v31  ;;  %v8939_v45 = vrot.slane %v6662_v50, 7  ;;  %v1156_v27 = vrot.slane %v1155_v59, 2  ;;  %1808 = vrot.lane.b32.xlu0 %v5963_v36, %s5756_s9  ;;  %1812 = vrot.lane.b32.xlu2 %v5993_v54, %s5756_s9  ;;  %v8940_v50 = vld [vmem:[#allocation17_spill] sm:$0xff] }
 0x203   : > { %v1163_v56 = vrot.slane %v1162_v9, 2  ;;  %v987_v7 = vrot.slane %v980_v10, 6  ;;  %v1266_v49 = vadd.f32 %v1265_v41, %v1264_v63  ;;  %v1054_v26 = vrot.slane %v1053_v58, 4  ;;  %1810 = vrot.lane.b32.xlu1 %v5967_v38, %s5756_s9  ;;  %s5772_s9 = smov 127  }
 0x204   : > { %v6874_v30 = vsel %vm483_vm1, %v1178_v15, %v8939_v45  ;;  %v986_v61 = vrot.slane %v979_v17, 7  ;;  %v1061_v44 = vrot.slane %v1060_v25, 4  ;;  %v1157_v15 = vadd.f32 %v1156_v27, %v1155_v59  ;;  %v6887_v20 = vpop.permute.xlu0 %1304  ;;  %v6889_v47 = vpop.permute.xlu2 %1410  ;;  %v8943_v27 = vld [vmem:[#allocation13_spill] sm:$0xff] }
 0x205   : > { %v1164_v13 = vadd.f32 %v1163_v56, %v1162_v9  ;;  %v1229_v11 = vsel %vm1214_vm13, %v8923_v3, %v6772_v21  ;;  %v8941_v63 = vrot.slane %v6752_v42, 5  ;;  %v1055_v39 = vadd.f32 %v1054_v26, %v1053_v58  ;;  %v6897_v17 = vpop.permute.xlu1 %1306  ;;  %v8944_v26 = vld [vmem:[#allocation15_spill] sm:$0xff] }
 0x206   : > { %v989_v31 = vsel %vm483_vm1, %v8940_v50, %v986_v61  ;;  %v1062_v4 = vadd.f32 %v1061_v44, %v1060_v25  ;;  %v1215_v18 = vsel %vm1214_vm13, %v6772_v21, %v6778_v16  ;;  %v1158_v9 = vrot.slane %v1157_v15, 1  ;;  %v8942_v21 = vld [vmem:[#allocation12_spill] sm:$0xff] }
 0x207   : > { %v990_v41 = vsel %vm485_vm2, %v987_v7, %v8941_v63  ;;  %v1165_v3 = vrot.slane %v1164_v13, 1  ;;  %v1216_v10 = vsel %vm1214_vm13, %v6778_v16, %v6667_v2  ;;  %v6908_v42 = vmul.f32 %v1273_v62, %v1266_v49 }
 0x208   : > { %v991_v59 = vsel %vm487_vm3, %v989_v31, %v990_v41  ;;  %v1056_v58 = vrot.slane %v1055_v39, 2  ;;  %v1063_v40 = vrot.slane %v1062_v4, 2  ;;  %v1231_v25 = vmul.f32 %v1229_v11, %v8942_v21 }
 0x209   : > { %5400 = vst.msk [vmem:[%s6027_s21 + $0x5] ss:$8 sm:$0xf] %vm6020_vm4, %v991_v59  ;;  %v1159_v45 = vadd.f32 %v1158_v9, %v1157_v15  ;;  %v1166_v61 = vadd.f32 %v1165_v3, %v1164_v13  ;;  %v1232_v56 = vmul.f32 %v1215_v18, %v8943_v27  ;;  %v1230_v7 = vsel %vm1214_vm13, %v6625_v23, %v6810_v6 }
 0x20a   : > { %v1057_v2 = vadd.f32 %v1056_v58, %v1055_v39  ;;  %v1064_v16 = vadd.f32 %v1063_v40, %v1062_v4  ;;  %v1233_v44 = vmul.f32 %v1216_v10, %v8944_v26  ;;  %v1235_v50 = vmul.f32 %v1230_v7, %v5955_v32  ;;  %1896 = vrot.lane.b32.xlu0 %v8893_v14, %s5757_s18 }
 0x20b   : > { %v8945_v62 = vperm.slane %v6547_v48, 2  ;;  %v1181_v31 = vmul.f32 %v1173_v57, %v1166_v61  ;;  %v1073_v11 = vperm.slane %v8920_v60, 3  ;;  %v1218_v15 = vsel %vm1214_vm13, %v6810_v6, %v6817_v1  ;;  %1902 = vrot.lane.b32.xlu2 %v5941_v28, %s5757_s18  ;;  %1898 = vrot.lane.b32.xlu1 %v5995_v55, %s5757_s18 }
 0x20c   : > { %v1058_v23 = vrot.slane %v1057_v2, 1  ;;  %v1065_v13 = vrot.slane %v1064_v16, 1  ;;  %v1239_v63 = vadd.f32 %v1235_v50, %v1231_v25  ;;  %v1219_v48 = vsel %vm1214_vm13, %v6817_v1, %v6699_v0  ;;  %v1311_v4 = vpop.permute.xlu0 %1310  ;;  %v6934_v18 = vpop.permute.xlu2 %1498 }
 0x20d   : > { %v1180_v49 = vmul.f32 %v8945_v62, %v1159_v45  ;;  %v1188_v41 = vrot.slane %v1181_v31, 5  ;;  %v1236_v6 = vmul.f32 %v1218_v15, %v5957_v33  ;;  %v1237_v39 = vmul.f32 %v1219_v48, %v5985_v46  ;;  %v1313_v10 = vpop.permute.xlu1 %1312 }
 0x20e   : > { %v1059_v59 = vadd.f32 %v1058_v23, %v1057_v2  ;;  %v1066_v9 = vadd.f32 %v1065_v13, %v1064_v16  ;;  %v1240_v3 = vrot.slane %v1239_v63, 4  ;;  %v1329_v40 = vsel %vm1314_vm14, %v6849_v37, %v6737_v19 }
 0x20f   : > { %v1187_v57 = vrot.slane %v1180_v49, 6  ;;  %v1246_v1 = vadd.f32 %v1236_v6, %v1232_v56  ;;  %v1253_v58 = vadd.f32 %v1237_v39, %v1233_v44  ;;  %v8946_v2 = vperm.slane %v8920_v60, 0 }
 0x210   : > { %v1080_v45 = vmul.f32 %v1072_v12, %v1059_v59  ;;  %v1081_v61 = vmul.f32 %v1073_v11, %v1066_v9  ;;  %v1241_v7 = vadd.f32 %v1240_v3, %v1239_v63  ;;  %v1331_v50 = vmul.f32 %v1329_v40, %v8942_v21 }
 0x211   : > { %v1190_v0 = vsel %vm485_vm2, %v1187_v57, %v1188_v41  ;;  %v1078_v16 = vmul.f32 %v8946_v2, %v6638_v43  ;;  %v1247_v56 = vrot.slane %v1246_v1, 4  ;;  %v1254_v44 = vrot.slane %v1253_v58, 4 }
 0x212   : > { %v1191_v25 = vsel %vm487_vm3, %v6874_v30, %v1190_v0  ;;  %v1087_v62 = vrot.slane %v1080_v45, 6  ;;  %v1088_v49 = vrot.slane %v1081_v61, 5  ;;  %v1242_v31 = vrot.slane %v1241_v7, 2  ;;  %1904 = vrot.lane.b32.xlu0 %v5943_v29, %s5757_s18 }
 0x213   : > { %5402 = vst.msk [vmem:[%s6027_s21 + $0x7] ss:$8 sm:$0xf] %vm6020_vm4, %v1191_v25  ;;  %v1330_v12 = vsel %vm1314_vm14, %v6858_v22, %v6774_v5  ;;  %v8947_v30 = vrot.slane %v6821_v35, 7  ;;  %v1248_v60 = vadd.f32 %v1247_v56, %v1246_v1  ;;  %v1255_v43 = vadd.f32 %v1254_v44, %v1253_v58  ;;  %1906 = vrot.lane.b32.xlu1 %v5959_v34, %s5757_s18 }
 0x214   : > { %v1335_v15 = vmul.f32 %v1330_v12, %v5955_v32  ;;  %v1288_v23 = vrot.slane %v6908_v42, 5  ;;  %v1090_v13 = vsel %vm485_vm2, %v1087_v62, %v1088_v49  ;;  %v1243_v63 = vadd.f32 %v1242_v31, %v1241_v7  ;;  %1908 = vrot.lane.b32.xlu2 %v5963_v36, %s5757_s18  ;;  %v6970_v39 = vpop.permute.xlu0 %1398  ;;  %v6972_v59 = vpop.permute.xlu2 %1504 }
 0x215   : > { %v1089_v11 = vsel %vm483_vm1, %v1078_v16, %v8947_v30  ;;  %v1315_v48 = vsel %vm1314_vm14, %v6737_v19, %v6887_v20  ;;  %v1249_v57 = vrot.slane %v1248_v60, 2  ;;  %v1256_v41 = vrot.slane %v1255_v43, 2  ;;  %v1403_v0 = vpop.permute.xlu1 %1402  ;;  %v6994_v30 = vld [vmem:[#allocation7 + $0x21] ss:$8 sm:$0xf] }
 0x216   : > { %v1091_v35 = vsel %vm487_vm3, %v1089_v11, %v1090_v13  ;;  %v1339_v6 = vadd.f32 %v1335_v15, %v1331_v50  ;;  %v1270_v19 = vperm.slane %v6823_v51, 0  ;;  %v1244_v9 = vrot.slane %v1243_v63, 1 }
 0x217   : > { %5401 = vst.msk [vmem:[%s6027_s21 + $0x6] ss:$8 sm:$0xf] %vm6020_vm4, %v1091_v35  ;;  %v1271_v3 = vperm.slane %v6823_v51, 1  ;;  %v1250_v1 = vadd.f32 %v1249_v57, %v1248_v60  ;;  %v1257_v58 = vadd.f32 %v1256_v41, %v1255_v43  ;;  %v1316_v25 = vsel %vm1314_vm14, %v6887_v20, %v6897_v17 }
 0x218   : > { %v1340_v40 = vrot.slane %v1339_v6, 4  ;;  %v1272_v45 = vperm.slane %v6823_v51, 2  ;;  %v1332_v61 = vmul.f32 %v1315_v48, %v8943_v27  ;;  %v1317_v7 = vsel %vm1314_vm14, %v6897_v17, %v6849_v37 }
 0x219   : > { %v1318_v2 = vsel %vm1314_vm14, %v6774_v5, %v1311_v4  ;;  %v1251_v16 = vrot.slane %v1250_v1, 1  ;;  %v1258_v56 = vrot.slane %v1257_v58, 1  ;;  %v1245_v62 = vadd.f32 %v1244_v9, %v1243_v63 }
 0x21a   : > { %v1341_v44 = vadd.f32 %v1340_v40, %v1339_v6  ;;  %v1336_v50 = vmul.f32 %v1318_v2, %v5957_v33  ;;  %v1333_v49 = vmul.f32 %v1316_v25, %v8944_v26  ;;  %v1319_v20 = vsel %vm1314_vm14, %v1311_v4, %v1313_v10  ;;  %1910 = vrot.lane.b32.xlu0 %v5967_v38, %s5757_s18 }
 0x21b   : > { %v1320_v51 = vsel %vm1314_vm14, %v1313_v10, %v6858_v22  ;;  %v1252_v31 = vadd.f32 %v1251_v16, %v1250_v1  ;;  %v1259_v12 = vadd.f32 %v1258_v56, %v1257_v58  ;;  %v1334_v5 = vmul.f32 %v1317_v7, %v8926_v53  ;;  %1912 = vrot.lane.b32.xlu1 %v5993_v54, %s5757_s18  ;;  %s5773_s18 = smov 111  }
 0x21c   : > { %v1342_v37 = vrot.slane %v1341_v44, 2  ;;  %v1346_v17 = vadd.f32 %v1336_v50, %v1332_v61  ;;  %v1337_v11 = vmul.f32 %v1319_v20, %v5985_v46  ;;  %v1338_v60 = vmul.f32 %v1320_v51, %v8892_v24  ;;  %1996 = vrot.lane.b32.xlu2 %v8893_v14, %s5758_s23  ;;  %v1407_v15 = vpop.permute.xlu0 %1406  ;;  %v7005_v13 = vpop.permute.xlu2 %1510  ;;  %v8948_v50 = vld [vmem:[#allocation14_spill] sm:$0xff] }
 0x21d   : > { %v1279_v22 = vmul.f32 %v1271_v3, %v1252_v31  ;;  %v1280_v4 = vmul.f32 %v1272_v45, %v1259_v12  ;;  %v1278_v63 = vmul.f32 %v1270_v19, %v1245_v62  ;;  %v1370_v48 = vperm.slane %v6994_v30, 0  ;;  %v1409_v41 = vpop.permute.xlu1 %1408 }
 0x21e   : > { %v1343_v10 = vadd.f32 %v1342_v37, %v1341_v44  ;;  %v1347_v43 = vrot.slane %v1346_v17, 4  ;;  %v1353_v35 = vadd.f32 %v1337_v11, %v1333_v49  ;;  %v1360_v57 = vadd.f32 %v1338_v60, %v1334_v5 }
 0x21f   : > { %v1286_v6 = vrot.slane %v1279_v22, 7  ;;  %v1287_v9 = vrot.slane %v1280_v4, 6  ;;  %v1371_v58 = vperm.slane %v6994_v30, 1  ;;  %v1415_v45 = vsel %vm1414_vm15, %v1403_v0, %v6851_v8 }
 0x220   : > { %v1344_v3 = vrot.slane %v1343_v10, 1  ;;  %v1348_v1 = vadd.f32 %v1347_v43, %v1346_v17  ;;  %v1354_v40 = vrot.slane %v1353_v35, 4  ;;  %v1361_v25 = vrot.slane %v1360_v57, 4 }
 0x221   : > { %v1289_v61 = vsel %vm483_vm1, %v1278_v63, %v1286_v6  ;;  %v1290_v19 = vsel %vm485_vm2, %v1287_v9, %v1288_v23  ;;  %v1372_v2 = vperm.slane %v6994_v30, 2  ;;  %v1429_v62 = vsel %vm1414_vm15, %v8948_v50, %v1403_v0 }
 0x222   : > { %v1349_v7 = vrot.slane %v1348_v1, 2  ;;  %v1291_v16 = vsel %vm487_vm3, %v1289_v61, %v1290_v19  ;;  %v1355_v56 = vadd.f32 %v1354_v40, %v1353_v35  ;;  %v1362_v44 = vadd.f32 %v1361_v25, %v1360_v57  ;;  %1998 = vrot.lane.b32.xlu0 %v5995_v55, %s5758_s23 }
 0x223   : > { %5403 = vst.msk [vmem:[%s6027_s21 + $0x20] ss:$8 sm:$0xf] %vm6020_vm4, %v1291_v16  ;;  %v1345_v49 = vadd.f32 %v1344_v3, %v1343_v10  ;;  %v1373_v51 = vperm.slane %v6994_v30, 3  ;;  %v1432_v42 = vmul.f32 %v1415_v45, %v8943_v27  ;;  %v1416_v12 = vsel %vm1414_vm15, %v6851_v8, %v1407_v15  ;;  %2002 = vrot.lane.b32.xlu1 %v5941_v28, %s5758_s23 }
 0x224   : > { %v1350_v20 = vadd.f32 %v1349_v7, %v1348_v1  ;;  %v1356_v23 = vrot.slane %v1355_v56, 2  ;;  %v1363_v31 = vrot.slane %v1362_v44, 2  ;;  %v1418_v0 = vsel %vm1414_vm15, %v1409_v41, %v6889_v47  ;;  %2004 = vrot.lane.b32.xlu2 %v5943_v29, %s5758_s23  ;;  %v1413_v11 = vpop.permute.xlu0 %1412  ;;  %v7039_v8 = vpop.permute.xlu2 %1600 }
 0x225   : > { %v1417_v30 = vsel %vm1414_vm15, %v1407_v15, %v8948_v50  ;;  %v1430_v17 = vsel %vm1414_vm15, %v6970_v39, %v1409_v41  ;;  %v1436_v5 = vmul.f32 %v1418_v0, %v5957_v33  ;;  %v1431_v4 = vmul.f32 %v1429_v62, %v8942_v21  ;;  %v1497_v43 = vpop.permute.xlu1 %1496 }
 0x226   : > { %v1351_v37 = vrot.slane %v1350_v20, 1  ;;  %v1357_v60 = vadd.f32 %v1356_v23, %v1355_v56  ;;  %v1364_v22 = vadd.f32 %v1363_v31, %v1362_v44  ;;  %v1435_v10 = vmul.f32 %v1430_v17, %v5955_v32 }
 0x227   : > { %v1378_v63 = vmul.f32 %v1370_v48, %v1345_v49  ;;  %v1433_v35 = vmul.f32 %v1416_v12, %v8944_v26  ;;  %v1446_v57 = vadd.f32 %v1436_v5, %v1432_v42  ;;  %v1434_v9 = vmul.f32 %v1417_v30, %v8926_v53 }
 0x228   : > { %v1352_v15 = vadd.f32 %v1351_v37, %v1350_v20  ;;  %v1358_v41 = vrot.slane %v1357_v60, 1  ;;  %v1365_v6 = vrot.slane %v1364_v22, 1  ;;  %v1439_v3 = vadd.f32 %v1435_v10, %v1431_v4  ;;  %v7060_v37 = vld [vmem:[#allocation7 + $0x22] ss:$8 sm:$0xf] }
 0x229   : > { %v1447_v40 = vrot.slane %v1446_v57, 4  ;;  %v1419_v25 = vsel %vm1414_vm15, %v6889_v47, %v1413_v11  ;;  %v1420_v45 = vsel %vm1414_vm15, %v1413_v11, %v6970_v39  ;;  %v1530_v17 = vsel %vm1512_vm5, %v7005_v13, %v6972_v59 }
 0x22a   : > { %v1379_v1 = vmul.f32 %v1371_v58, %v1352_v15  ;;  %v1359_v61 = vadd.f32 %v1358_v41, %v1357_v60  ;;  %v1366_v19 = vadd.f32 %v1365_v6, %v1364_v22  ;;  %v1440_v48 = vrot.slane %v1439_v3, 4  ;;  %2006 = vrot.lane.b32.xlu0 %v5959_v34, %s5758_s23 }
 0x22b   : > { %v1437_v7 = vmul.f32 %v1419_v25, %v5985_v46  ;;  %v1448_v56 = vadd.f32 %v1447_v40, %v1446_v57  ;;  %v1438_v44 = vmul.f32 %v1420_v45, %v8892_v24  ;;  %2008 = vrot.lane.b32.xlu1 %v5963_v36, %s5758_s23  ;;  %v1471_v15 = vperm.slane %v7060_v37, 1 }
 0x22c   : > { %v1386_v16 = vrot.slane %v1379_v1, 7  ;;  %v1380_v58 = vmul.f32 %v1372_v2, %v1359_v61  ;;  %v1381_v50 = vmul.f32 %v1373_v51, %v1366_v19  ;;  %v1441_v62 = vadd.f32 %v1440_v48, %v1439_v3  ;;  %2010 = vrot.lane.b32.xlu2 %v5967_v38, %s5758_s23  ;;  %v1501_v42 = vpop.permute.xlu0 %1500  ;;  %v7058_v23 = vpop.permute.xlu2 %1606 }
 0x22d   : > { %v1453_v47 = vadd.f32 %v1437_v7, %v1433_v35  ;;  %v1449_v49 = vrot.slane %v1448_v56, 2  ;;  %v1460_v20 = vadd.f32 %v1438_v44, %v1434_v9  ;;  %v1503_v0 = vpop.permute.xlu1 %1502  ;;  %v1538_v35 = vmul.f32 %v1530_v17, %v8892_v24 }
 0x22e   : > { %v1389_v39 = vsel %vm483_vm1, %v1378_v63, %v1386_v16  ;;  %v1387_v31 = vrot.slane %v1380_v58, 6  ;;  %v1388_v12 = vrot.slane %v1381_v50, 5  ;;  %v1442_v2 = vrot.slane %v1441_v62, 2 }
 0x22f   : > { %v1454_v51 = vrot.slane %v1453_v47, 4  ;;  %v1450_v30 = vadd.f32 %v1449_v49, %v1448_v56  ;;  %v1461_v5 = vrot.slane %v1460_v20, 4  ;;  %v1529_v41 = vsel %vm1512_vm5, %v1503_v0, %v1497_v43 }
 0x230   : > { %v1390_v11 = vsel %vm485_vm2, %v1387_v31, %v1388_v12  ;;  %v1443_v4 = vadd.f32 %v1442_v2, %v1441_v62  ;;  %v1513_v3 = vsel %vm1512_vm5, %v1497_v43, %v6934_v18  ;;  %v1534_v1 = vmul.f32 %v1529_v41, %v8926_v53 }
 0x231   : > { %v1455_v60 = vadd.f32 %v1454_v51, %v1453_v47  ;;  %v1391_v22 = vsel %vm487_vm3, %v1389_v39, %v1390_v11  ;;  %v1451_v10 = vrot.slane %v1450_v30, 1  ;;  %v1462_v63 = vadd.f32 %v1461_v5, %v1460_v20 }
 0x232   : > { %5404 = vst.msk [vmem:[%s6027_s21 + $0x21] ss:$8 sm:$0xf] %vm6020_vm4, %v1391_v22  ;;  %2012 = vrot.lane.b32.xlu0 %v5993_v54, %s5758_s23  ;;  %v1470_v40 = vperm.slane %v7060_v37, 0  ;;  %v1472_v25 = vperm.slane %v7060_v37, 2  ;;  %v1473_v45 = vperm.slane %v7060_v37, 3  ;;  %v1514_v43 = vsel %vm1512_vm5, %v6934_v18, %v1501_v42 }
 0x233   : > { %v1456_v57 = vrot.slane %v1455_v60, 2  ;;  %v1452_v6 = vadd.f32 %v1451_v10, %v1450_v30  ;;  %v1463_v9 = vrot.slane %v1462_v63, 2  ;;  %2096 = vrot.lane.b32.xlu1 %v8893_v14, %s5759_s6  ;;  %v1444_v19 = vrot.slane %v1443_v4, 1  ;;  %s5774_s23 = smov 95  }
 0x234   : > { %v1560_v7 = vadd.f32 %v1538_v35, %v1534_v1  ;;  %2098 = vrot.lane.b32.xlu2 %v5995_v55, %s5759_s6  ;;  %v1507_v16 = vpop.permute.xlu0 %1506  ;;  %v7087_v56 = vpop.permute.xlu2 %1696  ;;  %v1531_v58 = vmul.f32 %v1513_v3, %v8942_v21  ;;  %v1515_v50 = vsel %vm1512_vm5, %v1501_v42, %v1503_v0  ;;  %v1532_v12 = vmul.f32 %v1514_v43, %v8943_v27 }
 0x235   : > { %v1457_v61 = vadd.f32 %v1456_v57, %v1455_v60  ;;  %v1464_v48 = vadd.f32 %v1463_v9, %v1462_v63  ;;  %v1516_v62 = vsel %vm1512_vm5, %v6972_v59, %v1507_v16  ;;  %v1509_v47 = vpop.permute.xlu1 %1508  ;;  %v1479_v39 = vmul.f32 %v1471_v15, %v1452_v6 }
 0x236   : > { %v1561_v20 = vrot.slane %v1560_v7, 4  ;;  %v1535_v18 = vmul.f32 %v1516_v62, %v5955_v32  ;;  %v1517_v2 = vsel %vm1512_vm5, %v1507_v16, %v1509_v47  ;;  %v1518_v51 = vsel %vm1512_vm5, %v1509_v47, %v7005_v13 }
 0x237   : > { %v1458_v44 = vrot.slane %v1457_v61, 1  ;;  %v1465_v49 = vrot.slane %v1464_v48, 1  ;;  %v1445_v37 = vadd.f32 %v1444_v19, %v1443_v4  ;;  %v1533_v59 = vmul.f32 %v1515_v50, %v8944_v26 }
 0x238   : > { %v1562_v42 = vadd.f32 %v1561_v20, %v1560_v7  ;;  %v1539_v0 = vadd.f32 %v1535_v18, %v1531_v58  ;;  %v1536_v5 = vmul.f32 %v1517_v2, %v5957_v33  ;;  %v1537_v11 = vmul.f32 %v1518_v51, %v5985_v46  ;;  %v1568_v7 = vld [vmem:[#allocation7 + $0x23] ss:$8 sm:$0xf] }
 0x239   : > { %v1459_v31 = vadd.f32 %v1458_v44, %v1457_v61  ;;  %v1466_v30 = vadd.f32 %v1465_v49, %v1464_v48  ;;  %v1486_v60 = vrot.slane %v1479_v39, 7  ;;  %v1478_v35 = vmul.f32 %v1470_v40, %v1445_v37 }
 0x23a   : > { %v1563_v10 = vrot.slane %v1562_v42, 2  ;;  %v1540_v63 = vrot.slane %v1539_v0, 4  ;;  %2102 = vrot.lane.b32.xlu0 %v5941_v28, %s5759_s6  ;;  %v1546_v13 = vadd.f32 %v1536_v5, %v1532_v12  ;;  %v1553_v4 = vadd.f32 %v1537_v11, %v1533_v59 }
 0x23b   : > { %v1480_v17 = vmul.f32 %v1472_v25, %v1459_v31  ;;  %v1481_v22 = vmul.f32 %v1473_v45, %v1466_v30  ;;  %2104 = vrot.lane.b32.xlu1 %v5943_v29, %s5759_s6  ;;  %v1489_v61 = vsel %vm483_vm1, %v1478_v35, %v1486_v60  ;;  %vm1612_vm6 = vcmask 801792  }
 0x23c   : > { %v1564_v41 = vadd.f32 %v1563_v10, %v1562_v42  ;;  %v1541_v6 = vadd.f32 %v1540_v63, %v1539_v0  ;;  %2106 = vrot.lane.b32.xlu2 %v5959_v34, %s5759_s6  ;;  %v1597_v9 = vpop.permute.xlu0 %1596  ;;  %v7107_v3 = vpop.permute.xlu2 %1702  ;;  %v1547_v1 = vrot.slane %v1546_v13, 4  ;;  %v1554_v25 = vrot.slane %v1553_v4, 4 }
 0x23d   : > { %v1487_v15 = vrot.slane %v1480_v17, 6  ;;  %v1488_v57 = vrot.slane %v1481_v22, 5  ;;  %v1599_v45 = vpop.permute.xlu1 %1598  ;;  %v1573_v47 = vperm.slane %v1568_v7, 3  ;;  %v1571_v51 = vperm.slane %v1568_v7, 1 }
 0x23e   : > { %v1565_v48 = vrot.slane %v1564_v41, 1  ;;  %v1542_v43 = vrot.slane %v1541_v6, 2  ;;  %v1548_v16 = vadd.f32 %v1547_v1, %v1546_v13  ;;  %v1555_v44 = vadd.f32 %v1554_v25, %v1553_v4 }
 0x23f   : > { %v1490_v19 = vsel %vm485_vm2, %v1487_v15, %v1488_v57  ;;  %v1613_v31 = vsel %vm1612_vm6, %v1597_v9, %v1599_v45  ;;  %v1572_v37 = vperm.slane %v1568_v7, 2  ;;  %v1570_v59 = vperm.slane %v1568_v7, 0 }
 0x240   : > { %v1491_v40 = vsel %vm487_vm3, %v1489_v61, %v1490_v19  ;;  %v1543_v58 = vadd.f32 %v1542_v43, %v1541_v6  ;;  %v1549_v50 = vrot.slane %v1548_v16, 2  ;;  %v1556_v62 = vrot.slane %v1555_v44, 2 }
 0x241   : > { %5405 = vst.msk [vmem:[%s6027_s21 + $0x22] ss:$8 sm:$0xf] %vm6020_vm4, %v1491_v40  ;;  %v1566_v39 = vadd.f32 %v1565_v48, %v1564_v41  ;;  %v1631_v5 = vmul.f32 %v1613_v31, %v8942_v21  ;;  %v1614_v4 = vsel %vm1612_vm6, %v1599_v45, %v7039_v8  ;;  %vm1712_vm7 = vcmask 670720  }
 0x242   : > { %2108 = vrot.lane.b32.xlu0 %v5963_v36, %s5759_s6  ;;  %v1544_v49 = vrot.slane %v1543_v58, 1  ;;  %v1550_v20 = vadd.f32 %v1549_v50, %v1548_v16  ;;  %v1557_v18 = vadd.f32 %v1556_v62, %v1555_v44  ;;  %v1632_v61 = vmul.f32 %v1614_v4, %v8943_v27  ;;  %v1668_v4 = vld [vmem:[#allocation7 + $0x24] ss:$8 sm:$0xf] }
 0x243   : > { %2110 = vrot.lane.b32.xlu1 %v5967_v38, %s5759_s6  ;;  %v1581_v17 = vmul.f32 %v1573_v47, %v1566_v39  ;;  %vm1814_vm8 = vcmask 400384   ;;  %vm1914_vm9 = vcmask 269312   ;;  %vm2014_vm10 = vcmask 138240  }
 0x244   : > { %2112 = vrot.lane.b32.xlu2 %v5993_v54, %s5759_s6  ;;  %v1603_v12 = vpop.permute.xlu0 %1602  ;;  %v7122_v2 = vpop.permute.xlu2 %1708  ;;  %v1551_v30 = vrot.slane %v1550_v20, 1  ;;  %v1558_v42 = vrot.slane %v1557_v18, 1  ;;  %v1545_v60 = vadd.f32 %v1544_v49, %v1543_v58  ;;  %vm2114_vm11 = vcmask 7168   ;;  %s5775_s6 = smov 79  }
 0x245   : > { %v1605_v0 = vpop.permute.xlu1 %1604  ;;  %v1588_v57 = vrot.slane %v1581_v17, 5  ;;  %v1615_v19 = vsel %vm1612_vm6, %v7039_v8, %v1603_v12  ;;  %v1629_v45 = vsel %vm1612_vm6, %v1603_v12, %v1597_v9  ;;  %vm2212_vm12 = vcmask 924672  }
 0x246   : > { %v1616_v11 = vsel %vm1612_vm6, %v1605_v0, %v7058_v23  ;;  %v1552_v22 = vadd.f32 %v1551_v30, %v1550_v20  ;;  %v1559_v10 = vadd.f32 %v1558_v42, %v1557_v18  ;;  %v1578_v41 = vmul.f32 %v1570_v59, %v1545_v60 }
 0x247   : > { %v1635_v63 = vmul.f32 %v1616_v11, %v5955_v32  ;;  %v1633_v47 = vmul.f32 %v1615_v19, %v8944_v26  ;;  %v1634_v39 = vmul.f32 %v1629_v45, %v8926_v53  ;;  %vm2312_vm13 = vcmask 793600  }
 0x248   : > { %v1579_v15 = vmul.f32 %v1571_v51, %v1552_v22  ;;  %v1580_v13 = vmul.f32 %v1572_v37, %v1559_v10  ;;  %vm2412_vm14 = vcmask 662528   ;;  %vm2514_vm15 = vcmask 392192  }
 0x249   : > { %v1639_v35 = vadd.f32 %v1635_v63, %v1631_v5  ;;  %vm2713_vm5 = vcmask 130048  }
 0x24a   : > { %2196 = vrot.lane.b32.xlu0 %v5941_v28, %s5760_s7  ;;  %v1586_v6 = vrot.slane %v1579_v15, 7  ;;  %v1587_v1 = vrot.slane %v1580_v13, 6 }
 0x24b   : > { %v1640_v25 = vrot.slane %v1639_v35, 4  ;;  %2198 = vrot.lane.b32.xlu1 %v5943_v29, %s5760_s7 }
 0x24c   : > { %2200 = vrot.lane.b32.xlu2 %v5959_v34, %s5760_s7  ;;  %v1609_v48 = vpop.permute.xlu0 %1608  ;;  %v7140_v43 = vpop.permute.xlu2 %1798  ;;  %v1589_v40 = vsel %vm483_vm1, %v1578_v41, %v1586_v6  ;;  %v1590_v7 = vsel %vm485_vm2, %v1587_v1, %v1588_v57  ;;  %v1671_v41 = vperm.slane %v1668_v4, 1  ;;  %v1672_v1 = vperm.slane %v1668_v4, 2 }
 0x24d   : > { %v1641_v16 = vadd.f32 %v1640_v25, %v1639_v35  ;;  %v1617_v44 = vsel %vm1612_vm6, %v7058_v23, %v1609_v48  ;;  %v1611_v58 = vpop.permute.xlu1 %1610  ;;  %v1591_v50 = vsel %vm487_vm3, %v1589_v40, %v1590_v7  ;;  %v1670_v40 = vperm.slane %v1668_v4, 0 }
 0x24e   : > { %v1636_v8 = vmul.f32 %v1617_v44, %v5957_v33  ;;  %v1618_v9 = vsel %vm1612_vm6, %v1609_v48, %v1611_v58  ;;  %v1630_v62 = vsel %vm1612_vm6, %v1611_v58, %v1605_v0  ;;  %5406 = vst.msk [vmem:[%s6027_s21 + $0x23] ss:$8 sm:$0xf] %vm6020_vm4, %v1591_v50  ;;  %vm2976_vm6 = vcmask 785408  }
 0x24f   : > { %v1637_v49 = vmul.f32 %v1618_v9, %v5985_v46  ;;  %v1638_v23 = vmul.f32 %v1630_v62, %v8892_v24  ;;  %v1642_v20 = vrot.slane %v1641_v16, 2 }
 0x250   : > { %v1646_v18 = vadd.f32 %v1636_v8, %v1632_v61  ;;  %v1673_v61 = vperm.slane %v1668_v4, 3 }
 0x251   : > { %v1653_v31 = vadd.f32 %v1637_v49, %v1633_v47  ;;  %v1660_v12 = vadd.f32 %v1638_v23, %v1634_v39  ;;  %v1643_v42 = vadd.f32 %v1642_v20, %v1641_v16 }
 0x252   : > { %v1647_v51 = vrot.slane %v1646_v18, 4  ;;  %2202 = vrot.lane.b32.xlu0 %v8893_v14, %s5760_s7 }
 0x253   : > { %v1654_v37 = vrot.slane %v1653_v31, 4  ;;  %v1661_v30 = vrot.slane %v1660_v12, 4  ;;  %2204 = vrot.lane.b32.xlu1 %v5963_v36, %s5760_s7  ;;  %v1644_v15 = vrot.slane %v1643_v42, 1 }
 0x254   : > { %v1648_v0 = vadd.f32 %v1647_v51, %v1646_v18  ;;  %2206 = vrot.lane.b32.xlu2 %v5967_v38, %s5760_s7  ;;  %v1699_v17 = vpop.permute.xlu0 %1698  ;;  %v7163_v59 = vpop.permute.xlu2 %1806  ;;  %v1729_v51 = vsel %vm1712_vm7, %v7107_v3, %v7087_v56 }
 0x255   : > { %v1655_v5 = vadd.f32 %v1654_v37, %v1653_v31  ;;  %v1662_v11 = vadd.f32 %v1661_v30, %v1660_v12  ;;  %v1701_v60 = vpop.permute.xlu1 %1700  ;;  %v1713_v25 = vsel %vm1712_vm7, %v7087_v56, %v1699_v17  ;;  %v1645_v7 = vadd.f32 %v1644_v15, %v1643_v42 }
 0x256   : > { %v1649_v22 = vrot.slane %v1648_v0, 2  ;;  %v1714_v48 = vsel %vm1712_vm7, %v1699_v17, %v1701_v60  ;;  %v1731_v9 = vmul.f32 %v1713_v25, %v8942_v21  ;;  %v1734_v15 = vmul.f32 %v1729_v51, %v8926_v53 }
 0x257   : > { %v1656_v10 = vrot.slane %v1655_v5, 2  ;;  %v1663_v63 = vrot.slane %v1662_v11, 2  ;;  %v1732_v39 = vmul.f32 %v1714_v48, %v8943_v27  ;;  %v1678_v37 = vmul.f32 %v1670_v40, %v1645_v7 }
 0x258   : > { %v1650_v13 = vadd.f32 %v1649_v22, %v1648_v0 }
 0x259   : > { %v1657_v35 = vadd.f32 %v1656_v10, %v1655_v5  ;;  %v1664_v57 = vadd.f32 %v1663_v63, %v1662_v11  ;;  %v1715_v10 = vsel %vm1712_vm7, %v1701_v60, %v7107_v3 }
 0x25a   : > { %v1651_v6 = vrot.slane %v1650_v13, 1  ;;  %2208 = vrot.lane.b32.xlu0 %v5993_v54, %s5760_s7  ;;  %v1733_v25 = vmul.f32 %v1715_v10, %v8944_v26 }
 0x25b   : > { %v1658_v19 = vrot.slane %v1657_v35, 1  ;;  %v1665_v45 = vrot.slane %v1664_v57, 1  ;;  %2210 = vrot.lane.b32.xlu1 %v5995_v55, %s5760_s7  ;;  %s5776_s7 = smov 46  }
 0x25c   : > { %v1652_v16 = vadd.f32 %v1651_v6, %v1650_v13  ;;  %2296 = vrot.lane.b32.xlu2 %v5941_v28, %s5761_s28  ;;  %v1705_v44 = vpop.permute.xlu0 %1704  ;;  %v7174_v58 = vpop.permute.xlu2 %1812 }
 0x25d   : > { %v1659_v50 = vadd.f32 %v1658_v19, %v1657_v35  ;;  %v1666_v8 = vadd.f32 %v1665_v45, %v1664_v57  ;;  %v1707_v62 = vpop.permute.xlu1 %1706  ;;  %v1820_v4 = vsel %vm1814_vm8, %v7174_v58, %v7140_v43 }
 0x25e   : > { %v1679_v47 = vmul.f32 %v1671_v41, %v1652_v16  ;;  %v1716_v49 = vsel %vm1712_vm7, %v1705_v44, %v1707_v62  ;;  %v1717_v23 = vsel %vm1712_vm7, %v1707_v62, %v7122_v2  ;;  %v1838_v7 = vmul.f32 %v1820_v4, %v8892_v24  ;;  %v1768_v62 = vld [vmem:[#allocation7 + $0x25] ss:$8 sm:$0xf] }
 0x25f   : > { %v1680_v20 = vmul.f32 %v1672_v1, %v1659_v50  ;;  %v1681_v18 = vmul.f32 %v1673_v61, %v1666_v8  ;;  %v1735_v31 = vmul.f32 %v1716_v49, %v5955_v32  ;;  %v1736_v12 = vmul.f32 %v1717_v23, %v5957_v33 }
 0x260   : > { %v1686_v30 = vrot.slane %v1679_v47, 7  ;;  %v1770_v10 = vperm.slane %v1768_v62, 0  ;;  %v1773_v4 = vperm.slane %v1768_v62, 3 }
 0x261   : > { %v1687_v42 = vrot.slane %v1680_v20, 6  ;;  %v1688_v0 = vrot.slane %v1681_v18, 5  ;;  %v1739_v17 = vadd.f32 %v1735_v31, %v1731_v9  ;;  %v1746_v5 = vadd.f32 %v1736_v12, %v1732_v39 }
 0x262   : > { %v1689_v11 = vsel %vm483_vm1, %v1678_v37, %v1686_v30  ;;  %2298 = vrot.lane.b32.xlu0 %v5943_v29, %s5761_s28  ;;  %v1771_v31 = vperm.slane %v1768_v62, 1 }
 0x263   : > { %v1690_v22 = vsel %vm485_vm2, %v1687_v42, %v1688_v0  ;;  %v1740_v63 = vrot.slane %v1739_v17, 4  ;;  %v1747_v56 = vrot.slane %v1746_v5, 4  ;;  %2300 = vrot.lane.b32.xlu1 %v5959_v34, %s5761_s28 }
 0x264   : > { %v1691_v13 = vsel %vm487_vm3, %v1689_v11, %v1690_v22  ;;  %2302 = vrot.lane.b32.xlu2 %v8893_v14, %s5761_s28  ;;  %v1711_v35 = vpop.permute.xlu0 %1710 }
 0x265   : > { %v7201_v57 = vpop.permute.xlu2 %1902  ;;  %5407 = vst.msk [vmem:[%s6027_s21 + $0x24] ss:$8 sm:$0xf] %vm6020_vm4, %v1691_v13  ;;  %v1741_v3 = vadd.f32 %v1740_v63, %v1739_v17  ;;  %v1748_v60 = vadd.f32 %v1747_v56, %v1746_v5  ;;  %v1718_v41 = vsel %vm1712_vm7, %v7122_v2, %v1711_v35  ;;  %v1730_v6 = vsel %vm1712_vm7, %v1711_v35, %v1705_v44  ;;  %v1797_v1 = vpop.permute.xlu1 %1796 }
 0x266   : > { %v1737_v61 = vmul.f32 %v1718_v41, %v5985_v46  ;;  %v1738_v19 = vmul.f32 %v1730_v6, %v8892_v24  ;;  %v1817_v45 = vsel %vm1814_vm8, %v7163_v59, %v1797_v1  ;;  %v1772_v13 = vperm.slane %v1768_v62, 2 }
 0x267   : > { %v1742_v48 = vrot.slane %v1741_v3, 2  ;;  %v1749_v40 = vrot.slane %v1748_v60, 2  ;;  %v1834_v16 = vmul.f32 %v1817_v45, %v8926_v53  ;;  %vm3076_vm7 = vcmask 654336  }
 0x268   : > { %v1753_v50 = vadd.f32 %v1737_v61, %v1733_v25  ;;  %v1760_v2 = vadd.f32 %v1738_v19, %v1734_v15 }
 0x269   : > { %v1743_v8 = vadd.f32 %v1742_v48, %v1741_v3  ;;  %v1750_v44 = vadd.f32 %v1749_v40, %v1748_v60  ;;  %v1860_v9 = vadd.f32 %v1838_v7, %v1834_v16 }
 0x26a   : > { %v1754_v47 = vrot.slane %v1753_v50, 4  ;;  %v1761_v39 = vrot.slane %v1760_v2, 4  ;;  %2304 = vrot.lane.b32.xlu0 %v5963_v36, %s5761_s28 }
 0x26b   : > { %v1751_v49 = vrot.slane %v1750_v44, 1  ;;  %2306 = vrot.lane.b32.xlu1 %v5967_v38, %s5761_s28  ;;  %v1744_v12 = vrot.slane %v1743_v8, 1  ;;  %v1861_v37 = vrot.slane %v1860_v9, 4 }
 0x26c   : > { %v1755_v23 = vadd.f32 %v1754_v47, %v1753_v50  ;;  %v1762_v20 = vadd.f32 %v1761_v39, %v1760_v2  ;;  %2308 = vrot.lane.b32.xlu2 %v5993_v54, %s5761_s28  ;;  %v1803_v18 = vpop.permute.xlu0 %1802 }
 0x26d   : > { %v1752_v51 = vadd.f32 %v1751_v49, %v1750_v44  ;;  %v1805_v30 = vpop.permute.xlu1 %1804  ;;  %v1829_v22 = vsel %vm1814_vm8, %v1797_v1, %v1803_v18  ;;  %v1745_v63 = vadd.f32 %v1744_v12, %v1743_v8  ;;  %v1862_v15 = vadd.f32 %v1861_v37, %v1860_v9 }
 0x26e   : > { %v1756_v42 = vrot.slane %v1755_v23, 2  ;;  %v1763_v0 = vrot.slane %v1762_v20, 2  ;;  %v7222_v17 = vpop.permute.xlu2 %1908  ;;  %v1831_v60 = vmul.f32 %v1829_v22, %v8942_v21  ;;  %v1815_v1 = vsel %vm1814_vm8, %v1803_v18, %v1805_v30 }
 0x26f   : > { %v1779_v56 = vmul.f32 %v1771_v31, %v1752_v51  ;;  %v1816_v25 = vsel %vm1814_vm8, %v1805_v30, %v7163_v59  ;;  %v1778_v19 = vmul.f32 %v1770_v10, %v1745_v63  ;;  %v1863_v48 = vrot.slane %v1862_v15, 2 }
 0x270   : > { %v1757_v5 = vadd.f32 %v1756_v42, %v1755_v23  ;;  %v1764_v11 = vadd.f32 %v1763_v0, %v1762_v20  ;;  %v1832_v59 = vmul.f32 %v1815_v1, %v8943_v27  ;;  %v1833_v9 = vmul.f32 %v1816_v25, %v8944_v26 }
 0x271   : > { %v1786_v45 = vrot.slane %v1779_v56, 7  ;;  %v1864_v20 = vadd.f32 %v1863_v48, %v1862_v15  ;;  %v1868_v56 = vld [vmem:[#allocation7 + $0x26] ss:$8 sm:$0xf] }
 0x272   : > { %v1758_v35 = vrot.slane %v1757_v5, 1  ;;  %v1765_v3 = vrot.slane %v1764_v11, 1  ;;  %2310 = vrot.lane.b32.xlu0 %v5995_v55, %s5761_s28  ;;  %v1873_v25 = vperm.slane %v1868_v56, 3  ;;  %s5777_s28 = smov 30  }
 0x273   : > { %2396 = vrot.lane.b32.xlu1 %v5941_v28, %s5762_s29  ;;  %v1789_v31 = vsel %vm483_vm1, %v1778_v19, %v1786_v45 }
 0x274   : > { %v1759_v41 = vadd.f32 %v1758_v35, %v1757_v5  ;;  %v1766_v6 = vadd.f32 %v1765_v3, %v1764_v11  ;;  %2398 = vrot.lane.b32.xlu2 %v5943_v29, %s5762_s29  ;;  %v1809_v61 = vpop.permute.xlu0 %1808  ;;  %v1865_v11 = vrot.slane %v1864_v20, 1 }
 0x275   : > { %v1830_v40 = vsel %vm1814_vm8, %v7140_v43, %v1809_v61  ;;  %v1811_v7 = vpop.permute.xlu1 %1810 }
 0x276   : > { %v1780_v16 = vmul.f32 %v1772_v13, %v1759_v41  ;;  %v1781_v50 = vmul.f32 %v1773_v4, %v1766_v6  ;;  %v1835_v2 = vmul.f32 %v1830_v40, %v5955_v32  ;;  %v1818_v8 = vsel %vm1814_vm8, %v1809_v61, %v1811_v7  ;;  %v7239_v44 = vpop.permute.xlu2 %1996 }
 0x277   : > { %v1819_v62 = vsel %vm1814_vm8, %v1811_v7, %v7174_v58  ;;  %v1836_v47 = vmul.f32 %v1818_v8, %v5957_v33  ;;  %v1866_v19 = vadd.f32 %v1865_v11, %v1864_v20  ;;  %v1871_v7 = vperm.slane %v1868_v56, 1 }
 0x278   : > { %v1787_v43 = vrot.slane %v1780_v16, 6  ;;  %v1788_v39 = vrot.slane %v1781_v50, 5  ;;  %v1839_v49 = vadd.f32 %v1835_v2, %v1831_v60  ;;  %v1837_v23 = vmul.f32 %v1819_v62, %v5985_v46 }
 0x279   : > { %v1846_v18 = vadd.f32 %v1836_v47, %v1832_v59  ;;  %v1872_v50 = vperm.slane %v1868_v56, 2  ;;  %v1870_v59 = vperm.slane %v1868_v56, 0  ;;  %vm3178_vm8 = vcmask 384000  }
 0x27a   : > { %v1790_v12 = vsel %vm485_vm2, %v1787_v43, %v1788_v39  ;;  %v1840_v51 = vrot.slane %v1839_v49, 4  ;;  %v1853_v37 = vadd.f32 %v1837_v23, %v1833_v9  ;;  %2400 = vrot.lane.b32.xlu0 %v5959_v34, %s5762_s29  ;;  %v1881_v43 = vmul.f32 %v1873_v25, %v1866_v19 }
 0x27b   : > { %v1791_v58 = vsel %vm487_vm3, %v1789_v31, %v1790_v12  ;;  %v1847_v30 = vrot.slane %v1846_v18, 4  ;;  %2402 = vrot.lane.b32.xlu1 %v8893_v14, %s5762_s29 }
 0x27c   : > { %5408 = vst.msk [vmem:[%s6027_s21 + $0x25] ss:$8 sm:$0xf] %vm6020_vm4, %v1791_v58  ;;  %v1841_v42 = vadd.f32 %v1840_v51, %v1839_v49  ;;  %v1854_v0 = vrot.slane %v1853_v37, 4  ;;  %2404 = vrot.lane.b32.xlu2 %v5963_v36, %s5762_s29  ;;  %v1897_v5 = vpop.permute.xlu0 %1896  ;;  %v1888_v51 = vrot.slane %v1881_v43, 5 }
 0x27d   : > { %v1848_v22 = vadd.f32 %v1847_v30, %v1846_v18  ;;  %v1929_v10 = vsel %vm1914_vm9, %v1897_v5, %v7201_v57  ;;  %v1899_v63 = vpop.permute.xlu1 %1898 }
 0x27e   : > { %v1842_v15 = vrot.slane %v1841_v42, 2  ;;  %v1855_v13 = vadd.f32 %v1854_v0, %v1853_v37  ;;  %v1931_v4 = vmul.f32 %v1929_v10, %v8942_v21  ;;  %v1930_v35 = vsel %vm1914_vm9, %v1899_v63, %v7222_v17  ;;  %v7264_v3 = vpop.permute.xlu2 %2004 }
 0x27f   : > { %v1849_v60 = vrot.slane %v1848_v22, 2  ;;  %v1935_v41 = vmul.f32 %v1930_v35, %v5955_v32 }
 0x280   : > { %v1843_v6 = vadd.f32 %v1842_v15, %v1841_v42  ;;  %v1856_v1 = vrot.slane %v1855_v13, 2 }
 0x281   : > { %v1850_v61 = vadd.f32 %v1849_v60, %v1848_v22  ;;  %v1939_v40 = vadd.f32 %v1935_v41, %v1931_v4 }
 0x282   : > { %v1844_v45 = vrot.slane %v1843_v6, 1  ;;  %v1857_v48 = vadd.f32 %v1856_v1, %v1855_v13  ;;  %2406 = vrot.lane.b32.xlu0 %v5967_v38, %s5762_s29 }
 0x283   : > { %v1851_v16 = vrot.slane %v1850_v61, 1  ;;  %2408 = vrot.lane.b32.xlu1 %v5993_v54, %s5762_s29  ;;  %v1940_v49 = vrot.slane %v1939_v40, 4 }
 0x284   : > { %v1858_v2 = vrot.slane %v1857_v48, 1  ;;  %2410 = vrot.lane.b32.xlu2 %v5995_v55, %s5762_s29  ;;  %v1905_v8 = vpop.permute.xlu0 %1904  ;;  %v1845_v9 = vadd.f32 %v1844_v45, %v1843_v6  ;;  %s5778_s29 = smov 14  }
 0x285   : > { %v1852_v62 = vadd.f32 %v1851_v16, %v1850_v61  ;;  %v1907_v47 = vpop.permute.xlu1 %1906  ;;  %v1941_v58 = vadd.f32 %v1940_v49, %v1939_v40  ;;  %v1915_v30 = vsel %vm1914_vm9, %v7201_v57, %v1905_v8 }
 0x286   : > { %v1859_v39 = vadd.f32 %v1858_v2, %v1857_v48  ;;  %v7273_v23 = vpop.permute.xlu2 %2010  ;;  %v1878_v31 = vmul.f32 %v1870_v59, %v1845_v9  ;;  %v1916_v11 = vsel %vm1914_vm9, %v1905_v8, %v1907_v47  ;;  %v1917_v22 = vsel %vm1914_vm9, %v1907_v47, %v1897_v5  ;;  %v1968_v9 = vld [vmem:[#allocation7 + $0x27] ss:$8 sm:$0xf] }
 0x287   : > { %v1879_v20 = vmul.f32 %v1871_v7, %v1852_v62  ;;  %v1932_v56 = vmul.f32 %v1915_v30, %v8943_v27  ;;  %v1942_v4 = vrot.slane %v1941_v58, 2  ;;  %v1933_v6 = vmul.f32 %v1916_v11, %v8944_v26 }
 0x288   : > { %v1880_v18 = vmul.f32 %v1872_v50, %v1859_v39  ;;  %v1934_v1 = vmul.f32 %v1917_v22, %v8926_v53  ;;  %v1972_v30 = vperm.slane %v1968_v9, 2 }
 0x289   : > { %v1886_v12 = vrot.slane %v1879_v20, 7  ;;  %v1943_v48 = vadd.f32 %v1942_v4, %v1941_v58 }
 0x28a   : > { %v1887_v37 = vrot.slane %v1880_v18, 6  ;;  %2496 = vrot.lane.b32.xlu0 %v8893_v14, %s5763_s30  ;;  %v1970_v18 = vperm.slane %v1968_v9, 0 }
 0x28b   : > { %v1889_v42 = vsel %vm483_vm1, %v1878_v31, %v1886_v12  ;;  %2498 = vrot.lane.b32.xlu1 %v5995_v55, %s5763_s30  ;;  %v1944_v62 = vrot.slane %v1943_v48, 1 }
 0x28c   : > { %v1890_v0 = vsel %vm485_vm2, %v1887_v37, %v1888_v51  ;;  %2502 = vrot.lane.b32.xlu2 %v5941_v28, %s5763_s30  ;;  %v1911_v10 = vpop.permute.xlu0 %1910  ;;  %v1971_v37 = vperm.slane %v1968_v9, 1 }
 0x28d   : > { %v1891_v57 = vsel %vm487_vm3, %v1889_v42, %v1890_v0  ;;  %v1918_v15 = vsel %vm1914_vm9, %v7222_v17, %v1911_v10  ;;  %v1913_v13 = vpop.permute.xlu1 %1912  ;;  %v1945_v51 = vadd.f32 %v1944_v62, %v1943_v48  ;;  %v1973_v42 = vperm.slane %v1968_v9, 3 }
 0x28e   : > { %5409 = vst.msk [vmem:[%s6027_s21 + $0x26] ss:$8 sm:$0xf] %vm6020_vm4, %v1891_v57  ;;  %v1936_v35 = vmul.f32 %v1918_v15, %v5957_v33  ;;  %v1919_v5 = vsel %vm1914_vm9, %v1911_v10, %v1913_v13  ;;  %v1920_v60 = vsel %vm1914_vm9, %v1913_v13, %v1899_v63  ;;  %v7297_v41 = vpop.permute.xlu2 %2098  ;;  %vm3278_vm9 = vcmask 252928  }
 0x28f   : > { %v1937_v25 = vmul.f32 %v1919_v5, %v5985_v46  ;;  %v1938_v17 = vmul.f32 %v1920_v60, %v8892_v24 }
 0x290   : > { %v1946_v61 = vadd.f32 %v1936_v35, %v1932_v56  ;;  %v1978_v35 = vmul.f32 %v1970_v18, %v1945_v51 }
 0x291   : > { %v1953_v19 = vadd.f32 %v1937_v25, %v1933_v6  ;;  %v1960_v45 = vadd.f32 %v1938_v17, %v1934_v1 }
 0x292   : > { %v1947_v40 = vrot.slane %v1946_v61, 4  ;;  %2504 = vrot.lane.b32.xlu0 %v5943_v29, %s5763_s30 }
 0x293   : > { %v1954_v7 = vrot.slane %v1953_v19, 4  ;;  %v1961_v63 = vrot.slane %v1960_v45, 4  ;;  %2506 = vrot.lane.b32.xlu1 %v5959_v34, %s5763_s30 }
 0x294   : > { %v1948_v16 = vadd.f32 %v1947_v40, %v1946_v61  ;;  %2508 = vrot.lane.b32.xlu2 %v5963_v36, %s5763_s30  ;;  %v7309_v50 = vpop.permute.xlu0 %1998 }
 0x295   : > { %v1955_v2 = vadd.f32 %v1954_v7, %v1953_v19  ;;  %v1962_v8 = vadd.f32 %v1961_v63, %v1960_v45  ;;  %v2003_v59 = vpop.permute.xlu1 %2002 }
 0x296   : > { %v1949_v47 = vrot.slane %v1948_v16, 2  ;;  %v7311_v43 = vpop.permute.xlu2 %2106  ;;  %v2015_v22 = vsel %vm2014_vm10, %v2003_v59, %v7264_v3  ;;  %v2029_v13 = vsel %vm2014_vm10, %v7239_v44, %v2003_v59 }
 0x297   : > { %v1956_v39 = vrot.slane %v1955_v2, 2  ;;  %v1963_v49 = vrot.slane %v1962_v8, 2  ;;  %v2032_v60 = vmul.f32 %v2015_v22, %v8943_v27  ;;  %v2031_v48 = vmul.f32 %v2029_v13, %v8942_v21 }
 0x298   : > { %v1950_v20 = vadd.f32 %v1949_v47, %v1948_v16 }
 0x299   : > { %v1957_v31 = vadd.f32 %v1956_v39, %v1955_v2  ;;  %v1964_v12 = vadd.f32 %v1963_v49, %v1962_v8 }
 0x29a   : > { %v1951_v58 = vrot.slane %v1950_v20, 1  ;;  %2510 = vrot.lane.b32.xlu0 %v5967_v38, %s5763_s30 }
 0x29b   : > { %v1958_v0 = vrot.slane %v1957_v31, 1  ;;  %v1965_v11 = vrot.slane %v1964_v12, 1  ;;  %2512 = vrot.lane.b32.xlu1 %v5993_v54, %s5763_s30  ;;  %s5779_s30 = smov 126  }
 0x29c   : > { %v1952_v10 = vadd.f32 %v1951_v58, %v1950_v20  ;;  %2596 = vrot.lane.b32.xlu2 %v8893_v14, %s5764_s4  ;;  %v2007_v57 = vpop.permute.xlu0 %2006 }
 0x29d   : > { %v1959_v56 = vadd.f32 %v1958_v0, %v1957_v31  ;;  %v1966_v15 = vadd.f32 %v1965_v11, %v1964_v12  ;;  %v2009_v4 = vpop.permute.xlu1 %2008  ;;  %v2016_v16 = vsel %vm2014_vm10, %v7264_v3, %v2007_v57  ;;  %v2017_v59 = vsel %vm2014_vm10, %v2007_v57, %v7239_v44 }
 0x29e   : > { %v1979_v5 = vmul.f32 %v1971_v37, %v1952_v10  ;;  %v2018_v6 = vsel %vm2014_vm10, %v2009_v4, %v7273_v23  ;;  %v7326_v1 = vpop.permute.xlu2 %2112  ;;  %v2030_v61 = vsel %vm2014_vm10, %v7309_v50, %v2009_v4  ;;  %v2033_v3 = vmul.f32 %v2016_v16, %v8944_v26  ;;  %v2068_v4 = vld [vmem:[#allocation7 + $0x40] ss:$8 sm:$0xf] }
 0x29f   : > { %v1980_v25 = vmul.f32 %v1972_v30, %v1959_v56  ;;  %v1981_v17 = vmul.f32 %v1973_v42, %v1966_v15  ;;  %v2036_v19 = vmul.f32 %v2018_v6, %v5957_v33  ;;  %v2035_v40 = vmul.f32 %v2030_v61, %v5955_v32 }
 0x2a0   : > { %v1986_v45 = vrot.slane %v1979_v5, 7  ;;  %v2120_v20 = vsel %vm2114_vm11, %v7326_v1, %v7297_v41  ;;  %v2034_v18 = vmul.f32 %v2017_v59, %v8926_v53 }
 0x2a1   : > { %v1987_v7 = vrot.slane %v1980_v25, 6  ;;  %v1988_v63 = vrot.slane %v1981_v17, 5  ;;  %v2046_v2 = vadd.f32 %v2036_v19, %v2032_v60  ;;  %v2039_v9 = vadd.f32 %v2035_v40, %v2031_v48 }
 0x2a2   : > { %v1989_v8 = vsel %vm483_vm1, %v1978_v35, %v1986_v45  ;;  %2598 = vrot.lane.b32.xlu0 %v5995_v55, %s5764_s4  ;;  %v2138_v10 = vmul.f32 %v2120_v20, %v8892_v24  ;;  %v2071_v19 = vperm.slane %v2068_v4, 1  ;;  %v2073_v20 = vperm.slane %v2068_v4, 3 }
 0x2a3   : > { %v1990_v62 = vsel %vm485_vm2, %v1987_v7, %v1988_v63  ;;  %v2047_v47 = vrot.slane %v2046_v2, 4  ;;  %2602 = vrot.lane.b32.xlu1 %v5941_v28, %s5764_s4  ;;  %v2040_v49 = vrot.slane %v2039_v9, 4 }
 0x2a4   : > { %v1991_v39 = vsel %vm487_vm3, %v1989_v8, %v1990_v62  ;;  %2604 = vrot.lane.b32.xlu2 %v5943_v29, %s5764_s4  ;;  %v2013_v44 = vpop.permute.xlu0 %2012  ;;  %v2070_v62 = vperm.slane %v2068_v4, 0 }
 0x2a5   : > { %5410 = vst.msk [vmem:[%s6027_s21 + $0x27] ss:$8 sm:$0xf] %vm6020_vm4, %v1991_v39  ;;  %v2048_v31 = vadd.f32 %v2047_v47, %v2046_v2  ;;  %v2019_v12 = vsel %vm2014_vm10, %v7273_v23, %v2013_v44  ;;  %v2020_v51 = vsel %vm2014_vm10, %v2013_v44, %v7309_v50  ;;  %v2097_v37 = vpop.permute.xlu1 %2096  ;;  %v2041_v58 = vadd.f32 %v2040_v49, %v2039_v9 }
 0x2a6   : > { %v2037_v30 = vmul.f32 %v2019_v12, %v5985_v46  ;;  %v2038_v42 = vmul.f32 %v2020_v51, %v8892_v24  ;;  %v2117_v0 = vsel %vm2114_vm11, %v7311_v43, %v2097_v37  ;;  %v7362_v11 = vpop.permute.xlu2 %2200  ;;  %v2072_v49 = vperm.slane %v2068_v4, 2 }
 0x2a7   : > { %v2049_v22 = vrot.slane %v2048_v31, 2  ;;  %v2134_v57 = vmul.f32 %v2117_v0, %v8926_v53  ;;  %v2042_v23 = vrot.slane %v2041_v58, 2  ;;  %vm3378_vm10 = vcmask 121856  }
 0x2a8   : > { %v2053_v56 = vadd.f32 %v2037_v30, %v2033_v3  ;;  %v2060_v15 = vadd.f32 %v2038_v42, %v2034_v18 }
 0x2a9   : > { %v2050_v50 = vadd.f32 %v2049_v22, %v2048_v31  ;;  %v2160_v13 = vadd.f32 %v2138_v10, %v2134_v57  ;;  %v2043_v35 = vadd.f32 %v2042_v23, %v2041_v58 }
 0x2aa   : > { %v2054_v5 = vrot.slane %v2053_v56, 4  ;;  %v2061_v60 = vrot.slane %v2060_v15, 4  ;;  %2606 = vrot.lane.b32.xlu0 %v5959_v34, %s5764_s4 }
 0x2ab   : > { %v2051_v6 = vrot.slane %v2050_v50, 1  ;;  %2608 = vrot.lane.b32.xlu1 %v5963_v36, %s5764_s4  ;;  %v2044_v45 = vrot.slane %v2043_v35, 1  ;;  %v2161_v40 = vrot.slane %v2160_v13, 4 }
 0x2ac   : > { %v2055_v25 = vadd.f32 %v2054_v5, %v2053_v56  ;;  %v2062_v17 = vadd.f32 %v2061_v60, %v2060_v15  ;;  %2610 = vrot.lane.b32.xlu2 %v5967_v38, %s5764_s4  ;;  %v2103_v61 = vpop.permute.xlu0 %2102 }
 0x2ad   : > { %v2052_v48 = vadd.f32 %v2051_v6, %v2050_v50  ;;  %v2105_v7 = vpop.permute.xlu1 %2104  ;;  %v2129_v9 = vsel %vm2114_vm11, %v2097_v37, %v2103_v61  ;;  %v2045_v47 = vadd.f32 %v2044_v45, %v2043_v35  ;;  %v2162_v3 = vadd.f32 %v2161_v40, %v2160_v13 }
 0x2ae   : > { %v2056_v63 = vrot.slane %v2055_v25, 2  ;;  %v2063_v16 = vrot.slane %v2062_v17, 2  ;;  %v7372_v2 = vpop.permute.xlu2 %2206  ;;  %v2131_v31 = vmul.f32 %v2129_v9, %v8942_v21  ;;  %v2115_v37 = vsel %vm2114_vm11, %v2103_v61, %v2105_v7 }
 0x2af   : > { %v2079_v39 = vmul.f32 %v2071_v19, %v2052_v48  ;;  %v2116_v58 = vsel %vm2114_vm11, %v2105_v7, %v7311_v43  ;;  %v2078_v42 = vmul.f32 %v2070_v62, %v2045_v47  ;;  %v2163_v22 = vrot.slane %v2162_v3, 2  ;;  %v2168_v62 = vld [vmem:[#allocation7 + $0x41] ss:$8 sm:$0xf] }
 0x2b0   : > { %v2057_v8 = vadd.f32 %v2056_v63, %v2055_v25  ;;  %v2064_v59 = vadd.f32 %v2063_v16, %v2062_v17  ;;  %v2132_v43 = vmul.f32 %v2115_v37, %v8943_v27  ;;  %v2133_v4 = vmul.f32 %v2116_v58, %v8944_v26 }
 0x2b1   : > { %v2086_v0 = vrot.slane %v2079_v39, 7  ;;  %v2164_v17 = vadd.f32 %v2163_v22, %v2162_v3 }
 0x2b2   : > { %v2058_v44 = vrot.slane %v2057_v8, 1  ;;  %v2065_v18 = vrot.slane %v2064_v59, 1  ;;  %2612 = vrot.lane.b32.xlu0 %v5993_v54, %s5764_s4 }
 0x2b3   : > { %2695 = vrot.lane.b32.xlu1 %v8893_v14, %s5765_s10  ;;  %v2089_v19 = vsel %vm483_vm1, %v2078_v42, %v2086_v0  ;;  %v2165_v47 = vrot.slane %v2164_v17, 1  ;;  %v2172_v0 = vperm.slane %v2168_v62, 2 }
 0x2b4   : > { %v2059_v12 = vadd.f32 %v2058_v44, %v2057_v8  ;;  %v2066_v51 = vadd.f32 %v2065_v18, %v2064_v59  ;;  %2697 = vrot.lane.b32.xlu2 %v5995_v55, %s5765_s10  ;;  %v2109_v30 = vpop.permute.xlu0 %2108 }
 0x2b5   : > { %v2130_v10 = vsel %vm2114_vm11, %v7297_v41, %v2109_v30  ;;  %v2111_v57 = vpop.permute.xlu1 %2110 }
 0x2b6   : > { %v2080_v23 = vmul.f32 %v2072_v49, %v2059_v12  ;;  %v2081_v56 = vmul.f32 %v2073_v20, %v2066_v51  ;;  %v2135_v15 = vmul.f32 %v2130_v10, %v5955_v32  ;;  %v2118_v50 = vsel %vm2114_vm11, %v2109_v30, %v2111_v57  ;;  %v7389_v13 = vpop.permute.xlu2 %2296 }
 0x2b7   : > { %v2119_v35 = vsel %vm2114_vm11, %v2111_v57, %v7326_v1  ;;  %v2136_v5 = vmul.f32 %v2118_v50, %v5957_v33  ;;  %v2166_v51 = vadd.f32 %v2165_v47, %v2164_v17  ;;  %v2171_v30 = vperm.slane %v2168_v62, 1 }
 0x2b8   : > { %v2087_v41 = vrot.slane %v2080_v23, 6  ;;  %v2088_v60 = vrot.slane %v2081_v56, 5  ;;  %v2139_v6 = vadd.f32 %v2135_v15, %v2131_v31  ;;  %v2137_v25 = vmul.f32 %v2119_v35, %v5985_v46 }
 0x2b9   : > { %v2146_v61 = vadd.f32 %v2136_v5, %v2132_v43  ;;  %v2173_v31 = vperm.slane %v2168_v62, 3  ;;  %v2170_v57 = vperm.slane %v2168_v62, 0  ;;  %vm3476_vm11 = vcmask 1039360  }
 0x2ba   : > { %v2090_v45 = vsel %vm485_vm2, %v2087_v41, %v2088_v60  ;;  %v2140_v48 = vrot.slane %v2139_v6, 4  ;;  %v2153_v40 = vadd.f32 %v2137_v25, %v2133_v4  ;;  %2701 = vrot.lane.b32.xlu0 %v5941_v28, %s5765_s10 }
 0x2bb   : > { %v2091_v1 = vsel %vm487_vm3, %v2089_v19, %v2090_v45  ;;  %v2147_v7 = vrot.slane %v2146_v61, 4  ;;  %2703 = vrot.lane.b32.xlu1 %v5943_v29, %s5765_s10  ;;  %v2181_v43 = vmul.f32 %v2173_v31, %v2166_v51 }
 0x2bc   : > { %5411 = vst.msk [vmem:[%s6027_s21 + $0x40] ss:$8 sm:$0xf] %vm6020_vm4, %v2091_v1  ;;  %v2141_v63 = vadd.f32 %v2140_v48, %v2139_v6  ;;  %v2154_v16 = vrot.slane %v2153_v40, 4  ;;  %2705 = vrot.lane.b32.xlu2 %v5959_v34, %s5765_s10  ;;  %v2197_v8 = vpop.permute.xlu0 %2196 }
 0x2bd   : > { %v2148_v59 = vadd.f32 %v2147_v7, %v2146_v61  ;;  %v2199_v9 = vpop.permute.xlu1 %2198  ;;  %v2188_v19 = vrot.slane %v2181_v43, 5 }
 0x2be   : > { %v2142_v39 = vrot.slane %v2141_v63, 2  ;;  %v2155_v3 = vadd.f32 %v2154_v16, %v2153_v40  ;;  %v7409_v49 = vpop.permute.xlu2 %2302  ;;  %v2213_v15 = vsel %vm2212_vm12, %v2197_v8, %v2199_v9  ;;  %v2214_v48 = vsel %vm2212_vm12, %v2199_v9, %v7362_v11 }
 0x2bf   : > { %v2149_v20 = vrot.slane %v2148_v59, 2  ;;  %v2231_v6 = vmul.f32 %v2213_v15, %v8942_v21  ;;  %v2232_v47 = vmul.f32 %v2214_v48, %v8943_v27 }
 0x2c0   : > { %v2143_v44 = vadd.f32 %v2142_v39, %v2141_v63  ;;  %v2156_v18 = vrot.slane %v2155_v3, 2 }
 0x2c1   : > { %v2150_v12 = vadd.f32 %v2149_v20, %v2148_v59 }
 0x2c2   : > { %v2144_v37 = vrot.slane %v2143_v44, 1  ;;  %v2157_v58 = vadd.f32 %v2156_v18, %v2155_v3  ;;  %2707 = vrot.lane.b32.xlu0 %v5963_v36, %s5765_s10 }
 0x2c3   : > { %v2151_v42 = vrot.slane %v2150_v12, 1  ;;  %2709 = vrot.lane.b32.xlu1 %v5967_v38, %s5765_s10 }
 0x2c4   : > { %v2158_v22 = vrot.slane %v2157_v58, 1  ;;  %2711 = vrot.lane.b32.xlu2 %v5993_v54, %s5765_s10  ;;  %v2203_v10 = vpop.permute.xlu0 %2202  ;;  %v2145_v23 = vadd.f32 %v2144_v37, %v2143_v44  ;;  %s5780_s10 = smov 110  }
 0x2c5   : > { %v2152_v56 = vadd.f32 %v2151_v42, %v2150_v12  ;;  %v2205_v50 = vpop.permute.xlu1 %2204  ;;  %v2215_v63 = vsel %vm2212_vm12, %v7362_v11, %v2203_v10  ;;  %v2229_v16 = vsel %vm2212_vm12, %v2203_v10, %v2197_v8 }
 0x2c6   : > { %v2159_v4 = vadd.f32 %v2158_v22, %v2157_v58  ;;  %v7418_v35 = vpop.permute.xlu2 %2308  ;;  %v2216_v41 = vsel %vm2212_vm12, %v2205_v50, %v7372_v2  ;;  %v2178_v17 = vmul.f32 %v2170_v57, %v2145_v23  ;;  %v2233_v31 = vmul.f32 %v2215_v63, %v8944_v26 }
 0x2c7   : > { %v2179_v5 = vmul.f32 %v2171_v30, %v2152_v56  ;;  %v2235_v25 = vmul.f32 %v2216_v41, %v5955_v32  ;;  %v2234_v12 = vmul.f32 %v2229_v16, %v8926_v53 }
 0x2c8   : > { %v2180_v60 = vmul.f32 %v2172_v0, %v2159_v4 }
 0x2c9   : > { %v2186_v61 = vrot.slane %v2179_v5, 7  ;;  %v2239_v40 = vadd.f32 %v2235_v25, %v2231_v6 }
 0x2ca   : > { %v2187_v45 = vrot.slane %v2180_v60, 6  ;;  %2860 = vrot.lane.b32.xlu0 %v5941_v28, %s5766_s22 }
 0x2cb   : > { %v2189_v1 = vsel %vm483_vm1, %v2178_v17, %v2186_v61  ;;  %2862 = vrot.lane.b32.xlu1 %v5943_v29, %s5766_s22  ;;  %v2240_v59 = vrot.slane %v2239_v40, 4  ;;  %v2268_v17 = vld [vmem:[#allocation7 + $0x42] ss:$8 sm:$0xf] }
 0x2cc   : > { %v2190_v7 = vsel %vm485_vm2, %v2187_v45, %v2188_v19  ;;  %2864 = vrot.lane.b32.xlu2 %v5959_v34, %s5766_s22  ;;  %v2209_v9 = vpop.permute.xlu0 %2208  ;;  %v2271_v45 = vperm.slane %v2268_v17, 1 }
 0x2cd   : > { %v2191_v62 = vsel %vm487_vm3, %v2189_v1, %v2190_v7  ;;  %v2217_v39 = vsel %vm2212_vm12, %v7372_v2, %v2209_v9  ;;  %v2211_v3 = vpop.permute.xlu1 %2210  ;;  %v2241_v20 = vadd.f32 %v2240_v59, %v2239_v40  ;;  %v2272_v40 = vperm.slane %v2268_v17, 2 }
 0x2ce   : > { %5412 = vst.msk [vmem:[%s6027_s21 + $0x41] ss:$8 sm:$0xf] %vm6020_vm4, %v2191_v62  ;;  %v2236_v11 = vmul.f32 %v2217_v39, %v5957_v33  ;;  %v2218_v8 = vsel %vm2212_vm12, %v2209_v9, %v2211_v3  ;;  %v2230_v44 = vsel %vm2212_vm12, %v2211_v3, %v2205_v50  ;;  %v7447_v18 = vpop.permute.xlu2 %2398  ;;  %v2273_v7 = vperm.slane %v2268_v17, 3 }
 0x2cf   : > { %v2237_v51 = vmul.f32 %v2218_v8, %v5985_v46  ;;  %v2238_v2 = vmul.f32 %v2230_v44, %v8892_v24  ;;  %v2242_v37 = vrot.slane %v2241_v20, 2  ;;  %v2270_v9 = vperm.slane %v2268_v17, 0 }
 0x2d0   : > { %v2246_v58 = vadd.f32 %v2236_v11, %v2232_v47  ;;  %vm3576_vm12 = vcmask 908288  }
 0x2d1   : > { %v2253_v30 = vadd.f32 %v2237_v51, %v2233_v31  ;;  %v2260_v42 = vadd.f32 %v2238_v2, %v2234_v12  ;;  %v2243_v57 = vadd.f32 %v2242_v37, %v2241_v20 }
 0x2d2   : > { %v2247_v0 = vrot.slane %v2246_v58, 4  ;;  %2866 = vrot.lane.b32.xlu0 %v8893_v14, %s5766_s22 }
 0x2d3   : > { %v2254_v22 = vrot.slane %v2253_v30, 4  ;;  %v2261_v10 = vrot.slane %v2260_v42, 4  ;;  %2868 = vrot.lane.b32.xlu1 %v5963_v36, %s5766_s22  ;;  %v2244_v6 = vrot.slane %v2243_v57, 1 }
 0x2d4   : > { %v2248_v23 = vadd.f32 %v2247_v0, %v2246_v58  ;;  %2870 = vrot.lane.b32.xlu2 %v5967_v38, %s5766_s22  ;;  %v2299_v56 = vpop.permute.xlu0 %2298 }
 0x2d5   : > { %v2255_v15 = vadd.f32 %v2254_v22, %v2253_v30  ;;  %v2262_v50 = vadd.f32 %v2261_v10, %v2260_v42  ;;  %v2301_v43 = vpop.permute.xlu1 %2300  ;;  %v2313_v1 = vsel %vm2312_vm13, %v7389_v13, %v2299_v56  ;;  %v2245_v62 = vadd.f32 %v2244_v6, %v2243_v57 }
 0x2d6   : > { %v2249_v4 = vrot.slane %v2248_v23, 2  ;;  %v7459_v5 = vpop.permute.xlu2 %2404  ;;  %v2314_v59 = vsel %vm2312_vm13, %v2299_v56, %v2301_v43  ;;  %v2331_v11 = vmul.f32 %v2313_v1, %v8942_v21 }
 0x2d7   : > { %v2256_v41 = vrot.slane %v2255_v15, 2  ;;  %v2263_v60 = vrot.slane %v2262_v50, 2  ;;  %v2332_v31 = vmul.f32 %v2314_v59, %v8943_v27  ;;  %v2278_v0 = vmul.f32 %v2270_v9, %v2245_v62 }
 0x2d8   : > { %v2250_v25 = vadd.f32 %v2249_v4, %v2248_v23 }
 0x2d9   : > { %v2257_v61 = vadd.f32 %v2256_v41, %v2255_v15  ;;  %v2264_v19 = vadd.f32 %v2263_v60, %v2262_v50  ;;  %v2329_v15 = vsel %vm2312_vm13, %v7409_v49, %v7389_v13  ;;  %v2315_v41 = vsel %vm2312_vm13, %v2301_v43, %v7409_v49 }
 0x2da   : > { %v2251_v48 = vrot.slane %v2250_v25, 1  ;;  %2872 = vrot.lane.b32.xlu0 %v5993_v54, %s5766_s22 }
 0x2db   : > { %v2258_v63 = vrot.slane %v2257_v61, 1  ;;  %v2265_v16 = vrot.slane %v2264_v19, 1  ;;  %2874 = vrot.lane.b32.xlu1 %v5995_v55, %s5766_s22  ;;  %s5781_s22 = smov 94  }
 0x2dc   : > { %v2252_v47 = vadd.f32 %v2251_v48, %v2250_v25  ;;  %2960 = vrot.lane.b32.xlu2 %v5941_v28, %s5767_s24  ;;  %v2305_v39 = vpop.permute.xlu0 %2304  ;;  %v2333_v48 = vmul.f32 %v2315_v41, %v8944_v26 }
 0x2dd   : > { %v2259_v3 = vadd.f32 %v2258_v63, %v2257_v61  ;;  %v2266_v20 = vadd.f32 %v2265_v16, %v2264_v19  ;;  %v2307_v8 = vpop.permute.xlu1 %2306 }
 0x2de   : > { %v2279_v44 = vmul.f32 %v2271_v45, %v2252_v47  ;;  %v2316_v12 = vsel %vm2312_vm13, %v2305_v39, %v2307_v8  ;;  %v2317_v51 = vsel %vm2312_vm13, %v2307_v8, %v7418_v35  ;;  %v7475_v2 = vpop.permute.xlu2 %2410  ;;  %v2334_v45 = vmul.f32 %v2329_v15, %v8926_v53  ;;  %v2368_v47 = vld [vmem:[#allocation7 + $0x43] ss:$8 sm:$0xf] }
 0x2df   : > { %v2280_v37 = vmul.f32 %v2272_v40, %v2259_v3  ;;  %v2281_v58 = vmul.f32 %v2273_v7, %v2266_v20  ;;  %v2335_v30 = vmul.f32 %v2316_v12, %v5955_v32  ;;  %v2336_v42 = vmul.f32 %v2317_v51, %v5957_v33 }
 0x2e0   : > { %v2286_v22 = vrot.slane %v2279_v44, 7  ;;  %v2430_v51 = vsel %vm2412_vm14, %v7475_v2, %v7459_v5  ;;  %v2373_v41 = vperm.slane %v2368_v47, 3 }
 0x2e1   : > { %v2287_v10 = vrot.slane %v2280_v37, 6  ;;  %v2288_v57 = vrot.slane %v2281_v58, 5  ;;  %v2339_v23 = vadd.f32 %v2335_v30, %v2331_v11  ;;  %v2346_v56 = vadd.f32 %v2336_v42, %v2332_v31 }
 0x2e2   : > { %v2289_v50 = vsel %vm483_vm1, %v2278_v0, %v2286_v22  ;;  %2962 = vrot.lane.b32.xlu0 %v5943_v29, %s5767_s24  ;;  %v2371_v31 = vperm.slane %v2368_v47, 1 }
 0x2e3   : > { %v2290_v4 = vsel %vm485_vm2, %v2287_v10, %v2288_v57  ;;  %v2340_v60 = vrot.slane %v2339_v23, 4  ;;  %v2347_v6 = vrot.slane %v2346_v56, 4  ;;  %2964 = vrot.lane.b32.xlu1 %v5959_v34, %s5767_s24  ;;  %v2438_v10 = vmul.f32 %v2430_v51, %v8892_v24 }
 0x2e4   : > { %v2291_v25 = vsel %vm487_vm3, %v2289_v50, %v2290_v4  ;;  %2966 = vrot.lane.b32.xlu2 %v8893_v14, %s5767_s24  ;;  %v2311_v13 = vpop.permute.xlu0 %2310  ;;  %v2372_v50 = vperm.slane %v2368_v47, 2 }
 0x2e5   : > { %5413 = vst.msk [vmem:[%s6027_s21 + $0x42] ss:$8 sm:$0xf] %vm6020_vm4, %v2291_v25  ;;  %v2341_v17 = vadd.f32 %v2340_v60, %v2339_v23  ;;  %v2348_v61 = vadd.f32 %v2347_v6, %v2346_v56  ;;  %v2318_v19 = vsel %vm2312_vm13, %v7418_v35, %v2311_v13  ;;  %v2330_v49 = vsel %vm2312_vm13, %v2311_v13, %v2305_v39  ;;  %v2397_v43 = vpop.permute.xlu1 %2396 }
 0x2e6   : > { %v2337_v40 = vmul.f32 %v2318_v19, %v5985_v46  ;;  %v2338_v1 = vmul.f32 %v2330_v49, %v8892_v24  ;;  %v7503_v7 = vpop.permute.xlu2 %2502  ;;  %v2413_v4 = vsel %vm2412_vm14, %v2397_v43, %v7447_v18  ;;  %v2370_v13 = vperm.slane %v2368_v47, 0 }
 0x2e7   : > { %v2342_v63 = vrot.slane %v2341_v17, 2  ;;  %v2349_v16 = vrot.slane %v2348_v61, 2  ;;  %v2431_v49 = vmul.f32 %v2413_v4, %v8942_v21  ;;  %vm3676_vm13 = vcmask 777216  }
 0x2e8   : > { %v2353_v59 = vadd.f32 %v2337_v40, %v2333_v48  ;;  %v2360_v9 = vadd.f32 %v2338_v1, %v2334_v45 }
 0x2e9   : > { %v2350_v62 = vadd.f32 %v2349_v16, %v2348_v61  ;;  %v2343_v3 = vadd.f32 %v2342_v63, %v2341_v17 }
 0x2ea   : > { %v2354_v35 = vrot.slane %v2353_v59, 4  ;;  %v2361_v39 = vrot.slane %v2360_v9, 4  ;;  %2968 = vrot.lane.b32.xlu0 %v5963_v36, %s5767_s24 }
 0x2eb   : > { %v2351_v20 = vrot.slane %v2350_v62, 1  ;;  %2970 = vrot.lane.b32.xlu1 %v5967_v38, %s5767_s24  ;;  %v2344_v0 = vrot.slane %v2343_v3, 1 }
 0x2ec   : > { %v2355_v11 = vadd.f32 %v2354_v35, %v2353_v59  ;;  %v2362_v8 = vadd.f32 %v2361_v39, %v2360_v9  ;;  %2972 = vrot.lane.b32.xlu2 %v5993_v54, %s5767_s24  ;;  %v2401_v44 = vpop.permute.xlu0 %2400 }
 0x2ed   : > { %v2352_v12 = vadd.f32 %v2351_v20, %v2350_v62  ;;  %v2403_v37 = vpop.permute.xlu1 %2402  ;;  %v2345_v17 = vadd.f32 %v2344_v0, %v2343_v3  ;;  %v2414_v40 = vsel %vm2412_vm14, %v7447_v18, %v2401_v44 }
 0x2ee   : > { %v2356_v58 = vrot.slane %v2355_v11, 2  ;;  %v2363_v30 = vrot.slane %v2362_v8, 2  ;;  %v7514_v42 = vpop.permute.xlu2 %2508  ;;  %v2429_v22 = vsel %vm2412_vm14, %v2403_v37, %v2397_v43  ;;  %v2415_v1 = vsel %vm2412_vm14, %v2401_v44, %v2403_v37 }
 0x2ef   : > { %v2434_v56 = vmul.f32 %v2429_v22, %v8926_v53  ;;  %v2379_v15 = vmul.f32 %v2371_v31, %v2352_v12  ;;  %v2378_v39 = vmul.f32 %v2370_v13, %v2345_v17  ;;  %v2433_v31 = vmul.f32 %v2415_v1, %v8944_v26  ;;  %v2468_v13 = vld [vmem:[#allocation7 + $0x44] ss:$8 sm:$0xf] }
 0x2f0   : > { %v2357_v57 = vadd.f32 %v2356_v58, %v2355_v11  ;;  %v2364_v23 = vadd.f32 %v2363_v30, %v2362_v8  ;;  %v2473_v1 = vperm.slane %v2468_v13, 3 }
 0x2f1   : > { %v2460_v25 = vadd.f32 %v2438_v10, %v2434_v56  ;;  %v2386_v48 = vrot.slane %v2379_v15, 7 }
 0x2f2   : > { %v2358_v60 = vrot.slane %v2357_v57, 1  ;;  %v2365_v6 = vrot.slane %v2364_v23, 1  ;;  %2974 = vrot.lane.b32.xlu0 %v5995_v55, %s5767_s24  ;;  %s5782_s24 = smov 78  }
 0x2f3   : > { %3060 = vrot.lane.b32.xlu1 %v5941_v28, %s5768_s25  ;;  %v2461_v45 = vrot.slane %v2460_v25, 4  ;;  %v2389_v37 = vsel %vm483_vm1, %v2378_v39, %v2386_v48  ;;  %v2472_v39 = vperm.slane %v2468_v13, 2 }
 0x2f4   : > { %v2359_v61 = vadd.f32 %v2358_v60, %v2357_v57  ;;  %v2366_v19 = vadd.f32 %v2365_v6, %v2364_v23  ;;  %3062 = vrot.lane.b32.xlu2 %v5943_v29, %s5768_s25  ;;  %v2407_v43 = vpop.permute.xlu0 %2406 }
 0x2f5   : > { %v2416_v63 = vsel %vm2412_vm14, %v7459_v5, %v2407_v43  ;;  %v2409_v16 = vpop.permute.xlu1 %2408  ;;  %v2462_v62 = vadd.f32 %v2461_v45, %v2460_v25  ;;  %v2432_v5 = vmul.f32 %v2414_v40, %v8943_v27 }
 0x2f6   : > { %v2380_v59 = vmul.f32 %v2372_v50, %v2359_v61  ;;  %v2381_v9 = vmul.f32 %v2373_v41, %v2366_v19  ;;  %v2435_v47 = vmul.f32 %v2416_v63, %v5955_v32  ;;  %v7534_v35 = vpop.permute.xlu2 %2596  ;;  %v2417_v3 = vsel %vm2412_vm14, %v2407_v43, %v2409_v16 }
 0x2f7   : > { %v2418_v20 = vsel %vm2412_vm14, %v2409_v16, %v7475_v2  ;;  %v2463_v8 = vrot.slane %v2462_v62, 2  ;;  %v2436_v12 = vmul.f32 %v2417_v3, %v5957_v33  ;;  %vm3776_vm14 = vcmask 646144  }
 0x2f8   : > { %v2387_v18 = vrot.slane %v2380_v59, 6  ;;  %v2388_v11 = vrot.slane %v2381_v9, 5  ;;  %v2439_v44 = vadd.f32 %v2435_v47, %v2431_v49  ;;  %v2437_v51 = vmul.f32 %v2418_v20, %v5985_v46 }
 0x2f9   : > { %v2464_v0 = vadd.f32 %v2463_v8, %v2462_v62  ;;  %v2446_v22 = vadd.f32 %v2436_v12, %v2432_v5  ;;  %v2471_v62 = vperm.slane %v2468_v13, 1  ;;  %v2470_v8 = vperm.slane %v2468_v13, 0 }
 0x2fa   : > { %v2390_v58 = vsel %vm485_vm2, %v2387_v18, %v2388_v11  ;;  %v2440_v30 = vrot.slane %v2439_v44, 4  ;;  %3064 = vrot.lane.b32.xlu0 %v5959_v34, %s5768_s25  ;;  %v2453_v10 = vadd.f32 %v2437_v51, %v2433_v31 }
 0x2fb   : > { %v2391_v2 = vsel %vm487_vm3, %v2389_v37, %v2390_v58  ;;  %3066 = vrot.lane.b32.xlu1 %v8893_v14, %s5768_s25  ;;  %v2447_v56 = vrot.slane %v2446_v22, 4  ;;  %v2465_v17 = vrot.slane %v2464_v0, 1 }
 0x2fc   : > { %5414 = vst.msk [vmem:[%s6027_s21 + $0x43] ss:$8 sm:$0xf] %vm6020_vm4, %v2391_v2  ;;  %v2441_v57 = vadd.f32 %v2440_v30, %v2439_v44  ;;  %3068 = vrot.lane.b32.xlu2 %v5963_v36, %s5768_s25  ;;  %v2497_v23 = vpop.permute.xlu0 %2496  ;;  %v2454_v15 = vrot.slane %v2453_v10, 4 }
 0x2fd   : > { %v2529_v50 = vsel %vm2514_vm15, %v2497_v23, %v7503_v7  ;;  %v2499_v4 = vpop.permute.xlu1 %2498  ;;  %v2448_v61 = vadd.f32 %v2447_v56, %v2446_v22  ;;  %v2466_v63 = vadd.f32 %v2465_v17, %v2464_v0 }
 0x2fe   : > { %v2442_v41 = vrot.slane %v2441_v57, 2  ;;  %v2531_v60 = vmul.f32 %v2529_v50, %v8942_v21  ;;  %v2530_v6 = vsel %vm2514_vm15, %v2499_v4, %v7514_v42  ;;  %v7560_v25 = vpop.permute.xlu2 %2604  ;;  %v2455_v19 = vadd.f32 %v2454_v15, %v2453_v10 }
 0x2ff   : > { %v2535_v49 = vmul.f32 %v2530_v6, %v5955_v32  ;;  %v2449_v43 = vrot.slane %v2448_v61, 2  ;;  %v2481_v5 = vmul.f32 %v2473_v1, %v2466_v63 }
 0x300   : > { %v2443_v45 = vadd.f32 %v2442_v41, %v2441_v57  ;;  %v2456_v48 = vrot.slane %v2455_v19, 2 }
 0x301   : > { %v2539_v40 = vadd.f32 %v2535_v49, %v2531_v60  ;;  %v2450_v59 = vadd.f32 %v2449_v43, %v2448_v61  ;;  %v2488_v0 = vrot.slane %v2481_v5, 5 }
 0x302   : > { %3070 = vrot.lane.b32.xlu0 %v5967_v38, %s5768_s25  ;;  %v2444_v16 = vrot.slane %v2443_v45, 1  ;;  %v2457_v9 = vadd.f32 %v2456_v48, %v2455_v19 }
 0x303   : > { %3072 = vrot.lane.b32.xlu1 %v5993_v54, %s5768_s25  ;;  %v2451_v3 = vrot.slane %v2450_v59, 1  ;;  %v2540_v18 = vrot.slane %v2539_v40, 4 }
 0x304   : > { %3074 = vrot.lane.b32.xlu2 %v5995_v55, %s5768_s25  ;;  %v2505_v47 = vpop.permute.xlu0 %2504  ;;  %v2458_v20 = vrot.slane %v2457_v9, 1  ;;  %v2445_v31 = vadd.f32 %v2444_v16, %v2443_v45  ;;  %s5783_s25 = smov 45  }
 0x305   : > { %v2507_v11 = vpop.permute.xlu1 %2506  ;;  %v2452_v12 = vadd.f32 %v2451_v3, %v2450_v59  ;;  %v2541_v30 = vadd.f32 %v2540_v18, %v2539_v40  ;;  %v2515_v2 = vsel %vm2514_vm15, %v7503_v7, %v2505_v47 }
 0x306   : > { %v7569_v44 = vpop.permute.xlu2 %2610  ;;  %v2459_v51 = vadd.f32 %v2458_v20, %v2457_v9  ;;  %v2478_v22 = vmul.f32 %v2470_v8, %v2445_v31  ;;  %v2532_v56 = vmul.f32 %v2515_v2, %v8943_v27  ;;  %v2516_v15 = vsel %vm2514_vm15, %v2505_v47, %v2507_v11 }
 0x307   : > { %v2479_v37 = vmul.f32 %v2471_v62, %v2452_v12  ;;  %v2517_v50 = vsel %vm2514_vm15, %v2507_v11, %v2497_v23  ;;  %v2542_v6 = vrot.slane %v2541_v30, 2  ;;  %v2533_v43 = vmul.f32 %v2516_v15, %v8944_v26  ;;  %v2568_v11 = vld [vmem:[#allocation7 + $0x45] ss:$8 sm:$0xf] }
 0x308   : > { %v2480_v58 = vmul.f32 %v2472_v39, %v2459_v51  ;;  %v2534_v48 = vmul.f32 %v2517_v50, %v8926_v53 }
 0x309   : > { %v2486_v10 = vrot.slane %v2479_v37, 7  ;;  %v2543_v59 = vadd.f32 %v2542_v6, %v2541_v30 }
 0x30a   : > { %3160 = vrot.lane.b32.xlu0 %v8893_v14, %s5769_s20  ;;  %v2487_v57 = vrot.slane %v2480_v58, 6  ;;  %v2570_v58 = vperm.slane %v2568_v11, 0 }
 0x30b   : > { %3162 = vrot.lane.b32.xlu1 %v5995_v55, %s5769_s20  ;;  %v2489_v41 = vsel %vm483_vm1, %v2478_v22, %v2486_v10  ;;  %v2544_v8 = vrot.slane %v2543_v59, 1  ;;  %v2571_v22 = vperm.slane %v2568_v11, 1 }
 0x30c   : > { %3166 = vrot.lane.b32.xlu2 %v5941_v28, %s5769_s20  ;;  %v2511_v7 = vpop.permute.xlu0 %2510  ;;  %v2490_v60 = vsel %vm485_vm2, %v2487_v57, %v2488_v0  ;;  %v2572_v57 = vperm.slane %v2568_v11, 2 }
 0x30d   : > { %v2518_v13 = vsel %vm2514_vm15, %v7514_v42, %v2511_v7  ;;  %v2513_v17 = vpop.permute.xlu1 %2512  ;;  %v2491_v61 = vsel %vm487_vm3, %v2489_v41, %v2490_v60  ;;  %v2545_v0 = vadd.f32 %v2544_v8, %v2543_v59 }
 0x30e   : > { %v2536_v19 = vmul.f32 %v2518_v13, %v5957_v33  ;;  %v2519_v49 = vsel %vm2514_vm15, %v2511_v7, %v2513_v17  ;;  %v2520_v23 = vsel %vm2514_vm15, %v2513_v17, %v2499_v4  ;;  %v7590_v45 = vpop.permute.xlu2 %2697  ;;  %5415 = vst.msk [vmem:[%s6027_s21 + $0x44] ss:$8 sm:$0xf] %vm6020_vm4, %v2491_v61  ;;  %vm3878_vm15 = vcmask 375808  }
 0x30f   : > { %v2537_v42 = vmul.f32 %v2519_v49, %v5985_v46  ;;  %v2538_v40 = vmul.f32 %v2520_v23, %v8892_v24 }
 0x310   : > { %v2546_v1 = vadd.f32 %v2536_v19, %v2532_v56  ;;  %v2573_v56 = vperm.slane %v2568_v11, 3  ;;  %v2578_v19 = vmul.f32 %v2570_v58, %v2545_v0 }
 0x311   : > { %v2553_v63 = vadd.f32 %v2537_v42, %v2533_v43  ;;  %v2560_v16 = vadd.f32 %v2538_v40, %v2534_v48 }
 0x312   : > { %v2547_v9 = vrot.slane %v2546_v1, 4  ;;  %3168 = vrot.lane.b32.xlu0 %v5943_v29, %s5769_s20 }
 0x313   : > { %v2554_v4 = vrot.slane %v2553_v63, 4  ;;  %v2561_v62 = vrot.slane %v2560_v16, 4  ;;  %3170 = vrot.lane.b32.xlu1 %v5959_v34, %s5769_s20 }
 0x314   : > { %v2548_v47 = vadd.f32 %v2547_v9, %v2546_v1  ;;  %3172 = vrot.lane.b32.xlu2 %v5963_v36, %s5769_s20  ;;  %v7605_v39 = vpop.permute.xlu0 %2598 }
 0x315   : > { %v2555_v3 = vadd.f32 %v2554_v4, %v2553_v63  ;;  %v2562_v20 = vadd.f32 %v2561_v62, %v2560_v16  ;;  %v2603_v18 = vpop.permute.xlu1 %2602 }
 0x316   : > { %v2549_v5 = vrot.slane %v2548_v47, 2  ;;  %v7607_v31 = vpop.permute.xlu2 %2705  ;;  %v2614_v7 = vsel %vm246_vm0, %v2603_v18, %v7560_v25  ;;  %v2628_v17 = vsel %vm246_vm0, %v7534_v35, %v2603_v18 }
 0x317   : > { %v2556_v12 = vrot.slane %v2555_v3, 2  ;;  %v2563_v51 = vrot.slane %v2562_v20, 2  ;;  %v2631_v23 = vmul.f32 %v2614_v7, %v8943_v27  ;;  %v2630_v59 = vmul.f32 %v2628_v17, %v8942_v21 }
 0x318   : > { %v2550_v37 = vadd.f32 %v2549_v5, %v2548_v47 }
 0x319   : > { %v2557_v30 = vadd.f32 %v2556_v12, %v2555_v3  ;;  %v2564_v2 = vadd.f32 %v2563_v51, %v2562_v20 }
 0x31a   : > { %v2551_v10 = vrot.slane %v2550_v37, 1  ;;  %3174 = vrot.lane.b32.xlu0 %v5967_v38, %s5769_s20 }
 0x31b   : > { %v2558_v15 = vrot.slane %v2557_v30, 1  ;;  %v2565_v50 = vrot.slane %v2564_v2, 1  ;;  %3176 = vrot.lane.b32.xlu1 %v5993_v54, %s5769_s20  ;;  %s5784_s20 = smov 29  }
 0x31c   : > { %v2552_v41 = vadd.f32 %v2551_v10, %v2550_v37  ;;  %3260 = vrot.lane.b32.xlu2 %v8893_v14, %s5770_s27  ;;  %v2607_v60 = vpop.permute.xlu0 %2606 }
 0x31d   : > { %v2559_v6 = vadd.f32 %v2558_v15, %v2557_v30  ;;  %v2566_v13 = vadd.f32 %v2565_v50, %v2564_v2  ;;  %v2609_v61 = vpop.permute.xlu1 %2608  ;;  %v2615_v47 = vsel %vm246_vm0, %v7560_v25, %v2607_v60  ;;  %v2616_v18 = vsel %vm246_vm0, %v2607_v60, %v7534_v35 }
 0x31e   : > { %v2579_v49 = vmul.f32 %v2571_v22, %v2552_v41  ;;  %v2617_v43 = vsel %vm246_vm0, %v2609_v61, %v7569_v44  ;;  %v7622_v48 = vpop.permute.xlu2 %2711  ;;  %v2629_v1 = vsel %vm246_vm0, %v7605_v39, %v2609_v61  ;;  %v2632_v25 = vmul.f32 %v2615_v47, %v8944_v26  ;;  %v2667_v61 = vld [vmem:[#allocation7 + $0x46] ss:$8 sm:$0xf] }
 0x31f   : > { %v2580_v42 = vmul.f32 %v2572_v57, %v2559_v6  ;;  %v2581_v40 = vmul.f32 %v2573_v56, %v2566_v13  ;;  %v2635_v63 = vmul.f32 %v2617_v43, %v5957_v33  ;;  %v2634_v9 = vmul.f32 %v2629_v1, %v5955_v32 }
 0x320   : > { %v2586_v16 = vrot.slane %v2579_v49, 7  ;;  %v2719_v37 = vsel %vm2713_vm5, %v7622_v48, %v7590_v45  ;;  %v2633_v58 = vmul.f32 %v2616_v18, %v8926_v53 }
 0x321   : > { %v2587_v4 = vrot.slane %v2580_v42, 6  ;;  %v2588_v62 = vrot.slane %v2581_v40, 5  ;;  %v2645_v3 = vadd.f32 %v2635_v63, %v2631_v23  ;;  %v2638_v11 = vadd.f32 %v2634_v9, %v2630_v59 }
 0x322   : > { %v2589_v20 = vsel %vm483_vm1, %v2578_v19, %v2586_v16  ;;  %3262 = vrot.lane.b32.xlu0 %v5995_v55, %s5770_s27  ;;  %v2737_v41 = vmul.f32 %v2719_v37, %v8892_v24  ;;  %v2670_v63 = vperm.slane %v2667_v61, 1  ;;  %v2672_v37 = vperm.slane %v2667_v61, 3 }
 0x323   : > { %v2590_v8 = vsel %vm485_vm2, %v2587_v4, %v2588_v62  ;;  %v2646_v5 = vrot.slane %v2645_v3, 4  ;;  %3266 = vrot.lane.b32.xlu1 %v5941_v28, %s5770_s27  ;;  %v2639_v51 = vrot.slane %v2638_v11, 4 }
 0x324   : > { %v2591_v12 = vsel %vm487_vm3, %v2589_v20, %v2590_v8  ;;  %3268 = vrot.lane.b32.xlu2 %v5943_v29, %s5770_s27  ;;  %v2613_v35 = vpop.permute.xlu0 %2612  ;;  %v2669_v8 = vperm.slane %v2667_v61, 0 }
 0x325   : > { %5416 = vst.msk [vmem:[%s6027_s21 + $0x45] ss:$8 sm:$0xf] %vm6020_vm4, %v2591_v12  ;;  %v2647_v30 = vadd.f32 %v2646_v5, %v2645_v3  ;;  %v2618_v2 = vsel %vm246_vm0, %v7569_v44, %v2613_v35  ;;  %v2619_v0 = vsel %vm246_vm0, %v2613_v35, %v7605_v39  ;;  %v2696_v22 = vpop.permute.xlu1 %2695  ;;  %v2640_v10 = vadd.f32 %v2639_v51, %v2638_v11 }
 0x326   : > { %v2636_v57 = vmul.f32 %v2618_v2, %v5985_v46  ;;  %v2637_v56 = vmul.f32 %v2619_v0, %v8892_v24  ;;  %v2716_v15 = vsel %vm2713_vm5, %v7607_v31, %v2696_v22  ;;  %v7658_v50 = vpop.permute.xlu2 %2864  ;;  %v2671_v51 = vperm.slane %v2667_v61, 2 }
 0x327   : > { %v2648_v7 = vrot.slane %v2647_v30, 2  ;;  %v2733_v60 = vmul.f32 %v2716_v15, %v8926_v53  ;;  %v2641_v44 = vrot.slane %v2640_v10, 2  ;;  %vm2876_vm0 = vcmask 916480  }
 0x328   : > { %v2652_v6 = vadd.f32 %v2636_v57, %v2632_v25  ;;  %v2659_v13 = vadd.f32 %v2637_v56, %v2633_v58 }
 0x329   : > { %v2649_v39 = vadd.f32 %v2648_v7, %v2647_v30  ;;  %v2759_v17 = vadd.f32 %v2737_v41, %v2733_v60  ;;  %v2642_v19 = vadd.f32 %v2641_v44, %v2640_v10 }
 0x32a   : > { %v2653_v49 = vrot.slane %v2652_v6, 4  ;;  %v2660_v23 = vrot.slane %v2659_v13, 4  ;;  %3270 = vrot.lane.b32.xlu0 %v5959_v34, %s5770_s27 }
 0x32b   : > { %v2650_v43 = vrot.slane %v2649_v39, 1  ;;  %3272 = vrot.lane.b32.xlu1 %v5963_v36, %s5770_s27  ;;  %v2643_v16 = vrot.slane %v2642_v19, 1  ;;  %v2760_v9 = vrot.slane %v2759_v17, 4 }
 0x32c   : > { %v2654_v42 = vadd.f32 %v2653_v49, %v2652_v6  ;;  %v2661_v40 = vadd.f32 %v2660_v23, %v2659_v13  ;;  %3274 = vrot.lane.b32.xlu2 %v5967_v38, %s5770_s27  ;;  %v2702_v1 = vpop.permute.xlu0 %2701 }
 0x32d   : > { %v2651_v59 = vadd.f32 %v2650_v43, %v2649_v39  ;;  %v2704_v4 = vpop.permute.xlu1 %2703  ;;  %v2728_v11 = vsel %vm2713_vm5, %v2696_v22, %v2702_v1  ;;  %v2644_v5 = vadd.f32 %v2643_v16, %v2642_v19  ;;  %v2761_v25 = vadd.f32 %v2760_v9, %v2759_v17 }
 0x32e   : > { %v2655_v62 = vrot.slane %v2654_v42, 2  ;;  %v2662_v47 = vrot.slane %v2661_v40, 2  ;;  %v7668_v3 = vpop.permute.xlu2 %2870  ;;  %v2730_v30 = vmul.f32 %v2728_v11, %v8942_v21  ;;  %v2714_v22 = vsel %vm2713_vm5, %v2702_v1, %v2704_v4 }
 0x32f   : > { %v2678_v12 = vmul.f32 %v2670_v63, %v2651_v59  ;;  %v2715_v10 = vsel %vm2713_vm5, %v2704_v4, %v7607_v31  ;;  %v2677_v56 = vmul.f32 %v2669_v8, %v2644_v5  ;;  %v2762_v7 = vrot.slane %v2761_v25, 2  ;;  %v2767_v8 = vld [vmem:[#allocation7 + $0x47] ss:$8 sm:$0xf] }
 0x330   : > { %v2656_v20 = vadd.f32 %v2655_v62, %v2654_v42  ;;  %v2663_v18 = vadd.f32 %v2662_v47, %v2661_v40  ;;  %v2731_v31 = vmul.f32 %v2714_v22, %v8943_v27  ;;  %v2732_v61 = vmul.f32 %v2715_v10, %v8944_v26 }
 0x331   : > { %v2685_v15 = vrot.slane %v2678_v12, 7  ;;  %v2763_v40 = vadd.f32 %v2762_v7, %v2761_v25 }
 0x332   : > { %v2657_v35 = vrot.slane %v2656_v20, 1  ;;  %v2664_v58 = vrot.slane %v2663_v18, 1  ;;  %3276 = vrot.lane.b32.xlu0 %v5993_v54, %s5770_s27  ;;  %s5785_s27 = smov 13  }
 0x333   : > { %3360 = vrot.lane.b32.xlu1 %v8893_v14, %s5771_s5  ;;  %v2688_v63 = vsel %vm483_vm1, %v2677_v56, %v2685_v15  ;;  %v2764_v5 = vrot.slane %v2763_v40, 1  ;;  %v2771_v15 = vperm.slane %v2767_v8, 2 }
 0x334   : > { %v2658_v2 = vadd.f32 %v2657_v35, %v2656_v20  ;;  %v2665_v0 = vadd.f32 %v2664_v58, %v2663_v18  ;;  %3362 = vrot.lane.b32.xlu2 %v5995_v55, %s5771_s5  ;;  %v2708_v57 = vpop.permute.xlu0 %2707 }
 0x335   : > { %v2729_v41 = vsel %vm2713_vm5, %v7590_v45, %v2708_v57  ;;  %v2710_v60 = vpop.permute.xlu1 %2709 }
 0x336   : > { %v2679_v44 = vmul.f32 %v2671_v51, %v2658_v2  ;;  %v2680_v6 = vmul.f32 %v2672_v37, %v2665_v0  ;;  %v2734_v13 = vmul.f32 %v2729_v41, %v5955_v32  ;;  %v2717_v39 = vsel %vm2713_vm5, %v2708_v57, %v2710_v60  ;;  %v7685_v17 = vpop.permute.xlu2 %2960 }
 0x337   : > { %v2718_v19 = vsel %vm2713_vm5, %v2710_v60, %v7622_v48  ;;  %v2735_v49 = vmul.f32 %v2717_v39, %v5957_v33  ;;  %v2765_v0 = vadd.f32 %v2764_v5, %v2763_v40  ;;  %v2770_v57 = vperm.slane %v2767_v8, 1 }
 0x338   : > { %v2686_v45 = vrot.slane %v2679_v44, 6  ;;  %v2687_v23 = vrot.slane %v2680_v6, 5  ;;  %v2738_v43 = vadd.f32 %v2734_v13, %v2730_v30  ;;  %v2736_v42 = vmul.f32 %v2718_v19, %v5985_v46 }
 0x339   : > { %v2745_v1 = vadd.f32 %v2735_v49, %v2731_v31  ;;  %v2772_v30 = vperm.slane %v2767_v8, 3  ;;  %v2769_v60 = vperm.slane %v2767_v8, 0  ;;  %vm3978_vm5 = vcmask 244736  }
 0x33a   : > { %v2689_v16 = vsel %vm485_vm2, %v2686_v45, %v2687_v23  ;;  %v2739_v59 = vrot.slane %v2738_v43, 4  ;;  %v2752_v9 = vadd.f32 %v2736_v42, %v2732_v61  ;;  %3366 = vrot.lane.b32.xlu0 %v5941_v28, %s5771_s5 }
 0x33b   : > { %v2690_v48 = vsel %vm487_vm3, %v2688_v63, %v2689_v16  ;;  %v2746_v4 = vrot.slane %v2745_v1, 4  ;;  %3368 = vrot.lane.b32.xlu1 %v5943_v29, %s5771_s5  ;;  %v2780_v31 = vmul.f32 %v2772_v30, %v2765_v0 }
 0x33c   : > { %5417 = vst.msk [vmem:[%s6027_s21 + $0x46] ss:$8 sm:$0xf] %vm6020_vm4, %v2690_v48  ;;  %v2740_v62 = vadd.f32 %v2739_v59, %v2738_v43  ;;  %v2753_v47 = vrot.slane %v2752_v9, 4  ;;  %3370 = vrot.lane.b32.xlu2 %v5959_v34, %s5771_s5  ;;  %v2861_v20 = vpop.permute.xlu0 %2860 }
 0x33d   : > { %v2747_v18 = vadd.f32 %v2746_v4, %v2745_v1  ;;  %v2863_v11 = vpop.permute.xlu1 %2862  ;;  %v2787_v63 = vrot.slane %v2780_v31, 5 }
 0x33e   : > { %v2741_v12 = vrot.slane %v2740_v62, 2  ;;  %v2754_v25 = vadd.f32 %v2753_v47, %v2752_v9  ;;  %v7705_v51 = vpop.permute.xlu2 %2966  ;;  %v2877_v13 = vsel %vm2876_vm0, %v2861_v20, %v2863_v11  ;;  %v2878_v59 = vsel %vm2876_vm0, %v2863_v11, %v7658_v50 }
 0x33f   : > { %v2748_v37 = vrot.slane %v2747_v18, 2  ;;  %v2895_v43 = vmul.f32 %v2877_v13, %v8942_v21  ;;  %v2896_v5 = vmul.f32 %v2878_v59, %v8943_v27 }
 0x340   : > { %v2742_v35 = vadd.f32 %v2741_v12, %v2740_v62  ;;  %v2755_v58 = vrot.slane %v2754_v25, 2 }
 0x341   : > { %v2749_v2 = vadd.f32 %v2748_v37, %v2747_v18 }
 0x342   : > { %v2743_v22 = vrot.slane %v2742_v35, 1  ;;  %v2756_v10 = vadd.f32 %v2755_v58, %v2754_v25  ;;  %3372 = vrot.lane.b32.xlu0 %v5963_v36, %s5771_s5 }
 0x343   : > { %v2750_v56 = vrot.slane %v2749_v2, 1  ;;  %3374 = vrot.lane.b32.xlu1 %v5967_v38, %s5771_s5 }
 0x344   : > { %v2757_v7 = vrot.slane %v2756_v10, 1  ;;  %3376 = vrot.lane.b32.xlu2 %v5993_v54, %s5771_s5  ;;  %v2867_v41 = vpop.permute.xlu0 %2866  ;;  %v2744_v44 = vadd.f32 %v2743_v22, %v2742_v35  ;;  %s5786_s5 = smov 125  }
 0x345   : > { %v2751_v6 = vadd.f32 %v2750_v56, %v2749_v2  ;;  %v2869_v39 = vpop.permute.xlu1 %2868  ;;  %v2879_v62 = vsel %vm2876_vm0, %v7658_v50, %v2867_v41  ;;  %v2893_v47 = vsel %vm2876_vm0, %v2867_v41, %v2861_v20 }
 0x346   : > { %v2758_v61 = vadd.f32 %v2757_v7, %v2756_v10  ;;  %v7714_v19 = vpop.permute.xlu2 %2972  ;;  %v2880_v45 = vsel %vm2876_vm0, %v2869_v39, %v7668_v3  ;;  %v2777_v40 = vmul.f32 %v2769_v60, %v2744_v44  ;;  %v2897_v30 = vmul.f32 %v2879_v62, %v8944_v26 }
 0x347   : > { %v2778_v49 = vmul.f32 %v2770_v57, %v2751_v6  ;;  %v2899_v42 = vmul.f32 %v2880_v45, %v5955_v32  ;;  %v2898_v2 = vmul.f32 %v2893_v47, %v8926_v53 }
 0x348   : > { %v2779_v23 = vmul.f32 %v2771_v15, %v2758_v61 }
 0x349   : > { %v2785_v1 = vrot.slane %v2778_v49, 7  ;;  %v2903_v9 = vadd.f32 %v2899_v42, %v2895_v43 }
 0x34a   : > { %v2786_v16 = vrot.slane %v2779_v23, 6  ;;  %3460 = vrot.lane.b32.xlu0 %v5941_v28, %s5772_s9 }
 0x34b   : > { %v2788_v48 = vsel %vm483_vm1, %v2777_v40, %v2785_v1  ;;  %3462 = vrot.lane.b32.xlu1 %v5943_v29, %s5772_s9  ;;  %v2904_v18 = vrot.slane %v2903_v9, 4  ;;  %v2932_v40 = vld [vmem:[#allocation7 + $0x61] ss:$8 sm:$0xf] }
 0x34c   : > { %v2789_v4 = vsel %vm485_vm2, %v2786_v16, %v2787_v63  ;;  %3464 = vrot.lane.b32.xlu2 %v5959_v34, %s5772_s9  ;;  %v2873_v11 = vpop.permute.xlu0 %2872  ;;  %v2935_v16 = vperm.slane %v2932_v40, 1 }
 0x34d   : > { %v2790_v8 = vsel %vm487_vm3, %v2788_v48, %v2789_v4  ;;  %v2881_v12 = vsel %vm2876_vm0, %v7668_v3, %v2873_v11  ;;  %v2875_v25 = vpop.permute.xlu1 %2874  ;;  %v2905_v37 = vadd.f32 %v2904_v18, %v2903_v9  ;;  %v2936_v9 = vperm.slane %v2932_v40, 2 }
 0x34e   : > { %5418 = vst.msk [vmem:[%s6027_s21 + $0x47] ss:$8 sm:$0xf] %vm6020_vm4, %v2790_v8  ;;  %v2900_v50 = vmul.f32 %v2881_v12, %v5957_v33  ;;  %v2882_v20 = vsel %vm2876_vm0, %v2873_v11, %v2875_v25  ;;  %v2894_v35 = vsel %vm2876_vm0, %v2875_v25, %v2869_v39  ;;  %v7743_v58 = vpop.permute.xlu2 %3062  ;;  %v2937_v4 = vperm.slane %v2932_v40, 3 }
 0x34f   : > { %v2901_v0 = vmul.f32 %v2882_v20, %v5985_v46  ;;  %v2902_v3 = vmul.f32 %v2894_v35, %v8892_v24  ;;  %v2906_v22 = vrot.slane %v2905_v37, 2  ;;  %v2934_v11 = vperm.slane %v2932_v40, 0 }
 0x350   : > { %v2910_v10 = vadd.f32 %v2900_v50, %v2896_v5  ;;  %vm4078_vm0 = vcmask 113664  }
 0x351   : > { %v2917_v57 = vadd.f32 %v2901_v0, %v2897_v30  ;;  %v2924_v56 = vadd.f32 %v2902_v3, %v2898_v2  ;;  %v2907_v60 = vadd.f32 %v2906_v22, %v2905_v37 }
 0x352   : > { %v2911_v15 = vrot.slane %v2910_v10, 4  ;;  %3466 = vrot.lane.b32.xlu0 %v8893_v14, %s5772_s9 }
 0x353   : > { %v2918_v7 = vrot.slane %v2917_v57, 4  ;;  %v2925_v41 = vrot.slane %v2924_v56, 4  ;;  %3468 = vrot.lane.b32.xlu1 %v5963_v36, %s5772_s9  ;;  %v2908_v43 = vrot.slane %v2907_v60, 1 }
 0x354   : > { %v2912_v44 = vadd.f32 %v2911_v15, %v2910_v10  ;;  %3470 = vrot.lane.b32.xlu2 %v5967_v38, %s5772_s9  ;;  %v2963_v6 = vpop.permute.xlu0 %2962 }
 0x355   : > { %v2919_v13 = vadd.f32 %v2918_v7, %v2917_v57  ;;  %v2926_v39 = vadd.f32 %v2925_v41, %v2924_v56  ;;  %v2965_v31 = vpop.permute.xlu1 %2964  ;;  %v2977_v48 = vsel %vm2976_vm6, %v7685_v17, %v2963_v6  ;;  %v2909_v8 = vadd.f32 %v2908_v43, %v2907_v60 }
 0x356   : > { %v2913_v61 = vrot.slane %v2912_v44, 2  ;;  %v7755_v49 = vpop.permute.xlu2 %3068  ;;  %v2978_v18 = vsel %vm2976_vm6, %v2963_v6, %v2965_v31  ;;  %v2995_v50 = vmul.f32 %v2977_v48, %v8942_v21 }
 0x357   : > { %v2920_v45 = vrot.slane %v2919_v13, 2  ;;  %v2927_v23 = vrot.slane %v2926_v39, 2  ;;  %v2996_v30 = vmul.f32 %v2978_v18, %v8943_v27  ;;  %v2942_v15 = vmul.f32 %v2934_v11, %v2909_v8 }
 0x358   : > { %v2914_v42 = vadd.f32 %v2913_v61, %v2912_v44 }
 0x359   : > { %v2921_v1 = vadd.f32 %v2920_v45, %v2919_v13  ;;  %v2928_v63 = vadd.f32 %v2927_v23, %v2926_v39  ;;  %v2993_v13 = vsel %vm2976_vm6, %v7705_v51, %v7685_v17  ;;  %v2979_v45 = vsel %vm2976_vm6, %v2965_v31, %v7705_v51 }
 0x35a   : > { %v2915_v59 = vrot.slane %v2914_v42, 1  ;;  %3472 = vrot.lane.b32.xlu0 %v5993_v54, %s5772_s9 }
 0x35b   : > { %v2922_v62 = vrot.slane %v2921_v1, 1  ;;  %v2929_v47 = vrot.slane %v2928_v63, 1  ;;  %3474 = vrot.lane.b32.xlu1 %v5995_v55, %s5772_s9  ;;  %s5787_s9 = smov 109  }
 0x35c   : > { %v2916_v5 = vadd.f32 %v2915_v59, %v2914_v42  ;;  %3560 = vrot.lane.b32.xlu2 %v5941_v28, %s5773_s18  ;;  %v2969_v12 = vpop.permute.xlu0 %2968  ;;  %v2997_v59 = vmul.f32 %v2979_v45, %v8944_v26 }
 0x35d   : > { %v2923_v25 = vadd.f32 %v2922_v62, %v2921_v1  ;;  %v2930_v37 = vadd.f32 %v2929_v47, %v2928_v63  ;;  %v2971_v20 = vpop.permute.xlu1 %2970 }
 0x35e   : > { %v2943_v35 = vmul.f32 %v2935_v16, %v2916_v5  ;;  %v2980_v2 = vsel %vm2976_vm6, %v2969_v12, %v2971_v20  ;;  %v2981_v0 = vsel %vm2976_vm6, %v2971_v20, %v7714_v19  ;;  %v7771_v3 = vpop.permute.xlu2 %3074  ;;  %v2998_v16 = vmul.f32 %v2993_v13, %v8926_v53  ;;  %v3032_v5 = vld [vmem:[#allocation7 + $0x62] ss:$8 sm:$0xf] }
 0x35f   : > { %v2944_v22 = vmul.f32 %v2936_v9, %v2923_v25  ;;  %v2945_v10 = vmul.f32 %v2937_v4, %v2930_v37  ;;  %v2999_v57 = vmul.f32 %v2980_v2, %v5955_v32  ;;  %v3000_v56 = vmul.f32 %v2981_v0, %v5957_v33 }
 0x360   : > { %v2950_v7 = vrot.slane %v2943_v35, 7  ;;  %v3094_v0 = vsel %vm3076_vm7, %v7771_v3, %v7755_v49  ;;  %v3037_v45 = vperm.slane %v3032_v5, 3 }
 0x361   : > { %v2951_v41 = vrot.slane %v2944_v22, 6  ;;  %v2952_v60 = vrot.slane %v2945_v10, 5  ;;  %v3003_v44 = vadd.f32 %v2999_v57, %v2995_v50  ;;  %v3010_v6 = vadd.f32 %v3000_v56, %v2996_v30 }
 0x362   : > { %v2953_v39 = vsel %vm483_vm1, %v2942_v15, %v2950_v7  ;;  %3562 = vrot.lane.b32.xlu0 %v5943_v29, %s5773_s18  ;;  %v3035_v30 = vperm.slane %v3032_v5, 1 }
 0x363   : > { %v2954_v61 = vsel %vm485_vm2, %v2951_v41, %v2952_v60  ;;  %v3004_v23 = vrot.slane %v3003_v44, 4  ;;  %v3011_v43 = vrot.slane %v3010_v6, 4  ;;  %3564 = vrot.lane.b32.xlu1 %v5959_v34, %s5773_s18  ;;  %v3102_v41 = vmul.f32 %v3094_v0, %v8892_v24 }
 0x364   : > { %v2955_v42 = vsel %vm487_vm3, %v2953_v39, %v2954_v61  ;;  %3566 = vrot.lane.b32.xlu2 %v8893_v14, %s5773_s18  ;;  %v2975_v17 = vpop.permute.xlu0 %2974  ;;  %v3036_v39 = vperm.slane %v3032_v5, 2 }
 0x365   : > { %5420 = vst.msk [vmem:[%s6027_s21 + $0x61] ss:$8 sm:$0xf] %vm6020_vm4, %v2955_v42  ;;  %v3005_v40 = vadd.f32 %v3004_v23, %v3003_v44  ;;  %v3012_v1 = vadd.f32 %v3011_v43, %v3010_v6  ;;  %v2982_v63 = vsel %vm2976_vm6, %v7714_v19, %v2975_v17  ;;  %v2994_v51 = vsel %vm2976_vm6, %v2975_v17, %v2969_v12  ;;  %v3061_v31 = vpop.permute.xlu1 %3060 }
 0x366   : > { %v3001_v9 = vmul.f32 %v2982_v63, %v5985_v46  ;;  %v3002_v48 = vmul.f32 %v2994_v51, %v8892_v24  ;;  %v7799_v4 = vpop.permute.xlu2 %3166  ;;  %v3077_v61 = vsel %vm3076_vm7, %v3061_v31, %v7743_v58  ;;  %v3034_v17 = vperm.slane %v3032_v5, 0 }
 0x367   : > { %v3006_v62 = vrot.slane %v3005_v40, 2  ;;  %v3013_v47 = vrot.slane %v3012_v1, 2  ;;  %v3095_v51 = vmul.f32 %v3077_v61, %v8942_v21  ;;  %vm4176_vm6 = vcmask 1031168  }
 0x368   : > { %v3017_v18 = vadd.f32 %v3001_v9, %v2997_v59  ;;  %v3024_v11 = vadd.f32 %v3002_v48, %v2998_v16 }
 0x369   : > { %v3014_v8 = vadd.f32 %v3013_v47, %v3012_v1  ;;  %v3007_v25 = vadd.f32 %v3006_v62, %v3005_v40 }
 0x36a   : > { %v3018_v19 = vrot.slane %v3017_v18, 4  ;;  %v3025_v12 = vrot.slane %v3024_v11, 4  ;;  %3568 = vrot.lane.b32.xlu0 %v5963_v36, %s5773_s18 }
 0x36b   : > { %v3015_v37 = vrot.slane %v3014_v8, 1  ;;  %3570 = vrot.lane.b32.xlu1 %v5967_v38, %s5773_s18  ;;  %v3008_v15 = vrot.slane %v3007_v25, 1 }
 0x36c   : > { %v3019_v50 = vadd.f32 %v3018_v19, %v3017_v18  ;;  %v3026_v20 = vadd.f32 %v3025_v12, %v3024_v11  ;;  %3572 = vrot.lane.b32.xlu2 %v5993_v54, %s5773_s18  ;;  %v3065_v35 = vpop.permute.xlu0 %3064 }
 0x36d   : > { %v3016_v2 = vadd.f32 %v3015_v37, %v3014_v8  ;;  %v3067_v22 = vpop.permute.xlu1 %3066  ;;  %v3009_v40 = vadd.f32 %v3008_v15, %v3007_v25  ;;  %v3078_v9 = vsel %vm3076_vm7, %v7743_v58, %v3065_v35 }
 0x36e   : > { %v3020_v10 = vrot.slane %v3019_v50, 2  ;;  %v3027_v57 = vrot.slane %v3026_v20, 2  ;;  %v7810_v56 = vpop.permute.xlu2 %3172  ;;  %v3093_v7 = vsel %vm3076_vm7, %v3067_v22, %v3061_v31  ;;  %v3079_v48 = vsel %vm3076_vm7, %v3065_v35, %v3067_v22 }
 0x36f   : > { %v3098_v6 = vmul.f32 %v3093_v7, %v8926_v53  ;;  %v3043_v13 = vmul.f32 %v3035_v30, %v3016_v2  ;;  %v3042_v12 = vmul.f32 %v3034_v17, %v3009_v40  ;;  %v3097_v30 = vmul.f32 %v3079_v48, %v8944_v26  ;;  %v3132_v17 = vld [vmem:[#allocation7 + $0x63] ss:$8 sm:$0xf] }
 0x370   : > { %v3021_v60 = vadd.f32 %v3020_v10, %v3019_v50  ;;  %v3028_v44 = vadd.f32 %v3027_v57, %v3026_v20  ;;  %v3137_v48 = vperm.slane %v3132_v17, 3 }
 0x371   : > { %v3124_v42 = vadd.f32 %v3102_v41, %v3098_v6  ;;  %v3050_v59 = vrot.slane %v3043_v13, 7 }
 0x372   : > { %v3022_v23 = vrot.slane %v3021_v60, 1  ;;  %v3029_v43 = vrot.slane %v3028_v44, 1  ;;  %3574 = vrot.lane.b32.xlu0 %v5995_v55, %s5773_s18  ;;  %s5788_s18 = smov 93  }
 0x373   : > { %3660 = vrot.lane.b32.xlu1 %v5941_v28, %s5774_s23  ;;  %v3125_v16 = vrot.slane %v3124_v42, 4  ;;  %v3053_v22 = vsel %vm483_vm1, %v3042_v12, %v3050_v59  ;;  %v3136_v12 = vperm.slane %v3132_v17, 2 }
 0x374   : > { %v3023_v1 = vadd.f32 %v3022_v23, %v3021_v60  ;;  %v3030_v63 = vadd.f32 %v3029_v43, %v3028_v44  ;;  %3662 = vrot.lane.b32.xlu2 %v5943_v29, %s5774_s23  ;;  %v3071_v31 = vpop.permute.xlu0 %3070 }
 0x375   : > { %v3080_v62 = vsel %vm3076_vm7, %v7755_v49, %v3071_v31  ;;  %v3073_v47 = vpop.permute.xlu1 %3072  ;;  %v3126_v8 = vadd.f32 %v3125_v16, %v3124_v42  ;;  %v3096_v49 = vmul.f32 %v3078_v9, %v8943_v27 }
 0x376   : > { %v3044_v18 = vmul.f32 %v3036_v39, %v3023_v1  ;;  %v3045_v11 = vmul.f32 %v3037_v45, %v3030_v63  ;;  %v3099_v5 = vmul.f32 %v3080_v62, %v5955_v32  ;;  %v7830_v19 = vpop.permute.xlu2 %3260  ;;  %v3081_v25 = vsel %vm3076_vm7, %v3071_v31, %v3073_v47 }
 0x377   : > { %v3082_v37 = vsel %vm3076_vm7, %v3073_v47, %v7771_v3  ;;  %v3127_v20 = vrot.slane %v3126_v8, 2  ;;  %v3100_v2 = vmul.f32 %v3081_v25, %v5957_v33  ;;  %vm4276_vm7 = vcmask 900096  }
 0x378   : > { %v3051_v58 = vrot.slane %v3044_v18, 6  ;;  %v3052_v50 = vrot.slane %v3045_v11, 5  ;;  %v3103_v35 = vadd.f32 %v3099_v5, %v3095_v51  ;;  %v3101_v0 = vmul.f32 %v3082_v37, %v5985_v46 }
 0x379   : > { %v3128_v15 = vadd.f32 %v3127_v20, %v3126_v8  ;;  %v3110_v7 = vadd.f32 %v3100_v2, %v3096_v49  ;;  %v3135_v8 = vperm.slane %v3132_v17, 1  ;;  %v3134_v20 = vperm.slane %v3132_v17, 0 }
 0x37a   : > { %v3054_v10 = vsel %vm485_vm2, %v3051_v58, %v3052_v50  ;;  %v3104_v57 = vrot.slane %v3103_v35, 4  ;;  %3664 = vrot.lane.b32.xlu0 %v5959_v34, %s5774_s23  ;;  %v3117_v41 = vadd.f32 %v3101_v0, %v3097_v30 }
 0x37b   : > { %v3055_v3 = vsel %vm487_vm3, %v3053_v22, %v3054_v10  ;;  %3666 = vrot.lane.b32.xlu1 %v8893_v14, %s5774_s23  ;;  %v3111_v6 = vrot.slane %v3110_v7, 4  ;;  %v3129_v40 = vrot.slane %v3128_v15, 1 }
 0x37c   : > { %5421 = vst.msk [vmem:[%s6027_s21 + $0x62] ss:$8 sm:$0xf] %vm6020_vm4, %v3055_v3  ;;  %v3105_v60 = vadd.f32 %v3104_v57, %v3103_v35  ;;  %3668 = vrot.lane.b32.xlu2 %v5963_v36, %s5774_s23  ;;  %v3161_v44 = vpop.permute.xlu0 %3160  ;;  %v3118_v13 = vrot.slane %v3117_v41, 4 }
 0x37d   : > { %v3193_v39 = vsel %vm3178_vm8, %v3161_v44, %v7799_v4  ;;  %v3163_v61 = vpop.permute.xlu1 %3162  ;;  %v3112_v1 = vadd.f32 %v3111_v6, %v3110_v7  ;;  %v3130_v62 = vadd.f32 %v3129_v40, %v3128_v15 }
 0x37e   : > { %v3106_v45 = vrot.slane %v3105_v60, 2  ;;  %v3195_v23 = vmul.f32 %v3193_v39, %v8942_v21  ;;  %v3194_v43 = vsel %vm3178_vm8, %v3163_v61, %v7810_v56  ;;  %v7856_v42 = vpop.permute.xlu2 %3268  ;;  %v3119_v63 = vadd.f32 %v3118_v13, %v3117_v41 }
 0x37f   : > { %v3199_v51 = vmul.f32 %v3194_v43, %v5955_v32  ;;  %v3113_v31 = vrot.slane %v3112_v1, 2  ;;  %v3145_v49 = vmul.f32 %v3137_v48, %v3130_v62 }
 0x380   : > { %v3107_v16 = vadd.f32 %v3106_v45, %v3105_v60  ;;  %v3120_v59 = vrot.slane %v3119_v63, 2 }
 0x381   : > { %v3203_v9 = vadd.f32 %v3199_v51, %v3195_v23  ;;  %v3114_v18 = vadd.f32 %v3113_v31, %v3112_v1  ;;  %v3152_v15 = vrot.slane %v3145_v49, 5 }
 0x382   : > { %3670 = vrot.lane.b32.xlu0 %v5967_v38, %s5774_s23  ;;  %v3108_v47 = vrot.slane %v3107_v16, 1  ;;  %v3121_v11 = vadd.f32 %v3120_v59, %v3119_v63 }
 0x383   : > { %3672 = vrot.lane.b32.xlu1 %v5993_v54, %s5774_s23  ;;  %v3115_v25 = vrot.slane %v3114_v18, 1  ;;  %v3204_v58 = vrot.slane %v3203_v9, 4 }
 0x384   : > { %3674 = vrot.lane.b32.xlu2 %v5995_v55, %s5774_s23  ;;  %v3169_v5 = vpop.permute.xlu0 %3168  ;;  %v3122_v37 = vrot.slane %v3121_v11, 1  ;;  %v3109_v30 = vadd.f32 %v3108_v47, %v3107_v16  ;;  %s5789_s23 = smov 77  }
 0x385   : > { %v3171_v50 = vpop.permute.xlu1 %3170  ;;  %v3116_v2 = vadd.f32 %v3115_v25, %v3114_v18  ;;  %v3205_v57 = vadd.f32 %v3204_v58, %v3203_v9  ;;  %v3179_v3 = vsel %vm3178_vm8, %v7799_v4, %v3169_v5 }
 0x386   : > { %v7865_v35 = vpop.permute.xlu2 %3274  ;;  %v3123_v0 = vadd.f32 %v3122_v37, %v3121_v11  ;;  %v3142_v7 = vmul.f32 %v3134_v20, %v3109_v30  ;;  %v3196_v6 = vmul.f32 %v3179_v3, %v8943_v27  ;;  %v3180_v13 = vsel %vm3178_vm8, %v3169_v5, %v3171_v50 }
 0x387   : > { %v3143_v22 = vmul.f32 %v3135_v8, %v3116_v2  ;;  %v3181_v39 = vsel %vm3178_vm8, %v3171_v50, %v3161_v44  ;;  %v3206_v43 = vrot.slane %v3205_v57, 2  ;;  %v3197_v31 = vmul.f32 %v3180_v13, %v8944_v26  ;;  %v3232_v50 = vld [vmem:[#allocation7 + $0x64] ss:$8 sm:$0xf] }
 0x388   : > { %v3144_v10 = vmul.f32 %v3136_v12, %v3123_v0  ;;  %v3198_v59 = vmul.f32 %v3181_v39, %v8926_v53 }
 0x389   : > { %v3150_v41 = vrot.slane %v3143_v22, 7  ;;  %v3207_v18 = vadd.f32 %v3206_v43, %v3205_v57 }
 0x38a   : > { %3760 = vrot.lane.b32.xlu0 %v5941_v28, %s5775_s6  ;;  %v3151_v60 = vrot.slane %v3144_v10, 6  ;;  %v3234_v10 = vperm.slane %v3232_v50, 0 }
 0x38b   : > { %3762 = vrot.lane.b32.xlu1 %v5943_v29, %s5775_s6  ;;  %v3153_v45 = vsel %vm483_vm1, %v3142_v7, %v3150_v41  ;;  %v3208_v20 = vrot.slane %v3207_v18, 1  ;;  %v3235_v7 = vperm.slane %v3232_v50, 1 }
 0x38c   : > { %3764 = vrot.lane.b32.xlu2 %v5959_v34, %s5775_s6  ;;  %v3175_v4 = vpop.permute.xlu0 %3174  ;;  %v3154_v23 = vsel %vm485_vm2, %v3151_v60, %v3152_v15  ;;  %v3236_v60 = vperm.slane %v3232_v50, 2 }
 0x38d   : > { %v3182_v17 = vsel %vm3178_vm8, %v7810_v56, %v3175_v4  ;;  %v3177_v40 = vpop.permute.xlu1 %3176  ;;  %v3155_v1 = vsel %vm487_vm3, %v3153_v45, %v3154_v23  ;;  %v3209_v15 = vadd.f32 %v3208_v20, %v3207_v18 }
 0x38e   : > { %v3200_v63 = vmul.f32 %v3182_v17, %v5957_v33  ;;  %v3183_v51 = vsel %vm3178_vm8, %v3175_v4, %v3177_v40  ;;  %v3184_v44 = vsel %vm3178_vm8, %v3177_v40, %v3163_v61  ;;  %v7886_v16 = vpop.permute.xlu2 %3362  ;;  %5422 = vst.msk [vmem:[%s6027_s21 + $0x63] ss:$8 sm:$0xf] %vm6020_vm4, %v3155_v1  ;;  %vm4376_vm8 = vcmask 769024  }
 0x38f   : > { %v3201_v56 = vmul.f32 %v3183_v51, %v5985_v46  ;;  %v3202_v9 = vmul.f32 %v3184_v44, %v8892_v24 }
 0x390   : > { %v3210_v48 = vadd.f32 %v3200_v63, %v3196_v6  ;;  %v3237_v6 = vperm.slane %v3232_v50, 3  ;;  %v3242_v63 = vmul.f32 %v3234_v10, %v3209_v15 }
 0x391   : > { %v3217_v62 = vadd.f32 %v3201_v56, %v3197_v31  ;;  %v3224_v47 = vadd.f32 %v3202_v9, %v3198_v59 }
 0x392   : > { %v3211_v11 = vrot.slane %v3210_v48, 4  ;;  %3766 = vrot.lane.b32.xlu0 %v8893_v14, %s5775_s6 }
 0x393   : > { %v3218_v61 = vrot.slane %v3217_v62, 4  ;;  %v3225_v8 = vrot.slane %v3224_v47, 4  ;;  %3768 = vrot.lane.b32.xlu1 %v5963_v36, %s5775_s6 }
 0x394   : > { %v3212_v5 = vadd.f32 %v3211_v11, %v3210_v48  ;;  %3770 = vrot.lane.b32.xlu2 %v5967_v38, %s5775_s6  ;;  %v7901_v12 = vpop.permute.xlu0 %3262 }
 0x395   : > { %v3219_v25 = vadd.f32 %v3218_v61, %v3217_v62  ;;  %v3226_v37 = vadd.f32 %v3225_v8, %v3224_v47  ;;  %v3267_v58 = vpop.permute.xlu1 %3266 }
 0x396   : > { %v3213_v49 = vrot.slane %v3212_v5, 2  ;;  %v7903_v30 = vpop.permute.xlu2 %3370  ;;  %v3279_v4 = vsel %vm3278_vm9, %v3267_v58, %v7856_v42  ;;  %v3293_v40 = vsel %vm3278_vm9, %v7830_v19, %v3267_v58 }
 0x397   : > { %v3220_v2 = vrot.slane %v3219_v25, 2  ;;  %v3227_v0 = vrot.slane %v3226_v37, 2  ;;  %v3296_v44 = vmul.f32 %v3279_v4, %v8943_v27  ;;  %v3295_v18 = vmul.f32 %v3293_v40, %v8942_v21 }
 0x398   : > { %v3214_v22 = vadd.f32 %v3213_v49, %v3212_v5 }
 0x399   : > { %v3221_v57 = vadd.f32 %v3220_v2, %v3219_v25  ;;  %v3228_v3 = vadd.f32 %v3227_v0, %v3226_v37 }
 0x39a   : > { %v3215_v41 = vrot.slane %v3214_v22, 1  ;;  %3772 = vrot.lane.b32.xlu0 %v5993_v54, %s5775_s6 }
 0x39b   : > { %v3222_v13 = vrot.slane %v3221_v57, 1  ;;  %v3229_v39 = vrot.slane %v3228_v3, 1  ;;  %3774 = vrot.lane.b32.xlu1 %v5995_v55, %s5775_s6  ;;  %s5449_s6 = sshll.u32 %s5833_s16, 5  ;;  %s5261_s16 = scalar_lea.sflag [#allocation4], %s5913_s26 }
 0x39c   : > { %v3216_v45 = vadd.f32 %v3215_v41, %v3214_v22  ;;  %3860 = vrot.lane.b32.xlu2 %v8893_v14, %s5776_s7  ;;  %v3271_v23 = vpop.permute.xlu0 %3270 }
 0x39d   : > { %v3223_v43 = vadd.f32 %v3222_v13, %v3221_v57  ;;  %v3230_v17 = vadd.f32 %v3229_v39, %v3228_v3  ;;  %v3273_v1 = vpop.permute.xlu1 %3272  ;;  %v3280_v5 = vsel %vm3278_vm9, %v7856_v42, %v3271_v23  ;;  %v3281_v58 = vsel %vm3278_vm9, %v3271_v23, %v7830_v19 }
 0x39e   : > { %v3243_v51 = vmul.f32 %v3235_v7, %v3216_v45  ;;  %v3282_v31 = vsel %vm3278_vm9, %v3273_v1, %v7865_v35  ;;  %v7918_v59 = vpop.permute.xlu2 %3376  ;;  %v3294_v48 = vsel %vm3278_vm9, %v7901_v12, %v3273_v1  ;;  %v3297_v42 = vmul.f32 %v3280_v5, %v8944_v26  ;;  %v3332_v1 = vld [vmem:[#allocation7 + $0x65] ss:$8 sm:$0xf] }
 0x39f   : > { %v3244_v56 = vmul.f32 %v3236_v60, %v3223_v43  ;;  %v3245_v9 = vmul.f32 %v3237_v6, %v3230_v17  ;;  %v3300_v62 = vmul.f32 %v3282_v31, %v5957_v33  ;;  %v3299_v11 = vmul.f32 %v3294_v48, %v5955_v32 }
 0x3a0   : > { %v3250_v47 = vrot.slane %v3243_v51, 7  ;;  %v3384_v22 = vsel %vm3378_vm10, %v7918_v59, %v7886_v16  ;;  %v3298_v10 = vmul.f32 %v3281_v58, %v8926_v53 }
 0x3a1   : > { %v3251_v61 = vrot.slane %v3244_v56, 6  ;;  %v3252_v8 = vrot.slane %v3245_v9, 5  ;;  %v3310_v25 = vadd.f32 %v3300_v62, %v3296_v44  ;;  %v3303_v50 = vadd.f32 %v3299_v11, %v3295_v18 }
 0x3a2   : > { %v3253_v37 = vsel %vm483_vm1, %v3242_v63, %v3250_v47  ;;  %3862 = vrot.lane.b32.xlu0 %v5995_v55, %s5776_s7  ;;  %v3402_v45 = vmul.f32 %v3384_v22, %v8892_v24  ;;  %v3335_v62 = vperm.slane %v3332_v1, 1  ;;  %v3337_v22 = vperm.slane %v3332_v1, 3 }
 0x3a3   : > { %v3254_v20 = vsel %vm485_vm2, %v3251_v61, %v3252_v8  ;;  %v3311_v49 = vrot.slane %v3310_v25, 4  ;;  %3866 = vrot.lane.b32.xlu1 %v5941_v28, %s5776_s7  ;;  %v3304_v0 = vrot.slane %v3303_v50, 4 }
 0x3a4   : > { %v3255_v2 = vsel %vm487_vm3, %v3253_v37, %v3254_v20  ;;  %3868 = vrot.lane.b32.xlu2 %v5943_v29, %s5776_s7  ;;  %v3277_v19 = vpop.permute.xlu0 %3276  ;;  %v3334_v20 = vperm.slane %v3332_v1, 0 }
 0x3a5   : > { %5423 = vst.msk [vmem:[%s6027_s21 + $0x64] ss:$8 sm:$0xf] %vm6020_vm4, %v3255_v2  ;;  %v3312_v57 = vadd.f32 %v3311_v49, %v3310_v25  ;;  %v3283_v3 = vsel %vm3278_vm9, %v7865_v35, %v3277_v19  ;;  %v3284_v15 = vsel %vm3278_vm9, %v3277_v19, %v7901_v12  ;;  %v3361_v7 = vpop.permute.xlu1 %3360  ;;  %v3305_v41 = vadd.f32 %v3304_v0, %v3303_v50 }
 0x3a6   : > { %v3301_v60 = vmul.f32 %v3283_v3, %v5985_v46  ;;  %v3302_v6 = vmul.f32 %v3284_v15, %v8892_v24  ;;  %v3381_v13 = vsel %vm3378_vm10, %v7903_v30, %v3361_v7  ;;  %v7954_v39 = vpop.permute.xlu2 %3464  ;;  %v3336_v0 = vperm.slane %v3332_v1, 2 }
 0x3a7   : > { %v3313_v4 = vrot.slane %v3312_v57, 2  ;;  %v3398_v23 = vmul.f32 %v3381_v13, %v8926_v53  ;;  %v3306_v35 = vrot.slane %v3305_v41, 2  ;;  %vm4476_vm9 = vcmask 637952  }
 0x3a8   : > { %v3317_v43 = vadd.f32 %v3301_v60, %v3297_v42  ;;  %v3324_v17 = vadd.f32 %v3302_v6, %v3298_v10 }
 0x3a9   : > { %v3314_v12 = vadd.f32 %v3313_v4, %v3312_v57  ;;  %v3424_v40 = vadd.f32 %v3402_v45, %v3398_v23  ;;  %v3307_v63 = vadd.f32 %v3306_v35, %v3305_v41 }
 0x3aa   : > { %v3318_v51 = vrot.slane %v3317_v43, 4  ;;  %v3325_v44 = vrot.slane %v3324_v17, 4  ;;  %3870 = vrot.lane.b32.xlu0 %v5959_v34, %s5776_s7 }
 0x3ab   : > { %v3315_v31 = vrot.slane %v3314_v12, 1  ;;  %3872 = vrot.lane.b32.xlu1 %v5963_v36, %s5776_s7  ;;  %v3308_v47 = vrot.slane %v3307_v63, 1  ;;  %v3425_v11 = vrot.slane %v3424_v40, 4 }
 0x3ac   : > { %v3319_v56 = vadd.f32 %v3318_v51, %v3317_v43  ;;  %v3326_v9 = vadd.f32 %v3325_v44, %v3324_v17  ;;  %3874 = vrot.lane.b32.xlu2 %v5967_v38, %s5776_s7  ;;  %v3367_v48 = vpop.permute.xlu0 %3366 }
 0x3ad   : > { %v3316_v18 = vadd.f32 %v3315_v31, %v3314_v12  ;;  %v3369_v61 = vpop.permute.xlu1 %3368  ;;  %v3393_v50 = vsel %vm3378_vm10, %v3361_v7, %v3367_v48  ;;  %v3309_v49 = vadd.f32 %v3308_v47, %v3307_v63  ;;  %v3426_v42 = vadd.f32 %v3425_v11, %v3424_v40 }
 0x3ae   : > { %v3320_v8 = vrot.slane %v3319_v56, 2  ;;  %v3327_v5 = vrot.slane %v3326_v9, 2  ;;  %v7964_v25 = vpop.permute.xlu2 %3470  ;;  %v3395_v57 = vmul.f32 %v3393_v50, %v8942_v21  ;;  %v3379_v7 = vsel %vm3378_vm10, %v3367_v48, %v3369_v61 }
 0x3af   : > { %v3343_v2 = vmul.f32 %v3335_v62, %v3316_v18  ;;  %v3380_v41 = vsel %vm3378_vm10, %v3369_v61, %v7903_v30  ;;  %v3342_v6 = vmul.f32 %v3334_v20, %v3309_v49  ;;  %v3427_v4 = vrot.slane %v3426_v42, 2  ;;  %v3432_v20 = vld [vmem:[#allocation7 + $0x66] ss:$8 sm:$0xf] }
 0x3b0   : > { %v3321_v37 = vadd.f32 %v3320_v8, %v3319_v56  ;;  %v3328_v58 = vadd.f32 %v3327_v5, %v3326_v9  ;;  %v3396_v30 = vmul.f32 %v3379_v7, %v8943_v27  ;;  %v3397_v1 = vmul.f32 %v3380_v41, %v8944_v26 }
 0x3b1   : > { %v3350_v13 = vrot.slane %v3343_v2, 7  ;;  %v3428_v9 = vadd.f32 %v3427_v4, %v3426_v42 }
 0x3b2   : > { %v3322_v19 = vrot.slane %v3321_v37, 1  ;;  %v3329_v10 = vrot.slane %v3328_v58, 1  ;;  %3876 = vrot.lane.b32.xlu0 %v5993_v54, %s5776_s7 }
 0x3b3   : > { %3960 = vrot.lane.b32.xlu1 %v8893_v14, %s5777_s28  ;;  %v3353_v62 = vsel %vm483_vm1, %v3342_v6, %v3350_v13  ;;  %v3429_v49 = vrot.slane %v3428_v9, 1  ;;  %v3436_v13 = vperm.slane %v3432_v20, 2 }
 0x3b4   : > { %v3323_v3 = vadd.f32 %v3322_v19, %v3321_v37  ;;  %v3330_v15 = vadd.f32 %v3329_v10, %v3328_v58  ;;  %3962 = vrot.lane.b32.xlu2 %v5995_v55, %s5777_s28  ;;  %v3373_v60 = vpop.permute.xlu0 %3372 }
 0x3b5   : > { %v3394_v45 = vsel %vm3378_vm10, %v7886_v16, %v3373_v60  ;;  %v3375_v23 = vpop.permute.xlu1 %3374 }
 0x3b6   : > { %v3344_v35 = vmul.f32 %v3336_v0, %v3323_v3  ;;  %v3345_v43 = vmul.f32 %v3337_v22, %v3330_v15  ;;  %v3399_v17 = vmul.f32 %v3394_v45, %v5955_v32  ;;  %v3382_v12 = vsel %vm3378_vm10, %v3373_v60, %v3375_v23  ;;  %v7981_v40 = vpop.permute.xlu2 %3560 }
 0x3b7   : > { %v3383_v63 = vsel %vm3378_vm10, %v3375_v23, %v7918_v59  ;;  %v3400_v51 = vmul.f32 %v3382_v12, %v5957_v33  ;;  %v3430_v15 = vadd.f32 %v3429_v49, %v3428_v9  ;;  %v3435_v60 = vperm.slane %v3432_v20, 1 }
 0x3b8   : > { %v3351_v16 = vrot.slane %v3344_v35, 6  ;;  %v3352_v44 = vrot.slane %v3345_v43, 5  ;;  %v3403_v31 = vadd.f32 %v3399_v17, %v3395_v57  ;;  %v3401_v56 = vmul.f32 %v3383_v63, %v5985_v46 }
 0x3b9   : > { %v3410_v48 = vadd.f32 %v3400_v51, %v3396_v30  ;;  %v3437_v57 = vperm.slane %v3432_v20, 3  ;;  %v3434_v23 = vperm.slane %v3432_v20, 0  ;;  %vm4578_vm10 = vcmask 367616  }
 0x3ba   : > { %v3354_v47 = vsel %vm485_vm2, %v3351_v16, %v3352_v44  ;;  %v3404_v18 = vrot.slane %v3403_v31, 4  ;;  %v3417_v11 = vadd.f32 %v3401_v56, %v3397_v1  ;;  %3966 = vrot.lane.b32.xlu0 %v5941_v28, %s5777_s28 }
 0x3bb   : > { %v3355_v59 = vsel %vm487_vm3, %v3353_v62, %v3354_v47  ;;  %v3411_v61 = vrot.slane %v3410_v48, 4  ;;  %3968 = vrot.lane.b32.xlu1 %v5943_v29, %s5777_s28  ;;  %v3445_v30 = vmul.f32 %v3437_v57, %v3430_v15 }
 0x3bc   : > { %5424 = vst.msk [vmem:[%s6027_s21 + $0x65] ss:$8 sm:$0xf] %vm6020_vm4, %v3355_v59  ;;  %v3405_v8 = vadd.f32 %v3404_v18, %v3403_v31  ;;  %v3418_v5 = vrot.slane %v3417_v11, 4  ;;  %3970 = vrot.lane.b32.xlu2 %v5959_v34, %s5777_s28  ;;  %v3461_v37 = vpop.permute.xlu0 %3460 }
 0x3bd   : > { %v3412_v58 = vadd.f32 %v3411_v61, %v3410_v48  ;;  %v3463_v50 = vpop.permute.xlu1 %3462  ;;  %v3452_v62 = vrot.slane %v3445_v30, 5 }
 0x3be   : > { %v3406_v2 = vrot.slane %v3405_v8, 2  ;;  %v3419_v42 = vadd.f32 %v3418_v5, %v3417_v11  ;;  %v8001_v0 = vpop.permute.xlu2 %3566  ;;  %v3477_v17 = vsel %vm3476_vm11, %v3461_v37, %v3463_v50  ;;  %v3478_v18 = vsel %vm3476_vm11, %v3463_v50, %v7954_v39 }
 0x3bf   : > { %v3413_v22 = vrot.slane %v3412_v58, 2  ;;  %v3495_v31 = vmul.f32 %v3477_v17, %v8942_v21  ;;  %v3496_v49 = vmul.f32 %v3478_v18, %v8943_v27 }
 0x3c0   : > { %v3407_v19 = vadd.f32 %v3406_v2, %v3405_v8  ;;  %v3420_v10 = vrot.slane %v3419_v42, 2 }
 0x3c1   : > { %v3414_v3 = vadd.f32 %v3413_v22, %v3412_v58 }
 0x3c2   : > { %v3408_v7 = vrot.slane %v3407_v19, 1  ;;  %v3421_v41 = vadd.f32 %v3420_v10, %v3419_v42  ;;  %3972 = vrot.lane.b32.xlu0 %v5963_v36, %s5777_s28 }
 0x3c3   : > { %v3415_v6 = vrot.slane %v3414_v3, 1  ;;  %3974 = vrot.lane.b32.xlu1 %v5967_v38, %s5777_s28 }
 0x3c4   : > { %v3422_v4 = vrot.slane %v3421_v41, 1  ;;  %3976 = vrot.lane.b32.xlu2 %v5993_v54, %s5777_s28  ;;  %v3467_v45 = vpop.permute.xlu0 %3466  ;;  %v3409_v35 = vadd.f32 %v3408_v7, %v3407_v19 }
 0x3c5   : > { %v3416_v43 = vadd.f32 %v3415_v6, %v3414_v3  ;;  %v3469_v12 = vpop.permute.xlu1 %3468  ;;  %v3479_v8 = vsel %vm3476_vm11, %v7954_v39, %v3467_v45  ;;  %v3493_v5 = vsel %vm3476_vm11, %v3467_v45, %v3461_v37 }
 0x3c6   : > { %v3423_v1 = vadd.f32 %v3422_v4, %v3421_v41  ;;  %v8010_v63 = vpop.permute.xlu2 %3572  ;;  %v3480_v16 = vsel %vm3476_vm11, %v3469_v12, %v7964_v25  ;;  %v3442_v9 = vmul.f32 %v3434_v23, %v3409_v35  ;;  %v3497_v57 = vmul.f32 %v3479_v8, %v8944_v26 }
 0x3c7   : > { %v3443_v51 = vmul.f32 %v3435_v60, %v3416_v43  ;;  %v3499_v56 = vmul.f32 %v3480_v16, %v5955_v32  ;;  %v3498_v3 = vmul.f32 %v3493_v5, %v8926_v53 }
 0x3c8   : > { %v3444_v44 = vmul.f32 %v3436_v13, %v3423_v1 }
 0x3c9   : > { %v3450_v48 = vrot.slane %v3443_v51, 7  ;;  %v3503_v11 = vadd.f32 %v3499_v56, %v3495_v31 }
 0x3ca   : > { %v3451_v47 = vrot.slane %v3444_v44, 6  ;;  %4060 = vrot.lane.b32.xlu0 %v8893_v14, %s5778_s29 }
 0x3cb   : > { %v3453_v59 = vsel %vm483_vm1, %v3442_v9, %v3450_v48  ;;  %4062 = vrot.lane.b32.xlu1 %v5995_v55, %s5778_s29  ;;  %v3504_v58 = vrot.slane %v3503_v11, 4  ;;  %v3532_v9 = vld [vmem:[#allocation7 + $0x67] ss:$8 sm:$0xf] }
 0x3cc   : > { %v3454_v61 = vsel %vm485_vm2, %v3451_v47, %v3452_v62  ;;  %4066 = vrot.lane.b32.xlu2 %v5941_v28, %s5778_s29  ;;  %v3473_v50 = vpop.permute.xlu0 %3472  ;;  %v3535_v47 = vperm.slane %v3532_v9, 1 }
 0x3cd   : > { %v3455_v20 = vsel %vm487_vm3, %v3453_v59, %v3454_v61  ;;  %v3481_v2 = vsel %vm3476_vm11, %v7964_v25, %v3473_v50  ;;  %v3475_v42 = vpop.permute.xlu1 %3474  ;;  %v3505_v22 = vadd.f32 %v3504_v58, %v3503_v11  ;;  %v3536_v11 = vperm.slane %v3532_v9, 2 }
 0x3ce   : > { %5425 = vst.msk [vmem:[%s6027_s21 + $0x66] ss:$8 sm:$0xf] %vm6020_vm4, %v3455_v20  ;;  %v3500_v39 = vmul.f32 %v3481_v2, %v5957_v33  ;;  %v3482_v37 = vsel %vm3476_vm11, %v3473_v50, %v3475_v42  ;;  %v3494_v19 = vsel %vm3476_vm11, %v3475_v42, %v3469_v12  ;;  %v8039_v10 = vpop.permute.xlu2 %3662  ;;  %v3537_v61 = vperm.slane %v3532_v9, 3 }
 0x3cf   : > { %v3501_v15 = vmul.f32 %v3482_v37, %v5985_v46  ;;  %v3502_v25 = vmul.f32 %v3494_v19, %v8892_v24  ;;  %v3506_v7 = vrot.slane %v3505_v22, 2  ;;  %v3534_v50 = vperm.slane %v3532_v9, 0 }
 0x3d0   : > { %v3510_v41 = vadd.f32 %v3500_v39, %v3496_v49  ;;  %vm4678_vm11 = vcmask 236544  }
 0x3d1   : > { %v3517_v60 = vadd.f32 %v3501_v15, %v3497_v57  ;;  %v3524_v6 = vadd.f32 %v3502_v25, %v3498_v3  ;;  %v3507_v23 = vadd.f32 %v3506_v7, %v3505_v22 }
 0x3d2   : > { %v3511_v13 = vrot.slane %v3510_v41, 4  ;;  %4068 = vrot.lane.b32.xlu0 %v5943_v29, %s5778_s29 }
 0x3d3   : > { %v3518_v4 = vrot.slane %v3517_v60, 4  ;;  %v3525_v45 = vrot.slane %v3524_v6, 4  ;;  %4070 = vrot.lane.b32.xlu1 %v5959_v34, %s5778_s29  ;;  %v3508_v31 = vrot.slane %v3507_v23, 1 }
 0x3d4   : > { %v3512_v35 = vadd.f32 %v3511_v13, %v3510_v41  ;;  %4072 = vrot.lane.b32.xlu2 %v5963_v36, %s5778_s29  ;;  %v3563_v43 = vpop.permute.xlu0 %3562 }
 0x3d5   : > { %v3519_v17 = vadd.f32 %v3518_v4, %v3517_v60  ;;  %v3526_v12 = vadd.f32 %v3525_v45, %v3524_v6  ;;  %v3565_v30 = vpop.permute.xlu1 %3564  ;;  %v3577_v59 = vsel %vm3576_vm12, %v7981_v40, %v3563_v43  ;;  %v3509_v20 = vadd.f32 %v3508_v31, %v3507_v23 }
 0x3d6   : > { %v3513_v1 = vrot.slane %v3512_v35, 2  ;;  %v8051_v51 = vpop.permute.xlu2 %3668  ;;  %v3578_v58 = vsel %vm3576_vm12, %v3563_v43, %v3565_v30  ;;  %v3595_v39 = vmul.f32 %v3577_v59, %v8942_v21 }
 0x3d7   : > { %v3520_v16 = vrot.slane %v3519_v17, 2  ;;  %v3527_v44 = vrot.slane %v3526_v12, 2  ;;  %v3596_v57 = vmul.f32 %v3578_v58, %v8943_v27  ;;  %v3542_v13 = vmul.f32 %v3534_v50, %v3509_v20 }
 0x3d8   : > { %v3514_v56 = vadd.f32 %v3513_v1, %v3512_v35 }
 0x3d9   : > { %v3521_v48 = vadd.f32 %v3520_v16, %v3519_v17  ;;  %v3528_v62 = vadd.f32 %v3527_v44, %v3526_v12  ;;  %v3593_v17 = vsel %vm3576_vm12, %v8001_v0, %v7981_v40  ;;  %v3579_v16 = vsel %vm3576_vm12, %v3565_v30, %v8001_v0 }
 0x3da   : > { %v3515_v18 = vrot.slane %v3514_v56, 1  ;;  %4074 = vrot.lane.b32.xlu0 %v5967_v38, %s5778_s29 }
 0x3db   : > { %v3522_v8 = vrot.slane %v3521_v48, 1  ;;  %v3529_v5 = vrot.slane %v3528_v62, 1  ;;  %4076 = vrot.lane.b32.xlu1 %v5993_v54, %s5778_s29  ;;  %s5272_s29 = scalar_lea.hbm %s8825_s3, %s5449_s6 }
 0x3dc   : > { %v3516_v49 = vadd.f32 %v3515_v18, %v3514_v56  ;;  %4160 = vrot.lane.b32.xlu2 %v5941_v28, %s5779_s30  ;;  %v3569_v2 = vpop.permute.xlu0 %3568  ;;  %v3597_v18 = vmul.f32 %v3579_v16, %v8944_v26 }
 0x3dd   : > { %v3523_v42 = vadd.f32 %v3522_v8, %v3521_v48  ;;  %v3530_v22 = vadd.f32 %v3529_v5, %v3528_v62  ;;  %v3571_v37 = vpop.permute.xlu1 %3570 }
 0x3de   : > { %v3543_v19 = vmul.f32 %v3535_v47, %v3516_v49  ;;  %v3580_v3 = vsel %vm3576_vm12, %v3569_v2, %v3571_v37  ;;  %v3581_v15 = vsel %vm3576_vm12, %v3571_v37, %v8010_v63  ;;  %v8067_v25 = vpop.permute.xlu2 %3674  ;;  %v3598_v47 = vmul.f32 %v3593_v17, %v8926_v53  ;;  %v3632_v49 = vld [vmem:[#allocation7 + $0x80] ss:$8 sm:$0xf] }
 0x3df   : > { %v3544_v7 = vmul.f32 %v3536_v11, %v3523_v42  ;;  %v3545_v41 = vmul.f32 %v3537_v61, %v3530_v22  ;;  %v3599_v60 = vmul.f32 %v3580_v3, %v5955_v32  ;;  %v3600_v6 = vmul.f32 %v3581_v15, %v5957_v33 }
 0x3e0   : > { %v3550_v4 = vrot.slane %v3543_v19, 7  ;;  %v3694_v15 = vsel %vm3676_vm13, %v8067_v25, %v8051_v51  ;;  %v3637_v16 = vperm.slane %v3632_v49, 3 }
 0x3e1   : > { %v3551_v45 = vrot.slane %v3544_v7, 6  ;;  %v3552_v23 = vrot.slane %v3545_v41, 5  ;;  %v3603_v35 = vadd.f32 %v3599_v60, %v3595_v39  ;;  %v3610_v43 = vadd.f32 %v3600_v6, %v3596_v57 }
 0x3e2   : > { %v3553_v12 = vsel %vm483_vm1, %v3542_v13, %v3550_v4  ;;  %4162 = vrot.lane.b32.xlu0 %v5943_v29, %s5779_s30  ;;  %v3635_v57 = vperm.slane %v3632_v49, 1 }
 0x3e3   : > { %v3554_v1 = vsel %vm485_vm2, %v3551_v45, %v3552_v23  ;;  %v3604_v44 = vrot.slane %v3603_v35, 4  ;;  %v3611_v31 = vrot.slane %v3610_v43, 4  ;;  %4164 = vrot.lane.b32.xlu1 %v5959_v34, %s5779_s30  ;;  %v3702_v45 = vmul.f32 %v3694_v15, %v8892_v24 }
 0x3e4   : > { %v3555_v56 = vsel %vm487_vm3, %v3553_v12, %v3554_v1  ;;  %4166 = vrot.lane.b32.xlu2 %v8893_v14, %s5779_s30  ;;  %v3575_v40 = vpop.permute.xlu0 %3574  ;;  %v3636_v12 = vperm.slane %v3632_v49, 2 }
 0x3e5   : > { %5426 = vst.msk [vmem:[%s6027_s21 + $0x67] ss:$8 sm:$0xf] %vm6020_vm4, %v3555_v56  ;;  %v3605_v9 = vadd.f32 %v3604_v44, %v3603_v35  ;;  %v3612_v48 = vadd.f32 %v3611_v31, %v3610_v43  ;;  %v3582_v62 = vsel %vm3576_vm12, %v8010_v63, %v3575_v40  ;;  %v3594_v0 = vsel %vm3576_vm12, %v3575_v40, %v3569_v2  ;;  %v3661_v30 = vpop.permute.xlu1 %3660 }
 0x3e6   : > { %v3601_v11 = vmul.f32 %v3582_v62, %v5985_v46  ;;  %v3602_v59 = vmul.f32 %v3594_v0, %v8892_v24  ;;  %v8095_v61 = vpop.permute.xlu2 %3764  ;;  %v3677_v1 = vsel %vm3676_vm13, %v3661_v30, %v8039_v10  ;;  %v3634_v40 = vperm.slane %v3632_v49, 0 }
 0x3e7   : > { %v3606_v8 = vrot.slane %v3605_v9, 2  ;;  %v3613_v5 = vrot.slane %v3612_v48, 2  ;;  %v3695_v0 = vmul.f32 %v3677_v1, %v8942_v21  ;;  %vm4778_vm12 = vcmask 105472  }
 0x3e8   : > { %v3617_v58 = vadd.f32 %v3601_v11, %v3597_v18  ;;  %v3624_v50 = vadd.f32 %v3602_v59, %v3598_v47 }
 0x3e9   : > { %v3614_v20 = vadd.f32 %v3613_v5, %v3612_v48  ;;  %v3607_v42 = vadd.f32 %v3606_v8, %v3605_v9 }
 0x3ea   : > { %v3618_v63 = vrot.slane %v3617_v58, 4  ;;  %v3625_v2 = vrot.slane %v3624_v50, 4  ;;  %4168 = vrot.lane.b32.xlu0 %v5963_v36, %s5779_s30 }
 0x3eb   : > { %v3615_v22 = vrot.slane %v3614_v20, 1  ;;  %4170 = vrot.lane.b32.xlu1 %v5967_v38, %s5779_s30  ;;  %v3608_v13 = vrot.slane %v3607_v42, 1 }
 0x3ec   : > { %v3619_v39 = vadd.f32 %v3618_v63, %v3617_v58  ;;  %v3626_v37 = vadd.f32 %v3625_v2, %v3624_v50  ;;  %4172 = vrot.lane.b32.xlu2 %v5993_v54, %s5779_s30  ;;  %v3665_v19 = vpop.permute.xlu0 %3664 }
 0x3ed   : > { %v3616_v3 = vadd.f32 %v3615_v22, %v3614_v20  ;;  %v3667_v7 = vpop.permute.xlu1 %3666  ;;  %v3609_v9 = vadd.f32 %v3608_v13, %v3607_v42  ;;  %v3678_v11 = vsel %vm3676_vm13, %v8039_v10, %v3665_v19 }
 0x3ee   : > { %v3620_v41 = vrot.slane %v3619_v39, 2  ;;  %v3627_v60 = vrot.slane %v3626_v37, 2  ;;  %v8106_v6 = vpop.permute.xlu2 %3770  ;;  %v3693_v4 = vsel %vm3676_vm13, %v3667_v7, %v3661_v30  ;;  %v3679_v59 = vsel %vm3676_vm13, %v3665_v19, %v3667_v7 }
 0x3ef   : > { %v3698_v43 = vmul.f32 %v3693_v4, %v8926_v53  ;;  %v3643_v17 = vmul.f32 %v3635_v57, %v3616_v3  ;;  %v3642_v2 = vmul.f32 %v3634_v40, %v3609_v9  ;;  %v3697_v57 = vmul.f32 %v3679_v59, %v8944_v26 }
 0x3f0   : > { %v3621_v23 = vadd.f32 %v3620_v41, %v3619_v39  ;;  %v3628_v35 = vadd.f32 %v3627_v60, %v3626_v37 }
 0x3f1   : > { %v3724_v56 = vadd.f32 %v3702_v45, %v3698_v43  ;;  %v3650_v18 = vrot.slane %v3643_v17, 7 }
 0x3f2   : > { %v3622_v44 = vrot.slane %v3621_v23, 1  ;;  %v3629_v31 = vrot.slane %v3628_v35, 1  ;;  %4174 = vrot.lane.b32.xlu0 %v5995_v55, %s5779_s30  ;;  %s5273_s30 = sshll.u32 %s6027_s21, 4  ;;  %s5274_s30 = int_to_ptr.vmem [resolvable:$true] %s5273_s30 }
 0x3f3   : > { %4260 = vrot.lane.b32.xlu1 %v5941_v28, %s5780_s10  ;;  %v3725_v47 = vrot.slane %v3724_v56, 4  ;;  %v3653_v7 = vsel %vm483_vm1, %v3642_v2, %v3650_v18 }
 0x3f4   : > { %v3623_v48 = vadd.f32 %v3622_v44, %v3621_v23  ;;  %v3630_v62 = vadd.f32 %v3629_v31, %v3628_v35  ;;  %4262 = vrot.lane.b32.xlu2 %v5943_v29, %s5780_s10  ;;  %v3671_v30 = vpop.permute.xlu0 %3670  ;;  %v3732_v31 = vld [vmem:[#allocation7 + $0x81] ss:$8 sm:$0xf] }
 0x3f5   : > { %v3680_v8 = vsel %vm3676_vm13, %v8051_v51, %v3671_v30  ;;  %v3673_v5 = vpop.permute.xlu1 %3672  ;;  %v3726_v20 = vadd.f32 %v3725_v47, %v3724_v56  ;;  %v3696_v51 = vmul.f32 %v3678_v11, %v8943_v27 }
 0x3f6   : > { %v3644_v58 = vmul.f32 %v3636_v12, %v3623_v48  ;;  %v3645_v50 = vmul.f32 %v3637_v16, %v3630_v62  ;;  %v3699_v49 = vmul.f32 %v3680_v8, %v5955_v32  ;;  %v8126_v63 = vpop.permute.xlu2 %3860  ;;  %v3681_v42 = vsel %vm3676_vm13, %v3671_v30, %v3673_v5 }
 0x3f7   : > { %v3682_v22 = vsel %vm3676_vm13, %v3673_v5, %v8067_v25  ;;  %v3727_v37 = vrot.slane %v3726_v20, 2  ;;  %v3700_v3 = vmul.f32 %v3681_v42, %v5957_v33  ;;  %v3735_v5 = vperm.slane %v3732_v31, 1 }
 0x3f8   : > { %v3651_v10 = vrot.slane %v3644_v58, 6  ;;  %v3652_v39 = vrot.slane %v3645_v50, 5  ;;  %v3703_v19 = vadd.f32 %v3699_v49, %v3695_v0  ;;  %v3701_v15 = vmul.f32 %v3682_v22, %v5985_v46 }
 0x3f9   : > { %v3728_v60 = vadd.f32 %v3727_v37, %v3726_v20  ;;  %v3710_v4 = vadd.f32 %v3700_v3, %v3696_v51  ;;  %v3737_v0 = vperm.slane %v3732_v31, 3  ;;  %v3736_v58 = vperm.slane %v3732_v31, 2 }
 0x3fa   : > { %v3654_v41 = vsel %vm485_vm2, %v3651_v10, %v3652_v39  ;;  %v3704_v13 = vrot.slane %v3703_v19, 4  ;;  %4264 = vrot.lane.b32.xlu0 %v5959_v34, %s5780_s10  ;;  %v3717_v45 = vadd.f32 %v3701_v15, %v3697_v57  ;;  %v3734_v42 = vperm.slane %v3732_v31, 0 }
 0x3fb   : > { %v3655_v25 = vsel %vm487_vm3, %v3653_v7, %v3654_v41  ;;  %4266 = vrot.lane.b32.xlu1 %v8893_v14, %s5780_s10  ;;  %v3711_v43 = vrot.slane %v3710_v4, 4  ;;  %v3729_v1 = vrot.slane %v3728_v60, 1  ;;  %vm4876_vm13 = vcmask 1022976  }
 0x3fc   : > { %5427 = vst.msk [vmem:[%s6027_s21 + $0x80] ss:$8 sm:$0xf] %vm6020_vm4, %v3655_v25  ;;  %v3705_v23 = vadd.f32 %v3704_v13, %v3703_v19  ;;  %4268 = vrot.lane.b32.xlu2 %v5963_v36, %s5780_s10  ;;  %v3761_v35 = vpop.permute.xlu0 %3760  ;;  %v3718_v17 = vrot.slane %v3717_v45, 4 }
 0x3fd   : > { %v3763_v12 = vpop.permute.xlu1 %3762  ;;  %v3712_v56 = vadd.f32 %v3711_v43, %v3710_v4  ;;  %v3730_v47 = vadd.f32 %v3729_v1, %v3728_v60 }
 0x3fe   : > { %v3706_v16 = vrot.slane %v3705_v23, 2  ;;  %v8147_v44 = vpop.permute.xlu2 %3868  ;;  %v3719_v40 = vadd.f32 %v3718_v17, %v3717_v45  ;;  %v3777_v59 = vsel %vm3776_vm14, %v3761_v35, %v3763_v12  ;;  %v3778_v7 = vsel %vm3776_vm14, %v3763_v12, %v8095_v61 }
 0x3ff   : > { %v3713_v48 = vrot.slane %v3712_v56, 2  ;;  %v3745_v2 = vmul.f32 %v3737_v0, %v3730_v47  ;;  %v3795_v22 = vmul.f32 %v3777_v59, %v8942_v21 }
 0x400   : > { %v3707_v9 = vadd.f32 %v3706_v16, %v3705_v23  ;;  %v3720_v62 = vrot.slane %v3719_v40, 2  ;;  %v3796_v23 = vmul.f32 %v3778_v7, %v8943_v27  ;;  %v3832_v7 = vld [vmem:[#allocation7 + $0x82] ss:$8 sm:$0xf] }
 0x401   : > { %v3714_v18 = vadd.f32 %v3713_v48, %v3712_v56  ;;  %v3752_v60 = vrot.slane %v3745_v2, 5 }
 0x402   : > { %4270 = vrot.lane.b32.xlu0 %v5967_v38, %s5780_s10  ;;  %v3708_v30 = vrot.slane %v3707_v9, 1  ;;  %v3721_v11 = vadd.f32 %v3720_v62, %v3719_v40 }
 0x403   : > { %4272 = vrot.lane.b32.xlu1 %v5993_v54, %s5780_s10  ;;  %v3715_v50 = vrot.slane %v3714_v18, 1 }
 0x404   : > { %4274 = vrot.lane.b32.xlu2 %v5995_v55, %s5780_s10  ;;  %v3767_v8 = vpop.permute.xlu0 %3766  ;;  %v3722_v20 = vrot.slane %v3721_v11, 1  ;;  %v3709_v37 = vadd.f32 %v3708_v30, %v3707_v9  ;;  %s5275_s10 = sshll.u32 %s5272_s29, 4  ;;  %s5276_s10 = int_to_ptr.hbm [resolvable:$true] %s5275_s10 }
 0x405   : > { %v3769_v49 = vpop.permute.xlu1 %3768  ;;  %v3716_v19 = vadd.f32 %v3715_v50, %v3714_v18  ;;  %v3779_v43 = vsel %vm3776_vm14, %v8095_v61, %v3767_v8  ;;  %v3793_v17 = vsel %vm3776_vm14, %v3767_v8, %v3761_v35 }
 0x406   : > { %v3780_v10 = vsel %vm3776_vm14, %v3769_v49, %v8106_v6  ;;  %v8159_v39 = vpop.permute.xlu2 %3874  ;;  %v3723_v51 = vadd.f32 %v3722_v20, %v3721_v11  ;;  %v3742_v13 = vmul.f32 %v3734_v42, %v3709_v37  ;;  %v3797_v0 = vmul.f32 %v3779_v43, %v8944_v26 }
 0x407   : > { %v3799_v57 = vmul.f32 %v3780_v10, %v5955_v32  ;;  %v3743_v3 = vmul.f32 %v3735_v5, %v3716_v19  ;;  %v3798_v47 = vmul.f32 %v3793_v17, %v8926_v53 }
 0x408   : > { %v3744_v15 = vmul.f32 %v3736_v58, %v3723_v51 }
 0x409   : > { %v3803_v41 = vadd.f32 %v3799_v57, %v3795_v22  ;;  %v3750_v25 = vrot.slane %v3743_v3, 7 }
 0x40a   : > { %4360 = vrot.lane.b32.xlu0 %v5941_v28, %s5781_s22  ;;  %v3751_v4 = vrot.slane %v3744_v15, 6 }
 0x40b   : > { %v3804_v45 = vrot.slane %v3803_v41, 4  ;;  %4362 = vrot.lane.b32.xlu1 %v5943_v29, %s5781_s22  ;;  %v3753_v1 = vsel %vm483_vm1, %v3742_v13, %v3750_v25  ;;  %v3835_v13 = vperm.slane %v3832_v7, 1 }
 0x40c   : > { %4364 = vrot.lane.b32.xlu2 %v5959_v34, %s5781_s22  ;;  %v3773_v12 = vpop.permute.xlu0 %3772  ;;  %v3754_v16 = vsel %vm485_vm2, %v3751_v4, %v3752_v60  ;;  %v3836_v4 = vperm.slane %v3832_v7, 2 }
 0x40d   : > { %v3805_v31 = vadd.f32 %v3804_v45, %v3803_v41  ;;  %v3781_v56 = vsel %vm3776_vm14, %v8106_v6, %v3773_v12  ;;  %v3775_v40 = vpop.permute.xlu1 %3774  ;;  %v3755_v9 = vsel %vm487_vm3, %v3753_v1, %v3754_v16  ;;  %v3837_v45 = vperm.slane %v3832_v7, 3 }
 0x40e   : > { %v3800_v48 = vmul.f32 %v3781_v56, %v5957_v33  ;;  %v3782_v61 = vsel %vm3776_vm14, %v3773_v12, %v3775_v40  ;;  %v3794_v35 = vsel %vm3776_vm14, %v3775_v40, %v3769_v49  ;;  %v8182_v62 = vpop.permute.xlu2 %3962  ;;  %5428 = vst.msk [vmem:[%s6027_s21 + $0x81] ss:$8 sm:$0xf] %vm6020_vm4, %v3755_v9  ;;  %v3834_v12 = vperm.slane %v3832_v7, 0 }
 0x40f   : > { %v3801_v6 = vmul.f32 %v3782_v61, %v5985_v46  ;;  %v3802_v30 = vmul.f32 %v3794_v35, %v8892_v24  ;;  %v3806_v18 = vrot.slane %v3805_v31, 2  ;;  %vm4976_vm14 = vcmask 891904  }
 0x410   : > { %v3810_v11 = vadd.f32 %v3800_v48, %v3796_v23 }
 0x411   : > { %v3817_v59 = vadd.f32 %v3801_v6, %v3797_v0  ;;  %v3824_v8 = vadd.f32 %v3802_v30, %v3798_v47  ;;  %v3807_v20 = vadd.f32 %v3806_v18, %v3805_v31 }
 0x412   : > { %v3811_v5 = vrot.slane %v3810_v11, 4  ;;  %4366 = vrot.lane.b32.xlu0 %v8893_v14, %s5781_s22 }
 0x413   : > { %v3818_v58 = vrot.slane %v3817_v59, 4  ;;  %v3825_v50 = vrot.slane %v3824_v8, 4  ;;  %4368 = vrot.lane.b32.xlu1 %v5963_v36, %s5781_s22  ;;  %v3808_v3 = vrot.slane %v3807_v20, 1 }
 0x414   : > { %v3812_v49 = vadd.f32 %v3811_v5, %v3810_v11  ;;  %4370 = vrot.lane.b32.xlu2 %v5967_v38, %s5781_s22  ;;  %v8197_v2 = vpop.permute.xlu0 %3862 }
 0x415   : > { %v3819_v42 = vadd.f32 %v3818_v58, %v3817_v59  ;;  %v3826_v22 = vadd.f32 %v3825_v50, %v3824_v8  ;;  %v3867_v10 = vpop.permute.xlu1 %3866  ;;  %v3809_v1 = vadd.f32 %v3808_v3, %v3807_v20 }
 0x416   : > { %v3813_v37 = vrot.slane %v3812_v49, 2  ;;  %v8199_v19 = vpop.permute.xlu2 %3970  ;;  %v3879_v17 = vsel %vm3878_vm15, %v3867_v10, %v8147_v44  ;;  %v3893_v9 = vsel %vm3878_vm15, %v8126_v63, %v3867_v10 }
 0x417   : > { %v3820_v51 = vrot.slane %v3819_v42, 2  ;;  %v3827_v57 = vrot.slane %v3826_v22, 2  ;;  %v3896_v35 = vmul.f32 %v3879_v17, %v8943_v27  ;;  %v3842_v59 = vmul.f32 %v3834_v12, %v3809_v1 }
 0x418   : > { %v3814_v15 = vadd.f32 %v3813_v37, %v3812_v49  ;;  %v3895_v5 = vmul.f32 %v3893_v9, %v8942_v21 }
 0x419   : > { %v3821_v41 = vadd.f32 %v3820_v51, %v3819_v42  ;;  %v3828_v60 = vadd.f32 %v3827_v57, %v3826_v22 }
 0x41a   : > { %v3815_v25 = vrot.slane %v3814_v15, 1  ;;  %4372 = vrot.lane.b32.xlu0 %v5993_v54, %s5781_s22 }
 0x41b   : > { %v3822_v23 = vrot.slane %v3821_v41, 1  ;;  %v3829_v43 = vrot.slane %v3828_v60, 1  ;;  %4374 = vrot.lane.b32.xlu1 %v5995_v55, %s5781_s22  ;;  %s5677_s22 = sshra.s32 %s5276_s10, 4  ;;  %s5678_s22 = int_to_ptr.hbm [resolvable:$true] %s5677_s22 }
 0x41c   : > { %v3816_v16 = vadd.f32 %v3815_v25, %v3814_v15  ;;  %4460 = vrot.lane.b32.xlu2 %v5941_v28, %s5782_s24  ;;  %v3871_v31 = vpop.permute.xlu0 %3870  ;;  %p5684_p11 = scmp.lt.s32.totalorder %s5678_s22, %s8825_s3 }
 0x41d   : > { %v3823_v56 = vadd.f32 %v3822_v23, %v3821_v41  ;;  %v3830_v40 = vadd.f32 %v3829_v43, %v3828_v60  ;;  %v3873_v48 = vpop.permute.xlu1 %3872  ;;  %v3880_v49 = vsel %vm3878_vm15, %v8147_v44, %v3871_v31  ;;  %v3881_v10 = vsel %vm3878_vm15, %v3871_v31, %v8126_v63 }
 0x41e   : > { %v3843_v61 = vmul.f32 %v3835_v13, %v3816_v16  ;;  %v3882_v0 = vsel %vm3878_vm15, %v3873_v48, %v8159_v39  ;;  %v8214_v47 = vpop.permute.xlu2 %3976  ;;  %v3894_v18 = vsel %vm3878_vm15, %v8197_v2, %v3873_v48  ;;  %v3897_v44 = vmul.f32 %v3880_v49, %v8944_v26  ;;  %v3932_v48 = vld [vmem:[#allocation7 + $0x83] ss:$8 sm:$0xf] }
 0x41f   : > { %v3844_v6 = vmul.f32 %v3836_v4, %v3823_v56  ;;  %v3845_v30 = vmul.f32 %v3837_v45, %v3830_v40  ;;  %v3900_v11 = vmul.f32 %v3882_v0, %v5957_v33  ;;  %v3899_v58 = vmul.f32 %v3894_v18, %v5955_v32 }
 0x420   : > { %v3850_v8 = vrot.slane %v3843_v61, 7  ;;  %v3984_v7 = vsel %vm3978_vm5, %v8214_v47, %v8182_v62  ;;  %v3898_v41 = vmul.f32 %v3881_v10, %v8926_v53 }
 0x421   : > { %v3851_v50 = vrot.slane %v3844_v6, 6  ;;  %v3852_v20 = vrot.slane %v3845_v30, 5  ;;  %v3910_v42 = vadd.f32 %v3900_v11, %v3896_v35  ;;  %v3903_v37 = vadd.f32 %v3899_v58, %v3895_v5 }
 0x422   : > { %v3853_v22 = vsel %vm483_vm1, %v3842_v59, %v3850_v8  ;;  %4462 = vrot.lane.b32.xlu0 %v5943_v29, %s5782_s24  ;;  %v4002_v16 = vmul.f32 %v3984_v7, %v8892_v24  ;;  %v3935_v59 = vperm.slane %v3932_v48, 1  ;;  %v3937_v7 = vperm.slane %v3932_v48, 3 }
 0x423   : > { %v3854_v51 = vsel %vm485_vm2, %v3851_v50, %v3852_v20  ;;  %v3911_v57 = vrot.slane %v3910_v42, 4  ;;  %4464 = vrot.lane.b32.xlu1 %v5959_v34, %s5782_s24  ;;  %v3904_v15 = vrot.slane %v3903_v37, 4 }
 0x424   : > { %v3855_v3 = vsel %vm487_vm3, %v3853_v22, %v3854_v51  ;;  %4466 = vrot.lane.b32.xlu2 %v8893_v14, %s5782_s24  ;;  %v3877_v63 = vpop.permute.xlu0 %3876  ;;  %v3934_v51 = vperm.slane %v3932_v48, 0 }
 0x425   : > { %5429 = vst.msk [vmem:[%s6027_s21 + $0x82] ss:$8 sm:$0xf] %vm6020_vm4, %v3855_v3  ;;  %v3912_v60 = vadd.f32 %v3911_v57, %v3910_v42  ;;  %v3883_v13 = vsel %vm3878_vm15, %v8159_v39, %v3877_v63  ;;  %v3884_v25 = vsel %vm3878_vm15, %v3877_v63, %v8197_v2  ;;  %v3961_v4 = vpop.permute.xlu1 %3960  ;;  %v3905_v45 = vadd.f32 %v3904_v15, %v3903_v37 }
 0x426   : > { %v3901_v23 = vmul.f32 %v3883_v13, %v5985_v46  ;;  %v3902_v43 = vmul.f32 %v3884_v25, %v8892_v24  ;;  %v3981_v17 = vsel %vm3978_vm5, %v8199_v19, %v3961_v4  ;;  %v8250_v12 = vpop.permute.xlu2 %4066  ;;  %v3936_v15 = vperm.slane %v3932_v48, 2 }
 0x427   : > { %v3913_v1 = vrot.slane %v3912_v60, 2  ;;  %v3998_v31 = vmul.f32 %v3981_v17, %v8926_v53  ;;  %v3906_v39 = vrot.slane %v3905_v45, 2  ;;  %vm5076_vm15 = vcmask 760832  }
 0x428   : > { %v3917_v56 = vadd.f32 %v3901_v23, %v3897_v44  ;;  %v3924_v40 = vadd.f32 %v3902_v43, %v3898_v41 }
 0x429   : > { %v3914_v2 = vadd.f32 %v3913_v1, %v3912_v60  ;;  %v4024_v9 = vadd.f32 %v4002_v16, %v3998_v31  ;;  %v3907_v61 = vadd.f32 %v3906_v39, %v3905_v45 }
 0x42a   : > { %v3918_v35 = vrot.slane %v3917_v56, 4  ;;  %v3925_v0 = vrot.slane %v3924_v40, 4  ;;  %4468 = vrot.lane.b32.xlu0 %v5963_v36, %s5782_s24 }
 0x42b   : > { %v3915_v6 = vrot.slane %v3914_v2, 1  ;;  %4470 = vrot.lane.b32.xlu1 %v5967_v38, %s5782_s24  ;;  %v3908_v8 = vrot.slane %v3907_v61, 1  ;;  %v4025_v58 = vrot.slane %v4024_v9, 4 }
 0x42c   : > { %v3919_v30 = vadd.f32 %v3918_v35, %v3917_v56  ;;  %v3926_v18 = vadd.f32 %v3925_v0, %v3924_v40  ;;  %4472 = vrot.lane.b32.xlu2 %v5993_v54, %s5782_s24  ;;  %v3967_v11 = vpop.permute.xlu0 %3966 }
 0x42d   : > { %v3916_v5 = vadd.f32 %v3915_v6, %v3914_v2  ;;  %v3969_v50 = vpop.permute.xlu1 %3968  ;;  %v3993_v37 = vsel %vm3978_vm5, %v3961_v4, %v3967_v11  ;;  %v3909_v57 = vadd.f32 %v3908_v8, %v3907_v61  ;;  %v4026_v44 = vadd.f32 %v4025_v58, %v4024_v9 }
 0x42e   : > { %v3920_v20 = vrot.slane %v3919_v30, 2  ;;  %v3927_v49 = vrot.slane %v3926_v18, 2  ;;  %v8260_v42 = vpop.permute.xlu2 %4072  ;;  %v3995_v60 = vmul.f32 %v3993_v37, %v8942_v21  ;;  %v3979_v4 = vsel %vm3978_vm5, %v3967_v11, %v3969_v50 }
 0x42f   : > { %v3943_v3 = vmul.f32 %v3935_v59, %v3916_v5  ;;  %v3980_v45 = vsel %vm3978_vm5, %v3969_v50, %v8199_v19  ;;  %v3942_v43 = vmul.f32 %v3934_v51, %v3909_v57  ;;  %v4027_v1 = vrot.slane %v4026_v44, 2 }
 0x430   : > { %v3921_v22 = vadd.f32 %v3920_v20, %v3919_v30  ;;  %v3928_v10 = vadd.f32 %v3927_v49, %v3926_v18  ;;  %v3996_v19 = vmul.f32 %v3979_v4, %v8943_v27  ;;  %v3997_v48 = vmul.f32 %v3980_v45, %v8944_v26 }
 0x431   : > { %v3950_v17 = vrot.slane %v3943_v3, 7  ;;  %v4028_v18 = vadd.f32 %v4027_v1, %v4026_v44 }
 0x432   : > { %v3922_v63 = vrot.slane %v3921_v22, 1  ;;  %v3929_v41 = vrot.slane %v3928_v10, 1  ;;  %4474 = vrot.lane.b32.xlu0 %v5995_v55, %s5782_s24  ;;  %s5679_s24 = scalar_lea.hbm %s5678_s22, 224 }
 0x433   : > { %4560 = vrot.lane.b32.xlu1 %v8893_v14, %s5783_s25  ;;  %v3953_v59 = vsel %vm483_vm1, %v3942_v43, %v3950_v17  ;;  %v4029_v57 = vrot.slane %v4028_v18, 1  ;;  %p5680_p1 = scmp.ne.s32.totalorder %s5678_s22, %s5679_s24 }
 0x434   : > { %v3923_v13 = vadd.f32 %v3922_v63, %v3921_v22  ;;  %v3930_v25 = vadd.f32 %v3929_v41, %v3928_v10  ;;  %4562 = vrot.lane.b32.xlu2 %v5995_v55, %s5783_s25  ;;  %v3973_v23 = vpop.permute.xlu0 %3972  ;;  %v4032_v63 = vld [vmem:[#allocation7 + $0x84] ss:$8 sm:$0xf] }
 0x435   : > { %v3994_v16 = vsel %vm3978_vm5, %v8182_v62, %v3973_v23  ;;  %v3975_v31 = vpop.permute.xlu1 %3974  ;;  %v4030_v43 = vadd.f32 %v4029_v57, %v4028_v18  ;;  %p5681_p4 = pnand %p5680_p1, %p5884_p5 }
 0x436   : > { %v3944_v39 = vmul.f32 %v3936_v15, %v3923_v13  ;;  %v3945_v56 = vmul.f32 %v3937_v7, %v3930_v25  ;;  %v3999_v40 = vmul.f32 %v3994_v16, %v5955_v32  ;;  %v3982_v2 = vsel %vm3978_vm5, %v3973_v23, %v3975_v31  ;;  %v8277_v9 = vpop.permute.xlu2 %4160 }
 0x437   : > { %v3983_v61 = vsel %vm3978_vm5, %v3975_v31, %v8214_v47  ;;  %v4000_v35 = vmul.f32 %v3982_v2, %v5957_v33  ;;  %v4037_v23 = vperm.slane %v4032_v63, 3  ;;  %v4035_v16 = vperm.slane %v4032_v63, 1  ;;  %p5682_p8 = pneg %p5681_p4 }
 0x438   : > { %v3951_v62 = vrot.slane %v3944_v39, 6  ;;  %v3952_v0 = vrot.slane %v3945_v56, 5  ;;  %v4003_v6 = vadd.f32 %v3999_v40, %v3995_v60  ;;  %v4001_v30 = vmul.f32 %v3983_v61, %v5985_v46 }
 0x439   : > { %v4010_v11 = vadd.f32 %v4000_v35, %v3996_v19  ;;  %v4036_v39 = vperm.slane %v4032_v63, 2  ;;  %v4034_v19 = vperm.slane %v4032_v63, 0  ;;  %vm5176_vm5 = vcmask 629760  }
 0x43a   : > { %v3954_v8 = vsel %vm485_vm2, %v3951_v62, %v3952_v0  ;;  %v4004_v5 = vrot.slane %v4003_v6, 4  ;;  %v4017_v58 = vadd.f32 %v4001_v30, %v3997_v48  ;;  %4566 = vrot.lane.b32.xlu0 %v5941_v28, %s5783_s25  ;;  %v4045_v62 = vmul.f32 %v4037_v23, %v4030_v43 }
 0x43b   : > { %v3955_v47 = vsel %vm487_vm3, %v3953_v59, %v3954_v8  ;;  %v4011_v50 = vrot.slane %v4010_v11, 4  ;;  %4568 = vrot.lane.b32.xlu1 %v5943_v29, %s5783_s25 }
 0x43c   : > { %5430 = vst.msk [vmem:[%s6027_s21 + $0x83] ss:$8 sm:$0xf] %vm6020_vm4, %v3955_v47  ;;  %v4005_v20 = vadd.f32 %v4004_v5, %v4003_v6  ;;  %v4018_v49 = vrot.slane %v4017_v58, 4  ;;  %4570 = vrot.lane.b32.xlu2 %v5959_v34, %s5783_s25  ;;  %v4061_v22 = vpop.permute.xlu0 %4060  ;;  %v4052_v5 = vrot.slane %v4045_v62, 5 }
 0x43d   : > { %v4012_v10 = vadd.f32 %v4011_v50, %v4010_v11  ;;  %v4093_v37 = vsel %vm4078_vm0, %v4061_v22, %v8250_v12  ;;  %v4063_v51 = vpop.permute.xlu1 %4062 }
 0x43e   : > { %v4006_v3 = vrot.slane %v4005_v20, 2  ;;  %v4019_v44 = vadd.f32 %v4018_v49, %v4017_v58  ;;  %v4094_v15 = vsel %vm4078_vm0, %v4063_v51, %v8260_v42  ;;  %v8301_v7 = vpop.permute.xlu2 %4166  ;;  %v4095_v25 = vmul.f32 %v4093_v37, %v8942_v21 }
 0x43f   : > { %v4013_v41 = vrot.slane %v4012_v10, 2  ;;  %v4099_v4 = vmul.f32 %v4094_v15, %v5955_v32 }
 0x440   : > { %v4007_v60 = vadd.f32 %v4006_v3, %v4005_v20  ;;  %v4020_v13 = vrot.slane %v4019_v44, 2 }
 0x441   : > { %v4014_v45 = vadd.f32 %v4013_v41, %v4012_v10  ;;  %v4103_v40 = vadd.f32 %v4099_v4, %v4095_v25 }
 0x442   : > { %v4008_v17 = vrot.slane %v4007_v60, 1  ;;  %v4021_v1 = vadd.f32 %v4020_v13, %v4019_v44  ;;  %4572 = vrot.lane.b32.xlu0 %v5963_v36, %s5783_s25 }
 0x443   : > { %v4015_v31 = vrot.slane %v4014_v45, 1  ;;  %4574 = vrot.lane.b32.xlu1 %v5967_v38, %s5783_s25  ;;  %v4104_v11 = vrot.slane %v4103_v40, 4 }
 0x444   : > { %v4022_v56 = vrot.slane %v4021_v1, 1  ;;  %4576 = vrot.lane.b32.xlu2 %v5993_v54, %s5783_s25  ;;  %v4069_v2 = vpop.permute.xlu0 %4068  ;;  %v4009_v48 = vadd.f32 %v4008_v17, %v4007_v60 }
 0x445   : > { %v4016_v61 = vadd.f32 %v4015_v31, %v4014_v45  ;;  %v4071_v35 = vpop.permute.xlu1 %4070  ;;  %v4079_v50 = vsel %vm4078_vm0, %v8250_v12, %v4069_v2  ;;  %v4105_v49 = vadd.f32 %v4104_v11, %v4103_v40 }
 0x446   : > { %v4023_v0 = vadd.f32 %v4022_v56, %v4021_v1  ;;  %v8311_v6 = vpop.permute.xlu2 %4172  ;;  %v4042_v59 = vmul.f32 %v4034_v19, %v4009_v48  ;;  %v4080_v10 = vsel %vm4078_vm0, %v4069_v2, %v4071_v35  ;;  %v4081_v37 = vsel %vm4078_vm0, %v4071_v35, %v4061_v22 }
 0x447   : > { %v4043_v30 = vmul.f32 %v4035_v16, %v4016_v61  ;;  %v4096_v15 = vmul.f32 %v4079_v50, %v8943_v27  ;;  %v4097_v13 = vmul.f32 %v4080_v10, %v8944_v26  ;;  %v4098_v25 = vmul.f32 %v4081_v37, %v8926_v53 }
 0x448   : > { %v4044_v18 = vmul.f32 %v4036_v39, %v4023_v0  ;;  %v4106_v45 = vrot.slane %v4105_v49, 2 }
 0x449   : > { %v4050_v8 = vrot.slane %v4043_v30, 7 }
 0x44a   : > { %v4051_v58 = vrot.slane %v4044_v18, 6  ;;  %4660 = vrot.lane.b32.xlu0 %v8893_v14, %s5784_s20  ;;  %v4107_v31 = vadd.f32 %v4106_v45, %v4105_v49  ;;  %v4132_v18 = vld [vmem:[#allocation7 + $0x85] ss:$8 sm:$0xf] }
 0x44b   : > { %v4053_v47 = vsel %vm483_vm1, %v4042_v59, %v4050_v8  ;;  %4662 = vrot.lane.b32.xlu1 %v5995_v55, %s5784_s20  ;;  %v4135_v8 = vperm.slane %v4132_v18, 1  ;;  %v4137_v50 = vperm.slane %v4132_v18, 3  ;;  %v4134_v37 = vperm.slane %v4132_v18, 0 }
 0x44c   : > { %v4054_v20 = vsel %vm485_vm2, %v4051_v58, %v4052_v5  ;;  %4666 = vrot.lane.b32.xlu2 %v5941_v28, %s5784_s20  ;;  %v4075_v57 = vpop.permute.xlu0 %4074  ;;  %v4108_v0 = vrot.slane %v4107_v31, 1  ;;  %v4136_v58 = vperm.slane %v4132_v18, 2 }
 0x44d   : > { %v4055_v3 = vsel %vm487_vm3, %v4053_v47, %v4054_v20  ;;  %v4082_v44 = vsel %vm4078_vm0, %v8260_v42, %v4075_v57  ;;  %v4077_v12 = vpop.permute.xlu1 %4076 }
 0x44e   : > { %5431 = vst.msk [vmem:[%s6027_s21 + $0x84] ss:$8 sm:$0xf] %vm6020_vm4, %v4055_v3  ;;  %v4100_v63 = vmul.f32 %v4082_v44, %v5957_v33  ;;  %v4083_v41 = vsel %vm4078_vm0, %v4075_v57, %v4077_v12  ;;  %v4084_v22 = vsel %vm4078_vm0, %v4077_v12, %v4063_v51  ;;  %v8335_v60 = vpop.permute.xlu2 %4262  ;;  %v4109_v57 = vadd.f32 %v4108_v0, %v4107_v31 }
 0x44f   : > { %v4101_v42 = vmul.f32 %v4083_v41, %v5985_v46  ;;  %v4102_v4 = vmul.f32 %v4084_v22, %v8892_v24 }
 0x450   : > { %v4110_v23 = vadd.f32 %v4100_v63, %v4096_v15 }
 0x451   : > { %v4117_v43 = vadd.f32 %v4101_v42, %v4097_v13  ;;  %v4124_v17 = vadd.f32 %v4102_v4, %v4098_v25 }
 0x452   : > { %v4111_v1 = vrot.slane %v4110_v23, 4  ;;  %4668 = vrot.lane.b32.xlu0 %v5943_v29, %s5784_s20 }
 0x453   : > { %v4118_v16 = vrot.slane %v4117_v43, 4  ;;  %v4125_v51 = vrot.slane %v4124_v17, 4  ;;  %4670 = vrot.lane.b32.xlu1 %v5959_v34, %s5784_s20 }
 0x454   : > { %v4112_v39 = vadd.f32 %v4111_v1, %v4110_v23  ;;  %4672 = vrot.lane.b32.xlu2 %v5963_v36, %s5784_s20  ;;  %v4163_v56 = vpop.permute.xlu0 %4162  ;;  %v4142_v1 = vmul.f32 %v4134_v37, %v4109_v57 }
 0x455   : > { %v4119_v40 = vadd.f32 %v4118_v16, %v4117_v43  ;;  %v4126_v2 = vadd.f32 %v4125_v51, %v4124_v17  ;;  %v4165_v19 = vpop.permute.xlu1 %4164  ;;  %v4177_v47 = vsel %vm4176_vm6, %v8277_v9, %v4163_v56 }
 0x456   : > { %v4113_v48 = vrot.slane %v4112_v39, 2  ;;  %v8347_v61 = vpop.permute.xlu2 %4268  ;;  %v4178_v10 = vsel %vm4176_vm6, %v4163_v56, %v4165_v19  ;;  %v4195_v63 = vmul.f32 %v4177_v47, %v8942_v21 }
 0x457   : > { %v4120_v35 = vrot.slane %v4119_v40, 2  ;;  %v4127_v62 = vrot.slane %v4126_v2, 2  ;;  %v4196_v13 = vmul.f32 %v4178_v10, %v8943_v27 }
 0x458   : > { %v4114_v30 = vadd.f32 %v4113_v48, %v4112_v39 }
 0x459   : > { %v4121_v11 = vadd.f32 %v4120_v35, %v4119_v40  ;;  %v4128_v59 = vadd.f32 %v4127_v62, %v4126_v2  ;;  %v4193_v40 = vsel %vm4176_vm6, %v8301_v7, %v8277_v9  ;;  %v4179_v35 = vsel %vm4176_vm6, %v4165_v19, %v8301_v7 }
 0x45a   : > { %v4115_v5 = vrot.slane %v4114_v30, 1  ;;  %4674 = vrot.lane.b32.xlu0 %v5967_v38, %s5784_s20 }
 0x45b   : > { %v4122_v20 = vrot.slane %v4121_v11, 1  ;;  %v4129_v49 = vrot.slane %v4128_v59, 1  ;;  %4676 = vrot.lane.b32.xlu1 %v5993_v54, %s5784_s20 }
 0x45c   : > { %v4116_v3 = vadd.f32 %v4115_v5, %v4114_v30  ;;  %4760 = vrot.lane.b32.xlu2 %v8893_v14, %s5785_s27  ;;  %v4169_v44 = vpop.permute.xlu0 %4168  ;;  %v4197_v5 = vmul.f32 %v4179_v35, %v8944_v26 }
 0x45d   : > { %v4123_v12 = vadd.f32 %v4122_v20, %v4121_v11  ;;  %v4130_v15 = vadd.f32 %v4129_v49, %v4128_v59  ;;  %v4171_v41 = vpop.permute.xlu1 %4170 }
 0x45e   : > { %v4143_v22 = vmul.f32 %v4135_v8, %v4116_v3  ;;  %v4180_v25 = vsel %vm4176_vm6, %v4169_v44, %v4171_v41  ;;  %v4181_v42 = vsel %vm4176_vm6, %v4171_v41, %v8311_v6  ;;  %v8363_v4 = vpop.permute.xlu2 %4274  ;;  %v4198_v8 = vmul.f32 %v4193_v40, %v8926_v53  ;;  %v4232_v3 = vld [vmem:[#allocation7 + $0x86] ss:$8 sm:$0xf] }
 0x45f   : > { %v4144_v45 = vmul.f32 %v4136_v58, %v4123_v12  ;;  %v4145_v23 = vmul.f32 %v4137_v50, %v4130_v15  ;;  %v4199_v43 = vmul.f32 %v4180_v25, %v5955_v32  ;;  %v4200_v17 = vmul.f32 %v4181_v42, %v5957_v33 }
 0x460   : > { %v4150_v16 = vrot.slane %v4143_v22, 7  ;;  %v4294_v42 = vsel %vm4276_vm7, %v8363_v4, %v8347_v61  ;;  %v4237_v35 = vperm.slane %v4232_v3, 3 }
 0x461   : > { %v4151_v51 = vrot.slane %v4144_v45, 6  ;;  %v4152_v31 = vrot.slane %v4145_v23, 5  ;;  %v4203_v39 = vadd.f32 %v4199_v43, %v4195_v63  ;;  %v4210_v56 = vadd.f32 %v4200_v17, %v4196_v13 }
 0x462   : > { %v4153_v2 = vsel %vm483_vm1, %v4142_v1, %v4150_v16  ;;  %4762 = vrot.lane.b32.xlu0 %v5995_v55, %s5785_s27  ;;  %v4235_v13 = vperm.slane %v4232_v3, 1 }
 0x463   : > { %v4154_v48 = vsel %vm485_vm2, %v4151_v51, %v4152_v31  ;;  %v4204_v62 = vrot.slane %v4203_v39, 4  ;;  %v4211_v0 = vrot.slane %v4210_v56, 4  ;;  %4766 = vrot.lane.b32.xlu1 %v5941_v28, %s5785_s27  ;;  %v4302_v51 = vmul.f32 %v4294_v42, %v8892_v24 }
 0x464   : > { %v4155_v30 = vsel %vm487_vm3, %v4153_v2, %v4154_v48  ;;  %4768 = vrot.lane.b32.xlu2 %v5943_v29, %s5785_s27  ;;  %v4175_v9 = vpop.permute.xlu0 %4174  ;;  %v4236_v2 = vperm.slane %v4232_v3, 2 }
 0x465   : > { %5432 = vst.msk [vmem:[%s6027_s21 + $0x85] ss:$8 sm:$0xf] %vm6020_vm4, %v4155_v30  ;;  %v4205_v18 = vadd.f32 %v4204_v62, %v4203_v39  ;;  %v4212_v11 = vadd.f32 %v4211_v0, %v4210_v56  ;;  %v4182_v59 = vsel %vm4176_vm6, %v8311_v6, %v4175_v9  ;;  %v4194_v7 = vsel %vm4176_vm6, %v4175_v9, %v4169_v44  ;;  %v4261_v19 = vpop.permute.xlu1 %4260 }
 0x466   : > { %v4201_v58 = vmul.f32 %v4182_v59, %v5985_v46  ;;  %v4202_v47 = vmul.f32 %v4194_v7, %v8892_v24  ;;  %v8391_v50 = vpop.permute.xlu2 %4364  ;;  %v4277_v48 = vsel %vm4276_vm7, %v4261_v19, %v8335_v60  ;;  %v4234_v9 = vperm.slane %v4232_v3, 0 }
 0x467   : > { %v4206_v20 = vrot.slane %v4205_v18, 2  ;;  %v4213_v49 = vrot.slane %v4212_v11, 2  ;;  %v4295_v7 = vmul.f32 %v4277_v48, %v8942_v21 }
 0x468   : > { %v4217_v10 = vadd.f32 %v4201_v58, %v4197_v5  ;;  %v4224_v37 = vadd.f32 %v4202_v47, %v4198_v8 }
 0x469   : > { %v4214_v57 = vadd.f32 %v4213_v49, %v4212_v11  ;;  %v4207_v12 = vadd.f32 %v4206_v20, %v4205_v18 }
 0x46a   : > { %v4218_v6 = vrot.slane %v4217_v10, 4  ;;  %v4225_v44 = vrot.slane %v4224_v37, 4  ;;  %4770 = vrot.lane.b32.xlu0 %v5959_v34, %s5785_s27 }
 0x46b   : > { %v4215_v15 = vrot.slane %v4214_v57, 1  ;;  %4772 = vrot.lane.b32.xlu1 %v5963_v36, %s5785_s27  ;;  %v4208_v1 = vrot.slane %v4207_v12, 1 }
 0x46c   : > { %v4219_v63 = vadd.f32 %v4218_v6, %v4217_v10  ;;  %v4226_v41 = vadd.f32 %v4225_v44, %v4224_v37  ;;  %4774 = vrot.lane.b32.xlu2 %v5967_v38, %s5785_s27  ;;  %v4265_v22 = vpop.permute.xlu0 %4264 }
 0x46d   : > { %v4216_v25 = vadd.f32 %v4215_v15, %v4214_v57  ;;  %v4267_v45 = vpop.permute.xlu1 %4266  ;;  %v4209_v18 = vadd.f32 %v4208_v1, %v4207_v12  ;;  %v4278_v58 = vsel %vm4276_vm7, %v8335_v60, %v4265_v22 }
 0x46e   : > { %v4220_v23 = vrot.slane %v4219_v63, 2  ;;  %v4227_v43 = vrot.slane %v4226_v41, 2  ;;  %v8402_v17 = vpop.permute.xlu2 %4370  ;;  %v4293_v16 = vsel %vm4276_vm7, %v4267_v45, %v4261_v19  ;;  %v4279_v47 = vsel %vm4276_vm7, %v4265_v22, %v4267_v45 }
 0x46f   : > { %v4298_v56 = vmul.f32 %v4293_v16, %v8926_v53  ;;  %v4243_v40 = vmul.f32 %v4235_v13, %v4216_v25  ;;  %v4242_v44 = vmul.f32 %v4234_v9, %v4209_v18  ;;  %v4297_v13 = vmul.f32 %v4279_v47, %v8944_v26 }
 0x470   : > { %v4221_v31 = vadd.f32 %v4220_v23, %v4219_v63  ;;  %v4228_v39 = vadd.f32 %v4227_v43, %v4226_v41 }
 0x471   : > { %v4324_v30 = vadd.f32 %v4302_v51, %v4298_v56  ;;  %v4250_v5 = vrot.slane %v4243_v40, 7 }
 0x472   : > { %v4222_v62 = vrot.slane %v4221_v31, 1  ;;  %v4229_v0 = vrot.slane %v4228_v39, 1  ;;  %4776 = vrot.lane.b32.xlu0 %v5993_v54, %s5785_s27  ;;  %s5683_s27 = scalar_lea.hbm %s8825_s3, 448 }
 0x473   : > { %4860 = vrot.lane.b32.xlu1 %v5941_v28, %s5786_s5  ;;  %v4325_v8 = vrot.slane %v4324_v30, 4  ;;  %v4253_v45 = vsel %vm483_vm1, %v4242_v44, %v4250_v5  ;;  %p5685_p9 = scmp.lt.s32.totalorder %s5683_s27, %s5679_s24 }
 0x474   : > { %v4223_v11 = vadd.f32 %v4222_v62, %v4221_v31  ;;  %v4230_v59 = vadd.f32 %v4229_v0, %v4228_v39  ;;  %4862 = vrot.lane.b32.xlu2 %v5943_v29, %s5786_s5  ;;  %v4271_v19 = vpop.permute.xlu0 %4270  ;;  %v4332_v0 = vld [vmem:[#allocation7 + $0x87] ss:$8 sm:$0xf] }
 0x475   : > { %v4280_v20 = vsel %vm4276_vm7, %v8347_v61, %v4271_v19  ;;  %v4273_v49 = vpop.permute.xlu1 %4272  ;;  %v4326_v57 = vadd.f32 %v4325_v8, %v4324_v30  ;;  %v4296_v61 = vmul.f32 %v4278_v58, %v8943_v27  ;;  %p5686_p2 = por %p5685_p9, %p5684_p11 }
 0x476   : > { %v4244_v10 = vmul.f32 %v4236_v2, %v4223_v11  ;;  %v4245_v37 = vmul.f32 %v4237_v35, %v4230_v59  ;;  %v4299_v3 = vmul.f32 %v4280_v20, %v5955_v32  ;;  %v8422_v6 = vpop.permute.xlu2 %4460  ;;  %v4281_v12 = vsel %vm4276_vm7, %v4271_v19, %v4273_v49 }
 0x477   : > { %v4282_v15 = vsel %vm4276_vm7, %v4273_v49, %v8363_v4  ;;  %v4327_v41 = vrot.slane %v4326_v57, 2  ;;  %v4300_v25 = vmul.f32 %v4281_v12, %v5957_v33  ;;  %v4335_v49 = vperm.slane %v4332_v0, 1  ;;  %p5687_p10 = pnand %p5686_p2, %p5682_p8 }
 0x478   : > { %v4251_v60 = vrot.slane %v4244_v10, 6  ;;  %v4252_v63 = vrot.slane %v4245_v37, 5  ;;  %v4303_v22 = vadd.f32 %v4299_v3, %v4295_v7  ;;  %v4301_v42 = vmul.f32 %v4282_v15, %v5985_v46 }
 0x479   : > { %v4328_v43 = vadd.f32 %v4327_v41, %v4326_v57  ;;  %v4310_v16 = vadd.f32 %v4300_v25, %v4296_v61  ;;  %v4337_v7 = vperm.slane %v4332_v0, 3  ;;  %v4336_v10 = vperm.slane %v4332_v0, 2 }
 0x47a   : > { %v4254_v23 = vsel %vm485_vm2, %v4251_v60, %v4252_v63  ;;  %v4304_v1 = vrot.slane %v4303_v22, 4  ;;  %4864 = vrot.lane.b32.xlu0 %v5959_v34, %s5786_s5  ;;  %v4317_v51 = vadd.f32 %v4301_v42, %v4297_v13  ;;  %v4334_v12 = vperm.slane %v4332_v0, 0 }
 0x47b   : > { %v4255_v4 = vsel %vm487_vm3, %v4253_v45, %v4254_v23  ;;  %4866 = vrot.lane.b32.xlu1 %v8893_v14, %s5786_s5  ;;  %v4311_v56 = vrot.slane %v4310_v16, 4  ;;  %v4329_v48 = vrot.slane %v4328_v43, 1 }
 0x47c   : > { %5433 = vst.msk [vmem:[%s6027_s21 + $0x86] ss:$8 sm:$0xf] %vm6020_vm4, %v4255_v4  ;;  %v4305_v31 = vadd.f32 %v4304_v1, %v4303_v22  ;;  %4868 = vrot.lane.b32.xlu2 %v5963_v36, %s5786_s5  ;;  %v4361_v39 = vpop.permute.xlu0 %4360  ;;  %v4318_v40 = vrot.slane %v4317_v51, 4 }
 0x47d   : > { %v4363_v2 = vpop.permute.xlu1 %4362  ;;  %v4312_v30 = vadd.f32 %v4311_v56, %v4310_v16  ;;  %v4330_v8 = vadd.f32 %v4329_v48, %v4328_v43 }
 0x47e   : > { %v4306_v35 = vrot.slane %v4305_v31, 2  ;;  %v8443_v62 = vpop.permute.xlu2 %4466  ;;  %v4319_v9 = vadd.f32 %v4318_v40, %v4317_v51  ;;  %v4377_v47 = vsel %vm4376_vm8, %v4361_v39, %v4363_v2  ;;  %v4378_v45 = vsel %vm4376_vm8, %v4363_v2, %v8391_v50 }
 0x47f   : > { %v4313_v11 = vrot.slane %v4312_v30, 2  ;;  %v4345_v44 = vmul.f32 %v4337_v7, %v4330_v8  ;;  %v4395_v15 = vmul.f32 %v4377_v47, %v8942_v21 }
 0x480   : > { %v4307_v18 = vadd.f32 %v4306_v35, %v4305_v31  ;;  %v4320_v59 = vrot.slane %v4319_v9, 2  ;;  %v4396_v31 = vmul.f32 %v4378_v45, %v8943_v27  ;;  %v4432_v45 = vld [vmem:[#allocation7 + $0xa0] ss:$8 sm:$0xf] }
 0x481   : > { %v4314_v5 = vadd.f32 %v4313_v11, %v4312_v30  ;;  %v4352_v43 = vrot.slane %v4345_v44, 5 }
 0x482   : > { %4870 = vrot.lane.b32.xlu0 %v5967_v38, %s5786_s5  ;;  %v4308_v19 = vrot.slane %v4307_v18, 1  ;;  %v4321_v58 = vadd.f32 %v4320_v59, %v4319_v9 }
 0x483   : > { %4872 = vrot.lane.b32.xlu1 %v5993_v54, %s5786_s5  ;;  %v4315_v37 = vrot.slane %v4314_v5, 1 }
 0x484   : > { %4874 = vrot.lane.b32.xlu2 %v5995_v55, %s5786_s5  ;;  %v4367_v20 = vpop.permute.xlu0 %4366  ;;  %v4322_v57 = vrot.slane %v4321_v58, 1  ;;  %v4309_v41 = vadd.f32 %v4308_v19, %v4307_v18 }
 0x485   : > { %v4369_v3 = vpop.permute.xlu1 %4368  ;;  %v4316_v22 = vadd.f32 %v4315_v37, %v4314_v5  ;;  %v4379_v56 = vsel %vm4376_vm8, %v8391_v50, %v4367_v20  ;;  %v4393_v40 = vsel %vm4376_vm8, %v4367_v20, %v4361_v39 }
 0x486   : > { %v4380_v60 = vsel %vm4376_vm8, %v4369_v3, %v8402_v17  ;;  %v8455_v63 = vpop.permute.xlu2 %4472  ;;  %v4323_v61 = vadd.f32 %v4322_v57, %v4321_v58  ;;  %v4342_v1 = vmul.f32 %v4334_v12, %v4309_v41  ;;  %v4397_v7 = vmul.f32 %v4379_v56, %v8944_v26 }
 0x487   : > { %v4399_v13 = vmul.f32 %v4380_v60, %v5955_v32  ;;  %v4343_v25 = vmul.f32 %v4335_v49, %v4316_v22  ;;  %v4398_v8 = vmul.f32 %v4393_v40, %v8926_v53 }
 0x488   : > { %v4344_v42 = vmul.f32 %v4336_v10, %v4323_v61 }
 0x489   : > { %v4403_v23 = vadd.f32 %v4399_v13, %v4395_v15  ;;  %v4350_v4 = vrot.slane %v4343_v25, 7 }
 0x48a   : > { %4960 = vrot.lane.b32.xlu0 %v5941_v28, %s5787_s9  ;;  %v4351_v16 = vrot.slane %v4344_v42, 6 }
 0x48b   : > { %v4404_v51 = vrot.slane %v4403_v23, 4  ;;  %4962 = vrot.lane.b32.xlu1 %v5943_v29, %s5787_s9  ;;  %v4353_v48 = vsel %vm483_vm1, %v4342_v1, %v4350_v4  ;;  %v4435_v1 = vperm.slane %v4432_v45, 1 }
 0x48c   : > { %4964 = vrot.lane.b32.xlu2 %v5959_v34, %s5787_s9  ;;  %v4373_v2 = vpop.permute.xlu0 %4372  ;;  %v4354_v35 = vsel %vm485_vm2, %v4351_v16, %v4352_v43  ;;  %v4436_v16 = vperm.slane %v4432_v45, 2 }
 0x48d   : > { %v4405_v0 = vadd.f32 %v4404_v51, %v4403_v23  ;;  %v4381_v30 = vsel %vm4376_vm8, %v8402_v17, %v4373_v2  ;;  %v4375_v9 = vpop.permute.xlu1 %4374  ;;  %v4355_v18 = vsel %vm487_vm3, %v4353_v48, %v4354_v35  ;;  %v4434_v48 = vperm.slane %v4432_v45, 0 }
 0x48e   : > { %v4400_v11 = vmul.f32 %v4381_v30, %v5957_v33  ;;  %v4382_v50 = vsel %vm4376_vm8, %v4373_v2, %v4375_v9  ;;  %v4394_v39 = vsel %vm4376_vm8, %v4375_v9, %v4369_v3  ;;  %v8478_v59 = vpop.permute.xlu2 %4562  ;;  %5434 = vst.msk [vmem:[%s6027_s21 + $0x87] ss:$8 sm:$0xf] %vm6020_vm4, %v4355_v18 }
 0x48f   : > { %v4401_v17 = vmul.f32 %v4382_v50, %v5985_v46  ;;  %v4402_v19 = vmul.f32 %v4394_v39, %v8892_v24  ;;  %v4406_v5 = vrot.slane %v4405_v0, 2 }
 0x490   : > { %v4410_v58 = vadd.f32 %v4400_v11, %v4396_v31  ;;  %v4437_v31 = vperm.slane %v4432_v45, 3 }
 0x491   : > { %v4417_v47 = vadd.f32 %v4401_v17, %v4397_v7  ;;  %v4424_v20 = vadd.f32 %v4402_v19, %v4398_v8  ;;  %v4407_v57 = vadd.f32 %v4406_v5, %v4405_v0 }
 0x492   : > { %v4411_v49 = vrot.slane %v4410_v58, 4  ;;  %4966 = vrot.lane.b32.xlu0 %v8893_v14, %s5787_s9 }
 0x493   : > { %v4418_v10 = vrot.slane %v4417_v47, 4  ;;  %v4425_v37 = vrot.slane %v4424_v20, 4  ;;  %4968 = vrot.lane.b32.xlu1 %v5963_v36, %s5787_s9  ;;  %v4408_v25 = vrot.slane %v4407_v57, 1 }
 0x494   : > { %v4412_v3 = vadd.f32 %v4411_v49, %v4410_v58  ;;  %4970 = vrot.lane.b32.xlu2 %v5967_v38, %s5787_s9  ;;  %v4463_v44 = vpop.permute.xlu0 %4462  ;;  %v4493_v49 = vsel %vm4476_vm9, %v8443_v62, %v8422_v6 }
 0x495   : > { %v4419_v12 = vadd.f32 %v4418_v10, %v4417_v47  ;;  %v4426_v15 = vadd.f32 %v4425_v37, %v4424_v20  ;;  %v4465_v60 = vpop.permute.xlu1 %4464  ;;  %v4477_v51 = vsel %vm4476_vm9, %v8422_v6, %v4463_v44  ;;  %v4409_v35 = vadd.f32 %v4408_v25, %v4407_v57 }
 0x496   : > { %v4413_v41 = vrot.slane %v4412_v3, 2  ;;  %v8493_v22 = vpop.permute.xlu2 %4570  ;;  %v4478_v2 = vsel %vm4476_vm9, %v4463_v44, %v4465_v60  ;;  %v4495_v11 = vmul.f32 %v4477_v51, %v8942_v21  ;;  %v4498_v25 = vmul.f32 %v4493_v49, %v8926_v53 }
 0x497   : > { %v4420_v61 = vrot.slane %v4419_v12, 2  ;;  %v4427_v13 = vrot.slane %v4426_v15, 2  ;;  %v4496_v7 = vmul.f32 %v4478_v2, %v8943_v27  ;;  %v4442_v10 = vmul.f32 %v4434_v48, %v4409_v35 }
 0x498   : > { %v4414_v42 = vadd.f32 %v4413_v41, %v4412_v3 }
 0x499   : > { %v4421_v23 = vadd.f32 %v4420_v61, %v4419_v12  ;;  %v4428_v43 = vadd.f32 %v4427_v13, %v4426_v15  ;;  %v4479_v61 = vsel %vm4476_vm9, %v4465_v60, %v8443_v62 }
 0x49a   : > { %v4415_v4 = vrot.slane %v4414_v42, 1  ;;  %4972 = vrot.lane.b32.xlu0 %v5993_v54, %s5787_s9 }
 0x49b   : > { %v4422_v56 = vrot.slane %v4421_v23, 1  ;;  %v4429_v40 = vrot.slane %v4428_v43, 1  ;;  %4974 = vrot.lane.b32.xlu1 %v5995_v55, %s5787_s9 }
 0x49c   : > { %v4416_v0 = vadd.f32 %v4415_v4, %v4414_v42  ;;  %5060 = vrot.lane.b32.xlu2 %v5941_v28, %s5788_s18  ;;  %v4469_v30 = vpop.permute.xlu0 %4468 }
 0x49d   : > { %v4423_v9 = vadd.f32 %v4422_v56, %v4421_v23  ;;  %v4430_v18 = vadd.f32 %v4429_v40, %v4428_v43  ;;  %v4471_v50 = vpop.permute.xlu1 %4470 }
 0x49e   : > { %v4443_v39 = vmul.f32 %v4435_v1, %v4416_v0  ;;  %v4480_v8 = vsel %vm4476_vm9, %v4469_v30, %v4471_v50  ;;  %v4481_v17 = vsel %vm4476_vm9, %v4471_v50, %v8455_v63  ;;  %v8509_v19 = vpop.permute.xlu2 %4576  ;;  %v4532_v50 = vld [vmem:[#allocation7 + $0xa1] ss:$8 sm:$0xf] }
 0x49f   : > { %v4444_v5 = vmul.f32 %v4436_v16, %v4423_v9  ;;  %v4445_v58 = vmul.f32 %v4437_v31, %v4430_v18  ;;  %v4499_v47 = vmul.f32 %v4480_v8, %v5955_v32  ;;  %v4500_v20 = vmul.f32 %v4481_v17, %v5957_v33 }
 0x4a0   : > { %v4450_v37 = vrot.slane %v4443_v39, 7  ;;  %v4584_v45 = vsel %vm4578_vm10, %v8509_v19, %v8478_v59  ;;  %v4497_v16 = vmul.f32 %v4479_v61, %v8944_v26  ;;  %v4534_v61 = vperm.slane %v4532_v50, 0 }
 0x4a1   : > { %v4451_v57 = vrot.slane %v4444_v5, 6  ;;  %v4452_v3 = vrot.slane %v4445_v58, 5  ;;  %v4503_v44 = vadd.f32 %v4499_v47, %v4495_v11  ;;  %v4510_v12 = vadd.f32 %v4500_v20, %v4496_v7 }
 0x4a2   : > { %v4453_v15 = vsel %vm483_vm1, %v4442_v10, %v4450_v37  ;;  %5062 = vrot.lane.b32.xlu0 %v5943_v29, %s5788_s18  ;;  %v4602_v35 = vmul.f32 %v4584_v45, %v8892_v24  ;;  %v4535_v47 = vperm.slane %v4532_v50, 1  ;;  %v4537_v45 = vperm.slane %v4532_v50, 3 }
 0x4a3   : > { %v4454_v41 = vsel %vm485_vm2, %v4451_v57, %v4452_v3  ;;  %v4504_v13 = vrot.slane %v4503_v44, 4  ;;  %v4511_v6 = vrot.slane %v4510_v12, 4  ;;  %5064 = vrot.lane.b32.xlu1 %v5959_v34, %s5788_s18 }
 0x4a4   : > { %v4455_v42 = vsel %vm487_vm3, %v4453_v15, %v4454_v41  ;;  %5066 = vrot.lane.b32.xlu2 %v8893_v14, %s5788_s18  ;;  %v4475_v23 = vpop.permute.xlu0 %4474 }
 0x4a5   : > { %5435 = vst.msk [vmem:[%s6027_s21 + $0xa0] ss:$8 sm:$0xf] %vm6020_vm4, %v4455_v42  ;;  %v4505_v62 = vadd.f32 %v4504_v13, %v4503_v44  ;;  %v4512_v60 = vadd.f32 %v4511_v6, %v4510_v12  ;;  %v4482_v43 = vsel %vm4476_vm9, %v8455_v63, %v4475_v23  ;;  %v4494_v1 = vsel %vm4476_vm9, %v4475_v23, %v4469_v30  ;;  %v4561_v4 = vpop.permute.xlu1 %4560 }
 0x4a6   : > { %v4501_v51 = vmul.f32 %v4482_v43, %v5985_v46  ;;  %v4502_v31 = vmul.f32 %v4494_v1, %v8892_v24  ;;  %v4581_v56 = vsel %vm4578_vm10, %v8493_v22, %v4561_v4  ;;  %v8542_v40 = vpop.permute.xlu2 %4666  ;;  %v4536_v42 = vperm.slane %v4532_v50, 2 }
 0x4a7   : > { %v4506_v2 = vrot.slane %v4505_v62, 2  ;;  %v4513_v48 = vrot.slane %v4512_v60, 2  ;;  %v4598_v63 = vmul.f32 %v4581_v56, %v8926_v53 }
 0x4a8   : > { %v4517_v0 = vadd.f32 %v4501_v51, %v4497_v16  ;;  %v4524_v30 = vadd.f32 %v4502_v31, %v4498_v25 }
 0x4a9   : > { %v4507_v9 = vadd.f32 %v4506_v2, %v4505_v62  ;;  %v4514_v18 = vadd.f32 %v4513_v48, %v4512_v60  ;;  %v4624_v11 = vadd.f32 %v4602_v35, %v4598_v63 }
 0x4aa   : > { %v4518_v39 = vrot.slane %v4517_v0, 4  ;;  %v4525_v7 = vrot.slane %v4524_v30, 4  ;;  %5068 = vrot.lane.b32.xlu0 %v5963_v36, %s5788_s18 }
 0x4ab   : > { %v4515_v8 = vrot.slane %v4514_v18, 1  ;;  %5070 = vrot.lane.b32.xlu1 %v5967_v38, %s5788_s18  ;;  %v4508_v20 = vrot.slane %v4507_v9, 1  ;;  %v4625_v10 = vrot.slane %v4624_v11, 4 }
 0x4ac   : > { %v4519_v17 = vadd.f32 %v4518_v39, %v4517_v0  ;;  %v4526_v5 = vadd.f32 %v4525_v7, %v4524_v30  ;;  %5072 = vrot.lane.b32.xlu2 %v5993_v54, %s5788_s18  ;;  %v4567_v58 = vpop.permute.xlu0 %4566 }
 0x4ad   : > { %v4516_v49 = vadd.f32 %v4515_v8, %v4514_v18  ;;  %v4569_v37 = vpop.permute.xlu1 %4568  ;;  %v4593_v41 = vsel %vm4578_vm10, %v4561_v4, %v4567_v58  ;;  %v4509_v13 = vadd.f32 %v4508_v20, %v4507_v9  ;;  %v4626_v25 = vadd.f32 %v4625_v10, %v4624_v11 }
 0x4ae   : > { %v4520_v57 = vrot.slane %v4519_v17, 2  ;;  %v4527_v3 = vrot.slane %v4526_v5, 2  ;;  %v8552_v44 = vpop.permute.xlu2 %4672  ;;  %v4595_v60 = vmul.f32 %v4593_v41, %v8942_v21  ;;  %v4579_v4 = vsel %vm4578_vm10, %v4567_v58, %v4569_v37 }
 0x4af   : > { %v4543_v6 = vmul.f32 %v4535_v47, %v4516_v49  ;;  %v4580_v16 = vsel %vm4578_vm10, %v4569_v37, %v8493_v22  ;;  %v4542_v31 = vmul.f32 %v4534_v61, %v4509_v13  ;;  %v4627_v2 = vrot.slane %v4626_v25, 2 }
 0x4b0   : > { %v4521_v12 = vadd.f32 %v4520_v57, %v4519_v17  ;;  %v4528_v15 = vadd.f32 %v4527_v3, %v4526_v5  ;;  %v4596_v22 = vmul.f32 %v4579_v4, %v8943_v27 }
 0x4b1   : > { %v4550_v56 = vrot.slane %v4543_v6, 7  ;;  %v4628_v8 = vadd.f32 %v4627_v2, %v4626_v25  ;;  %v4632_v6 = vld [vmem:[#allocation7 + $0xa2] ss:$8 sm:$0xf] }
 0x4b2   : > { %v4522_v23 = vrot.slane %v4521_v12, 1  ;;  %v4529_v62 = vrot.slane %v4528_v15, 1  ;;  %5074 = vrot.lane.b32.xlu0 %v5995_v55, %s5788_s18 }
 0x4b3   : > { %5160 = vrot.lane.b32.xlu1 %v5941_v28, %s5789_s23  ;;  %v4553_v5 = vsel %vm483_vm1, %v4542_v31, %v4550_v56  ;;  %v4636_v31 = vperm.slane %v4632_v6, 2 }
 0x4b4   : > { %v4523_v43 = vadd.f32 %v4522_v23, %v4521_v12  ;;  %v4530_v1 = vadd.f32 %v4529_v62, %v4528_v15  ;;  %5162 = vrot.lane.b32.xlu2 %v5943_v29, %s5789_s23  ;;  %v4573_v51 = vpop.permute.xlu0 %4572  ;;  %v4597_v29 = vmul.f32 %v4580_v16, %v8944_v26  ;;  %v4629_v15 = vrot.slane %v4628_v8, 1 }
 0x4b5   : > { %v4594_v48 = vsel %vm4578_vm10, %v8478_v59, %v4573_v51  ;;  %v4575_v35 = vpop.permute.xlu1 %4574  ;;  %v4635_v16 = vperm.slane %v4632_v6, 1 }
 0x4b6   : > { %v4544_v63 = vmul.f32 %v4536_v42, %v4523_v43  ;;  %v4545_v28 = vmul.f32 %v4537_v45, %v4530_v1  ;;  %v4599_v0 = vmul.f32 %v4594_v48, %v5955_v32  ;;  %v4582_v30 = vsel %vm4578_vm10, %v4573_v51, %v4575_v35  ;;  %v8569_v9 = vpop.permute.xlu2 %4760 }
 0x4b7   : > { %v4583_v18 = vsel %vm4578_vm10, %v4575_v35, %v8509_v19  ;;  %v4600_v11 = vmul.f32 %v4582_v30, %v5957_v33  ;;  %v4630_v43 = vadd.f32 %v4629_v15, %v4628_v8  ;;  %v4634_v35 = vperm.slane %v4632_v6, 0 }
 0x4b8   : > { %v4551_v59 = vrot.slane %v4544_v63, 6  ;;  %v4552_v50 = vrot.slane %v4545_v28, 5  ;;  %v4603_v39 = vadd.f32 %v4599_v0, %v4595_v60  ;;  %v4601_v7 = vmul.f32 %v4583_v18, %v5985_v46 }
 0x4b9   : > { %v4610_v17 = vadd.f32 %v4600_v11, %v4596_v22  ;;  %v4637_v60 = vperm.slane %v4632_v6, 3 }
 0x4ba   : > { %v4554_v58 = vsel %vm485_vm2, %v4551_v59, %v4552_v50  ;;  %v4604_v47 = vrot.slane %v4603_v39, 4  ;;  %v4617_v20 = vadd.f32 %v4601_v7, %v4597_v29  ;;  %5164 = vrot.lane.b32.xlu0 %v5959_v34, %s5789_s23 }
 0x4bb   : > { %v4555_v19 = vsel %vm487_vm3, %v4553_v5, %v4554_v58  ;;  %v4611_v49 = vrot.slane %v4610_v17, 4  ;;  %5166 = vrot.lane.b32.xlu1 %v8893_v14, %s5789_s23  ;;  %v4645_v30 = vmul.f32 %v4637_v60, %v4630_v43 }
 0x4bc   : > { %5436 = vst.msk [vmem:[%s6027_s21 + $0xa1] ss:$8 sm:$0xf] %vm6020_vm4, %v4555_v19  ;;  %v4605_v10 = vadd.f32 %v4604_v47, %v4603_v39  ;;  %v4618_v37 = vrot.slane %v4617_v20, 4  ;;  %5168 = vrot.lane.b32.xlu2 %v5963_v36, %s5789_s23  ;;  %v4661_v57 = vpop.permute.xlu0 %4660 }
 0x4bd   : > { %v4612_v3 = vadd.f32 %v4611_v49, %v4610_v17  ;;  %v4693_v12 = vsel %vm4678_vm11, %v4661_v57, %v8542_v40  ;;  %v4663_v34 = vpop.permute.xlu1 %4662  ;;  %v4652_v50 = vrot.slane %v4645_v30, 5 }
 0x4be   : > { %v4606_v41 = vrot.slane %v4605_v10, 2  ;;  %v4619_v61 = vadd.f32 %v4618_v37, %v4617_v20  ;;  %v4694_v14 = vsel %vm4678_vm11, %v4663_v34, %v8552_v44  ;;  %v8593_v13 = vpop.permute.xlu2 %4768  ;;  %v4695_v36 = vmul.f32 %v4693_v12, %v8942_v21 }
 0x4bf   : > { %v4613_v25 = vrot.slane %v4612_v3, 2  ;;  %v4699_v23 = vmul.f32 %v4694_v14, %v5955_v32 }
 0x4c0   : > { %v4607_v42 = vadd.f32 %v4606_v41, %v4605_v10  ;;  %v4620_v45 = vrot.slane %v4619_v61, 2 }
 0x4c1   : > { %v4614_v62 = vadd.f32 %v4613_v25, %v4612_v3  ;;  %v4703_v2 = vadd.f32 %v4699_v23, %v4695_v36 }
 0x4c2   : > { %v4608_v1 = vrot.slane %v4607_v42, 1  ;;  %v4621_v4 = vadd.f32 %v4620_v45, %v4619_v61  ;;  %5170 = vrot.lane.b32.xlu0 %v5967_v38, %s5789_s23 }
 0x4c3   : > { %v4615_v51 = vrot.slane %v4614_v62, 1  ;;  %5172 = vrot.lane.b32.xlu1 %v5993_v54, %s5789_s23  ;;  %v4704_v11 = vrot.slane %v4703_v2, 4 }
 0x4c4   : > { %v4622_v56 = vrot.slane %v4621_v4, 1  ;;  %5174 = vrot.lane.b32.xlu2 %v5995_v55, %s5789_s23  ;;  %v4669_v48 = vpop.permute.xlu0 %4668  ;;  %v4609_v63 = vadd.f32 %v4608_v1, %v4607_v42 }
 0x4c5   : > { %v4616_v28 = vadd.f32 %v4615_v51, %v4614_v62  ;;  %v4671_v0 = vpop.permute.xlu1 %4670  ;;  %v4679_v55 = vsel %vm4678_vm11, %v8542_v40, %v4669_v48  ;;  %v4705_v17 = vadd.f32 %v4704_v11, %v4703_v2 }
 0x4c6   : > { %v4623_v22 = vadd.f32 %v4622_v56, %v4621_v4  ;;  %v8603_v29 = vpop.permute.xlu2 %4774  ;;  %v4642_v54 = vmul.f32 %v4634_v35, %v4609_v63  ;;  %v4680_v5 = vsel %vm4678_vm11, %v4669_v48, %v4671_v0  ;;  %v4681_v58 = vsel %vm4678_vm11, %v4671_v0, %v4661_v57  ;;  %v4732_v48 = vld [vmem:[#allocation7 + $0xa3] ss:$8 sm:$0xf] }
 0x4c7   : > { %v4643_v38 = vmul.f32 %v4635_v16, %v4616_v28  ;;  %v4696_v10 = vmul.f32 %v4679_v55, %v8943_v27  ;;  %v4697_v57 = vmul.f32 %v4680_v5, %v8944_v26  ;;  %v4698_v15 = vmul.f32 %v4681_v58, %v8926_v53 }
 0x4c8   : > { %v4644_v18 = vmul.f32 %v4636_v31, %v4623_v22  ;;  %v4706_v61 = vrot.slane %v4705_v17, 2  ;;  %v4735_v28 = vperm.slane %v4732_v48, 1  ;;  %v4736_v30 = vperm.slane %v4732_v48, 2 }
 0x4c9   : > { %v4650_v59 = vrot.slane %v4643_v38, 7  ;;  %v4737_v22 = vperm.slane %v4732_v48, 3 }
 0x4ca   : > { %v4651_v39 = vrot.slane %v4644_v18, 6  ;;  %v4707_v23 = vadd.f32 %v4706_v61, %v4705_v17 }
 0x4cb   : > { %v4653_v7 = vsel %vm483_vm1, %v4642_v54, %v4650_v59  ;;  %v4734_v54 = vperm.slane %v4732_v48, 0 }
 0x4cc   : > { %v4654_v8 = vsel %vm485_vm2, %v4651_v39, %v4652_v50  ;;  %v4675_v47 = vpop.permute.xlu0 %4674  ;;  %v4708_v56 = vrot.slane %v4707_v23, 1 }
 0x4cd   : > { %v4655_v20 = vsel %vm487_vm3, %v4653_v7, %v4654_v8  ;;  %v4682_v19 = vsel %vm4678_vm11, %v8552_v44, %v4675_v47  ;;  %v4677_v49 = vpop.permute.xlu1 %4676 }
 0x4ce   : > { %5437 = vst.msk [vmem:[%s6027_s21 + $0xa2] ss:$8 sm:$0xf] %vm6020_vm4, %v4655_v20  ;;  %v4700_v40 = vmul.f32 %v4682_v19, %v5957_v33  ;;  %v4683_v37 = vsel %vm4678_vm11, %v4675_v47, %v4677_v49  ;;  %v4684_v3 = vsel %vm4678_vm11, %v4677_v49, %v4663_v34  ;;  %v8621_v12 = vpop.permute.xlu2 %4862  ;;  %v4709_v59 = vadd.f32 %v4708_v56, %v4707_v23 }
 0x4cf   : > { %v4701_v44 = vmul.f32 %v4683_v37, %v5985_v46  ;;  %v4702_v41 = vmul.f32 %v4684_v3, %v8892_v24 }
 0x4d0   : > { %v4710_v14 = vadd.f32 %v4700_v40, %v4696_v10  ;;  %v4742_v37 = vmul.f32 %v4734_v54, %v4709_v59 }
 0x4d1   : > { %v4717_v6 = vadd.f32 %v4701_v44, %v4697_v57  ;;  %v4724_v25 = vadd.f32 %v4702_v41, %v4698_v15 }
 0x4d2   : > { %v4711_v42 = vrot.slane %v4710_v14, 4 }
 0x4d3   : > { %v4718_v45 = vrot.slane %v4717_v6, 4  ;;  %v4725_v36 = vrot.slane %v4724_v25, 4 }
 0x4d4   : > { %v4712_v62 = vadd.f32 %v4711_v42, %v4710_v14  ;;  %v4763_v34 = vpop.permute.xlu0 %4762 }
 0x4d5   : > { %v4719_v60 = vadd.f32 %v4718_v45, %v4717_v6  ;;  %v4726_v43 = vadd.f32 %v4725_v36, %v4724_v25  ;;  %v4767_v1 = vpop.permute.xlu1 %4766 }
 0x4d6   : > { %v4713_v4 = vrot.slane %v4712_v62, 2  ;;  %v8627_v16 = vpop.permute.xlu2 %4868  ;;  %v4779_v11 = vsel %vm4778_vm12, %v4767_v1, %v8593_v13  ;;  %v4793_v8 = vsel %vm4778_vm12, %v8569_v9, %v4767_v1 }
 0x4d7   : > { %v4720_v51 = vrot.slane %v4719_v60, 2  ;;  %v4727_v31 = vrot.slane %v4726_v43, 2  ;;  %v4796_v58 = vmul.f32 %v4779_v11, %v8943_v27  ;;  %v4795_v57 = vmul.f32 %v4793_v8, %v8942_v21 }
 0x4d8   : > { %v4714_v2 = vadd.f32 %v4713_v4, %v4712_v62 }
 0x4d9   : > { %v4721_v35 = vadd.f32 %v4720_v51, %v4719_v60  ;;  %v4728_v63 = vadd.f32 %v4727_v31, %v4726_v43 }
 0x4da   : > { %v4715_v0 = vrot.slane %v4714_v2, 1 }
 0x4db   : > { %v4722_v38 = vrot.slane %v4721_v35, 1  ;;  %v4729_v18 = vrot.slane %v4728_v63, 1 }
 0x4dc   : > { %v4716_v50 = vadd.f32 %v4715_v0, %v4714_v2  ;;  %v4771_v39 = vpop.permute.xlu0 %4770 }
 0x4dd   : > { %v4723_v7 = vadd.f32 %v4722_v38, %v4721_v35  ;;  %v4730_v55 = vadd.f32 %v4729_v18, %v4728_v63  ;;  %v4773_v17 = vpop.permute.xlu1 %4772  ;;  %v4780_v6 = vsel %vm4778_vm12, %v8593_v13, %v4771_v39  ;;  %v4781_v45 = vsel %vm4778_vm12, %v4771_v39, %v8569_v9 }
 0x4de   : > { %v4743_v5 = vmul.f32 %v4735_v28, %v4716_v50  ;;  %v4782_v47 = vsel %vm4778_vm12, %v4773_v17, %v8603_v29  ;;  %v8636_v20 = vpop.permute.xlu2 %4874  ;;  %v4794_v10 = vsel %vm4778_vm12, %v4763_v34, %v4773_v17  ;;  %v4797_v43 = vmul.f32 %v4780_v6, %v8944_v26 }
 0x4df   : > { %v4744_v19 = vmul.f32 %v4736_v30, %v4723_v7  ;;  %v4745_v49 = vmul.f32 %v4737_v22, %v4730_v55  ;;  %v4800_v40 = vmul.f32 %v4782_v47, %v5957_v33  ;;  %v4799_v15 = vmul.f32 %v4794_v10, %v5955_v32  ;;  %v4832_v22 = vld [vmem:[#allocation7 + $0xa4] ss:$8 sm:$0xf] }
 0x4e0   : > { %v4750_v3 = vrot.slane %v4743_v5, 7  ;;  %v4798_v31 = vmul.f32 %v4781_v45, %v8926_v53  ;;  %v4835_v50 = vperm.slane %v4832_v22, 1  ;;  %v4894_v55 = vsel %vm4876_vm13, %v8636_v20, %v8627_v16 }
 0x4e1   : > { %v4751_v44 = vrot.slane %v4744_v19, 6  ;;  %v4752_v41 = vrot.slane %v4745_v49, 5  ;;  %v4810_v61 = vadd.f32 %v4800_v40, %v4796_v58  ;;  %v4803_v25 = vadd.f32 %v4799_v15, %v4795_v57 }
 0x4e2   : > { %v4753_v14 = vsel %vm483_vm1, %v4742_v37, %v4750_v3  ;;  %v4834_v47 = vperm.slane %v4832_v22, 0  ;;  %v4902_v49 = vmul.f32 %v4894_v55, %v8892_v24 }
 0x4e3   : > { %v4754_v42 = vsel %vm485_vm2, %v4751_v44, %v4752_v41  ;;  %v4811_v36 = vrot.slane %v4810_v61, 4  ;;  %v4804_v62 = vrot.slane %v4803_v25, 4  ;;  %v4836_v41 = vperm.slane %v4832_v22, 2 }
 0x4e4   : > { %v4755_v23 = vsel %vm487_vm3, %v4753_v14, %v4754_v42  ;;  %v4777_v60 = vpop.permute.xlu0 %4776 }
 0x4e5   : > { %5438 = vst.msk [vmem:[%s6027_s21 + $0xa3] ss:$8 sm:$0xf] %vm6020_vm4, %v4755_v23  ;;  %v4812_v1 = vadd.f32 %v4811_v36, %v4810_v61  ;;  %v4783_v13 = vsel %vm4778_vm12, %v8603_v29, %v4777_v60  ;;  %v4784_v4 = vsel %vm4778_vm12, %v4777_v60, %v4763_v34  ;;  %v4861_v51 = vpop.permute.xlu1 %4860  ;;  %v4805_v9 = vadd.f32 %v4804_v62, %v4803_v25 }
 0x4e6   : > { %v4801_v56 = vmul.f32 %v4783_v13, %v5985_v46  ;;  %v4802_v2 = vmul.f32 %v4784_v4, %v8892_v24  ;;  %v8659_v48 = vpop.permute.xlu2 %4964  ;;  %v4877_v37 = vsel %vm4876_vm13, %v4861_v51, %v8621_v12  ;;  %v4837_v61 = vperm.slane %v4832_v22, 3 }
 0x4e7   : > { %v4813_v35 = vrot.slane %v4812_v1, 2  ;;  %v4806_v63 = vrot.slane %v4805_v9, 2  ;;  %v4895_v25 = vmul.f32 %v4877_v37, %v8942_v21 }
 0x4e8   : > { %v4817_v28 = vadd.f32 %v4801_v56, %v4797_v43  ;;  %v4824_v0 = vadd.f32 %v4802_v2, %v4798_v31 }
 0x4e9   : > { %v4814_v30 = vadd.f32 %v4813_v35, %v4812_v1  ;;  %v4807_v38 = vadd.f32 %v4806_v63, %v4805_v9 }
 0x4ea   : > { %v4818_v29 = vrot.slane %v4817_v28, 4  ;;  %v4825_v34 = vrot.slane %v4824_v0, 4 }
 0x4eb   : > { %v4815_v18 = vrot.slane %v4814_v30, 1  ;;  %v4808_v39 = vrot.slane %v4807_v38, 1 }
 0x4ec   : > { %v4819_v11 = vadd.f32 %v4818_v29, %v4817_v28  ;;  %v4826_v54 = vadd.f32 %v4825_v34, %v4824_v0  ;;  %v4865_v59 = vpop.permute.xlu0 %4864 }
 0x4ed   : > { %v4816_v7 = vadd.f32 %v4815_v18, %v4814_v30  ;;  %v4867_v8 = vpop.permute.xlu1 %4866  ;;  %v4809_v3 = vadd.f32 %v4808_v39, %v4807_v38  ;;  %v4878_v15 = vsel %vm4876_vm13, %v8621_v12, %v4865_v59 }
 0x4ee   : > { %v4820_v17 = vrot.slane %v4819_v11, 2  ;;  %v4827_v5 = vrot.slane %v4826_v54, 2  ;;  %v8664_v58 = vpop.permute.xlu2 %4970  ;;  %v4893_v19 = vsel %vm4876_vm13, %v4867_v8, %v4861_v51  ;;  %v4896_v23 = vmul.f32 %v4878_v15, %v8943_v27 }
 0x4ef   : > { %v4843_v57 = vmul.f32 %v4835_v50, %v4816_v7  ;;  %v4898_v44 = vmul.f32 %v4893_v19, %v8926_v53  ;;  %v4879_v62 = vsel %vm4876_vm13, %v4865_v59, %v4867_v8  ;;  %v4842_v43 = vmul.f32 %v4834_v47, %v4809_v3  ;;  %v4932_v47 = vld [vmem:[#allocation7 + $0xa5] ss:$8 sm:$0xf] }
 0x4f0   : > { %v4821_v10 = vadd.f32 %v4820_v17, %v4819_v11  ;;  %v4828_v40 = vadd.f32 %v4827_v5, %v4826_v54  ;;  %v4897_v2 = vmul.f32 %v4879_v62, %v8944_v26 }
 0x4f1   : > { %v4924_v42 = vadd.f32 %v4902_v49, %v4898_v44  ;;  %v4850_v1 = vrot.slane %v4843_v57, 7  ;;  %v4937_v57 = vperm.slane %v4932_v47, 3 }
 0x4f2   : > { %v4822_v14 = vrot.slane %v4821_v10, 1  ;;  %v4829_v6 = vrot.slane %v4828_v40, 1 }
 0x4f3   : > { %v4925_v13 = vrot.slane %v4924_v42, 4  ;;  %v4853_v18 = vsel %vm483_vm1, %v4842_v43, %v4850_v1 }
 0x4f4   : > { %v4823_v45 = vadd.f32 %v4822_v14, %v4821_v10  ;;  %v4830_v36 = vadd.f32 %v4829_v6, %v4828_v40  ;;  %v4871_v60 = vpop.permute.xlu0 %4870  ;;  %v4935_v6 = vperm.slane %v4932_v47, 1 }
 0x4f5   : > { %v4880_v12 = vsel %vm4876_vm13, %v8627_v16, %v4871_v60  ;;  %v4873_v4 = vpop.permute.xlu1 %4872  ;;  %v4926_v35 = vadd.f32 %v4925_v13, %v4924_v42  ;;  %v4936_v42 = vperm.slane %v4932_v47, 2 }
 0x4f6   : > { %v4844_v51 = vmul.f32 %v4836_v41, %v4823_v45  ;;  %v4845_v31 = vmul.f32 %v4837_v61, %v4830_v36  ;;  %v4899_v9 = vmul.f32 %v4880_v12, %v5955_v32  ;;  %v4881_v56 = vsel %vm4876_vm13, %v4871_v60, %v4873_v4  ;;  %v8685_v38 = vpop.permute.xlu2 %5060 }
 0x4f7   : > { %v4882_v63 = vsel %vm4876_vm13, %v4873_v4, %v8636_v20  ;;  %v4900_v28 = vmul.f32 %v4881_v56, %v5957_v33  ;;  %v4927_v29 = vrot.slane %v4926_v35, 2 }
 0x4f8   : > { %v4851_v0 = vrot.slane %v4844_v51, 6  ;;  %v4852_v30 = vrot.slane %v4845_v31, 5  ;;  %v4903_v22 = vadd.f32 %v4899_v9, %v4895_v25  ;;  %v4901_v16 = vmul.f32 %v4882_v63, %v5985_v46 }
 0x4f9   : > { %v4910_v34 = vadd.f32 %v4900_v28, %v4896_v23  ;;  %v4928_v50 = vadd.f32 %v4927_v29, %v4926_v35  ;;  %v4934_v23 = vperm.slane %v4932_v47, 0 }
 0x4fa   : > { %v4854_v11 = vsel %vm485_vm2, %v4851_v0, %v4852_v30  ;;  %v4904_v54 = vrot.slane %v4903_v22, 4  ;;  %v4917_v59 = vadd.f32 %v4901_v16, %v4897_v2 }
 0x4fb   : > { %v4855_v20 = vsel %vm487_vm3, %v4853_v18, %v4854_v11  ;;  %v4911_v39 = vrot.slane %v4910_v34, 4  ;;  %v4929_v19 = vrot.slane %v4928_v50, 1 }
 0x4fc   : > { %5439 = vst.msk [vmem:[%s6027_s21 + $0xa4] ss:$8 sm:$0xf] %vm6020_vm4, %v4855_v20  ;;  %v4905_v7 = vadd.f32 %v4904_v54, %v4903_v22  ;;  %v4918_v55 = vrot.slane %v4917_v59, 4  ;;  %v4961_v8 = vpop.permute.xlu0 %4960 }
 0x4fd   : > { %v4912_v17 = vadd.f32 %v4911_v39, %v4910_v34  ;;  %v4963_v5 = vpop.permute.xlu1 %4962  ;;  %v4930_v44 = vadd.f32 %v4929_v19, %v4928_v50 }
 0x4fe   : > { %v4906_v49 = vrot.slane %v4905_v7, 2  ;;  %v4919_v10 = vadd.f32 %v4918_v55, %v4917_v59  ;;  %v8693_v14 = vpop.permute.xlu2 %5066  ;;  %v4977_v43 = vsel %vm4976_vm14, %v4961_v8, %v4963_v5  ;;  %v4978_v0 = vsel %vm4976_vm14, %v4963_v5, %v8659_v48 }
 0x4ff   : > { %v4913_v40 = vrot.slane %v4912_v17, 2  ;;  %v4945_v13 = vmul.f32 %v4937_v57, %v4930_v44  ;;  %v4995_v9 = vmul.f32 %v4977_v43, %v8942_v21  ;;  %v4996_v20 = vmul.f32 %v4978_v0, %v8943_v27  ;;  %v5032_v43 = vld [vmem:[#allocation7 + $0xa6] ss:$8 sm:$0xf] }
 0x500   : > { %v4907_v37 = vadd.f32 %v4906_v49, %v4905_v7  ;;  %v4920_v3 = vrot.slane %v4919_v10, 2 }
 0x501   : > { %v4914_v15 = vadd.f32 %v4913_v40, %v4912_v17  ;;  %v4952_v63 = vrot.slane %v4945_v13, 5 }
 0x502   : > { %v4908_v41 = vrot.slane %v4907_v37, 1  ;;  %v4921_v61 = vadd.f32 %v4920_v3, %v4919_v10 }
 0x503   : > { %v4915_v25 = vrot.slane %v4914_v15, 1 }
 0x504   : > { %v4922_v45 = vrot.slane %v4921_v61, 1  ;;  %v4967_v36 = vpop.permute.xlu0 %4966  ;;  %v4909_v62 = vadd.f32 %v4908_v41, %v4907_v37 }
 0x505   : > { %v4916_v60 = vadd.f32 %v4915_v25, %v4914_v15  ;;  %v4969_v1 = vpop.permute.xlu1 %4968  ;;  %v4979_v29 = vsel %vm4976_vm14, %v8659_v48, %v4967_v36  ;;  %v4993_v34 = vsel %vm4976_vm14, %v4967_v36, %v4961_v8 }
 0x506   : > { %v4923_v12 = vadd.f32 %v4922_v45, %v4921_v61  ;;  %v4980_v51 = vsel %vm4976_vm14, %v4969_v1, %v8664_v58  ;;  %v4942_v2 = vmul.f32 %v4934_v23, %v4909_v62  ;;  %v8707_v11 = vpop.permute.xlu2 %5072  ;;  %v4997_v17 = vmul.f32 %v4979_v29, %v8944_v26 }
 0x507   : > { %v4943_v4 = vmul.f32 %v4935_v6, %v4916_v60  ;;  %v4999_v56 = vmul.f32 %v4980_v51, %v5955_v32  ;;  %v4998_v5 = vmul.f32 %v4993_v34, %v8926_v53  ;;  %v5036_v51 = vperm.slane %v5032_v43, 2 }
 0x508   : > { %v4944_v31 = vmul.f32 %v4936_v42, %v4923_v12  ;;  %v5035_v12 = vperm.slane %v5032_v43, 1 }
 0x509   : > { %v4950_v35 = vrot.slane %v4943_v4, 7  ;;  %v5003_v30 = vadd.f32 %v4999_v56, %v4995_v9  ;;  %v5037_v9 = vperm.slane %v5032_v43, 3 }
 0x50a   : > { %v4951_v28 = vrot.slane %v4944_v31, 6 }
 0x50b   : > { %v4953_v22 = vsel %vm483_vm1, %v4942_v2, %v4950_v35  ;;  %v5004_v18 = vrot.slane %v5003_v30, 4 }
 0x50c   : > { %v4954_v16 = vsel %vm485_vm2, %v4951_v28, %v4952_v63  ;;  %v4973_v54 = vpop.permute.xlu0 %4972  ;;  %v5034_v63 = vperm.slane %v5032_v43, 0 }
 0x50d   : > { %v4955_v59 = vsel %vm487_vm3, %v4953_v22, %v4954_v16  ;;  %v4981_v50 = vsel %vm4976_vm14, %v8664_v58, %v4973_v54  ;;  %v4975_v39 = vpop.permute.xlu1 %4974  ;;  %v5005_v7 = vadd.f32 %v5004_v18, %v5003_v30 }
 0x50e   : > { %5440 = vst.msk [vmem:[%s6027_s21 + $0xa5] ss:$8 sm:$0xf] %vm6020_vm4, %v4955_v59  ;;  %v5000_v48 = vmul.f32 %v4981_v50, %v5957_v33  ;;  %v4982_v55 = vsel %vm4976_vm14, %v4973_v54, %v4975_v39  ;;  %v4994_v8 = vsel %vm4976_vm14, %v4975_v39, %v4969_v1  ;;  %v8723_v45 = vpop.permute.xlu2 %5162 }
 0x50f   : > { %v5001_v47 = vmul.f32 %v4982_v55, %v5985_v46  ;;  %v5002_v19 = vmul.f32 %v4994_v8, %v8892_v24  ;;  %v5006_v58 = vrot.slane %v5005_v7, 2 }
 0x510   : > { %v5010_v49 = vadd.f32 %v5000_v48, %v4996_v20 }
 0x511   : > { %v5017_v10 = vadd.f32 %v5001_v47, %v4997_v17  ;;  %v5024_v40 = vadd.f32 %v5002_v19, %v4998_v5  ;;  %v5007_v15 = vadd.f32 %v5006_v58, %v5005_v7 }
 0x512   : > { %v5011_v37 = vrot.slane %v5010_v49, 4 }
 0x513   : > { %v5018_v3 = vrot.slane %v5017_v10, 4  ;;  %v5025_v57 = vrot.slane %v5024_v40, 4  ;;  %v5008_v62 = vrot.slane %v5007_v15, 1 }
 0x514   : > { %v5012_v44 = vadd.f32 %v5011_v37, %v5010_v49  ;;  %v5063_v41 = vpop.permute.xlu0 %5062  ;;  %v5093_v49 = vsel %vm5076_vm15, %v8693_v14, %v8685_v38 }
 0x515   : > { %v5019_v61 = vadd.f32 %v5018_v3, %v5017_v10  ;;  %v5026_v6 = vadd.f32 %v5025_v57, %v5024_v40  ;;  %v5065_v25 = vpop.permute.xlu1 %5064  ;;  %v5077_v31 = vsel %vm5076_vm15, %v8685_v38, %v5063_v41  ;;  %v5009_v28 = vadd.f32 %v5008_v62, %v5007_v15 }
 0x516   : > { %v5013_v42 = vrot.slane %v5012_v44, 2  ;;  %v5078_v35 = vsel %vm5076_vm15, %v5063_v41, %v5065_v25  ;;  %v5095_v29 = vmul.f32 %v5077_v31, %v8942_v21  ;;  %v8735_v17 = vpop.permute.xlu2 %5168  ;;  %v5079_v37 = vsel %vm5076_vm15, %v5065_v25, %v8693_v14 }
 0x517   : > { %v5020_v36 = vrot.slane %v5019_v61, 2  ;;  %v5027_v23 = vrot.slane %v5026_v6, 2  ;;  %v5096_v54 = vmul.f32 %v5078_v35, %v8943_v27  ;;  %v5042_v55 = vmul.f32 %v5034_v63, %v5009_v28 }
 0x518   : > { %v5014_v60 = vadd.f32 %v5013_v42, %v5012_v44  ;;  %v5097_v14 = vmul.f32 %v5079_v37, %v8944_v26 }
 0x519   : > { %v5021_v1 = vadd.f32 %v5020_v36, %v5019_v61  ;;  %v5028_v13 = vadd.f32 %v5027_v23, %v5026_v6  ;;  %v5098_v36 = vmul.f32 %v5093_v49, %v8926_v53 }
 0x51a   : > { %v5015_v4 = vrot.slane %v5014_v60, 1 }
 0x51b   : > { %v5022_v56 = vrot.slane %v5021_v1, 1  ;;  %v5029_v2 = vrot.slane %v5028_v13, 1 }
 0x51c   : > { %v5016_v0 = vadd.f32 %v5015_v4, %v5014_v60  ;;  %v5069_v30 = vpop.permute.xlu0 %5068 }
 0x51d   : > { %v5023_v22 = vadd.f32 %v5022_v56, %v5021_v1  ;;  %v5030_v16 = vadd.f32 %v5029_v2, %v5028_v13  ;;  %v5071_v34 = vpop.permute.xlu1 %5070 }
 0x51e   : > { %v5043_v18 = vmul.f32 %v5035_v12, %v5016_v0  ;;  %v5080_v59 = vsel %vm5076_vm15, %v5069_v30, %v5071_v34  ;;  %v5081_v20 = vsel %vm5076_vm15, %v5071_v34, %v8707_v11  ;;  %v5132_v12 = vld [vmem:[#allocation7 + $0xa7] ss:$8 sm:$0xf]  ;;  %v5175_v4 = vpop.permute.xlu2 %5174 }
 0x51f   : > { %v5044_v50 = vmul.f32 %v5036_v51, %v5023_v22  ;;  %v5045_v39 = vmul.f32 %v5037_v9, %v5030_v16  ;;  %v5099_v7 = vmul.f32 %v5080_v59, %v5955_v32  ;;  %v5100_v48 = vmul.f32 %v5081_v20, %v5957_v33 }
 0x520   : > { %v5050_v8 = vrot.slane %v5043_v18, 7  ;;  %v5135_v63 = vperm.slane %v5132_v12, 1  ;;  %v5194_v0 = vsel %vm5176_vm5, %v5175_v4, %v8735_v17 }
 0x521   : > { %v5051_v5 = vrot.slane %v5044_v50, 6  ;;  %v5052_v47 = vrot.slane %v5045_v39, 5  ;;  %v5103_v19 = vadd.f32 %v5099_v7, %v5095_v29  ;;  %v5110_v58 = vadd.f32 %v5100_v48, %v5096_v54 }
 0x522   : > { %v5053_v10 = vsel %vm483_vm1, %v5042_v55, %v5050_v8  ;;  %v5202_v18 = vmul.f32 %v5194_v0, %v8892_v24  ;;  %v5136_v39 = vperm.slane %v5132_v12, 2  ;;  %v5137_v48 = vperm.slane %v5132_v12, 3 }
 0x523   : > { %v5054_v40 = vsel %vm485_vm2, %v5051_v5, %v5052_v47  ;;  %v5104_v3 = vrot.slane %v5103_v19, 4  ;;  %v5111_v57 = vrot.slane %v5110_v58, 4  ;;  %v5134_v47 = vperm.slane %v5132_v12, 0 }
 0x524   : > { %v5055_v15 = vsel %vm487_vm3, %v5053_v10, %v5054_v40  ;;  %v5075_v44 = vpop.permute.xlu0 %5074 }
 0x525   : > { %5441 = vst.msk [vmem:[%s6027_s21 + $0xa6] ss:$8 sm:$0xf] %vm6020_vm4, %v5055_v15  ;;  %v5105_v41 = vadd.f32 %v5104_v3, %v5103_v19  ;;  %v5112_v61 = vadd.f32 %v5111_v57, %v5110_v58  ;;  %v5082_v38 = vsel %vm5076_vm15, %v8707_v11, %v5075_v44  ;;  %v5094_v6 = vsel %vm5076_vm15, %v5075_v44, %v5069_v30  ;;  %v5161_v42 = vpop.permute.xlu1 %5160 }
 0x526   : > { %v5101_v25 = vmul.f32 %v5082_v38, %v5985_v46  ;;  %v5102_v23 = vmul.f32 %v5094_v6, %v8892_v24  ;;  %v5177_v7 = vsel %vm5176_vm5, %v5161_v42, %v8723_v45 }
 0x527   : > { %v5106_v62 = vrot.slane %v5105_v41, 2  ;;  %v5113_v60 = vrot.slane %v5112_v61, 2  ;;  %v5195_v10 = vmul.f32 %v5177_v7, %v8942_v21 }
 0x528   : > { %v5117_v43 = vadd.f32 %v5101_v25, %v5097_v14  ;;  %v5124_v1 = vadd.f32 %v5102_v23, %v5098_v36 }
 0x529   : > { %v5114_v13 = vadd.f32 %v5113_v60, %v5112_v61  ;;  %v5107_v31 = vadd.f32 %v5106_v62, %v5105_v41 }
 0x52a   : > { %v5118_v11 = vrot.slane %v5117_v43, 4  ;;  %v5125_v51 = vrot.slane %v5124_v1, 4 }
 0x52b   : > { %v5115_v9 = vrot.slane %v5114_v13, 1  ;;  %v5108_v29 = vrot.slane %v5107_v31, 1 }
 0x52c   : > { %v5119_v56 = vadd.f32 %v5118_v11, %v5117_v43  ;;  %v5126_v2 = vadd.f32 %v5125_v51, %v5124_v1  ;;  %v5165_v35 = vpop.permute.xlu0 %5164 }
 0x52d   : > { %v5116_v28 = vadd.f32 %v5115_v9, %v5114_v13  ;;  %v5167_v30 = vpop.permute.xlu1 %5166  ;;  %v5109_v19 = vadd.f32 %v5108_v29, %v5107_v31  ;;  %v5232_v31 = vld [vmem:[#allocation7 + $0xc0] ss:$8 sm:$0xf] }
 0x52e   : > { %v5120_v22 = vrot.slane %v5119_v56, 2  ;;  %v5127_v16 = vrot.slane %v5126_v2, 2  ;;  %v5193_v34 = vsel %vm5176_vm5, %v5167_v30, %v5161_v42  ;;  %v5179_v3 = vsel %vm5176_vm5, %v5165_v35, %v5167_v30 }
 0x52f   : > { %v5198_v20 = vmul.f32 %v5193_v34, %v8926_v53  ;;  %v5143_v50 = vmul.f32 %v5135_v63, %v5116_v28  ;;  %v5178_v53 = vsel %vm5176_vm5, %v8723_v45, %v5165_v35  ;;  %v5142_v6 = vmul.f32 %v5134_v47, %v5109_v19 }
 0x530   : > { %v5121_v54 = vadd.f32 %v5120_v22, %v5119_v56  ;;  %v5128_v59 = vadd.f32 %v5127_v16, %v5126_v2  ;;  %v5196_v23 = vmul.f32 %v5178_v53, %v8943_v27  ;;  %v5237_v28 = vperm.slane %v5232_v31, 3 }
 0x531   : > { %v5224_v5 = vadd.f32 %v5202_v18, %v5198_v20  ;;  %v5150_v37 = vrot.slane %v5143_v50, 7  ;;  %v5235_v29 = vperm.slane %v5232_v31, 1  ;;  %v5236_v34 = vperm.slane %v5232_v31, 2 }
 0x532   : > { %v5122_v55 = vrot.slane %v5121_v54, 1  ;;  %v5129_v8 = vrot.slane %v5128_v59, 1 }
 0x533   : > { %v5225_v24 = vrot.slane %v5224_v5, 4 }
 0x534   : > { %v5123_v58 = vadd.f32 %v5122_v55, %v5121_v54  ;;  %v5130_v49 = vadd.f32 %v5129_v8, %v5128_v59  ;;  %v5171_v40 = vpop.permute.xlu0 %5170  ;;  %v5234_v59 = vperm.slane %v5232_v31, 0 }
 0x535   : > { %v5180_v57 = vsel %vm5176_vm5, %v8735_v17, %v5171_v40  ;;  %v5173_v15 = vpop.permute.xlu1 %5172  ;;  %v5226_v61 = vadd.f32 %v5225_v24, %v5224_v5  ;;  %v5197_v17 = vmul.f32 %v5179_v3, %v8944_v26 }
 0x536   : > { %v5144_v44 = vmul.f32 %v5136_v39, %v5123_v58  ;;  %v5145_v41 = vmul.f32 %v5137_v48, %v5130_v49  ;;  %v5199_v38 = vmul.f32 %v5180_v57, %v5955_v32  ;;  %v5181_v21 = vsel %vm5176_vm5, %v5171_v40, %v5173_v15 }
 0x537   : > { %v5182_v42 = vsel %vm5176_vm5, %v5173_v15, %v5175_v4  ;;  %v5227_v45 = vrot.slane %v5226_v61, 2  ;;  %v5200_v62 = vmul.f32 %v5181_v21, %v5957_v33  ;;  %v5153_v32 = vsel %vm483_vm1, %v5142_v6, %v5150_v37 }
 0x538   : > { %v5151_v36 = vrot.slane %v5144_v44, 6  ;;  %v5152_v14 = vrot.slane %v5145_v41, 5  ;;  %v5203_v25 = vadd.f32 %v5199_v38, %v5195_v10  ;;  %v5201_v60 = vmul.f32 %v5182_v42, %v5985_v46 }
 0x539   : > { %v5228_v12 = vadd.f32 %v5227_v45, %v5226_v61  ;;  %v5210_v4 = vadd.f32 %v5200_v62, %v5196_v23 }
 0x53a   : > { %v5154_v43 = vsel %vm485_vm2, %v5151_v36, %v5152_v14  ;;  %v5204_v1 = vrot.slane %v5203_v25, 4  ;;  %v5217_v11 = vadd.f32 %v5201_v60, %v5197_v17 }
 0x53b   : > { %v5155_v13 = vsel %vm487_vm3, %v5153_v32, %v5154_v43  ;;  %v5211_v26 = vrot.slane %v5210_v4, 4  ;;  %v5229_v46 = vrot.slane %v5228_v12, 1 }
 0x53c   : > { %5442 = vst.msk [vmem:[%s6027_s21 + $0xa7] ss:$8 sm:$0xf] %vm6020_vm4, %v5155_v13  ;;  %v5205_v27 = vadd.f32 %v5204_v1, %v5203_v25  ;;  %v5218_v51 = vrot.slane %v5217_v11, 4 }
 0x53d   : > { %v5212_v9 = vadd.f32 %v5211_v26, %v5210_v4  ;;  %v5230_v0 = vadd.f32 %v5229_v46, %v5228_v12 }
 0x53e   : > { %v5206_v33 = vrot.slane %v5205_v27, 2  ;;  %v5219_v56 = vadd.f32 %v5218_v51, %v5217_v11 }
 0x53f   : > { %v5213_v35 = vrot.slane %v5212_v9, 2  ;;  %v5245_v20 = vmul.f32 %v5237_v28, %v5230_v0 }
 0x540   : > { %v5207_v2 = vadd.f32 %v5206_v33, %v5205_v27  ;;  %v5220_v63 = vrot.slane %v5219_v56, 2 }
 0x541   : > { %v5214_v22 = vadd.f32 %v5213_v35, %v5212_v9  ;;  %v5252_v8 = vrot.slane %v5245_v20, 5 }
 0x542   : > { %v5208_v30 = vrot.slane %v5207_v2, 1  ;;  %v5221_v16 = vadd.f32 %v5220_v63, %v5219_v56 }
 0x543   : > { %v5215_v18 = vrot.slane %v5214_v22, 1 }
 0x544   : > { %v5222_v54 = vrot.slane %v5221_v16, 1  ;;  %v5209_v50 = vadd.f32 %v5208_v30, %v5207_v2 }
 0x545   : > { %v5216_v39 = vadd.f32 %v5215_v18, %v5214_v22 }
 0x546   : > { %v5223_v7 = vadd.f32 %v5222_v54, %v5221_v16  ;;  %v5242_v5 = vmul.f32 %v5234_v59, %v5209_v50 }
 0x547   : > { %v5243_v48 = vmul.f32 %v5235_v29, %v5216_v39 }
 0x548   : > { %v5244_v55 = vmul.f32 %v5236_v34, %v5223_v7 }
 0x549   : > { %v5250_v47 = vrot.slane %v5243_v48, 7 }
 0x54a   : > { %v5251_v19 = vrot.slane %v5244_v55, 6 }
 0x54b   : > { %v5253_v58 = vsel %vm483_vm1, %v5242_v5, %v5250_v47 }
 0x54c   : > { %v5254_v49 = vsel %vm485_vm2, %v5251_v19, %v5252_v8 }
 0x54d   : > { %v5255_v10 = vsel %vm487_vm3, %v5253_v58, %v5254_v49 }
 0x54e   : > { %5443 = vst.msk [vmem:[%s6027_s21 + $0xc0] ss:$8 sm:$0xf] %vm6020_vm4, %v5255_v10 }
 0x54f   : > { %5690 = shalt.err (!%p5687_p10)
}
 0x550   : > { %s5790_s26 = smov 512   ;;  %s5791_s21 = smov 1024  }
 0x551   : > { %5461 = dma.vmem_to_hbm [thread:$0]  (%p5884_p5), %s5274_s30, 3584, %s5276_s10, %s5261_s16, %s5790_s26, %s5791_s21, %s5764_s4  }
 0x552 PF: > { %s5290_s18 = sand.u32 1, %s5721_s12   ;;  %p8949_p12 = scmp.ge.s32.totalorder %s5733_s15, 2 }
 0x553   : > { %s5291_s23 = scalar_lea.sflag [#allocation4], %s5290_s18 }
 0x554   : > { %p5475_p13 = pnand %p8949_p12, %p5847_p6 }
 0x556   : > { %p5476_p0 = pneg %p5475_p13 }
 0x558   : > { %5716 = dma.done.wait (%p5476_p0), %s5291_s23, 3584  }
 0x559   : > { %5718 = vsyncadd (%p5476_p0), %s5291_s23, 4294963712  ;;  %p17_p3 = scmp.ge.s32.totalorder %s5871_s8, 4   ;;  %s8950_s12 = smov %s5725_s13 }
 0x55a   : > { %s8951_s13 = smov %s5729_s14  ;;  %s8952_s14 = smov %s5880_s11 }
 0x55b   : > { %s8953_s15 = smov %s5871_s8  ;;  %19 = sbr.rel (!%p17_p3) target bundleno = 6 (0x6), region = 181 }
 0x560   :  { %5297 = vsyncpa [#allocation3], 1 }
 0x561   :  { %5299 = vsyncpa [#allocation3 + $0x1], 1 }
 0x562   :  { %5300 = vsyncpa [#allocation6], 1 }
 0x563   :  { %5301 = vsyncpa [#allocation4], 1 }
 0x564   :  { %5303 = vsyncpa [#allocation4 + $0x1], 1 }

</bundles_post_ra>
